<compile_context>
chip_gen: v6e
topology: v6e:2x2x1
jax: 0.10.0
libtpu: 0.0.40
codegen_flags: <defaults>
</compile_context>

<pallas_src>
import functools
import math

import numpy as np

import jax
import jax.numpy as jnp
from jax import lax
from jax.experimental import pallas as pl
from jax.experimental.pallas import tpu as pltpu

# Make the pure-JAX reference use accurate f32 matmuls (parity with the
# in-kernel f32 MXU matmuls).
jax.config.update("jax_default_matmul_precision", "highest")


# ------------------------------ fused kernel --------------------------------

def _fused_kernel(x2d_ref, psel_ref, wih_ref, bl_ref,
                  whh_i_ref, whh_f_ref, whh_g_ref, whh_o_ref,
                  wfc_ref, bfc_ref, sl_ref, sr_ref,
                  w1a_ref, w1b_ref, b1_ref, w2_ref, b2_ref, w3_ref, b3_ref,
                  w4_ref, b4_ref, out_ref, *, T, H, NP, sub_len):

    def dot(a, w):
        return jnp.dot(a, w, preferred_element_type=jnp.float32)

    # ---- time-major + batch-pad gather via constant selection matmul (MXU) --
    # xf row t*NP + (seq*B + b) = x[b, seq, t, :]; padding rows are zero.
    xf = dot(psel_ref[...], x2d_ref[...])                  # (T*NP, D)

    # ---- hoisted input projection: one big matmul for all timesteps ---------
    gx = dot(xf, wih_ref[...]) + bl_ref[...]               # (T*NP, 4H)
    gx3 = gx.reshape(T, NP, 4 * H)                         # tile-aligned view
    gxi = gx3[:, :, 0 * H:1 * H]                           # per-gate, sliced
    gxf = gx3[:, :, 1 * H:2 * H]                           # ONCE (off chain)
    gxg = gx3[:, :, 2 * H:3 * H]
    gxo = gx3[:, :, 3 * H:4 * H]

    whh_i = whh_i_ref[...]
    whh_f = whh_f_ref[...]
    whh_g = whh_g_ref[...]
    whh_o = whh_o_ref[...]

    # ---- unrolled LSTM recurrence: no slicing on the serial chain -----------
    h = jnp.zeros((NP, H), jnp.float32)
    c = jnp.zeros((NP, H), jnp.float32)
    embs = []
    for t in range(T):                                     # fully unrolled
        i_g = jax.nn.sigmoid(gxi[t] + dot(h, whh_i))       # PyTorch gate order
        f_g = jax.nn.sigmoid(gxf[t] + dot(h, whh_f))
        g_g = jnp.tanh(gxg[t] + dot(h, whh_g))
        o_g = jax.nn.sigmoid(gxo[t] + dot(h, whh_o))
        c = f_g * c + i_g * g_g
        h = o_g * jnp.tanh(c)
        if (t + 1) % sub_len == 0:
            embs.append(h)                                 # boundary states

    emb_all = jnp.concatenate(embs, axis=0)                # (n*NP, H) aligned

    # ---- shared fc (Linear(H,64)+ReLU) on all boundary states at once -------
    a_all = jnp.maximum(dot(emb_all, wfc_ref[...]) + bfc_ref[...], 0.0)

    # ---- pair gather via selection matmuls + split first sim layer ----------
    left = dot(sl_ref[...], a_all)                         # (P*B, 64)
    right = dot(sr_ref[...], a_all)                        # (P*B, 64)
    h1 = jnp.maximum(dot(left, w1a_ref[...]) + dot(right, w1b_ref[...])
                     + b1_ref[...], 0.0)                   # (P*B, 64)
    h2 = jnp.maximum(dot(h1, w2_ref[...]) + b2_ref[...], 0.0)   # (P*B, 32)
    h3 = jnp.maximum(dot(h2, w3_ref[...]) + b3_ref[...], 0.0)   # (P*B, 8)

    # Final Linear(8,1)+Sigmoid, lane-dense: (1,8) x (P*B,8)^T -> (1, P*B)
    logits = lax.dot_general(w4_ref[...], h3,
                             dimension_numbers=(((1,), (1,)), ((), ())),
                             preferred_element_type=jnp.float32) + b4_ref[...]
    out_ref[...] = jax.nn.sigmoid(logits)


# ------------------------------ pair bookkeeping -----------------------------

def _pair_order(n):
    """Exact PyTorch pair enumeration order; ((seq, sub_idx), (seq, sub_idx))."""
    pairs = []
    for i in range(n):
        for j in range(i + 1, n):
            pairs.append(((0, i), (0, j)))
        for k in range(n):
            pairs.append(((0, i), (1, k)))
    for i in range(n):
        for j in range(i + 1, n):
            pairs.append(((1, i), (1, j)))
    return tuple(pairs)


def _gather_constants(B, T, n, NP, pairs):
    """Constant 0/1 selection matrices (trace-time constants, MXU gathers)."""
    N = 2 * B
    # time-major + pad: row t*NP + (seq*B + b) picks x2d row b*2T + seq*T + t
    psel = np.zeros((T * NP, N * T), np.float32)
    for t in range(T):
        for seq in range(2):
            for b in range(B):
                psel[t * NP + seq * B + b, b * 2 * T + seq * T + t] = 1.0
    # pair gather: out row p*B + b picks a_all row i*NP + seq*B + b
    P = len(pairs)
    sl = np.zeros((P * B, n * NP), np.float32)
    sr = np.zeros((P * B, n * NP), np.float32)
    for p, (lft, rgt) in enumerate(pairs):
        for b in range(B):
            sl[p * B + b, lft[1] * NP + lft[0] * B + b] = 1.0
            sr[p * B + b, rgt[1] * NP + rgt[0] * B + b] = 1.0
    return jnp.asarray(psel), jnp.asarray(sl), jnp.asarray(sr)


# ------------------------------ model forward -------------------------------

@functools.partial(jax.jit, static_argnums=2)
def model_forward(x, params, sub_len):
    B, two, T, D = x.shape
    assert two == 2 and T % sub_len == 0
    H = params["whh_i"].shape[0]
    n = T // sub_len
    pairs = _pair_order(n)
    P = len(pairs)                                        # == 2*n*n - n
    NP = max(8, -(-2 * B // 8) * 8)                       # padded batch rows

    psel, sl, sr = _gather_constants(B, T, n, NP, pairs)

    # Free contiguous reshape (bitcast) -- no data movement, no extra launch.
    x2d = x.reshape(2 * B * T, D)

    kernel = functools.partial(_fused_kernel, T=T, H=H, NP=NP, sub_len=sub_len)
    vmem = pl.BlockSpec(memory_space=pltpu.MemorySpace.VMEM)

    out_row = pl.pallas_call(
        kernel,
        out_shape=jax.ShapeDtypeStruct((1, P * B), jnp.float32),
        in_specs=[vmem] * 21,
        out_specs=vmem,
    )(x2d, psel,
      params["wih_t"], params["b_lstm"],
      params["whh_i"], params["whh_f"], params["whh_g"], params["whh_o"],
      params["wfc_t"], params["bfc"], sl, sr,
      params["w1a_t"], params["w1b_t"], params["b1"],
      params["w2_t"], params["b2"], params["w3_t"], params["b3"],
      params["w4"], params["b4"])

    # lane index = pair*B + batch  ->  (B, P), matching torch.cat(dim=1)
    return out_row.reshape(P, B).T


# ------------------------------ parameter init -------------------------------

def xavier_normal(key, out_f, in_f):
    std = math.sqrt(2.0 / (in_f + out_f))
    return std * jax.random.normal(key, (out_f, in_f), jnp.float32)


def init_params(key, input_size, hidden_size):
    H = hidden_size
    ks = jax.random.split(key, 9)
    k_lstm = 1.0 / math.sqrt(H)
    wih = jax.random.uniform(ks[0], (4 * H, input_size), jnp.float32, -k_lstm, k_lstm)
    whh = jax.random.uniform(ks[1], (4 * H, H), jnp.float32, -k_lstm, k_lstm)
    bih = jax.random.uniform(ks[2], (4 * H,), jnp.float32, -k_lstm, k_lstm)
    bhh = jax.random.uniform(ks[3], (4 * H,), jnp.float32, -k_lstm, k_lstm)

    wfc = xavier_normal(ks[4], 64, H)            # fc:     Linear(H, 64)
    w1 = xavier_normal(ks[5], 64, 128)           # sim[0]: Linear(128, 64)
    w2 = xavier_normal(ks[6], 32, 64)            # sim[3]: Linear(64, 32)
    w3 = xavier_normal(ks[7], 8, 32)             # sim[6]: Linear(32, 8)
    w4 = xavier_normal(ks[8], 1, 8)              # sim[9]: Linear(8, 1)

    whh_t = whh.T                                # (H, 4H), gate order i,f,g,o
    w1_t = w1.T                                  # (128, 64)
    return {
        "wih_t": wih.T,                                      # (D, 4H)
        "b_lstm": (bih + bhh).reshape(1, 4 * H),             # fused LSTM bias
        "whh_i": whh_t[:, 0 * H:1 * H],                      # per-gate (H, H)
        "whh_f": whh_t[:, 1 * H:2 * H],
        "whh_g": whh_t[:, 2 * H:3 * H],
        "whh_o": whh_t[:, 3 * H:4 * H],
        "wfc_t": wfc.T,                                      # (H, 64)
        "bfc": jnp.zeros((1, 64), jnp.float32),              # init.zeros_
        "w1a_t": w1_t[:64, :],                               # left half (64,64)
        "w1b_t": w1_t[64:, :],                               # right half (64,64)
        "b1": jnp.zeros((1, 64), jnp.float32),
        "w2_t": w2.T, "b2": jnp.zeros((1, 32), jnp.float32),
        "w3_t": w3.T, "b3": jnp.zeros((1, 8), jnp.float32),
        "w4": w4, "b4": jnp.zeros((1, 1), jnp.float32),      # (1,8) trans_b dot
    }


# ------------------------------ pure-JAX reference ---------------------------

def _reference_forward(x, params, sub_len):
    """Faithful (eval-mode) replica of the PyTorch forward, pure JAX."""
    B, _, T, D = x.shape
    H = params["whh_i"].shape[0]
    wih = params["wih_t"]
    whh = jnp.concatenate([params["whh_i"], params["whh_f"],
                           params["whh_g"], params["whh_o"]], axis=1)
    b = params["b_lstm"]

    def lstm(seq_x):                               # (B, T, D) -> (B, T, H)
        def step(carry, xt):
            h, c = carry
            g = xt @ wih + h @ whh + b
            i = jax.nn.sigmoid(g[:, 0 * H:1 * H])
            f = jax.nn.sigmoid(g[:, 1 * H:2 * H])
            gg = jnp.tanh(g[:, 2 * H:3 * H])
            o = jax.nn.sigmoid(g[:, 3 * H:4 * H])
            c = f * c + i * gg
            h = o * jnp.tanh(c)
            return (h, c), h
        init = (jnp.zeros((B, H), jnp.float32), jnp.zeros((B, H), jnp.float32))
        _, hs = lax.scan(step, init, jnp.transpose(seq_x, (1, 0, 2)))
        return jnp.transpose(hs, (1, 0, 2))

    x1 = lstm(x[:, 0])
    x2 = lstm(x[:, 1])
    n = T // sub_len
    e1 = [x1[:, (i + 1) * sub_len - 1, :] for i in range(n)]
    e2 = [x2[:, (i + 1) * sub_len - 1, :] for i in range(n)]

    def fc(v):
        return jnp.maximum(v @ params["wfc_t"] + params["bfc"], 0.0)

    w1_t = jnp.concatenate([params["w1a_t"], params["w1b_t"]], axis=0)

    def sim(v):
        h1 = jnp.maximum(v @ w1_t + params["b1"], 0.0)
        h2 = jnp.maximum(h1 @ params["w2_t"] + params["b2"], 0.0)
        h3 = jnp.maximum(h2 @ params["w3_t"] + params["b3"], 0.0)
        return jax.nn.sigmoid(h3 @ params["w4"].T + params["b4"])

    outs = []
    for i in range(n):
        for j in range(i + 1, n):
            outs.append(sim(jnp.concatenate([fc(e1[i]), fc(e1[j])], axis=1)))
        for k in range(n):
            outs.append(sim(jnp.concatenate([fc(e1[i]), fc(e2[k])], axis=1)))
    for i in range(n):
        for j in range(i + 1, n):
            outs.append(sim(jnp.concatenate([fc(e2[i]), fc(e2[j])], axis=1)))
    return jnp.concatenate(outs, axis=1)


# ----------------------------------- main ------------------------------------

if __name__ == "__main__":
    B, T, D = 2, 8, 8
    hidden_size = 32
    sub_len = 4                      # -> n = 2 subsequences, 2n^2 - n = 6 pairs

    key = jax.random.PRNGKey(0)
    k_x, k_p = jax.random.split(key)
    x = jax.random.normal(k_x, (B, 2, T, D), jnp.float32)
    params = init_params(k_p, D, hidden_size)

    out = model_forward(x, params, sub_len)
    out = jax.block_until_ready(out)

    n = T // sub_len
    expected_pairs = 2 * n * n - n
    assert out.shape == (B, expected_pairs), out.shape
    assert bool(jnp.all(jnp.isfinite(out)))
    assert bool(jnp.all((out >= 0.0) & (out <= 1.0)))   # sigmoid output range

    ref = _reference_forward(x, params, sub_len)
    max_err = float(jnp.max(jnp.abs(out - ref)))
    assert jnp.allclose(out, ref, rtol=2e-2, atol=2e-2), max_err

    print("KERNEL_OK")
</pallas_src>

<mosaic_0001>
module attributes {stable_mosaic.version = 11 : i64} {
  func.func @_fused_kernel(%arg0: memref<32x8xf32, #tpu.memory_space<vmem>>, %arg1: memref<64x32xf32, #tpu.memory_space<vmem>>, %arg2: memref<8x128xf32, #tpu.memory_space<vmem>>, %arg3: memref<1x128xf32, #tpu.memory_space<vmem>>, %arg4: memref<32x32xf32, #tpu.memory_space<vmem>>, %arg5: memref<32x32xf32, #tpu.memory_space<vmem>>, %arg6: memref<32x32xf32, #tpu.memory_space<vmem>>, %arg7: memref<32x32xf32, #tpu.memory_space<vmem>>, %arg8: memref<32x64xf32, #tpu.memory_space<vmem>>, %arg9: memref<1x64xf32, #tpu.memory_space<vmem>>, %arg10: memref<12x16xf32, #tpu.memory_space<vmem>>, %arg11: memref<12x16xf32, #tpu.memory_space<vmem>>, %arg12: memref<64x64xf32, #tpu.memory_space<vmem>>, %arg13: memref<64x64xf32, #tpu.memory_space<vmem>>, %arg14: memref<1x64xf32, #tpu.memory_space<vmem>>, %arg15: memref<64x32xf32, #tpu.memory_space<vmem>>, %arg16: memref<1x32xf32, #tpu.memory_space<vmem>>, %arg17: memref<32x8xf32, #tpu.memory_space<vmem>>, %arg18: memref<1x8xf32, #tpu.memory_space<vmem>>, %arg19: memref<1x8xf32, #tpu.memory_space<vmem>>, %arg20: memref<1x1xf32, #tpu.memory_space<vmem>>, %arg21: memref<1x12xf32, #tpu.memory_space<vmem>>) attributes {dimension_semantics = [], scalar_prefetch = 0 : i64, scratch_operands = 0 : i64, tpu.core_type = #tpu.core_type<tc>} {
    %c0 = arith.constant 0 : index
    %c0_0 = arith.constant 0 : index
    %0 = vector.load %arg1[%c0, %c0_0] : memref<64x32xf32, #tpu.memory_space<vmem>>, vector<64x32xf32>
    %c0_1 = arith.constant 0 : index
    %c0_2 = arith.constant 0 : index
    %1 = vector.load %arg0[%c0_1, %c0_2] : memref<32x8xf32, #tpu.memory_space<vmem>>, vector<32x8xf32>
    %cst = arith.constant dense<0.000000e+00> : vector<64x8xf32>
    %2 = tpu.matmul %0, %1, %cst {dimension_numbers = #tpu.dot_dimension_numbers<[1], [0], [0], [1], [0, 0, 1, 1], [], []>, precision = #tpu.contract_precision<fp32>} : vector<64x32xf32>, vector<32x8xf32>, vector<64x8xf32> -> vector<64x8xf32>
    %c0_3 = arith.constant 0 : index
    %c0_4 = arith.constant 0 : index
    %3 = vector.load %arg2[%c0_3, %c0_4] : memref<8x128xf32, #tpu.memory_space<vmem>>, vector<8x128xf32>
    %cst_5 = arith.constant dense<0.000000e+00> : vector<64x128xf32>
    %4 = tpu.matmul %2, %3, %cst_5 {dimension_numbers = #tpu.dot_dimension_numbers<[1], [0], [0], [1], [0, 0, 1, 1], [], []>, precision = #tpu.contract_precision<fp32>} : vector<64x8xf32>, vector<8x128xf32>, vector<64x128xf32> -> vector<64x128xf32>
    %c0_6 = arith.constant 0 : index
    %c0_7 = arith.constant 0 : index
    %5 = vector.load %arg3[%c0_6, %c0_7] : memref<1x128xf32, #tpu.memory_space<vmem>>, vector<1x128xf32>
    %6 = vector.broadcast %5 : vector<1x128xf32> to vector<64x128xf32>
    %7 = arith.addf %4, %6 : vector<64x128xf32>
    %8 = vector.shape_cast %7 : vector<64x128xf32> to vector<8x8x128xf32>
    %9 = vector.extract_strided_slice %8 {offsets = [0, 0, 0], sizes = [8, 8, 32], strides = [1, 1, 1]} : vector<8x8x128xf32> to vector<8x8x32xf32>
    %10 = vector.extract_strided_slice %8 {offsets = [0, 0, 32], sizes = [8, 8, 32], strides = [1, 1, 1]} : vector<8x8x128xf32> to vector<8x8x32xf32>
    %11 = vector.extract_strided_slice %8 {offsets = [0, 0, 64], sizes = [8, 8, 32], strides = [1, 1, 1]} : vector<8x8x128xf32> to vector<8x8x32xf32>
    %12 = vector.extract_strided_slice %8 {offsets = [0, 0, 96], sizes = [8, 8, 32], strides = [1, 1, 1]} : vector<8x8x128xf32> to vector<8x8x32xf32>
    %c0_8 = arith.constant 0 : index
    %c0_9 = arith.constant 0 : index
    %13 = vector.load %arg4[%c0_8, %c0_9] : memref<32x32xf32, #tpu.memory_space<vmem>>, vector<32x32xf32>
    %c0_10 = arith.constant 0 : index
    %c0_11 = arith.constant 0 : index
    %14 = vector.load %arg5[%c0_10, %c0_11] : memref<32x32xf32, #tpu.memory_space<vmem>>, vector<32x32xf32>
    %c0_12 = arith.constant 0 : index
    %c0_13 = arith.constant 0 : index
    %15 = vector.load %arg6[%c0_12, %c0_13] : memref<32x32xf32, #tpu.memory_space<vmem>>, vector<32x32xf32>
    %c0_14 = arith.constant 0 : index
    %c0_15 = arith.constant 0 : index
    %16 = vector.load %arg7[%c0_14, %c0_15] : memref<32x32xf32, #tpu.memory_space<vmem>>, vector<32x32xf32>
    %cst_16 = arith.constant 0.000000e+00 : f32
    %17 = vector.broadcast %cst_16 : f32 to vector<8x32xf32>
    %cst_17 = arith.constant 0.000000e+00 : f32
    %18 = vector.broadcast %cst_17 : f32 to vector<8x32xf32>
    %19 = vector.extract_strided_slice %9 {offsets = [0, 0, 0], sizes = [1, 8, 32], strides = [1, 1, 1]} : vector<8x8x32xf32> to vector<1x8x32xf32>
    %20 = vector.shape_cast %19 : vector<1x8x32xf32> to vector<8x32xf32>
    %cst_18 = arith.constant dense<0.000000e+00> : vector<8x32xf32>
    %21 = tpu.matmul %17, %13, %cst_18 {dimension_numbers = #tpu.dot_dimension_numbers<[1], [0], [0], [1], [0, 0, 1, 1], [], []>, precision = #tpu.contract_precision<fp32>} : vector<8x32xf32>, vector<32x32xf32>, vector<8x32xf32> -> vector<8x32xf32>
    %22 = arith.addf %20, %21 : vector<8x32xf32>
    %23 = arith.negf %22 : vector<8x32xf32>
    %24 = math.exp %23 : vector<8x32xf32>
    %cst_19 = arith.constant 1.000000e+00 : f32
    %25 = vector.broadcast %cst_19 : f32 to vector<8x32xf32>
    %26 = arith.addf %25, %24 : vector<8x32xf32>
    %27 = arith.divf %25, %26 : vector<8x32xf32>
    %28 = vector.extract_strided_slice %10 {offsets = [0, 0, 0], sizes = [1, 8, 32], strides = [1, 1, 1]} : vector<8x8x32xf32> to vector<1x8x32xf32>
    %29 = vector.shape_cast %28 : vector<1x8x32xf32> to vector<8x32xf32>
    %cst_20 = arith.constant dense<0.000000e+00> : vector<8x32xf32>
    %30 = tpu.matmul %17, %14, %cst_20 {dimension_numbers = #tpu.dot_dimension_numbers<[1], [0], [0], [1], [0, 0, 1, 1], [], []>, precision = #tpu.contract_precision<fp32>} : vector<8x32xf32>, vector<32x32xf32>, vector<8x32xf32> -> vector<8x32xf32>
    %31 = arith.addf %29, %30 : vector<8x32xf32>
    %32 = arith.negf %31 : vector<8x32xf32>
    %33 = math.exp %32 : vector<8x32xf32>
    %cst_21 = arith.constant 1.000000e+00 : f32
    %34 = vector.broadcast %cst_21 : f32 to vector<8x32xf32>
    %35 = arith.addf %34, %33 : vector<8x32xf32>
    %36 = arith.divf %34, %35 : vector<8x32xf32>
    %37 = vector.extract_strided_slice %11 {offsets = [0, 0, 0], sizes = [1, 8, 32], strides = [1, 1, 1]} : vector<8x8x32xf32> to vector<1x8x32xf32>
    %38 = vector.shape_cast %37 : vector<1x8x32xf32> to vector<8x32xf32>
    %cst_22 = arith.constant dense<0.000000e+00> : vector<8x32xf32>
    %39 = tpu.matmul %17, %15, %cst_22 {dimension_numbers = #tpu.dot_dimension_numbers<[1], [0], [0], [1], [0, 0, 1, 1], [], []>, precision = #tpu.contract_precision<fp32>} : vector<8x32xf32>, vector<32x32xf32>, vector<8x32xf32> -> vector<8x32xf32>
    %40 = arith.addf %38, %39 : vector<8x32xf32>
    %41 = math.tanh %40 : vector<8x32xf32>
    %42 = vector.extract_strided_slice %12 {offsets = [0, 0, 0], sizes = [1, 8, 32], strides = [1, 1, 1]} : vector<8x8x32xf32> to vector<1x8x32xf32>
    %43 = vector.shape_cast %42 : vector<1x8x32xf32> to vector<8x32xf32>
    %cst_23 = arith.constant dense<0.000000e+00> : vector<8x32xf32>
    %44 = tpu.matmul %17, %16, %cst_23 {dimension_numbers = #tpu.dot_dimension_numbers<[1], [0], [0], [1], [0, 0, 1, 1], [], []>, precision = #tpu.contract_precision<fp32>} : vector<8x32xf32>, vector<32x32xf32>, vector<8x32xf32> -> vector<8x32xf32>
    %45 = arith.addf %43, %44 : vector<8x32xf32>
    %46 = arith.negf %45 : vector<8x32xf32>
    %47 = math.exp %46 : vector<8x32xf32>
    %cst_24 = arith.constant 1.000000e+00 : f32
    %48 = vector.broadcast %cst_24 : f32 to vector<8x32xf32>
    %49 = arith.addf %48, %47 : vector<8x32xf32>
    %50 = arith.divf %48, %49 : vector<8x32xf32>
    %51 = arith.mulf %36, %18 : vector<8x32xf32>
    %52 = arith.mulf %27, %41 : vector<8x32xf32>
    %53 = arith.addf %51, %52 : vector<8x32xf32>
    %54 = math.tanh %53 : vector<8x32xf32>
    %55 = arith.mulf %50, %54 : vector<8x32xf32>
    %56 = vector.extract_strided_slice %9 {offsets = [1, 0, 0], sizes = [1, 8, 32], strides = [1, 1, 1]} : vector<8x8x32xf32> to vector<1x8x32xf32>
    %57 = vector.shape_cast %56 : vector<1x8x32xf32> to vector<8x32xf32>
    %cst_25 = arith.constant dense<0.000000e+00> : vector<8x32xf32>
    %58 = tpu.matmul %55, %13, %cst_25 {dimension_numbers = #tpu.dot_dimension_numbers<[1], [0], [0], [1], [0, 0, 1, 1], [], []>, precision = #tpu.contract_precision<fp32>} : vector<8x32xf32>, vector<32x32xf32>, vector<8x32xf32> -> vector<8x32xf32>
    %59 = arith.addf %57, %58 : vector<8x32xf32>
    %60 = arith.negf %59 : vector<8x32xf32>
    %61 = math.exp %60 : vector<8x32xf32>
    %cst_26 = arith.constant 1.000000e+00 : f32
    %62 = vector.broadcast %cst_26 : f32 to vector<8x32xf32>
    %63 = arith.addf %62, %61 : vector<8x32xf32>
    %64 = arith.divf %62, %63 : vector<8x32xf32>
    %65 = vector.extract_strided_slice %10 {offsets = [1, 0, 0], sizes = [1, 8, 32], strides = [1, 1, 1]} : vector<8x8x32xf32> to vector<1x8x32xf32>
    %66 = vector.shape_cast %65 : vector<1x8x32xf32> to vector<8x32xf32>
    %cst_27 = arith.constant dense<0.000000e+00> : vector<8x32xf32>
    %67 = tpu.matmul %55, %14, %cst_27 {dimension_numbers = #tpu.dot_dimension_numbers<[1], [0], [0], [1], [0, 0, 1, 1], [], []>, precision = #tpu.contract_precision<fp32>} : vector<8x32xf32>, vector<32x32xf32>, vector<8x32xf32> -> vector<8x32xf32>
    %68 = arith.addf %66, %67 : vector<8x32xf32>
    %69 = arith.negf %68 : vector<8x32xf32>
    %70 = math.exp %69 : vector<8x32xf32>
    %cst_28 = arith.constant 1.000000e+00 : f32
    %71 = vector.broadcast %cst_28 : f32 to vector<8x32xf32>
    %72 = arith.addf %71, %70 : vector<8x32xf32>
    %73 = arith.divf %71, %72 : vector<8x32xf32>
    %74 = vector.extract_strided_slice %11 {offsets = [1, 0, 0], sizes = [1, 8, 32], strides = [1, 1, 1]} : vector<8x8x32xf32> to vector<1x8x32xf32>
    %75 = vector.shape_cast %74 : vector<1x8x32xf32> to vector<8x32xf32>
    %cst_29 = arith.constant dense<0.000000e+00> : vector<8x32xf32>
    %76 = tpu.matmul %55, %15, %cst_29 {dimension_numbers = #tpu.dot_dimension_numbers<[1], [0], [0], [1], [0, 0, 1, 1], [], []>, precision = #tpu.contract_precision<fp32>} : vector<8x32xf32>, vector<32x32xf32>, vector<8x32xf32> -> vector<8x32xf32>
    %77 = arith.addf %75, %76 : vector<8x32xf32>
    %78 = math.tanh %77 : vector<8x32xf32>
    %79 = vector.extract_strided_slice %12 {offsets = [1, 0, 0], sizes = [1, 8, 32], strides = [1, 1, 1]} : vector<8x8x32xf32> to vector<1x8x32xf32>
    %80 = vector.shape_cast %79 : vector<1x8x32xf32> to vector<8x32xf32>
    %cst_30 = arith.constant dense<0.000000e+00> : vector<8x32xf32>
    %81 = tpu.matmul %55, %16, %cst_30 {dimension_numbers = #tpu.dot_dimension_numbers<[1], [0], [0], [1], [0, 0, 1, 1], [], []>, precision = #tpu.contract_precision<fp32>} : vector<8x32xf32>, vector<32x32xf32>, vector<8x32xf32> -> vector<8x32xf32>
    %82 = arith.addf %80, %81 : vector<8x32xf32>
    %83 = arith.negf %82 : vector<8x32xf32>
    %84 = math.exp %83 : vector<8x32xf32>
    %cst_31 = arith.constant 1.000000e+00 : f32
    %85 = vector.broadcast %cst_31 : f32 to vector<8x32xf32>
    %86 = arith.addf %85, %84 : vector<8x32xf32>
    %87 = arith.divf %85, %86 : vector<8x32xf32>
    %88 = arith.mulf %73, %53 : vector<8x32xf32>
    %89 = arith.mulf %64, %78 : vector<8x32xf32>
    %90 = arith.addf %88, %89 : vector<8x32xf32>
    %91 = math.tanh %90 : vector<8x32xf32>
    %92 = arith.mulf %87, %91 : vector<8x32xf32>
    %93 = vector.extract_strided_slice %9 {offsets = [2, 0, 0], sizes = [1, 8, 32], strides = [1, 1, 1]} : vector<8x8x32xf32> to vector<1x8x32xf32>
    %94 = vector.shape_cast %93 : vector<1x8x32xf32> to vector<8x32xf32>
    %cst_32 = arith.constant dense<0.000000e+00> : vector<8x32xf32>
    %95 = tpu.matmul %92, %13, %cst_32 {dimension_numbers = #tpu.dot_dimension_numbers<[1], [0], [0], [1], [0, 0, 1, 1], [], []>, precision = #tpu.contract_precision<fp32>} : vector<8x32xf32>, vector<32x32xf32>, vector<8x32xf32> -> vector<8x32xf32>
    %96 = arith.addf %94, %95 : vector<8x32xf32>
    %97 = arith.negf %96 : vector<8x32xf32>
    %98 = math.exp %97 : vector<8x32xf32>
    %cst_33 = arith.constant 1.000000e+00 : f32
    %99 = vector.broadcast %cst_33 : f32 to vector<8x32xf32>
    %100 = arith.addf %99, %98 : vector<8x32xf32>
    %101 = arith.divf %99, %100 : vector<8x32xf32>
    %102 = vector.extract_strided_slice %10 {offsets = [2, 0, 0], sizes = [1, 8, 32], strides = [1, 1, 1]} : vector<8x8x32xf32> to vector<1x8x32xf32>
    %103 = vector.shape_cast %102 : vector<1x8x32xf32> to vector<8x32xf32>
    %cst_34 = arith.constant dense<0.000000e+00> : vector<8x32xf32>
    %104 = tpu.matmul %92, %14, %cst_34 {dimension_numbers = #tpu.dot_dimension_numbers<[1], [0], [0], [1], [0, 0, 1, 1], [], []>, precision = #tpu.contract_precision<fp32>} : vector<8x32xf32>, vector<32x32xf32>, vector<8x32xf32> -> vector<8x32xf32>
    %105 = arith.addf %103, %104 : vector<8x32xf32>
    %106 = arith.negf %105 : vector<8x32xf32>
    %107 = math.exp %106 : vector<8x32xf32>
    %cst_35 = arith.constant 1.000000e+00 : f32
    %108 = vector.broadcast %cst_35 : f32 to vector<8x32xf32>
    %109 = arith.addf %108, %107 : vector<8x32xf32>
    %110 = arith.divf %108, %109 : vector<8x32xf32>
    %111 = vector.extract_strided_slice %11 {offsets = [2, 0, 0], sizes = [1, 8, 32], strides = [1, 1, 1]} : vector<8x8x32xf32> to vector<1x8x32xf32>
    %112 = vector.shape_cast %111 : vector<1x8x32xf32> to vector<8x32xf32>
    %cst_36 = arith.constant dense<0.000000e+00> : vector<8x32xf32>
    %113 = tpu.matmul %92, %15, %cst_36 {dimension_numbers = #tpu.dot_dimension_numbers<[1], [0], [0], [1], [0, 0, 1, 1], [], []>, precision = #tpu.contract_precision<fp32>} : vector<8x32xf32>, vector<32x32xf32>, vector<8x32xf32> -> vector<8x32xf32>
    %114 = arith.addf %112, %113 : vector<8x32xf32>
    %115 = math.tanh %114 : vector<8x32xf32>
    %116 = vector.extract_strided_slice %12 {offsets = [2, 0, 0], sizes = [1, 8, 32], strides = [1, 1, 1]} : vector<8x8x32xf32> to vector<1x8x32xf32>
    %117 = vector.shape_cast %116 : vector<1x8x32xf32> to vector<8x32xf32>
    %cst_37 = arith.constant dense<0.000000e+00> : vector<8x32xf32>
    %118 = tpu.matmul %92, %16, %cst_37 {dimension_numbers = #tpu.dot_dimension_numbers<[1], [0], [0], [1], [0, 0, 1, 1], [], []>, precision = #tpu.contract_precision<fp32>} : vector<8x32xf32>, vector<32x32xf32>, vector<8x32xf32> -> vector<8x32xf32>
    %119 = arith.addf %117, %118 : vector<8x32xf32>
    %120 = arith.negf %119 : vector<8x32xf32>
    %121 = math.exp %120 : vector<8x32xf32>
    %cst_38 = arith.constant 1.000000e+00 : f32
    %122 = vector.broadcast %cst_38 : f32 to vector<8x32xf32>
    %123 = arith.addf %122, %121 : vector<8x32xf32>
    %124 = arith.divf %122, %123 : vector<8x32xf32>
    %125 = arith.mulf %110, %90 : vector<8x32xf32>
    %126 = arith.mulf %101, %115 : vector<8x32xf32>
    %127 = arith.addf %125, %126 : vector<8x32xf32>
    %128 = math.tanh %127 : vector<8x32xf32>
    %129 = arith.mulf %124, %128 : vector<8x32xf32>
    %130 = vector.extract_strided_slice %9 {offsets = [3, 0, 0], sizes = [1, 8, 32], strides = [1, 1, 1]} : vector<8x8x32xf32> to vector<1x8x32xf32>
    %131 = vector.shape_cast %130 : vector<1x8x32xf32> to vector<8x32xf32>
    %cst_39 = arith.constant dense<0.000000e+00> : vector<8x32xf32>
    %132 = tpu.matmul %129, %13, %cst_39 {dimension_numbers = #tpu.dot_dimension_numbers<[1], [0], [0], [1], [0, 0, 1, 1], [], []>, precision = #tpu.contract_precision<fp32>} : vector<8x32xf32>, vector<32x32xf32>, vector<8x32xf32> -> vector<8x32xf32>
    %133 = arith.addf %131, %132 : vector<8x32xf32>
    %134 = arith.negf %133 : vector<8x32xf32>
    %135 = math.exp %134 : vector<8x32xf32>
    %cst_40 = arith.constant 1.000000e+00 : f32
    %136 = vector.broadcast %cst_40 : f32 to vector<8x32xf32>
    %137 = arith.addf %136, %135 : vector<8x32xf32>
    %138 = arith.divf %136, %137 : vector<8x32xf32>
    %139 = vector.extract_strided_slice %10 {offsets = [3, 0, 0], sizes = [1, 8, 32], strides = [1, 1, 1]} : vector<8x8x32xf32> to vector<1x8x32xf32>
    %140 = vector.shape_cast %139 : vector<1x8x32xf32> to vector<8x32xf32>
    %cst_41 = arith.constant dense<0.000000e+00> : vector<8x32xf32>
    %141 = tpu.matmul %129, %14, %cst_41 {dimension_numbers = #tpu.dot_dimension_numbers<[1], [0], [0], [1], [0, 0, 1, 1], [], []>, precision = #tpu.contract_precision<fp32>} : vector<8x32xf32>, vector<32x32xf32>, vector<8x32xf32> -> vector<8x32xf32>
    %142 = arith.addf %140, %141 : vector<8x32xf32>
    %143 = arith.negf %142 : vector<8x32xf32>
    %144 = math.exp %143 : vector<8x32xf32>
    %cst_42 = arith.constant 1.000000e+00 : f32
    %145 = vector.broadcast %cst_42 : f32 to vector<8x32xf32>
    %146 = arith.addf %145, %144 : vector<8x32xf32>
    %147 = arith.divf %145, %146 : vector<8x32xf32>
    %148 = vector.extract_strided_slice %11 {offsets = [3, 0, 0], sizes = [1, 8, 32], strides = [1, 1, 1]} : vector<8x8x32xf32> to vector<1x8x32xf32>
    %149 = vector.shape_cast %148 : vector<1x8x32xf32> to vector<8x32xf32>
    %cst_43 = arith.constant dense<0.000000e+00> : vector<8x32xf32>
    %150 = tpu.matmul %129, %15, %cst_43 {dimension_numbers = #tpu.dot_dimension_numbers<[1], [0], [0], [1], [0, 0, 1, 1], [], []>, precision = #tpu.contract_precision<fp32>} : vector<8x32xf32>, vector<32x32xf32>, vector<8x32xf32> -> vector<8x32xf32>
    %151 = arith.addf %149, %150 : vector<8x32xf32>
    %152 = math.tanh %151 : vector<8x32xf32>
    %153 = vector.extract_strided_slice %12 {offsets = [3, 0, 0], sizes = [1, 8, 32], strides = [1, 1, 1]} : vector<8x8x32xf32> to vector<1x8x32xf32>
    %154 = vector.shape_cast %153 : vector<1x8x32xf32> to vector<8x32xf32>
    %cst_44 = arith.constant dense<0.000000e+00> : vector<8x32xf32>
    %155 = tpu.matmul %129, %16, %cst_44 {dimension_numbers = #tpu.dot_dimension_numbers<[1], [0], [0], [1], [0, 0, 1, 1], [], []>, precision = #tpu.contract_precision<fp32>} : vector<8x32xf32>, vector<32x32xf32>, vector<8x32xf32> -> vector<8x32xf32>
    %156 = arith.addf %154, %155 : vector<8x32xf32>
    %157 = arith.negf %156 : vector<8x32xf32>
    %158 = math.exp %157 : vector<8x32xf32>
    %cst_45 = arith.constant 1.000000e+00 : f32
    %159 = vector.broadcast %cst_45 : f32 to vector<8x32xf32>
    %160 = arith.addf %159, %158 : vector<8x32xf32>
    %161 = arith.divf %159, %160 : vector<8x32xf32>
    %162 = arith.mulf %147, %127 : vector<8x32xf32>
    %163 = arith.mulf %138, %152 : vector<8x32xf32>
    %164 = arith.addf %162, %163 : vector<8x32xf32>
    %165 = math.tanh %164 : vector<8x32xf32>
    %166 = arith.mulf %161, %165 : vector<8x32xf32>
    %167 = vector.extract_strided_slice %9 {offsets = [4, 0, 0], sizes = [1, 8, 32], strides = [1, 1, 1]} : vector<8x8x32xf32> to vector<1x8x32xf32>
    %168 = vector.shape_cast %167 : vector<1x8x32xf32> to vector<8x32xf32>
    %cst_46 = arith.constant dense<0.000000e+00> : vector<8x32xf32>
    %169 = tpu.matmul %166, %13, %cst_46 {dimension_numbers = #tpu.dot_dimension_numbers<[1], [0], [0], [1], [0, 0, 1, 1], [], []>, precision = #tpu.contract_precision<fp32>} : vector<8x32xf32>, vector<32x32xf32>, vector<8x32xf32> -> vector<8x32xf32>
    %170 = arith.addf %168, %169 : vector<8x32xf32>
    %171 = arith.negf %170 : vector<8x32xf32>
    %172 = math.exp %171 : vector<8x32xf32>
    %cst_47 = arith.constant 1.000000e+00 : f32
    %173 = vector.broadcast %cst_47 : f32 to vector<8x32xf32>
    %174 = arith.addf %173, %172 : vector<8x32xf32>
    %175 = arith.divf %173, %174 : vector<8x32xf32>
    %176 = vector.extract_strided_slice %10 {offsets = [4, 0, 0], sizes = [1, 8, 32], strides = [1, 1, 1]} : vector<8x8x32xf32> to vector<1x8x32xf32>
    %177 = vector.shape_cast %176 : vector<1x8x32xf32> to vector<8x32xf32>
    %cst_48 = arith.constant dense<0.000000e+00> : vector<8x32xf32>
    %178 = tpu.matmul %166, %14, %cst_48 {dimension_numbers = #tpu.dot_dimension_numbers<[1], [0], [0], [1], [0, 0, 1, 1], [], []>, precision = #tpu.contract_precision<fp32>} : vector<8x32xf32>, vector<32x32xf32>, vector<8x32xf32> -> vector<8x32xf32>
    %179 = arith.addf %177, %178 : vector<8x32xf32>
    %180 = arith.negf %179 : vector<8x32xf32>
    %181 = math.exp %180 : vector<8x32xf32>
    %cst_49 = arith.constant 1.000000e+00 : f32
    %182 = vector.broadcast %cst_49 : f32 to vector<8x32xf32>
    %183 = arith.addf %182, %181 : vector<8x32xf32>
    %184 = arith.divf %182, %183 : vector<8x32xf32>
    %185 = vector.extract_strided_slice %11 {offsets = [4, 0, 0], sizes = [1, 8, 32], strides = [1, 1, 1]} : vector<8x8x32xf32> to vector<1x8x32xf32>
    %186 = vector.shape_cast %185 : vector<1x8x32xf32> to vector<8x32xf32>
    %cst_50 = arith.constant dense<0.000000e+00> : vector<8x32xf32>
    %187 = tpu.matmul %166, %15, %cst_50 {dimension_numbers = #tpu.dot_dimension_numbers<[1], [0], [0], [1], [0, 0, 1, 1], [], []>, precision = #tpu.contract_precision<fp32>} : vector<8x32xf32>, vector<32x32xf32>, vector<8x32xf32> -> vector<8x32xf32>
    %188 = arith.addf %186, %187 : vector<8x32xf32>
    %189 = math.tanh %188 : vector<8x32xf32>
    %190 = vector.extract_strided_slice %12 {offsets = [4, 0, 0], sizes = [1, 8, 32], strides = [1, 1, 1]} : vector<8x8x32xf32> to vector<1x8x32xf32>
    %191 = vector.shape_cast %190 : vector<1x8x32xf32> to vector<8x32xf32>
    %cst_51 = arith.constant dense<0.000000e+00> : vector<8x32xf32>
    %192 = tpu.matmul %166, %16, %cst_51 {dimension_numbers = #tpu.dot_dimension_numbers<[1], [0], [0], [1], [0, 0, 1, 1], [], []>, precision = #tpu.contract_precision<fp32>} : vector<8x32xf32>, vector<32x32xf32>, vector<8x32xf32> -> vector<8x32xf32>
    %193 = arith.addf %191, %192 : vector<8x32xf32>
    %194 = arith.negf %193 : vector<8x32xf32>
    %195 = math.exp %194 : vector<8x32xf32>
    %cst_52 = arith.constant 1.000000e+00 : f32
    %196 = vector.broadcast %cst_52 : f32 to vector<8x32xf32>
    %197 = arith.addf %196, %195 : vector<8x32xf32>
    %198 = arith.divf %196, %197 : vector<8x32xf32>
    %199 = arith.mulf %184, %164 : vector<8x32xf32>
    %200 = arith.mulf %175, %189 : vector<8x32xf32>
    %201 = arith.addf %199, %200 : vector<8x32xf32>
    %202 = math.tanh %201 : vector<8x32xf32>
    %203 = arith.mulf %198, %202 : vector<8x32xf32>
    %204 = vector.extract_strided_slice %9 {offsets = [5, 0, 0], sizes = [1, 8, 32], strides = [1, 1, 1]} : vector<8x8x32xf32> to vector<1x8x32xf32>
    %205 = vector.shape_cast %204 : vector<1x8x32xf32> to vector<8x32xf32>
    %cst_53 = arith.constant dense<0.000000e+00> : vector<8x32xf32>
    %206 = tpu.matmul %203, %13, %cst_53 {dimension_numbers = #tpu.dot_dimension_numbers<[1], [0], [0], [1], [0, 0, 1, 1], [], []>, precision = #tpu.contract_precision<fp32>} : vector<8x32xf32>, vector<32x32xf32>, vector<8x32xf32> -> vector<8x32xf32>
    %207 = arith.addf %205, %206 : vector<8x32xf32>
    %208 = arith.negf %207 : vector<8x32xf32>
    %209 = math.exp %208 : vector<8x32xf32>
    %cst_54 = arith.constant 1.000000e+00 : f32
    %210 = vector.broadcast %cst_54 : f32 to vector<8x32xf32>
    %211 = arith.addf %210, %209 : vector<8x32xf32>
    %212 = arith.divf %210, %211 : vector<8x32xf32>
    %213 = vector.extract_strided_slice %10 {offsets = [5, 0, 0], sizes = [1, 8, 32], strides = [1, 1, 1]} : vector<8x8x32xf32> to vector<1x8x32xf32>
    %214 = vector.shape_cast %213 : vector<1x8x32xf32> to vector<8x32xf32>
    %cst_55 = arith.constant dense<0.000000e+00> : vector<8x32xf32>
    %215 = tpu.matmul %203, %14, %cst_55 {dimension_numbers = #tpu.dot_dimension_numbers<[1], [0], [0], [1], [0, 0, 1, 1], [], []>, precision = #tpu.contract_precision<fp32>} : vector<8x32xf32>, vector<32x32xf32>, vector<8x32xf32> -> vector<8x32xf32>
    %216 = arith.addf %214, %215 : vector<8x32xf32>
    %217 = arith.negf %216 : vector<8x32xf32>
    %218 = math.exp %217 : vector<8x32xf32>
    %cst_56 = arith.constant 1.000000e+00 : f32
    %219 = vector.broadcast %cst_56 : f32 to vector<8x32xf32>
    %220 = arith.addf %219, %218 : vector<8x32xf32>
    %221 = arith.divf %219, %220 : vector<8x32xf32>
    %222 = vector.extract_strided_slice %11 {offsets = [5, 0, 0], sizes = [1, 8, 32], strides = [1, 1, 1]} : vector<8x8x32xf32> to vector<1x8x32xf32>
    %223 = vector.shape_cast %222 : vector<1x8x32xf32> to vector<8x32xf32>
    %cst_57 = arith.constant dense<0.000000e+00> : vector<8x32xf32>
    %224 = tpu.matmul %203, %15, %cst_57 {dimension_numbers = #tpu.dot_dimension_numbers<[1], [0], [0], [1], [0, 0, 1, 1], [], []>, precision = #tpu.contract_precision<fp32>} : vector<8x32xf32>, vector<32x32xf32>, vector<8x32xf32> -> vector<8x32xf32>
    %225 = arith.addf %223, %224 : vector<8x32xf32>
    %226 = math.tanh %225 : vector<8x32xf32>
    %227 = vector.extract_strided_slice %12 {offsets = [5, 0, 0], sizes = [1, 8, 32], strides = [1, 1, 1]} : vector<8x8x32xf32> to vector<1x8x32xf32>
    %228 = vector.shape_cast %227 : vector<1x8x32xf32> to vector<8x32xf32>
    %cst_58 = arith.constant dense<0.000000e+00> : vector<8x32xf32>
    %229 = tpu.matmul %203, %16, %cst_58 {dimension_numbers = #tpu.dot_dimension_numbers<[1], [0], [0], [1], [0, 0, 1, 1], [], []>, precision = #tpu.contract_precision<fp32>} : vector<8x32xf32>, vector<32x32xf32>, vector<8x32xf32> -> vector<8x32xf32>
    %230 = arith.addf %228, %229 : vector<8x32xf32>
    %231 = arith.negf %230 : vector<8x32xf32>
    %232 = math.exp %231 : vector<8x32xf32>
    %cst_59 = arith.constant 1.000000e+00 : f32
    %233 = vector.broadcast %cst_59 : f32 to vector<8x32xf32>
    %234 = arith.addf %233, %232 : vector<8x32xf32>
    %235 = arith.divf %233, %234 : vector<8x32xf32>
    %236 = arith.mulf %221, %201 : vector<8x32xf32>
    %237 = arith.mulf %212, %226 : vector<8x32xf32>
    %238 = arith.addf %236, %237 : vector<8x32xf32>
    %239 = math.tanh %238 : vector<8x32xf32>
    %240 = arith.mulf %235, %239 : vector<8x32xf32>
    %241 = vector.extract_strided_slice %9 {offsets = [6, 0, 0], sizes = [1, 8, 32], strides = [1, 1, 1]} : vector<8x8x32xf32> to vector<1x8x32xf32>
    %242 = vector.shape_cast %241 : vector<1x8x32xf32> to vector<8x32xf32>
    %cst_60 = arith.constant dense<0.000000e+00> : vector<8x32xf32>
    %243 = tpu.matmul %240, %13, %cst_60 {dimension_numbers = #tpu.dot_dimension_numbers<[1], [0], [0], [1], [0, 0, 1, 1], [], []>, precision = #tpu.contract_precision<fp32>} : vector<8x32xf32>, vector<32x32xf32>, vector<8x32xf32> -> vector<8x32xf32>
    %244 = arith.addf %242, %243 : vector<8x32xf32>
    %245 = arith.negf %244 : vector<8x32xf32>
    %246 = math.exp %245 : vector<8x32xf32>
    %cst_61 = arith.constant 1.000000e+00 : f32
    %247 = vector.broadcast %cst_61 : f32 to vector<8x32xf32>
    %248 = arith.addf %247, %246 : vector<8x32xf32>
    %249 = arith.divf %247, %248 : vector<8x32xf32>
    %250 = vector.extract_strided_slice %10 {offsets = [6, 0, 0], sizes = [1, 8, 32], strides = [1, 1, 1]} : vector<8x8x32xf32> to vector<1x8x32xf32>
    %251 = vector.shape_cast %250 : vector<1x8x32xf32> to vector<8x32xf32>
    %cst_62 = arith.constant dense<0.000000e+00> : vector<8x32xf32>
    %252 = tpu.matmul %240, %14, %cst_62 {dimension_numbers = #tpu.dot_dimension_numbers<[1], [0], [0], [1], [0, 0, 1, 1], [], []>, precision = #tpu.contract_precision<fp32>} : vector<8x32xf32>, vector<32x32xf32>, vector<8x32xf32> -> vector<8x32xf32>
    %253 = arith.addf %251, %252 : vector<8x32xf32>
    %254 = arith.negf %253 : vector<8x32xf32>
    %255 = math.exp %254 : vector<8x32xf32>
    %cst_63 = arith.constant 1.000000e+00 : f32
    %256 = vector.broadcast %cst_63 : f32 to vector<8x32xf32>
    %257 = arith.addf %256, %255 : vector<8x32xf32>
    %258 = arith.divf %256, %257 : vector<8x32xf32>
    %259 = vector.extract_strided_slice %11 {offsets = [6, 0, 0], sizes = [1, 8, 32], strides = [1, 1, 1]} : vector<8x8x32xf32> to vector<1x8x32xf32>
    %260 = vector.shape_cast %259 : vector<1x8x32xf32> to vector<8x32xf32>
    %cst_64 = arith.constant dense<0.000000e+00> : vector<8x32xf32>
    %261 = tpu.matmul %240, %15, %cst_64 {dimension_numbers = #tpu.dot_dimension_numbers<[1], [0], [0], [1], [0, 0, 1, 1], [], []>, precision = #tpu.contract_precision<fp32>} : vector<8x32xf32>, vector<32x32xf32>, vector<8x32xf32> -> vector<8x32xf32>
    %262 = arith.addf %260, %261 : vector<8x32xf32>
    %263 = math.tanh %262 : vector<8x32xf32>
    %264 = vector.extract_strided_slice %12 {offsets = [6, 0, 0], sizes = [1, 8, 32], strides = [1, 1, 1]} : vector<8x8x32xf32> to vector<1x8x32xf32>
    %265 = vector.shape_cast %264 : vector<1x8x32xf32> to vector<8x32xf32>
    %cst_65 = arith.constant dense<0.000000e+00> : vector<8x32xf32>
    %266 = tpu.matmul %240, %16, %cst_65 {dimension_numbers = #tpu.dot_dimension_numbers<[1], [0], [0], [1], [0, 0, 1, 1], [], []>, precision = #tpu.contract_precision<fp32>} : vector<8x32xf32>, vector<32x32xf32>, vector<8x32xf32> -> vector<8x32xf32>
    %267 = arith.addf %265, %266 : vector<8x32xf32>
    %268 = arith.negf %267 : vector<8x32xf32>
    %269 = math.exp %268 : vector<8x32xf32>
    %cst_66 = arith.constant 1.000000e+00 : f32
    %270 = vector.broadcast %cst_66 : f32 to vector<8x32xf32>
    %271 = arith.addf %270, %269 : vector<8x32xf32>
    %272 = arith.divf %270, %271 : vector<8x32xf32>
    %273 = arith.mulf %258, %238 : vector<8x32xf32>
    %274 = arith.mulf %249, %263 : vector<8x32xf32>
    %275 = arith.addf %273, %274 : vector<8x32xf32>
    %276 = math.tanh %275 : vector<8x32xf32>
    %277 = arith.mulf %272, %276 : vector<8x32xf32>
    %278 = vector.extract_strided_slice %9 {offsets = [7, 0, 0], sizes = [1, 8, 32], strides = [1, 1, 1]} : vector<8x8x32xf32> to vector<1x8x32xf32>
    %279 = vector.shape_cast %278 : vector<1x8x32xf32> to vector<8x32xf32>
    %cst_67 = arith.constant dense<0.000000e+00> : vector<8x32xf32>
    %280 = tpu.matmul %277, %13, %cst_67 {dimension_numbers = #tpu.dot_dimension_numbers<[1], [0], [0], [1], [0, 0, 1, 1], [], []>, precision = #tpu.contract_precision<fp32>} : vector<8x32xf32>, vector<32x32xf32>, vector<8x32xf32> -> vector<8x32xf32>
    %281 = arith.addf %279, %280 : vector<8x32xf32>
    %282 = arith.negf %281 : vector<8x32xf32>
    %283 = math.exp %282 : vector<8x32xf32>
    %cst_68 = arith.constant 1.000000e+00 : f32
    %284 = vector.broadcast %cst_68 : f32 to vector<8x32xf32>
    %285 = arith.addf %284, %283 : vector<8x32xf32>
    %286 = arith.divf %284, %285 : vector<8x32xf32>
    %287 = vector.extract_strided_slice %10 {offsets = [7, 0, 0], sizes = [1, 8, 32], strides = [1, 1, 1]} : vector<8x8x32xf32> to vector<1x8x32xf32>
    %288 = vector.shape_cast %287 : vector<1x8x32xf32> to vector<8x32xf32>
    %cst_69 = arith.constant dense<0.000000e+00> : vector<8x32xf32>
    %289 = tpu.matmul %277, %14, %cst_69 {dimension_numbers = #tpu.dot_dimension_numbers<[1], [0], [0], [1], [0, 0, 1, 1], [], []>, precision = #tpu.contract_precision<fp32>} : vector<8x32xf32>, vector<32x32xf32>, vector<8x32xf32> -> vector<8x32xf32>
    %290 = arith.addf %288, %289 : vector<8x32xf32>
    %291 = arith.negf %290 : vector<8x32xf32>
    %292 = math.exp %291 : vector<8x32xf32>
    %cst_70 = arith.constant 1.000000e+00 : f32
    %293 = vector.broadcast %cst_70 : f32 to vector<8x32xf32>
    %294 = arith.addf %293, %292 : vector<8x32xf32>
    %295 = arith.divf %293, %294 : vector<8x32xf32>
    %296 = vector.extract_strided_slice %11 {offsets = [7, 0, 0], sizes = [1, 8, 32], strides = [1, 1, 1]} : vector<8x8x32xf32> to vector<1x8x32xf32>
    %297 = vector.shape_cast %296 : vector<1x8x32xf32> to vector<8x32xf32>
    %cst_71 = arith.constant dense<0.000000e+00> : vector<8x32xf32>
    %298 = tpu.matmul %277, %15, %cst_71 {dimension_numbers = #tpu.dot_dimension_numbers<[1], [0], [0], [1], [0, 0, 1, 1], [], []>, precision = #tpu.contract_precision<fp32>} : vector<8x32xf32>, vector<32x32xf32>, vector<8x32xf32> -> vector<8x32xf32>
    %299 = arith.addf %297, %298 : vector<8x32xf32>
    %300 = math.tanh %299 : vector<8x32xf32>
    %301 = vector.extract_strided_slice %12 {offsets = [7, 0, 0], sizes = [1, 8, 32], strides = [1, 1, 1]} : vector<8x8x32xf32> to vector<1x8x32xf32>
    %302 = vector.shape_cast %301 : vector<1x8x32xf32> to vector<8x32xf32>
    %cst_72 = arith.constant dense<0.000000e+00> : vector<8x32xf32>
    %303 = tpu.matmul %277, %16, %cst_72 {dimension_numbers = #tpu.dot_dimension_numbers<[1], [0], [0], [1], [0, 0, 1, 1], [], []>, precision = #tpu.contract_precision<fp32>} : vector<8x32xf32>, vector<32x32xf32>, vector<8x32xf32> -> vector<8x32xf32>
    %304 = arith.addf %302, %303 : vector<8x32xf32>
    %305 = arith.negf %304 : vector<8x32xf32>
    %306 = math.exp %305 : vector<8x32xf32>
    %cst_73 = arith.constant 1.000000e+00 : f32
    %307 = vector.broadcast %cst_73 : f32 to vector<8x32xf32>
    %308 = arith.addf %307, %306 : vector<8x32xf32>
    %309 = arith.divf %307, %308 : vector<8x32xf32>
    %310 = arith.mulf %295, %275 : vector<8x32xf32>
    %311 = arith.mulf %286, %300 : vector<8x32xf32>
    %312 = arith.addf %310, %311 : vector<8x32xf32>
    %313 = math.tanh %312 : vector<8x32xf32>
    %314 = arith.mulf %309, %313 : vector<8x32xf32>
    %315 = tpu.concatenate %166, %314 in 0 : vector<8x32xf32>, vector<8x32xf32> -> vector<16x32xf32>
    %c0_74 = arith.constant 0 : index
    %c0_75 = arith.constant 0 : index
    %316 = vector.load %arg8[%c0_74, %c0_75] : memref<32x64xf32, #tpu.memory_space<vmem>>, vector<32x64xf32>
    %cst_76 = arith.constant dense<0.000000e+00> : vector<16x64xf32>
    %317 = tpu.matmul %315, %316, %cst_76 {dimension_numbers = #tpu.dot_dimension_numbers<[1], [0], [0], [1], [0, 0, 1, 1], [], []>, precision = #tpu.contract_precision<fp32>} : vector<16x32xf32>, vector<32x64xf32>, vector<16x64xf32> -> vector<16x64xf32>
    %c0_77 = arith.constant 0 : index
    %c0_78 = arith.constant 0 : index
    %318 = vector.load %arg9[%c0_77, %c0_78] : memref<1x64xf32, #tpu.memory_space<vmem>>, vector<1x64xf32>
    %319 = vector.broadcast %318 : vector<1x64xf32> to vector<16x64xf32>
    %320 = arith.addf %317, %319 : vector<16x64xf32>
    %cst_79 = arith.constant 0.000000e+00 : f32
    %321 = vector.broadcast %cst_79 : f32 to vector<16x64xf32>
    %322 = arith.maximumf %320, %321 : vector<16x64xf32>
    %c0_80 = arith.constant 0 : index
    %c0_81 = arith.constant 0 : index
    %323 = vector.load %arg10[%c0_80, %c0_81] : memref<12x16xf32, #tpu.memory_space<vmem>>, vector<12x16xf32>
    %cst_82 = arith.constant dense<0.000000e+00> : vector<12x64xf32>
    %324 = tpu.matmul %323, %322, %cst_82 {dimension_numbers = #tpu.dot_dimension_numbers<[1], [0], [0], [1], [0, 0, 1, 1], [], []>, precision = #tpu.contract_precision<fp32>} : vector<12x16xf32>, vector<16x64xf32>, vector<12x64xf32> -> vector<12x64xf32>
    %c0_83 = arith.constant 0 : index
    %c0_84 = arith.constant 0 : index
    %325 = vector.load %arg11[%c0_83, %c0_84] : memref<12x16xf32, #tpu.memory_space<vmem>>, vector<12x16xf32>
    %cst_85 = arith.constant dense<0.000000e+00> : vector<12x64xf32>
    %326 = tpu.matmul %325, %322, %cst_85 {dimension_numbers = #tpu.dot_dimension_numbers<[1], [0], [0], [1], [0, 0, 1, 1], [], []>, precision = #tpu.contract_precision<fp32>} : vector<12x16xf32>, vector<16x64xf32>, vector<12x64xf32> -> vector<12x64xf32>
    %c0_86 = arith.constant 0 : index
    %c0_87 = arith.constant 0 : index
    %327 = vector.load %arg12[%c0_86, %c0_87] : memref<64x64xf32, #tpu.memory_space<vmem>>, vector<64x64xf32>
    %cst_88 = arith.constant dense<0.000000e+00> : vector<12x64xf32>
    %328 = tpu.matmul %324, %327, %cst_88 {dimension_numbers = #tpu.dot_dimension_numbers<[1], [0], [0], [1], [0, 0, 1, 1], [], []>, precision = #tpu.contract_precision<fp32>} : vector<12x64xf32>, vector<64x64xf32>, vector<12x64xf32> -> vector<12x64xf32>
    %c0_89 = arith.constant 0 : index
    %c0_90 = arith.constant 0 : index
    %329 = vector.load %arg13[%c0_89, %c0_90] : memref<64x64xf32, #tpu.memory_space<vmem>>, vector<64x64xf32>
    %cst_91 = arith.constant dense<0.000000e+00> : vector<12x64xf32>
    %330 = tpu.matmul %326, %329, %cst_91 {dimension_numbers = #tpu.dot_dimension_numbers<[1], [0], [0], [1], [0, 0, 1, 1], [], []>, precision = #tpu.contract_precision<fp32>} : vector<12x64xf32>, vector<64x64xf32>, vector<12x64xf32> -> vector<12x64xf32>
    %331 = arith.addf %328, %330 : vector<12x64xf32>
    %c0_92 = arith.constant 0 : index
    %c0_93 = arith.constant 0 : index
    %332 = vector.load %arg14[%c0_92, %c0_93] : memref<1x64xf32, #tpu.memory_space<vmem>>, vector<1x64xf32>
    %333 = vector.broadcast %332 : vector<1x64xf32> to vector<12x64xf32>
    %334 = arith.addf %331, %333 : vector<12x64xf32>
    %cst_94 = arith.constant 0.000000e+00 : f32
    %335 = vector.broadcast %cst_94 : f32 to vector<12x64xf32>
    %336 = arith.maximumf %334, %335 : vector<12x64xf32>
    %c0_95 = arith.constant 0 : index
    %c0_96 = arith.constant 0 : index
    %337 = vector.load %arg15[%c0_95, %c0_96] : memref<64x32xf32, #tpu.memory_space<vmem>>, vector<64x32xf32>
    %cst_97 = arith.constant dense<0.000000e+00> : vector<12x32xf32>
    %338 = tpu.matmul %336, %337, %cst_97 {dimension_numbers = #tpu.dot_dimension_numbers<[1], [0], [0], [1], [0, 0, 1, 1], [], []>, precision = #tpu.contract_precision<fp32>} : vector<12x64xf32>, vector<64x32xf32>, vector<12x32xf32> -> vector<12x32xf32>
    %c0_98 = arith.constant 0 : index
    %c0_99 = arith.constant 0 : index
    %339 = vector.load %arg16[%c0_98, %c0_99] : memref<1x32xf32, #tpu.memory_space<vmem>>, vector<1x32xf32>
    %340 = vector.broadcast %339 : vector<1x32xf32> to vector<12x32xf32>
    %341 = arith.addf %338, %340 : vector<12x32xf32>
    %cst_100 = arith.constant 0.000000e+00 : f32
    %342 = vector.broadcast %cst_100 : f32 to vector<12x32xf32>
    %343 = arith.maximumf %341, %342 : vector<12x32xf32>
    %c0_101 = arith.constant 0 : index
    %c0_102 = arith.constant 0 : index
    %344 = vector.load %arg17[%c0_101, %c0_102] : memref<32x8xf32, #tpu.memory_space<vmem>>, vector<32x8xf32>
    %cst_103 = arith.constant dense<0.000000e+00> : vector<12x8xf32>
    %345 = tpu.matmul %343, %344, %cst_103 {dimension_numbers = #tpu.dot_dimension_numbers<[1], [0], [0], [1], [0, 0, 1, 1], [], []>, precision = #tpu.contract_precision<fp32>} : vector<12x32xf32>, vector<32x8xf32>, vector<12x8xf32> -> vector<12x8xf32>
    %c0_104 = arith.constant 0 : index
    %c0_105 = arith.constant 0 : index
    %346 = vector.load %arg18[%c0_104, %c0_105] : memref<1x8xf32, #tpu.memory_space<vmem>>, vector<1x8xf32>
    %347 = vector.broadcast %346 : vector<1x8xf32> to vector<12x8xf32>
    %348 = arith.addf %345, %347 : vector<12x8xf32>
    %cst_106 = arith.constant 0.000000e+00 : f32
    %349 = vector.broadcast %cst_106 : f32 to vector<12x8xf32>
    %350 = arith.maximumf %348, %349 : vector<12x8xf32>
    %c0_107 = arith.constant 0 : index
    %c0_108 = arith.constant 0 : index
    %351 = vector.load %arg19[%c0_107, %c0_108] : memref<1x8xf32, #tpu.memory_space<vmem>>, vector<1x8xf32>
    %cst_109 = arith.constant dense<0.000000e+00> : vector<1x12xf32>
    %352 = tpu.matmul %351, %350, %cst_109 {dimension_numbers = #tpu.dot_dimension_numbers<[1], [1], [0], [0], [0, 0, 1, 0], [], []>, precision = #tpu.contract_precision<fp32>} : vector<1x8xf32>, vector<12x8xf32>, vector<1x12xf32> -> vector<1x12xf32>
    %c0_110 = arith.constant 0 : index
    %c0_111 = arith.constant 0 : index
    %353 = vector.load %arg20[%c0_110, %c0_111] : memref<1x1xf32, #tpu.memory_space<vmem>>, vector<1x1xf32>
    %354 = vector.broadcast %353 : vector<1x1xf32> to vector<1x12xf32>
    %355 = arith.addf %352, %354 : vector<1x12xf32>
    %356 = arith.negf %355 : vector<1x12xf32>
    %357 = math.exp %356 : vector<1x12xf32>
    %cst_112 = arith.constant 1.000000e+00 : f32
    %358 = vector.broadcast %cst_112 : f32 to vector<1x12xf32>
    %359 = arith.addf %358, %357 : vector<1x12xf32>
    %360 = arith.divf %358, %359 : vector<1x12xf32>
    %c0_113 = arith.constant 0 : index
    %c0_114 = arith.constant 0 : index
    %361 = vector.load %arg21[%c0_113, %c0_114] : memref<1x12xf32, #tpu.memory_space<vmem>>, vector<1x12xf32>
    tpu.vector_store %arg21[%c0_113, %c0_114], %360 {strides = array<i32>} : memref<1x12xf32, #tpu.memory_space<vmem>>, vector<1x12xf32>,
    return
  }
}

</mosaic_0001>

<bundles_post_ra>
// kernel: model_forward.1
= control target key start
LH: loop header
LB: loop body
LE: loop exit
PB: predicated region body
PF: predicated region fallthrough
CT: control target
= control target key end

     0   :  { %s31069_s0 = inlined_call_operand.vmem [shape: f32[32,8], index: 0, kind: input, shape index: {}]   ;;  %s31070_s1 = inlined_call_operand.hbm [shape: f32[64,32], index: 1, kind: input, shape index: {}]   ;;  %s31071_s2 = inlined_call_operand.hbm [shape: f32[8,128], index: 2, kind: input, shape index: {}]   ;;  %s31072_s3 = inlined_call_operand.hbm [shape: f32[1,128], index: 3, kind: input, shape index: {}]   ;;  %s31073_s4 = inlined_call_operand.hbm [shape: f32[32,32], index: 4, kind: input, shape index: {}]   ;;  %s31074_s5 = inlined_call_operand.hbm [shape: f32[32,32], index: 5, kind: input, shape index: {}]   ;;  %s31075_s6 = inlined_call_operand.hbm [shape: f32[32,32], index: 6, kind: input, shape index: {}]   ;;  %s31076_s7 = inlined_call_operand.hbm [shape: f32[32,32], index: 7, kind: input, shape index: {}]   ;;  %s31077_s8 = inlined_call_operand.hbm [shape: f32[32,64], index: 8, kind: input, shape index: {}]   ;;  %s31078_s9 = inlined_call_operand.hbm [shape: f32[1,64], index: 9, kind: input, shape index: {}]   ;;  %s31079_s10 = inlined_call_operand.vmem [shape: f32[12,16], index: 10, kind: input, shape index: {}]   ;;  %s31080_s11 = inlined_call_operand.hbm [shape: f32[12,16], index: 11, kind: input, shape index: {}]   ;;  %s31081_s12 = inlined_call_operand.vmem [shape: f32[64,64], index: 12, kind: input, shape index: {}]   ;;  %s31082_s13 = inlined_call_operand.vmem [shape: f32[64,64], index: 13, kind: input, shape index: {}]   ;;  %s31083_s14 = inlined_call_operand.hbm [shape: f32[1,64], index: 14, kind: input, shape index: {}]   ;;  %s31084_s15 = inlined_call_operand.vmem [shape: f32[64,32], index: 15, kind: input, shape index: {}]   ;;  %s31085_s16 = inlined_call_operand.hbm [shape: f32[1,32], index: 16, kind: input, shape index: {}]   ;;  %s31086_s17 = inlined_call_operand.vmem [shape: f32[32,8], index: 17, kind: input, shape index: {}]   ;;  %s31087_s18 = inlined_call_operand.hbm [shape: f32[1,8], index: 18, kind: input, shape index: {}]   ;;  %s31088_s19 = inlined_call_operand.hbm [shape: f32[1,8], index: 19, kind: input, shape index: {}]   ;;  %s31089_s20 = inlined_call_operand.<no memory space> [shape: f32[1,1], index: 20, kind: input, shape index: {}]   ;;  %s31090_s21 = inlined_call_operand.vmem [shape: f32[1,12], index: 21, kind: output, shape index: {}]  }
   0x1   :  { %31205 = sst [smem:[#allocation86_spill]] %s31069_s0  ;;  %v26_v0 = vstv %s31089_s20 }
   0x2   :  { %31206 = sst [smem:[#allocation87_spill]] %s31070_s1  ;;  %27 = vst [vmem:[#allocation2] sm:$0x1] %v26_v0 }
   0x3   :  { %31207 = sst [smem:[#allocation88_spill]] %s31071_s2 }
   0x4   :  { %31208 = sst [smem:[#allocation89_spill]] %s31072_s3 }
   0x5   :  { %31209 = sst [smem:[#allocation90_spill]] %s31073_s4 }
   0x6   :  { %31210 = sst [smem:[#allocation91_spill]] %s31074_s5 }
   0x7   :  { %28 = vsyncpa [#allocation4], 0 }
   0x8   :  { %29 = vsyncpa [#allocation6], 0 }
   0x9   :  { %30 = vsyncpa [#allocation9], 0 }
   0xa   :  { %31 = vsyncpa [#allocation12], 0 }
   0xb   :  { %32 = vsyncpa [#allocation15], 0 }
   0xc   :  { %33 = vsyncpa [#allocation18], 0 }
   0xd   :  { %34 = vsyncpa [#allocation21], 0 }
   0xe   :  { %35 = vsyncpa [#allocation24], 0  ;;  %s27059_s26 = smov [#allocation5]  }
   0xf   :  { %s56_s27 = sshll.u32 %s27059_s26, 4  ;;  %s57_s27 = int_to_ptr.vmem [resolvable:$true] %s56_s27 }
  0x10   :  { %s26771_s3 = scalar_lea.vmem %s57_s27, 128  ;;  %p26776_p1 = scmp.lt.s32.totalorder %s57_s27, %s57_s27 }
  0x11   :  { %p26772_p0 = scmp.ne.s32.totalorder %s57_s27, %s26771_s3  ;;  %p26777_p2 = scmp.lt.s32.totalorder %s26771_s3, %s26771_s3 }
  0x13   :  { %p26778_p3 = por %p26777_p2, %p26776_p1 }
  0x15   :  { %p26779_p4 = pnand %p26778_p3, %p26772_p0 }
  0x17   :  { %26782 = shalt.err (!%p26779_p4)
}
  0x18   :  { %s31211_s29 = sld [smem:[#allocation88_spill]]  ;;  %s27060_s0 = smov [#allocation8]  }
  0x19   :  { %s75_s4 = sshll.u32 %s27060_s0, 4  ;;  %s27061_s30 = smov [#allocation11]   ;;  %s76_s4 = int_to_ptr.vmem [resolvable:$true] %s75_s4 }
  0x1a   :  { %s99_s5 = sshll.u32 %s27061_s30, 4  ;;  %s26791_s22 = scalar_lea.vmem %s76_s4, 512  ;;  %s100_s5 = int_to_ptr.vmem [resolvable:$true] %s99_s5 }
  0x1b   :  { %p26792_p5 = scmp.ne.s32.totalorder %s76_s4, %s26791_s22  ;;  %p26796_p6 = scmp.lt.s32.totalorder %s76_s4, %s76_s4 }
  0x1c   :  { %p26797_p7 = scmp.lt.s32.totalorder %s26791_s22, %s26791_s22 }
  0x1e   :  { %59 = dma.hbm_to_vmem [thread:$0]  %s31211_s29, 128, %s57_s27, [#allocation6]  }
  0x1f   :  { %p26798_p8 = por %p26797_p7, %p26796_p6 }
  0x21   :  { %p26799_p9 = pnand %p26798_p8, %p26792_p5 }
  0x23   :  { %26802 = shalt.err (!%p26799_p9)
}
  0x24   :  { %s27062_s23 = smov 128   ;;  %s27063_s1 = smov 8  }
  0x25   :  { %s31212_s25 = sld [smem:[#allocation90_spill]]  ;;  %s26811_s26 = scalar_lea.vmem %s100_s5, 512 }
  0x26   :  { %p26812_p10 = scmp.ne.s32.totalorder %s100_s5, %s26811_s26  ;;  %p26816_p11 = scmp.lt.s32.totalorder %s100_s5, %s100_s5 }
  0x27   :  { %p26817_p12 = scmp.lt.s32.totalorder %s26811_s26, %s26811_s26 }
  0x29   :  { %p26818_p13 = por %p26817_p12, %p26816_p11 }
  0x2b   :  { %81 = dma.hbm_to_vmem [thread:$0]  %s31212_s25, 512, %s76_s4, [#allocation9], %s27062_s23, %s27062_s23, %s27063_s1  }
  0x2c   :  { %p26819_p0 = pnand %p26818_p13, %p26812_p10 }
  0x2e   :  { %26822 = shalt.err (!%p26819_p0)
}
  0x2f   :  { %105 = dma.hbm_to_vmem [thread:$0]  %s31075_s6, 512, %s100_s5, [#allocation12], %s27062_s23, %s27062_s23, %s27063_s1  }
  0x30   :  { %s27064_s20 = smov [#allocation14]   ;;  %s27065_s29 = smov [#allocation17]  }
  0x31   :  { %s123_s28 = sshll.u32 %s27064_s20, 4  ;;  %s147_s0 = sshll.u32 %s27065_s29, 4  ;;  %s124_s28 = int_to_ptr.vmem [resolvable:$true] %s123_s28  ;;  %s148_s0 = int_to_ptr.vmem [resolvable:$true] %s147_s0 }
  0x32   :  { %s26831_s4 = scalar_lea.vmem %s124_s28, 512  ;;  %p26836_p2 = scmp.lt.s32.totalorder %s124_s28, %s124_s28 }
  0x33   :  { %p26832_p1 = scmp.ne.s32.totalorder %s124_s28, %s26831_s4  ;;  %p26837_p3 = scmp.lt.s32.totalorder %s26831_s4, %s26831_s4 }
  0x35   :  { %p26838_p4 = por %p26837_p3, %p26836_p2 }
  0x37   :  { %p26839_p5 = pnand %p26838_p4, %p26832_p1 }
  0x39   :  { %26842 = shalt.err (!%p26839_p5)
}
  0x3a   :  { %129 = dma.hbm_to_vmem [thread:$0]  %s31077_s8, 512, %s124_s28, [#allocation15], %s27062_s23, %s27062_s23, %s27063_s1  }
  0x3b   :  { %s26851_s6 = scalar_lea.vmem %s148_s0, 256  ;;  %p26856_p7 = scmp.lt.s32.totalorder %s148_s0, %s148_s0 }
  0x3c   :  { %p26852_p6 = scmp.ne.s32.totalorder %s148_s0, %s26851_s6  ;;  %p26857_p8 = scmp.lt.s32.totalorder %s26851_s6, %s26851_s6 }
  0x3e   :  { %p26858_p9 = por %p26857_p8, %p26856_p7 }
  0x40   :  { %p26859_p10 = pnand %p26858_p9, %p26852_p6 }
  0x42   :  { %26862 = shalt.err (!%p26859_p10)
}
  0x43   :  { %153 = dma.hbm_to_vmem [thread:$0]  %s31080_s11, 256, %s148_s0, [#allocation18], %s27062_s23, %s27062_s23, %s27063_s1  }
  0x44   :  { %s27066_s2 = smov [#allocation20]   ;;  %s27067_s26 = smov [#allocation3]  }
  0x45   :  { %s176_s25 = sshll.u32 %s27066_s2, 4  ;;  %s43_s8 = sshll.u32 %s27067_s26, 4  ;;  %s177_s25 = int_to_ptr.vmem [resolvable:$true] %s176_s25  ;;  %s44_s8 = int_to_ptr.vmem [resolvable:$true] %s43_s8 }
  0x46   :  { %s26871_s27 = scalar_lea.vmem %s177_s25, 16  ;;  %s26875_s3 = scalar_lea.vmem %s177_s25, 32 }
  0x47   :  { %p26872_p11 = scmp.ne.s32.totalorder %s177_s25, %s26871_s27  ;;  %p26876_p12 = scmp.lt.s32.totalorder %s177_s25, %s177_s25 }
  0x48   :  { %p26877_p13 = scmp.lt.s32.totalorder %s26875_s3, %s26871_s27 }
  0x4a   :  { %p26878_p0 = por %p26877_p13, %p26876_p12 }
  0x4c   :  { %p26879_p1 = pnand %p26878_p0, %p26872_p11 }
  0x4e   :  { %26882 = shalt.err (!%p26879_p1)
}
  0x4f   :  { %179 = dma.hbm_to_vmem [thread:$0]  %s31085_s16, 16, %s177_s25, [#allocation21]  }
  0x50   :  { %s26891_s29 = scalar_lea.vmem %s44_s8, 1024  ;;  %p26896_p3 = scmp.lt.s32.totalorder %s44_s8, %s44_s8 }
  0x51   :  { %p26892_p2 = scmp.ne.s32.totalorder %s44_s8, %s26891_s29  ;;  %p26897_p4 = scmp.lt.s32.totalorder %s26891_s29, %s26891_s29 }
  0x53   :  { %p26898_p5 = por %p26897_p4, %p26896_p3 }
  0x55   :  { %p26899_p6 = pnand %p26898_p5, %p26892_p2 }
  0x57   :  { %26902 = shalt.err (!%p26899_p6)
}
  0x58   :  { %s31213_s4 = sld [smem:[#allocation87_spill]]  ;;  %s27068_s30 = smov [#allocation7]  }
  0x59   :  { %s66_s22 = sshll.u32 %s27068_s30, 4  ;;  %s27069_s6 = smov [#allocation10]   ;;  %s67_s22 = int_to_ptr.vmem [resolvable:$true] %s66_s22 }
  0x5a   :  { %s87_s16 = sshll.u32 %s27069_s6, 4  ;;  %s26911_s5 = scalar_lea.vmem %s67_s22, 16  ;;  %s88_s16 = int_to_ptr.vmem [resolvable:$true] %s87_s16 }
  0x5b   :  { %p26912_p7 = scmp.ne.s32.totalorder %s67_s22, %s26911_s5  ;;  %s26915_s24 = scalar_lea.vmem %s67_s22, 32 }
  0x5c   :  { %p26916_p8 = scmp.lt.s32.totalorder %s67_s22, %s67_s22  ;;  %p26917_p9 = scmp.lt.s32.totalorder %s26915_s24, %s26911_s5 }
  0x5e   :  { %49 = dma.hbm_to_vmem [thread:$0]  %s31213_s4, 1024, %s44_s8, [#allocation4], %s27062_s23, %s27062_s23, %s27063_s1  }
  0x5f   :  { %p26918_p10 = por %p26917_p9, %p26916_p8 }
  0x61   :  { %p26919_p11 = pnand %p26918_p10, %p26912_p7 }
  0x63   :  { %26922 = shalt.err (!%p26919_p11)
}
  0x64   :  { %s31214_s26 = sld [smem:[#allocation89_spill]]  ;;  %s26931_s27 = scalar_lea.vmem %s88_s16, 512 }
  0x65   :  { %p26932_p12 = scmp.ne.s32.totalorder %s88_s16, %s26931_s27  ;;  %p26936_p13 = scmp.lt.s32.totalorder %s88_s16, %s88_s16 }
  0x66   :  { %p26937_p0 = scmp.lt.s32.totalorder %s26931_s27, %s26931_s27 }
  0x68   :  { %p26938_p1 = por %p26937_p0, %p26936_p13 }
  0x6a   :  { %69 = dma.hbm_to_vmem [thread:$0]  %s31214_s26, 16, %s67_s22, [#allocation6]  }
  0x6b   :  { %p26939_p2 = pnand %p26938_p1, %p26932_p12 }
  0x6d   :  { %26942 = shalt.err (!%p26939_p2)
}
  0x6e   :  { %s31215_s20 = sld [smem:[#allocation91_spill]]  ;;  %s27070_s28 = smov [#allocation13]  }
  0x6f   :  { %s111_s29 = sshll.u32 %s27070_s28, 4  ;;  %s27071_s11 = smov [#allocation16]   ;;  %s112_s29 = int_to_ptr.vmem [resolvable:$true] %s111_s29 }
  0x70   :  { %s136_s0 = sshll.u32 %s27071_s11, 4  ;;  %s26951_s4 = scalar_lea.vmem %s112_s29, 512  ;;  %s137_s0 = int_to_ptr.vmem [resolvable:$true] %s136_s0 }
  0x71   :  { %p26952_p3 = scmp.ne.s32.totalorder %s112_s29, %s26951_s4  ;;  %p26956_p4 = scmp.lt.s32.totalorder %s112_s29, %s112_s29 }
  0x72   :  { %p26957_p5 = scmp.lt.s32.totalorder %s26951_s4, %s26951_s4 }
  0x74   :  { %93 = dma.hbm_to_vmem [thread:$0]  %s31215_s20, 512, %s88_s16, [#allocation9], %s27062_s23, %s27062_s23, %s27063_s1  }
  0x75   :  { %p26958_p6 = por %p26957_p5, %p26956_p4 }
  0x77   :  { %p26959_p7 = pnand %p26958_p6, %p26952_p3 }
  0x79   :  { %26962 = shalt.err (!%p26959_p7)
}
  0x7a   :  { %117 = dma.hbm_to_vmem [thread:$0]  %s31076_s7, 512, %s112_s29, [#allocation12], %s27062_s23, %s27062_s23, %s27063_s1  }
  0x7b   :  { %s26971_s6 = scalar_lea.vmem %s137_s0, 16  ;;  %s26975_s16 = scalar_lea.vmem %s137_s0, 32 }
  0x7c   :  { %p26972_p8 = scmp.ne.s32.totalorder %s137_s0, %s26971_s6  ;;  %p26976_p9 = scmp.lt.s32.totalorder %s137_s0, %s137_s0 }
  0x7d   :  { %p26977_p10 = scmp.lt.s32.totalorder %s26975_s16, %s26971_s6 }
  0x7f   :  { %p26978_p11 = por %p26977_p10, %p26976_p9 }
  0x81   :  { %p26979_p12 = pnand %p26978_p11, %p26972_p8 }
  0x83   :  { %26982 = shalt.err (!%p26979_p12)
}
  0x84   :  { %139 = dma.hbm_to_vmem [thread:$0]  %s31078_s9, 16, %s137_s0, [#allocation15]  }
  0x85   :  { %s27072_s2 = smov [#allocation19]   ;;  %s27073_s26 = smov [#allocation22]  }
  0x86   :  { %s164_s25 = sshll.u32 %s27072_s2, 4  ;;  %s188_s27 = sshll.u32 %s27073_s26, 4  ;;  %s165_s25 = int_to_ptr.vmem [resolvable:$true] %s164_s25  ;;  %s189_s27 = int_to_ptr.vmem [resolvable:$true] %s188_s27 }
  0x87   :  { %s26991_s8 = scalar_lea.vmem %s165_s25, 16  ;;  %s26995_s7 = scalar_lea.vmem %s165_s25, 32 }
  0x88   :  { %p26992_p13 = scmp.ne.s32.totalorder %s165_s25, %s26991_s8  ;;  %p26996_p0 = scmp.lt.s32.totalorder %s165_s25, %s165_s25 }
  0x89   :  { %p26997_p1 = scmp.lt.s32.totalorder %s26995_s7, %s26991_s8 }
  0x8b   :  { %p26998_p2 = por %p26997_p1, %p26996_p0 }
  0x8d   :  { %p26999_p3 = pnand %p26998_p2, %p26992_p13 }
  0x8f   :  { %27002 = shalt.err (!%p26999_p3)
}
  0x90   :  { %167 = dma.hbm_to_vmem [thread:$0]  %s31083_s14, 16, %s165_s25, [#allocation18]  }
  0x91   :  { %s27011_s3 = scalar_lea.vmem %s189_s27, 16  ;;  %s27015_s9 = scalar_lea.vmem %s189_s27, 32 }
  0x92   :  { %p27012_p4 = scmp.ne.s32.totalorder %s189_s27, %s27011_s3  ;;  %p27016_p5 = scmp.lt.s32.totalorder %s189_s27, %s189_s27 }
  0x93   :  { %p27017_p6 = scmp.lt.s32.totalorder %s27015_s9, %s27011_s3 }
  0x95   :  { %p27018_p7 = por %p27017_p6, %p27016_p5 }
  0x97   :  { %p27019_p8 = pnand %p27018_p7, %p27012_p4 }
  0x99   :  { %27022 = shalt.err (!%p27019_p8)
}
  0x9a   :  { %191 = dma.hbm_to_vmem [thread:$0]  %s31087_s18, 16, %s189_s27, [#allocation21]  }
  0x9b   :  { %s27074_s29 = smov [#allocation23]  }
  0x9c   :  { %s198_s11 = sshll.u32 %s27074_s29, 4  ;;  %s199_s11 = int_to_ptr.vmem [resolvable:$true] %s198_s11 }
  0x9d   :  { %s27031_s0 = scalar_lea.vmem %s199_s11, 16  ;;  %s27035_s4 = scalar_lea.vmem %s199_s11, 32 }
  0x9e   :  { %p27032_p9 = scmp.ne.s32.totalorder %s199_s11, %s27031_s0  ;;  %p27036_p10 = scmp.lt.s32.totalorder %s199_s11, %s199_s11 }
  0x9f   :  { %p27037_p11 = scmp.lt.s32.totalorder %s27035_s4, %s27031_s0 }
  0xa1   :  { %p27038_p12 = por %p27037_p11, %p27036_p10 }
  0xa3   :  { %p27039_p13 = pnand %p27038_p12, %p27032_p9 }
  0xa5   :  { %27042 = shalt.err (!%p27039_p13)
}
  0xa6   :  { %201 = dma.hbm_to_vmem [thread:$0]  %s31088_s19, 16, %s199_s11, [#allocation24]  }
  0xa7   :  { %27043 = dma.done.wait [#allocation4], 1024  }
  0xa8   :  { %27044 = vsyncadd [#allocation4], 4294966272 }
  0xa9   :  { %27045 = dma.done.wait [#allocation6], 144  }
  0xaa   :  { %27046 = vsyncadd [#allocation6], 4294967152 }
  0xab   :  { %27047 = dma.done.wait [#allocation9], 1024  }
  0xac   :  { %27048 = vsyncadd [#allocation9], 4294966272 }
  0xad   :  { %27049 = dma.done.wait [#allocation12], 1024  }
  0xae   :  { %27050 = vsyncadd [#allocation12], 4294966272 }
  0xaf   :  { %27051 = dma.done.wait [#allocation15], 528  }
  0xb0   :  { %27052 = vsyncadd [#allocation15], 4294966768 }
  0xb1   :  { %27053 = dma.done.wait [#allocation18], 272  }
  0xb2   :  { %27054 = vsyncadd [#allocation18], 4294967024 }
  0xb3   :  { %27055 = dma.done.wait [#allocation21], 32  }
  0xb4   :  { %27056 = vsyncadd [#allocation21], 4294967264 }
  0xb5   :  { %27057 = dma.done.wait [#allocation24], 16  }
  0xb6   :  { %27058 = vsyncadd [#allocation24], 4294967280  ;;  %vm258_vm0 = vcmask 261120   ;;  %s31216_s19 = sld [smem:[#allocation86_spill]]  ;;  %v246_v8 = vld [vmem:[#allocation3] sm:$0xff]  ;;  %v247_v9 = vld [vmem:[#allocation3 + $0x8] sm:$0xff] }
  0xb7   :  { %v260_v11 = vsel %vm258_vm0, %v246_v8, 0  ;;  %v263_v12 = vsel %vm258_vm0, %v247_v9, 0  ;;  %v248_v13 = vld [vmem:[#allocation3 + $0x10] sm:$0xff]  ;;  %v249_v14 = vld [vmem:[#allocation3 + $0x18] sm:$0xff]  ;;  %v250_v39 = vld [vmem:[#allocation3 + $0x20] sm:$0xff]  ;;  %vm1077_vm1 = vcmask 64512  }
  0xb8   :  { %v27283_v16 = vand.u32 4294901760, %v260_v11  ;;  %v27285_v17 = vand.u32 4294901760, %v263_v12  ;;  %v266_v20 = vsel %vm258_vm0, %v248_v13, 0  ;;  %v269_v21 = vsel %vm258_vm0, %v249_v14, 0  ;;  %v251_v40 = vld [vmem:[#allocation3 + $0x28] sm:$0xff]  ;;  %v252_v48 = vld [vmem:[#allocation3 + $0x30] sm:$0xff] }
  0xb9   :  { %v27317_v28 = vand.u32 4294901760, %v266_v20  ;;  %v27319_v29 = vand.u32 4294901760, %v269_v21  ;;  %v253_v49 = vld [vmem:[#allocation3 + $0x38] sm:$0xff]  ;;  %v272_v52 = vsel %vm258_vm0, %v250_v39, 0  ;;  %v275_v53 = vsel %vm258_vm0, %v251_v40, 0  ;;  %s27077_s26 = smov 32  }
  0xba   :  { %v27304_v24 = vsub.f32 %v260_v11, %v27283_v16  ;;  %v27307_v25 = vsub.f32 %v263_v12, %v27285_v17  ;;  %23717 = vmatprep.mubr.f32.mxu1 %v27283_v16  ;;  %v27361_v56 = vand.u32 4294901760, %v272_v52  ;;  %v27363_v57 = vand.u32 4294901760, %v275_v53  ;;  %s27078_s27 = smov 64   ;;  %s27079_s8 = smov 96  }
  0xbb   :  { %v27335_v36 = vsub.f32 %v266_v20, %v27317_v28  ;;  %v27338_v37 = vsub.f32 %v269_v21, %v27319_v29  ;;  %v278_v59 = vsel %vm258_vm0, %v252_v48, 0  ;;  %v281_v60 = vsel %vm258_vm0, %v253_v49, 0 }
  0xbc   :  { %v257_v1 = vld [vmem:[%s31216_s19 + $0x18] sm:$0xff]  ;;  %v256_v2 = vld [vmem:[%s31216_s19 + $0x10] sm:$0xff]  ;;  %v255_v3 = vld [vmem:[%s31216_s19 + $0x8] sm:$0xff]  ;;  %v354_v32 = vand.u32 4294901760, %v27304_v24  ;;  %v364_v33 = vand.u32 4294901760, %v27307_v25  ;;  %v27368_v63 = vsub.f32 %v272_v52, %v27361_v56  ;;  %v27371_v0 = vsub.f32 %v275_v53, %v27363_v57 }
  0xbd   :  { %v27266_v4 = vand.u32 4294901760, %v257_v1  ;;  %v27268_v5 = vand.u32 4294901760, %v256_v2  ;;  %v27270_v6 = vand.u32 4294901760, %v255_v3  ;;  %v254_v7 = vld [vmem:[%s31216_s19] sm:$0xff]  ;;  %v374_v46 = vand.u32 4294901760, %v27335_v36 }
  0xbe   :  { %v27275_v10 = vand.u32 4294901760, %v254_v7  ;;  %v355_v42 = vsub.f32 %v27304_v24, %v354_v32  ;;  %v365_v43 = vsub.f32 %v27307_v25, %v364_v33  ;;  %v384_v47 = vand.u32 4294901760, %v27338_v37 }
  0xbf   :  { %23689 = vmatprep.subr.mxu0 %v27266_v4  ;;  %v27281_v15 = vsub.f32 %v257_v1, %v27266_v4  ;;  %v27288_v18 = vsub.f32 %v256_v2, %v27268_v5  ;;  %v27292_v19 = vsub.f32 %v255_v3, %v27270_v6  ;;  %v375_v54 = vsub.f32 %v27335_v36, %v374_v46 }
  0xc0   :  { %23690 = vmatpush3.msra.mxu0 %v27266_v4  ;;  %v27297_v22 = vsub.f32 %v254_v7, %v27275_v10  ;;  %v356_v50 = vand.u32 4294901760, %v355_v42  ;;  %v366_v51 = vand.u32 4294901760, %v365_v43  ;;  %v385_v55 = vsub.f32 %v27338_v37, %v384_v47 }
  0xc1   :  { %23691 = vmatprep.subr.mxu0 %v27268_v5  ;;  %v27301_v23 = vand.u32 4294901760, %v27281_v15  ;;  %v27310_v26 = vand.u32 4294901760, %v27288_v18  ;;  %v27315_v27 = vand.u32 4294901760, %v27292_v19  ;;  %v376_v61 = vand.u32 4294901760, %v375_v54 }
  0xc2   :  { %23692 = vmatpush3.msra.mxu0 %v27268_v5  ;;  %v27322_v30 = vand.u32 4294901760, %v27297_v22  ;;  %23697 = vmatprep.mubr.f32.mxu0 %v356_v50  ;;  %v386_v62 = vand.u32 4294901760, %v385_v55  ;;  %v27374_v1 = vand.u32 4294901760, %v278_v59  ;;  %v27376_v2 = vand.u32 4294901760, %v281_v60 }
  0xc3   :  { %23693 = vmatprep.subr.mxu0 %v27270_v6  ;;  %v460_v31 = vsub.f32 %v27281_v15, %v27301_v23  ;;  %v467_v34 = vsub.f32 %v27288_v18, %v27310_v26  ;;  %v474_v35 = vsub.f32 %v27292_v19, %v27315_v27  ;;  %v394_v3 = vand.u32 4294901760, %v27368_v63 }
  0xc4   :  { %23694 = vmatpush3.msra.mxu0 %v27270_v6  ;;  %v481_v38 = vsub.f32 %v27297_v22, %v27322_v30  ;;  %v404_v7 = vand.u32 4294901760, %v27371_v0  ;;  %v27382_v8 = vsub.f32 %v278_v59, %v27374_v1  ;;  %v27385_v9 = vsub.f32 %v281_v60, %v27376_v2 }
  0xc5   :  { %23695 = vmatprep.subr.mxu0 %v27275_v10  ;;  %v461_v41 = vand.u32 4294901760, %v460_v31  ;;  %v468_v44 = vand.u32 4294901760, %v467_v34  ;;  %v475_v45 = vand.u32 4294901760, %v474_v35  ;;  %v395_v11 = vsub.f32 %v27368_v63, %v394_v3 }
  0xc6   :  { %23696 = vmatpush3.msra.mxu0 %v27275_v10  ;;  %v482_v58 = vand.u32 4294901760, %v481_v38  ;;  %v405_v12 = vsub.f32 %v27371_v0, %v404_v7  ;;  %v414_v13 = vand.u32 4294901760, %v27382_v8  ;;  %v424_v14 = vand.u32 4294901760, %v27385_v9 }
  0xc7   :  { %23709 = vmatprep.subr.mxu1 %v461_v41  ;;  %23729 = vmatprep.subr.mxu0 %v27281_v15  ;;  %vm27076_vm2 = vmmov 0   ;;  %vm18387_vm3 = vcmask 130048   ;;  %vm19422_vm4 = vcmask 523264   ;;  %vm22241_vm5 = vcmask 90112  }
  0xc8   :  { %23710 = vmatpush3.msra.mxu1 %v461_v41  ;;  %23698 = vmatmul.mubr.f32.vlgmr.msra.gmra.mxu0 %v366_v51  ;;  %v406_v20 = vand.u32 4294901760, %v405_v12  ;;  %v415_v21 = vsub.f32 %v27382_v8, %v414_v13  ;;  %v425_v31 = vsub.f32 %v27385_v9, %v424_v14 }
  0xc9   :  { %23711 = vmatprep.subr.mxu1 %v468_v44  ;;  %23730 = vmatpush3.msra.mxu0 %v27281_v15  ;;  %v396_v15 = vand.u32 4294901760, %v395_v11 }
  0xca   :  { %23712 = vmatpush3.msra.mxu1 %v468_v44  ;;  %23700 = vmatprep.mubr.f32.mxu0 %v376_v61  ;;  %v416_v34 = vand.u32 4294901760, %v415_v21  ;;  %v426_v35 = vand.u32 4294901760, %v425_v31 }
  0xcb   :  { %23713 = vmatprep.subr.mxu1 %v475_v45  ;;  %23731 = vmatprep.subr.mxu0 %v27288_v18 }
  0xcc   :  { %23714 = vmatpush3.msra.mxu1 %v475_v45  ;;  %23701 = vmatmul.mubr.f32.gmra.mxu0 %v386_v62 }
  0xcd   :  { %23715 = vmatprep.subr.mxu1 %v482_v58  ;;  %23732 = vmatpush3.msra.mxu0 %v27288_v18 }
  0xce   :  { %23716 = vmatpush3.msra.mxu1 %v482_v58  ;;  %23703 = vmatprep.mubr.f32.mxu0 %v396_v15 }
  0xcf   :  { %23718 = vmatmul.mubr.f32.vlgmr.msra.gmra.mxu1 %v27285_v17  ;;  %23749 = vmatprep.subr.mxu1 %v27266_v4 }
  0xd0   :  { %23750 = vmatpush3.msra.mxu1 %v27266_v4  ;;  %23720 = vmatprep.mubr.f32.mxu1 %v27317_v28 }
  0xd1   :  { %23751 = vmatprep.subr.mxu1 %v27268_v5  ;;  %23704 = vmatmul.mubr.f32.gmra.mxu0 %v406_v20 }
  0xd2   :  { %23752 = vmatpush3.msra.mxu1 %v27268_v5  ;;  %23733 = vmatprep.subr.mxu0 %v27292_v19 }
  0xd3   :  { %23721 = vmatmul.mubr.f32.gmra.mxu1 %v27319_v29  ;;  %23706 = vmatprep.mubr.f32.mxu0 %v416_v34 }
  0xd4   :  { %23723 = vmatprep.mubr.f32.mxu1 %v27361_v56  ;;  %23734 = vmatpush3.msra.mxu0 %v27292_v19 }
  0xd5   :  { %23735 = vmatprep.subr.mxu0 %v27297_v22  ;;  %23753 = vmatprep.subr.mxu1 %v27270_v6 }
  0xd6   :  { %23707 = vmatmul.mubr.f32.gmra.mxu0 %v426_v35  ;;  %23754 = vmatpush3.msra.mxu1 %v27270_v6 }
  0xd7   :  { %23724 = vmatmul.mubr.f32.gmra.mxu1 %v27363_v57  ;;  %23736 = vmatpush3.msra.mxu0 %v27297_v22 }
  0xd8   :  { %23737 = vmatprep.mubr.f32.mxu0 %v27304_v24  ;;  %23726 = vmatprep.mubr.f32.mxu1 %v27374_v1 }
  0xd9   :  { %23755 = vmatprep.subr.mxu1 %v27275_v10  ;;  %23769 = vmatprep.subr.mxu0 %v27301_v23 }
  0xda   :  { %23738 = vmatmul.mubr.f32.vlgmr.msra.gmra.mxu0 %v27307_v25  ;;  %23756 = vmatpush3.msra.mxu1 %v27275_v10 }
  0xdb   :  { %23727 = vmatmul.mubr.f32.gmra.mxu1 %v27376_v2  ;;  %23740 = vmatprep.mubr.f32.mxu0 %v27335_v36 }
  0xdc   :  { %23757 = vmatprep.mubr.f32.mxu1 %v354_v32  ;;  %23770 = vmatpush3.msra.mxu0 %v27301_v23 }
  0xdd   :  { %23789 = vmatprep.subr.mxu1 %v27266_v4  ;;  %23771 = vmatprep.subr.mxu0 %v27310_v26 }
  0xde   :  { %23741 = vmatmul.mubr.f32.gmra.mxu0 %v27338_v37 }
  0xdf   :  { %23758 = vmatmul.mubr.f32.vlgmr.msra.gmra.mxu1 %v364_v33  ;;  %23743 = vmatprep.mubr.f32.mxu0 %v27368_v63 }
  0xe0   :  { %23790 = vmatpush3.msra.mxu1 %v27266_v4  ;;  %23760 = vmatprep.mubr.f32.mxu1 %v374_v46  ;;  %v1069_v4 = vld [vmem:[#allocation5] sm:$0xff] }
  0xe1   :  { %23772 = vmatpush3.msra.mxu0 %v27310_v26  ;;  %23791 = vmatprep.subr.mxu1 %v27268_v5 }
  0xe2   :  { %23773 = vmatprep.subr.mxu0 %v27315_v27  ;;  %23744 = vmatmul.mubr.f32.gmra.mxu0 %v27371_v0 }
  0xe3   :  { %23761 = vmatmul.mubr.f32.gmra.mxu1 %v384_v47  ;;  %23746 = vmatprep.mubr.f32.mxu0 %v27382_v8 }
  0xe4   :  { %23792 = vmatpush3.msra.mxu1 %v27268_v5  ;;  %23763 = vmatprep.mubr.f32.mxu1 %v394_v3  ;;  %v27465_v5 = vand.u32 4294901760, %v1069_v4 }
  0xe5   :  { %23774 = vmatpush3.msra.mxu0 %v27315_v27  ;;  %23793 = vmatprep.subr.mxu1 %v27270_v6 }
  0xe6   :  { %23775 = vmatprep.subr.mxu0 %v27322_v30  ;;  %23747 = vmatmul.mubr.f32.gmra.mxu0 %v27385_v9 }
  0xe7   :  { %23764 = vmatmul.mubr.f32.gmra.mxu1 %v404_v7  ;;  %23776 = vmatpush3.msra.mxu0 %v27322_v30 }
  0xe8   :  { %23777 = vmatprep.mubr.f32.mxu0 %v27283_v16  ;;  %23794 = vmatpush3.msra.mxu1 %v27270_v6  ;;  %v27469_v6 = vsub.f32 %v1069_v4, %v27465_v5 }
  0xe9   :  { %23766 = vmatprep.mubr.f32.mxu1 %v414_v13  ;;  %23795 = vmatprep.subr.mxu1 %v27275_v10 }
  0xea   :  { %23778 = vmatmul.mubr.f32.vlgmr.msra.gmra.mxu0 %v27285_v17  ;;  %23796 = vmatpush3.msra.mxu1 %v27275_v10  ;;  %v27473_v10 = vand.u32 4294901760, %v27469_v6 }
  0xeb   :  { %23767 = vmatmul.mubr.f32.gmra.mxu1 %v424_v14  ;;  %23780 = vmatprep.mubr.f32.mxu0 %v27317_v28 }
  0xec   :  { %23797 = vmatprep.mubr.f32.mxu1 %v27283_v16  ;;  %23809 = vmatprep.subr.mxu0 %v27465_v5  ;;  %v1282_v16 = vsub.f32 %v27469_v6, %v27473_v10 }
  0xed   :  { %23810 = vmatpush3.msra.mxu0 %v27465_v5 }
  0xee   :  { %23781 = vmatmul.mubr.f32.gmra.mxu0 %v27319_v29  ;;  %23837 = vmatprep.subr.mxu0 %v27469_v6 }
  0xef   :  { %23798 = vmatmul.mubr.f32.vlgmr.msra.gmra.mxu1 %v27285_v17  ;;  %23783 = vmatprep.mubr.f32.mxu0 %v27361_v56  ;;  %v1283_v17 = vand.u32 4294901760, %v1282_v16 }
  0xf0   :  { %23800 = vmatprep.mubr.f32.mxu1 %v27317_v28 }
  0xf1   :  { %23823 = vmatprep.subr.mxu1 %v1283_v17 }
  0xf2   :  { %23784 = vmatmul.mubr.f32.gmra.mxu0 %v27363_v57  ;;  %23824 = vmatpush3.msra.mxu1 %v1283_v17 }
  0xf3   :  { %23801 = vmatmul.mubr.f32.gmra.mxu1 %v27319_v29  ;;  %23786 = vmatprep.mubr.f32.mxu0 %v27374_v1 }
  0xf4   :  { %23803 = vmatprep.mubr.f32.mxu1 %v27361_v56  ;;  %23851 = vmatprep.subr.mxu1 %v27465_v5 }
  0xf6   :  { %23787 = vmatmul.mubr.f32.gmra.mxu0 %v27376_v2 }
  0xf7   :  { %23804 = vmatmul.mubr.f32.gmra.mxu1 %v27363_v57 }
  0xf8   :  { %23806 = vmatprep.mubr.f32.mxu1 %v27374_v1 }
  0xfb   :  { %23807 = vmatmul.mubr.f32.gmra.mxu1 %v27376_v2 }
 0x188   :  { %v23699_v18 = vpop.f32.mrf.mxu0 }
 0x18a   :  { %v358_v19 = vpop.f32.mrf.mxu0 }
 0x18c   :  { %v23702_v22 = vpop.f32.mrf.mxu0 }
 0x18e   :  { %v378_v24 = vpop.f32.mrf.mxu0 }
 0x18f   :  { %v23719_v23 = vpop.f32.mrf.mxu1 }
 0x190   :  { %v526_v51 = vadd.f32 %v23719_v23, %v23699_v18 }
 0x191   :  { %v519_v25 = vpop.f32.mrf.mxu1  ;;  %v23705_v26 = vpop.f32.mrf.mxu0 }
 0x192   :  { %v520_v54 = vadd.f32 %v519_v25, %v358_v19 }
 0x193   :  { %v23722_v27 = vpop.f32.mrf.mxu1  ;;  %v398_v28 = vpop.f32.mrf.mxu0 }
 0x194   :  { %v538_v58 = vadd.f32 %v23722_v27, %v23702_v22 }
 0x195   :  { %v531_v29 = vpop.f32.mrf.mxu1 }
 0x196   :  { %v23708_v30 = vpop.f32.mrf.mxu0  ;;  %v532_v63 = vadd.f32 %v531_v29, %v378_v24 }
 0x197   :  { %v23725_v32 = vpop.f32.mrf.mxu1 }
 0x198   :  { %v418_v33 = vpop.f32.mrf.mxu0  ;;  %v550_v3 = vadd.f32 %v23725_v32, %v23705_v26 }
 0x199   :  { %v543_v36 = vpop.f32.mrf.mxu1 }
 0x19a   :  { %v23739_v37 = vpop.f32.mrf.mxu0  ;;  %v544_v14 = vadd.f32 %v543_v36, %v398_v28 }
 0x19b   :  { %v23728_v38 = vpop.f32.mrf.mxu1  ;;  %v649_v55 = vadd.f32 %v23739_v37, %v526_v51 }
 0x19c   :  { %v641_v39 = vpop.f32.mrf.mxu0  ;;  %v562_v16 = vadd.f32 %v23728_v38, %v23708_v30 }
 0x19d   :  { %v555_v40 = vpop.f32.mrf.mxu1  ;;  %v642_v59 = vadd.f32 %v641_v39, %v520_v54 }
 0x19e   :  { %v23742_v41 = vpop.f32.mrf.mxu0  ;;  %v556_v27 = vadd.f32 %v555_v40, %v418_v33 }
 0x19f   :  { %v23759_v42 = vpop.f32.mrf.mxu1  ;;  %v663_v0 = vadd.f32 %v23742_v41, %v538_v58 }
 0x1a0   :  { %v655_v43 = vpop.f32.mrf.mxu0  ;;  %v776_v60 = vadd.f32 %v23759_v42, %v649_v55 }
 0x1a1   :  { %v767_v44 = vpop.f32.mrf.mxu1  ;;  %v656_v9 = vadd.f32 %v655_v43, %v532_v63 }
 0x1a2   :  { %v23745_v45 = vpop.f32.mrf.mxu0  ;;  %v768_v1 = vadd.f32 %v767_v44, %v642_v59 }
 0x1a3   :  { %v23762_v46 = vpop.f32.mrf.mxu1  ;;  %v677_v15 = vadd.f32 %v23745_v45, %v550_v3 }
 0x1a4   :  { %v669_v47 = vpop.f32.mrf.mxu0  ;;  %v792_v11 = vadd.f32 %v23762_v46, %v663_v0 }
 0x1a5   :  { %v783_v48 = vpop.f32.mrf.mxu1  ;;  %v670_v17 = vadd.f32 %v669_v47, %v544_v14 }
 0x1a6   :  { %v23748_v49 = vpop.f32.mrf.mxu0  ;;  %v784_v31 = vadd.f32 %v783_v48, %v656_v9 }
 0x1a7   :  { %v23765_v50 = vpop.f32.mrf.mxu1  ;;  %v691_v28 = vadd.f32 %v23748_v49, %v562_v16 }
 0x1a8   :  { %v683_v52 = vpop.f32.mrf.mxu0  ;;  %v808_v23 = vadd.f32 %v23765_v50, %v677_v15 }
 0x1a9   :  { %v799_v53 = vpop.f32.mrf.mxu1  ;;  %v684_v42 = vadd.f32 %v683_v52, %v556_v27 }
 0x1aa   :  { %v23779_v56 = vpop.f32.mrf.mxu0  ;;  %v800_v30 = vadd.f32 %v799_v53, %v670_v17 }
 0x1ab   :  { %v23768_v57 = vpop.f32.mrf.mxu1  ;;  %v913_v2 = vadd.f32 %v23779_v56, %v776_v60 }
 0x1ac   :  { %v906_v61 = vpop.f32.mrf.mxu0  ;;  %v824_v46 = vadd.f32 %v23768_v57, %v691_v28  ;;  %v1852_v28 = vld [vmem:[#allocation8 + $0x18] sm:$0xff] }
 0x1ad   :  { %v815_v62 = vpop.f32.mrf.mxu1  ;;  %v907_v12 = vadd.f32 %v906_v61, %v768_v1 }
 0x1ae   :  { %v23782_v7 = vpop.f32.mrf.mxu0  ;;  %v816_v50 = vadd.f32 %v815_v62, %v684_v42 }
 0x1af   :  { %v23799_v8 = vpop.f32.mrf.mxu1  ;;  %v925_v34 = vadd.f32 %v23782_v7, %v792_v11 }
 0x1b0   :  { %v1030_v13 = vadd.f32 %v23799_v8, %v913_v2  ;;  %v918_v20 = vpop.f32.mrf.mxu0 }
 0x1b1   :  { %v1023_v21 = vpop.f32.mrf.mxu1  ;;  %v919_v24 = vadd.f32 %v918_v20, %v784_v31 }
 0x1b2   :  { %v1082_v35 = vsel %vm1077_vm1, %v1030_v13, 0  ;;  %v1024_v4 = vadd.f32 %v1023_v21, %v907_v12  ;;  %v23785_v19 = vpop.f32.mrf.mxu0 }
 0x1b3   :  { %v27480_v18 = vand.u32 4294901760, %v1082_v35  ;;  %v23802_v22 = vpop.f32.mrf.mxu1  ;;  %v937_v38 = vadd.f32 %v23785_v19, %v808_v23 }
 0x1b4   :  { %v1079_v25 = vsel %vm1077_vm1, %v1024_v4, 0  ;;  %v1042_v26 = vadd.f32 %v23802_v22, %v925_v34  ;;  %v930_v36 = vpop.f32.mrf.mxu0 }
 0x1b5   :  { %v27484_v29 = vsub.f32 %v1082_v35, %v27480_v18  ;;  %v27486_v32 = vand.u32 4294901760, %v1079_v25  ;;  %v1035_v37 = vpop.f32.mrf.mxu1  ;;  %v931_v47 = vadd.f32 %v930_v36, %v800_v30 }
 0x1b6   :  { %v1088_v39 = vsel %vm1077_vm1, %v1042_v26, 0  ;;  %v1036_v41 = vadd.f32 %v1035_v37, %v919_v24  ;;  %v23788_v40 = vpop.f32.mrf.mxu0 }
 0x1b7   :  { %v1180_v43 = vand.u32 4294901760, %v27484_v29  ;;  %v27491_v44 = vsub.f32 %v1079_v25, %v27486_v32  ;;  %v27493_v33 = vand.u32 4294901760, %v1088_v39  ;;  %v23805_v45 = vpop.f32.mrf.mxu1  ;;  %23825 = vmatprep.mubr.f32.mxu1 %v27486_v32  ;;  %v949_v57 = vadd.f32 %v23788_v40, %v824_v46 }
 0x1b8   :  { %v1085_v48 = vsel %vm1077_vm1, %v1036_v41, 0  ;;  %v1054_v49 = vadd.f32 %v23805_v45, %v937_v38  ;;  %23826 = vmatmul.mubr.f32.vlgmr.msra.gmra.mxu1 %v27480_v18  ;;  %v942_v53 = vpop.f32.mrf.mxu0  ;;  %v27553_v38 = vand.u32 4294901760, %v1852_v28  ;;  %v1851_v41 = vld [vmem:[#allocation8 + $0x10] sm:$0xff]  ;;  %v31120_v45 = vmov 0.0  }
 0x1b9   :  { %v27499_v51 = vsub.f32 %v1088_v39, %v27493_v33  ;;  %v27501_v52 = vand.u32 4294901760, %v1085_v48  ;;  %v1047_v54 = vpop.f32.mrf.mxu1  ;;  %v1170_v55 = vand.u32 4294901760, %v27491_v44  ;;  %23852 = vmatpush3.msra.mxu1 %v27465_v5  ;;  %v1181_v56 = vsub.f32 %v27484_v29, %v1180_v43 }
 0x1ba   :  { %v1094_v58 = vsel %vm1077_vm1, %v1054_v49, 0  ;;  %v1048_v59 = vadd.f32 %v1047_v54, %v931_v47  ;;  %23879 = vmatprep.subr.mxu1 %v27465_v5  ;;  %v943_v0 = vadd.f32 %v942_v53, %v816_v50  ;;  %v27560_v46 = vsub.f32 %v1852_v28, %v27553_v38  ;;  %v1849_v50 = vld [vmem:[#allocation8] sm:$0xff] }
 0x1bb   :  { %v27511_v60 = vsub.f32 %v1085_v48, %v27501_v52  ;;  %v27513_v61 = vand.u32 4294901760, %v1094_v58  ;;  %v23808_v62 = vpop.f32.mrf.mxu1  ;;  %23828 = vmatprep.mubr.f32.mxu1 %v27501_v52  ;;  %v1171_v63 = vsub.f32 %v27491_v44, %v1170_v55  ;;  %v1200_v3 = vand.u32 4294901760, %v27499_v51  ;;  %v1850_v48 = vld [vmem:[#allocation8 + $0x8] sm:$0xff] }
 0x1bc   :  { %v1091_v1 = vsel %vm1077_vm1, %v1048_v59, 0  ;;  %v1066_v2 = vadd.f32 %v23808_v62, %v949_v57  ;;  %23829 = vmatmul.mubr.f32.gmra.mxu1 %v27493_v33  ;;  %v1182_v13 = vand.u32 4294901760, %v1181_v56  ;;  %v27562_v47 = vand.u32 4294901760, %v1851_v41 }
 0x1bd   :  { %v27521_v7 = vsub.f32 %v1094_v58, %v27513_v61  ;;  %v27523_v8 = vand.u32 4294901760, %v1091_v1  ;;  %v1059_v9 = vpop.f32.mrf.mxu1  ;;  %v1172_v11 = vand.u32 4294901760, %v1171_v63  ;;  %v1190_v12 = vand.u32 4294901760, %v27511_v60 }
 0x1be   :  { %v1100_v14 = vsel %vm1077_vm1, %v1066_v2, 0  ;;  %v1060_v15 = vadd.f32 %v1059_v9, %v943_v0  ;;  %v1201_v20 = vsub.f32 %v27499_v51, %v1200_v3  ;;  %v27571_v49 = vand.u32 4294901760, %v1850_v48  ;;  %v1853_v2 = vld [vmem:[#allocation10] sm:$0xff] }
 0x1bf   :  { %v27529_v21 = vsub.f32 %v1091_v1, %v27523_v8  ;;  %v27531_v31 = vand.u32 4294901760, %v1100_v14  ;;  %23811 = vmatprep.mubr.f32.mxu0 %v1172_v11  ;;  %23831 = vmatprep.mubr.f32.mxu1 %v27523_v8  ;;  %v1191_v34 = vsub.f32 %v27511_v60, %v1190_v12  ;;  %v1220_v35 = vand.u32 4294901760, %v27521_v7 }
 0x1c0   :  { %v1097_v4 = vsel %vm1077_vm1, %v1060_v15, 0  ;;  %23812 = vmatmul.mubr.f32.vlgmr.msra.gmra.mxu0 %v1182_v13  ;;  %23832 = vmatmul.mubr.f32.gmra.mxu1 %v27513_v61  ;;  %v1202_v23 = vand.u32 4294901760, %v1201_v20  ;;  %v27582_v54 = vsub.f32 %v1850_v48, %v27571_v49 }
 0x1c1   :  { %v27539_v16 = vsub.f32 %v1100_v14, %v27531_v31  ;;  %v27541_v17 = vand.u32 4294901760, %v1097_v4  ;;  %23838 = vmatpush3.msra.mxu0 %v27469_v6  ;;  %v1192_v19 = vand.u32 4294901760, %v1191_v34  ;;  %v1210_v22 = vand.u32 4294901760, %v27529_v21 }
 0x1c2   :  { %v1221_v24 = vsub.f32 %v27521_v7, %v1220_v35  ;;  %23865 = vmatprep.subr.mxu0 %v27473_v10  ;;  %v27595_v56 = vand.u32 4294901760, %v27582_v54 }
 0x1c3   :  { %v1229_v25 = vsub.f32 %v1097_v4, %v27541_v17  ;;  %23814 = vmatprep.mubr.f32.mxu0 %v1192_v19  ;;  %23834 = vmatprep.mubr.f32.mxu1 %v27541_v17  ;;  %v1211_v26 = vsub.f32 %v27529_v21, %v1210_v22  ;;  %v1240_v27 = vand.u32 4294901760, %v27539_v16  ;;  %v1859_v19 = vld [vmem:[#allocation11 + $0x10] sm:$0xff] }
 0x1c4   :  { %23815 = vmatmul.mubr.f32.gmra.mxu0 %v1202_v23  ;;  %23835 = vmatmul.mubr.f32.gmra.mxu1 %v27531_v31  ;;  %v1222_v37 = vand.u32 4294901760, %v1221_v24  ;;  %v1989_v58 = vsub.f32 %v27582_v54, %v27595_v56  ;;  %v1858_v23 = vld [vmem:[#allocation11 + $0x8] sm:$0xff]  ;;  %v27774_v24 = vand.u32 4294901760, %v1859_v19 }
 0x1c5   :  { %23853 = vmatprep.mubr.f32.mxu1 %v1170_v55  ;;  %v1212_v6 = vand.u32 4294901760, %v1211_v26  ;;  %v1230_v36 = vand.u32 4294901760, %v1229_v25  ;;  %v1241_v30 = vsub.f32 %v27539_v16, %v1240_v27  ;;  %v27584_v55 = vand.u32 4294901760, %v1849_v50 }
 0x1c6   :  { %31221 = vst [vmem:[#allocation37_spill] sm:$0xff] %v27774_v24  ;;  %v27783_v26 = vand.u32 4294901760, %v1858_v23  ;;  %v27791_v28 = vsub.f32 %v1859_v19, %v27774_v24 }
 0x1c7   :  { %23817 = vmatprep.mubr.f32.mxu0 %v1212_v6  ;;  %v1231_v39 = vsub.f32 %v1229_v25, %v1230_v36  ;;  %v1242_v40 = vand.u32 4294901760, %v1241_v30  ;;  %v27598_v57 = vsub.f32 %v1849_v50, %v27584_v55 }
 0x1c8   :  { %23818 = vmatmul.mubr.f32.gmra.mxu0 %v1222_v37  ;;  %23854 = vmatmul.mubr.f32.vlgmr.msra.gmra.mxu1 %v1180_v43  ;;  %v27566_v43 = vand.u32 4294901760, %v27560_v46  ;;  %31223 = vst [vmem:[#allocation39_spill] sm:$0xff] %v27783_v26  ;;  %31224 = vst [vmem:[#allocation40_spill] sm:$0xff] %v27791_v28  ;;  %v27804_v37 = vsub.f32 %v1858_v23, %v27783_v26  ;;  %v27811_v30 = vand.u32 4294901760, %v27791_v28 }
 0x1c9   :  { %23856 = vmatprep.mubr.f32.mxu1 %v1190_v12  ;;  %v1232_v42 = vand.u32 4294901760, %v1231_v39  ;;  %23880 = vmatpush3.msra.mxu1 %v27465_v5  ;;  %v27569_v5 = vsub.f32 %v1851_v41, %v27562_v47  ;;  %v27609_v59 = vand.u32 4294901760, %v27598_v57 }
 0x1ca   :  { %23904 = vmatprep.subr.mxu1 %v31120_v45  ;;  %31227 = vst [vmem:[#allocation43_spill] sm:$0xff] %v27804_v37  ;;  %31228 = vst [vmem:[#allocation44_spill] sm:$0xff] %v27811_v30 }
 0x1cb   :  { %23820 = vmatprep.mubr.f32.mxu0 %v1232_v42  ;;  %v27579_v53 = vand.u32 4294901760, %v27569_v5  ;;  %v1996_v62 = vsub.f32 %v27598_v57, %v27609_v59  ;;  %v27823_v42 = vand.u32 4294901760, %v27804_v37 }
 0x1cc   :  { %23821 = vmatmul.mubr.f32.gmra.mxu0 %v1242_v40  ;;  %23857 = vmatmul.mubr.f32.gmra.mxu1 %v1200_v3  ;;  %v2970_v40 = vsub.f32 %v27791_v28, %v27811_v30 }
 0x1cd   :  { %23839 = vmatprep.mubr.f32.mxu0 %v27491_v44  ;;  %23859 = vmatprep.mubr.f32.mxu1 %v1210_v22  ;;  %v1975_v44 = vsub.f32 %v27560_v46, %v27566_v43  ;;  %31230 = vst [vmem:[#allocation46_spill] sm:$0xff] %v27823_v42 }
 0x1d0   :  { %23840 = vmatmul.mubr.f32.vlgmr.msra.gmra.mxu0 %v27484_v29  ;;  %23860 = vmatmul.mubr.f32.gmra.mxu1 %v1220_v35  ;;  %v1982_v29 = vsub.f32 %v27569_v5, %v27579_v53 }
 0x1d1   :  { %23842 = vmatprep.mubr.f32.mxu0 %v27511_v60  ;;  %23862 = vmatprep.mubr.f32.mxu1 %v1230_v36  ;;  %v27617_v60 = vand.u32 4294901760, %v1989_v58 }
 0x1d2   :  { %23866 = vmatpush3.msra.mxu0 %v27473_v10  ;;  %v27590_v10 = vand.u32 4294901760, %v1975_v44  ;;  %v2977_v44 = vsub.f32 %v27804_v37, %v27823_v42 }
 0x1d3   :  { %23893 = vmatprep.subr.mxu0 %v31120_v45  ;;  %31219 = vst [vmem:[#allocation35_spill] sm:$0xff] %v27617_v60 }
 0x1d4   :  { %23843 = vmatmul.mubr.f32.gmra.mxu0 %v27499_v51  ;;  %23863 = vmatmul.mubr.f32.gmra.mxu1 %v1240_v27  ;;  %31217 = vst [vmem:[#allocation33_spill] sm:$0xff] %v27590_v10  ;;  %v27604_v51 = vand.u32 4294901760, %v1982_v29  ;;  %v1857_v27 = vld [vmem:[#allocation11] sm:$0xff]  ;;  %v27848_v29 = vand.u32 4294901760, %v2970_v40 }
 0x1d5   :  { %23845 = vmatprep.mubr.f32.mxu0 %v27529_v21  ;;  %23881 = vmatprep.mubr.f32.mxu1 %v27486_v32  ;;  %v27795_v6 = vand.u32 4294901760, %v1857_v27 }
 0x1d6   :  { %31218 = vst [vmem:[#allocation34_spill] sm:$0xff] %v27604_v51 }
 0x1d7   :  { %31225 = vst [vmem:[#allocation41_spill] sm:$0xff] %v27795_v6  ;;  %v27816_v39 = vsub.f32 %v1857_v27, %v27795_v6 }
 0x1d8   :  { %23846 = vmatmul.mubr.f32.gmra.mxu0 %v27521_v7  ;;  %23882 = vmatmul.mubr.f32.vlgmr.msra.gmra.mxu1 %v27480_v18  ;;  %v27682_v7 = vand.u32 4294901760, %v1853_v2 }
 0x1d9   :  { %23848 = vmatprep.mubr.f32.mxu0 %v1229_v25  ;;  %23884 = vmatprep.mubr.f32.mxu1 %v27501_v52  ;;  %31229 = vst [vmem:[#allocation45_spill] sm:$0xff] %v27816_v39  ;;  %v27834_v48 = vand.u32 4294901760, %v27816_v39 }
 0x1da   :  { %23905 = vmatpush3.msra.mxu1 %v27590_v10  ;;  %v27702_v12 = vsub.f32 %v1853_v2, %v27682_v7 }
 0x1db   :  { %23906 = vmatprep.subr.mxu1 %v31120_v45  ;;  %31231 = vst [vmem:[#allocation47_spill] sm:$0xff] %v27834_v48  ;;  %v2984_v58 = vsub.f32 %v27816_v39, %v27834_v48 }
 0x1dc   :  { %23849 = vmatmul.mubr.f32.gmra.mxu0 %v27539_v16  ;;  %23885 = vmatmul.mubr.f32.gmra.mxu1 %v27493_v33  ;;  %v27721_v20 = vand.u32 4294901760, %v27702_v12 }
 0x1dd   :  { %23867 = vmatprep.mubr.f32.mxu0 %v27486_v32  ;;  %23887 = vmatprep.mubr.f32.mxu1 %v27523_v8  ;;  %v27628_v32 = vand.u32 4294901760, %v1996_v62  ;;  %v27856_v62 = vand.u32 4294901760, %v2977_v44 }
 0x1de   :  { %23907 = vmatpush3.msra.mxu1 %v27604_v51  ;;  %v2488_v35 = vsub.f32 %v27702_v12, %v27721_v20 }
 0x1df   :  { %23908 = vmatprep.subr.mxu1 %v31120_v45  ;;  %31220 = vst [vmem:[#allocation36_spill] sm:$0xff] %v27628_v32 }
 0x1e0   :  { %23868 = vmatmul.mubr.f32.vlgmr.msra.gmra.mxu0 %v27480_v18  ;;  %23888 = vmatmul.mubr.f32.gmra.mxu1 %v27513_v61  ;;  %v1856_v18 = vld [vmem:[#allocation10 + $0x18] sm:$0xff]  ;;  %v27750_v16 = vand.u32 4294901760, %v2488_v35 }
 0x1e1   :  { %23870 = vmatprep.mubr.f32.mxu0 %v27501_v52  ;;  %23890 = vmatprep.mubr.f32.mxu1 %v27541_v17  ;;  %v27656_v52 = vand.u32 4294901760, %v1856_v18 }
 0x1e2   :  { %23894 = vmatpush3.msra.mxu0 %v27553_v38  ;;  %23909 = vmatpush3.msra.mxu1 %v27617_v60 }
 0x1e3   :  { %23895 = vmatprep.subr.mxu0 %v31120_v45  ;;  %23910 = vmatprep.subr.mxu1 %v31120_v45  ;;  %v27669_v0 = vsub.f32 %v1856_v18, %v27656_v52  ;;  %v27864_v18 = vand.u32 4294901760, %v2984_v58 }
 0x1e4   :  { %23871 = vmatmul.mubr.f32.gmra.mxu0 %v27493_v33  ;;  %23891 = vmatmul.mubr.f32.gmra.mxu1 %v27531_v31  ;;  %v1855_v33 = vld [vmem:[#allocation10 + $0x10] sm:$0xff] }
 0x1e5   :  { %23873 = vmatprep.mubr.f32.mxu0 %v27523_v8  ;;  %23896 = vmatpush3.msra.mxu0 %v27562_v47  ;;  %v27661_v63 = vand.u32 4294901760, %v1855_v33  ;;  %v27687_v8 = vand.u32 4294901760, %v27669_v0 }
 0x1e6   :  { %23897 = vmatprep.subr.mxu0 %v31120_v45  ;;  %23911 = vmatpush3.msra.mxu1 %v27628_v32 }
 0x1e7   :  { %23898 = vmatpush3.msra.mxu0 %v27571_v49  ;;  %23912 = vmatprep.mubr.msk.f32.mxu1 %vm27076_vm2, %v31120_v45  ;;  %v27678_v3 = vsub.f32 %v1855_v33, %v27661_v63  ;;  %v2467_v13 = vsub.f32 %v27669_v0, %v27687_v8  ;;  %v1864_v33 = vld [vmem:[#allocation13 + $0x18] sm:$0xff] }
 0x1e8   :  { %23874 = vmatmul.mubr.f32.gmra.mxu0 %v27513_v61  ;;  %23899 = vmatprep.subr.mxu0 %v31120_v45  ;;  %v1854_v61 = vld [vmem:[#allocation10 + $0x8] sm:$0xff]  ;;  %v27882_v2 = vand.u32 4294901760, %v1864_v33 }
 0x1e9   :  { %23876 = vmatprep.mubr.f32.mxu0 %v27541_v17  ;;  %23900 = vmatpush3.msra.mxu0 %v27584_v55  ;;  %v27671_v1 = vand.u32 4294901760, %v1854_v61  ;;  %v27697_v11 = vand.u32 4294901760, %v27678_v3  ;;  %v27725_v21 = vand.u32 4294901760, %v2467_v13  ;;  %v1860_v17 = vld [vmem:[#allocation11 + $0x18] sm:$0xff]  ;;  %v1862_v13 = vld [vmem:[#allocation13 + $0x8] sm:$0xff] }
 0x1ea   :  { %23915 = vmatprep.subr.mxu0 %v31120_v45  ;;  %23926 = vmatprep.subr.mxu1 %v31120_v45  ;;  %v27768_v22 = vand.u32 4294901760, %v1860_v17  ;;  %31232 = vst [vmem:[#allocation48_spill] sm:$0xff] %v27882_v2  ;;  %v27897_v35 = vand.u32 4294901760, %v1862_v13 }
 0x1eb   :  { %23913 = vmatmul.mubr.f32.vlgmr.msra.gmra.mxu1 %v31120_v45  ;;  %v27690_v9 = vsub.f32 %v1854_v61, %v27671_v1  ;;  %v2474_v15 = vsub.f32 %v27678_v3, %v27697_v11  ;;  %v1863_v61 = vld [vmem:[#allocation13 + $0x10] sm:$0xff] }
 0x1ec   :  { %23877 = vmatmul.mubr.f32.gmra.mxu0 %v27531_v31  ;;  %23927 = vmatpush3.msra.mxu1 %v27553_v38  ;;  %v27781_v25 = vsub.f32 %v1860_v17, %v27768_v22  ;;  %31235 = vst [vmem:[#allocation51_spill] sm:$0xff] %v27897_v35  ;;  %v1861_v17 = vld [vmem:[#allocation13] sm:$0xff] }
 0x1ed   :  { %23901 = vmatprep.mubr.msk.f32.mxu0 %vm27076_vm2, %v31120_v45  ;;  %23928 = vmatprep.subr.mxu1 %v31120_v45  ;;  %v27709_v14 = vand.u32 4294901760, %v27690_v9  ;;  %v27734_v34 = vand.u32 4294901760, %v2474_v15  ;;  %v27888_v15 = vand.u32 4294901760, %v1863_v61  ;;  %v27915_v27 = vand.u32 4294901760, %v1861_v17 }
 0x1ee   :  { %23929 = vmatpush3.msra.mxu1 %v27562_v47  ;;  %23934 = vmatprep.mubr.msk.f32.mxu1 %vm27076_vm2, %v31120_v45  ;;  %31222 = vst [vmem:[#allocation38_spill] sm:$0xff] %v27781_v25  ;;  %v27801_v36 = vand.u32 4294901760, %v27781_v25 }
 0x1ef   :  { %23930 = vmatprep.subr.mxu1 %v31120_v45  ;;  %v2481_v31 = vsub.f32 %v27690_v9, %v27709_v14  ;;  %31233 = vst [vmem:[#allocation49_spill] sm:$0xff] %v27888_v15  ;;  %v27905_v19 = vsub.f32 %v1863_v61, %v27888_v15  ;;  %31238 = vst [vmem:[#allocation54_spill] sm:$0xff] %v27915_v27 }
 0x1f0   :  { %23902 = vmatmul.mubr.f32.vlgmr.msra.gmra.mxu0 %v31120_v45  ;;  %23931 = vmatpush3.msra.mxu1 %v27571_v49  ;;  %31226 = vst [vmem:[#allocation42_spill] sm:$0xff] %v27801_v36  ;;  %v2963_v41 = vsub.f32 %v27781_v25, %v27801_v36 }
 0x1f1   :  { %23916 = vmatpush3.msra.mxu0 %v27560_v46  ;;  %23932 = vmatprep.subr.mxu1 %v31120_v45  ;;  %v27742_v4 = vand.u32 4294901760, %v2481_v31  ;;  %v27895_v31 = vsub.f32 %v1864_v33, %v27882_v2  ;;  %31236 = vst [vmem:[#allocation52_spill] sm:$0xff] %v27905_v19  ;;  %v27925_v40 = vand.u32 4294901760, %v27905_v19  ;;  %v27937_v33 = vsub.f32 %v1861_v17, %v27915_v27 }
 0x1f2   :  { %23917 = vmatprep.subr.mxu0 %v31120_v45  ;;  %23923 = vmatprep.mubr.msk.f32.mxu0 %vm27076_vm2, %v31120_v45  ;;  %v27839_v50 = vand.u32 4294901760, %v2963_v41  ;;  %v27918_v41 = vsub.f32 %v1862_v13, %v27897_v35 }
 0x1f3   :  { %23918 = vmatpush3.msra.mxu0 %v27569_v5  ;;  %23933 = vmatpush3.msra.mxu1 %v27584_v55  ;;  %31234 = vst [vmem:[#allocation50_spill] sm:$0xff] %v27895_v31  ;;  %v27913_v23 = vand.u32 4294901760, %v27895_v31  ;;  %31240 = vst [vmem:[#allocation56_spill] sm:$0xff] %v27925_v40  ;;  %v3461_v61 = vsub.f32 %v27905_v19, %v27925_v40 }
 0x1f4   :  { %23919 = vmatprep.subr.mxu0 %v31120_v45  ;;  %23948 = vmatprep.subr.mxu1 %v31120_v45  ;;  %31239 = vst [vmem:[#allocation55_spill] sm:$0xff] %v27918_v41  ;;  %v27934_v58 = vand.u32 4294901760, %v27918_v41  ;;  %31242 = vst [vmem:[#allocation58_spill] sm:$0xff] %v27937_v33 }
 0x1f5   :  { %23920 = vmatpush3.msra.mxu0 %v27582_v54  ;;  %23935 = vmatmul.mubr.f32.vlgmr.msra.gmra.mxu1 %v31120_v45  ;;  %31237 = vst [vmem:[#allocation53_spill] sm:$0xff] %v27913_v23  ;;  %v3454_v44 = vsub.f32 %v27895_v31, %v27913_v23 }
 0x1f6   :  { %23921 = vmatprep.subr.mxu0 %v31120_v45  ;;  %23949 = vmatpush3.msra.mxu1 %v27553_v38  ;;  %31241 = vst [vmem:[#allocation57_spill] sm:$0xff] %v27934_v58  ;;  %v3468_v17 = vsub.f32 %v27918_v41, %v27934_v58 }
 0x1f7   :  { %23922 = vmatpush3.msra.mxu0 %v27598_v57  ;;  %23950 = vmatprep.subr.mxu1 %v31120_v45  ;;  %v27950_v13 = vand.u32 4294901760, %v3454_v44 }
 0x1f8   :  { %23924 = vmatmul.mubr.f32.vlgmr.msra.gmra.mxu0 %v31120_v45  ;;  %23937 = vmatprep.subr.mxu0 %v31120_v45  ;;  %v27968_v44 = vand.u32 4294901760, %v3468_v17 }
 0x1f9   :  { %23938 = vmatpush3.msra.mxu0 %v27566_v43  ;;  %23951 = vmatpush3.msra.mxu1 %v27562_v47  ;;  %31243 = vst [vmem:[#allocation59_spill] sm:$0xff] %v27950_v13 }
 0x1fa   :  { %23939 = vmatprep.subr.mxu0 %v31120_v45  ;;  %23952 = vmatprep.subr.mxu1 %v31120_v45  ;;  %31246 = vst [vmem:[#allocation62_spill] sm:$0xff] %v27968_v44 }
 0x1fb   :  { %23940 = vmatpush3.msra.mxu0 %v27579_v53  ;;  %23953 = vmatpush3.msra.mxu1 %v27571_v49 }
 0x1fc   :  { %23941 = vmatprep.subr.mxu0 %v31120_v45  ;;  %23954 = vmatprep.subr.mxu1 %v31120_v45 }
 0x1fd   :  { %23942 = vmatpush3.msra.mxu0 %v27595_v56  ;;  %23945 = vmatprep.mubr.msk.f32.mxu0 %vm27076_vm2, %v31120_v45 }
 0x1fe   :  { %23943 = vmatprep.subr.mxu0 %v31120_v45  ;;  %23955 = vmatpush3.msra.mxu1 %v27584_v55 }
 0x1ff   :  { %23944 = vmatpush3.msra.mxu0 %v27609_v59  ;;  %23956 = vmatprep.mubr.msk.f32.mxu1 %vm27076_vm2, %v31120_v45 }
 0x200   :  { %23946 = vmatmul.mubr.f32.vlgmr.msra.gmra.mxu0 %v31120_v45  ;;  %23959 = vmatprep.subr.mxu0 %v31120_v45 }
 0x201   :  { %23970 = vmatprep.subr.mxu1 %v31120_v45  ;;  %23957 = vmatmul.mubr.f32.vlgmr.msra.gmra.mxu1 %v31120_v45 }
 0x202   :  { %23960 = vmatpush3.msra.mxu0 %v27656_v52  ;;  %23971 = vmatpush3.msra.mxu1 %v27725_v21 }
 0x203   :  { %23961 = vmatprep.subr.mxu0 %v31120_v45  ;;  %23972 = vmatprep.subr.mxu1 %v31120_v45 }
 0x204   :  { %23962 = vmatpush3.msra.mxu0 %v27661_v63  ;;  %23973 = vmatpush3.msra.mxu1 %v27734_v34 }
 0x205   :  { %23963 = vmatprep.subr.mxu0 %v31120_v45  ;;  %23974 = vmatprep.subr.mxu1 %v31120_v45 }
 0x206   :  { %23964 = vmatpush3.msra.mxu0 %v27671_v1  ;;  %23975 = vmatpush3.msra.mxu1 %v27742_v4 }
 0x207   :  { %23965 = vmatprep.subr.mxu0 %v31120_v45  ;;  %23976 = vmatprep.subr.mxu1 %v31120_v45 }
 0x208   :  { %23966 = vmatpush3.msra.mxu0 %v27682_v7  ;;  %23967 = vmatprep.mubr.msk.f32.mxu0 %vm27076_vm2, %v31120_v45 }
 0x209   :  { %23977 = vmatpush3.msra.mxu1 %v27750_v16  ;;  %23968 = vmatmul.mubr.f32.vlgmr.msra.gmra.mxu0 %v31120_v45 }
 0x20a   :  { %23978 = vmatprep.mubr.msk.f32.mxu1 %vm27076_vm2, %v31120_v45  ;;  %23981 = vmatprep.subr.mxu0 %v31120_v45 }
 0x20b   :  { %23992 = vmatprep.subr.mxu1 %v31120_v45  ;;  %23979 = vmatmul.mubr.f32.vlgmr.msra.gmra.mxu1 %v31120_v45 }
 0x20c   :  { %23982 = vmatpush3.msra.mxu0 %v27669_v0  ;;  %23993 = vmatpush3.msra.mxu1 %v27656_v52 }
 0x20d   :  { %23983 = vmatprep.subr.mxu0 %v31120_v45  ;;  %23994 = vmatprep.subr.mxu1 %v31120_v45 }
 0x20e   :  { %23984 = vmatpush3.msra.mxu0 %v27678_v3  ;;  %23995 = vmatpush3.msra.mxu1 %v27661_v63 }
 0x20f   :  { %23985 = vmatprep.subr.mxu0 %v31120_v45  ;;  %23996 = vmatprep.subr.mxu1 %v31120_v45 }
 0x210   :  { %23986 = vmatpush3.msra.mxu0 %v27690_v9  ;;  %23997 = vmatpush3.msra.mxu1 %v27671_v1 }
 0x211   :  { %23987 = vmatprep.subr.mxu0 %v31120_v45  ;;  %23998 = vmatprep.subr.mxu1 %v31120_v45 }
 0x212   :  { %23988 = vmatpush3.msra.mxu0 %v27702_v12  ;;  %23989 = vmatprep.mubr.msk.f32.mxu0 %vm27076_vm2, %v31120_v45 }
 0x213   :  { %23999 = vmatpush3.msra.mxu1 %v27682_v7  ;;  %23990 = vmatmul.mubr.f32.vlgmr.msra.gmra.mxu0 %v31120_v45 }
 0x214   :  { %24000 = vmatprep.mubr.msk.f32.mxu1 %vm27076_vm2, %v31120_v45  ;;  %24003 = vmatprep.subr.mxu0 %v31120_v45 }
 0x215   :  { %24014 = vmatprep.subr.mxu1 %v31120_v45  ;;  %24001 = vmatmul.mubr.f32.vlgmr.msra.gmra.mxu1 %v31120_v45 }
 0x216   :  { %24004 = vmatpush3.msra.mxu0 %v27687_v8  ;;  %24015 = vmatpush3.msra.mxu1 %v27656_v52 }
 0x217   :  { %24005 = vmatprep.subr.mxu0 %v31120_v45  ;;  %24016 = vmatprep.subr.mxu1 %v31120_v45 }
 0x218   :  { %24006 = vmatpush3.msra.mxu0 %v27697_v11  ;;  %24017 = vmatpush3.msra.mxu1 %v27661_v63 }
 0x219   :  { %24007 = vmatprep.subr.mxu0 %v31120_v45  ;;  %24018 = vmatprep.subr.mxu1 %v31120_v45 }
 0x21a   :  { %24008 = vmatpush3.msra.mxu0 %v27709_v14  ;;  %24019 = vmatpush3.msra.mxu1 %v27671_v1 }
 0x21b   :  { %24009 = vmatprep.subr.mxu0 %v31120_v45  ;;  %24020 = vmatprep.subr.mxu1 %v31120_v45 }
 0x21c   :  { %24010 = vmatpush3.msra.mxu0 %v27721_v20  ;;  %24011 = vmatprep.mubr.msk.f32.mxu0 %vm27076_vm2, %v31120_v45 }
 0x21d   :  { %24021 = vmatpush3.msra.mxu1 %v27682_v7  ;;  %24012 = vmatmul.mubr.f32.vlgmr.msra.gmra.mxu0 %v31120_v45 }
 0x21e   :  { %24022 = vmatprep.mubr.msk.f32.mxu1 %vm27076_vm2, %v31120_v45  ;;  %24025 = vmatprep.subr.mxu0 %v31120_v45 }
 0x21f   :  { %24036 = vmatprep.subr.mxu1 %v31120_v45  ;;  %24023 = vmatmul.mubr.f32.vlgmr.msra.gmra.mxu1 %v31120_v45 }
 0x220   :  { %24026 = vmatpush3.msra.mxu0 %v27768_v22  ;;  %24037 = vmatpush3.msra.mxu1 %v27839_v50 }
 0x221   :  { %24027 = vmatprep.subr.mxu0 %v31120_v45  ;;  %24038 = vmatprep.subr.mxu1 %v31120_v45 }
 0x222   :  { %24028 = vmatpush3.msra.mxu0 %v27774_v24  ;;  %24039 = vmatpush3.msra.mxu1 %v27848_v29 }
 0x223   :  { %24029 = vmatprep.subr.mxu0 %v31120_v45  ;;  %24040 = vmatprep.subr.mxu1 %v31120_v45 }
 0x224   :  { %24030 = vmatpush3.msra.mxu0 %v27783_v26  ;;  %24041 = vmatpush3.msra.mxu1 %v27856_v62 }
 0x225   :  { %24031 = vmatprep.subr.mxu0 %v31120_v45  ;;  %24042 = vmatprep.subr.mxu1 %v31120_v45 }
 0x226   :  { %24032 = vmatpush3.msra.mxu0 %v27795_v6  ;;  %24033 = vmatprep.mubr.msk.f32.mxu0 %vm27076_vm2, %v31120_v45 }
 0x227   :  { %24043 = vmatpush3.msra.mxu1 %v27864_v18  ;;  %24034 = vmatmul.mubr.f32.vlgmr.msra.gmra.mxu0 %v31120_v45 }
 0x228   :  { %24044 = vmatprep.mubr.msk.f32.mxu1 %vm27076_vm2, %v31120_v45  ;;  %24047 = vmatprep.subr.mxu0 %v31120_v45 }
 0x229   :  { %24058 = vmatprep.subr.mxu1 %v31120_v45  ;;  %24045 = vmatmul.mubr.f32.vlgmr.msra.gmra.mxu1 %v31120_v45 }
 0x22a   :  { %24048 = vmatpush3.msra.mxu0 %v27781_v25  ;;  %24059 = vmatpush3.msra.mxu1 %v27768_v22 }
 0x22b   :  { %24049 = vmatprep.subr.mxu0 %v31120_v45  ;;  %24060 = vmatprep.subr.mxu1 %v31120_v45 }
 0x22c   :  { %24050 = vmatpush3.msra.mxu0 %v27791_v28  ;;  %24061 = vmatpush3.msra.mxu1 %v27774_v24 }
 0x22d   :  { %24051 = vmatprep.subr.mxu0 %v31120_v45  ;;  %24062 = vmatprep.subr.mxu1 %v31120_v45 }
 0x22e   :  { %24052 = vmatpush3.msra.mxu0 %v27804_v37  ;;  %24063 = vmatpush3.msra.mxu1 %v27783_v26 }
 0x22f   :  { %24053 = vmatprep.subr.mxu0 %v31120_v45  ;;  %24064 = vmatprep.subr.mxu1 %v31120_v45 }
 0x230   :  { %24054 = vmatpush3.msra.mxu0 %v27816_v39  ;;  %24055 = vmatprep.mubr.msk.f32.mxu0 %vm27076_vm2, %v31120_v45 }
 0x231   :  { %24065 = vmatpush3.msra.mxu1 %v27795_v6  ;;  %24056 = vmatmul.mubr.f32.vlgmr.msra.gmra.mxu0 %v31120_v45 }
 0x232   :  { %24066 = vmatprep.mubr.msk.f32.mxu1 %vm27076_vm2, %v31120_v45  ;;  %24069 = vmatprep.subr.mxu0 %v31120_v45 }
 0x233   :  { %24080 = vmatprep.subr.mxu1 %v31120_v45  ;;  %24067 = vmatmul.mubr.f32.vlgmr.msra.gmra.mxu1 %v31120_v45 }
 0x234   :  { %24070 = vmatpush3.msra.mxu0 %v27801_v36  ;;  %24081 = vmatpush3.msra.mxu1 %v27768_v22 }
 0x235   :  { %24071 = vmatprep.subr.mxu0 %v31120_v45  ;;  %24082 = vmatprep.subr.mxu1 %v31120_v45 }
 0x236   :  { %24072 = vmatpush3.msra.mxu0 %v27811_v30  ;;  %24083 = vmatpush3.msra.mxu1 %v27774_v24 }
 0x237   :  { %24073 = vmatprep.subr.mxu0 %v31120_v45  ;;  %24084 = vmatprep.subr.mxu1 %v31120_v45 }
 0x238   :  { %24074 = vmatpush3.msra.mxu0 %v27823_v42  ;;  %24085 = vmatpush3.msra.mxu1 %v27783_v26  ;;  %v27955_v42 = vand.u32 4294901760, %v27937_v33 }
 0x239   :  { %24075 = vmatprep.subr.mxu0 %v31120_v45  ;;  %24086 = vmatprep.subr.mxu1 %v31120_v45 }
 0x23a   :  { %24076 = vmatpush3.msra.mxu0 %v27834_v48  ;;  %24077 = vmatprep.mubr.msk.f32.mxu0 %vm27076_vm2, %v31120_v45  ;;  %31244 = vst [vmem:[#allocation60_spill] sm:$0xff] %v27955_v42  ;;  %v27962_v48 = vand.u32 4294901760, %v3461_v61  ;;  %v3475_v30 = vsub.f32 %v27937_v33, %v27955_v42 }
 0x23b   :  { %24087 = vmatpush3.msra.mxu1 %v27795_v6  ;;  %24088 = vmatprep.mubr.msk.f32.mxu1 %vm27076_vm2, %v31120_v45 }
 0x23c   :  { %24078 = vmatmul.mubr.f32.vlgmr.msra.gmra.mxu0 %v31120_v45  ;;  %24089 = vmatmul.mubr.f32.vlgmr.msra.gmra.mxu1 %v31120_v45  ;;  %31245 = vst [vmem:[#allocation61_spill] sm:$0xff] %v27962_v48  ;;  %v27980_v61 = vand.u32 4294901760, %v3475_v30 }
 0x23d   :  { %24091 = vmatprep.subr.mxu0 %v31120_v45  ;;  %24102 = vmatprep.subr.mxu1 %v31120_v45 }
 0x23e   :  { %24092 = vmatpush3.msra.mxu0 %v27882_v2  ;;  %24103 = vmatpush3.msra.mxu1 %v27950_v13  ;;  %31247 = vst [vmem:[#allocation63_spill] sm:$0xff] %v27980_v61 }
 0x23f   :  { %24093 = vmatprep.subr.mxu0 %v31120_v45  ;;  %24104 = vmatprep.subr.mxu1 %v31120_v45 }
 0x240   :  { %24094 = vmatpush3.msra.mxu0 %v27888_v15  ;;  %24105 = vmatpush3.msra.mxu1 %v27962_v48 }
 0x241   :  { %24095 = vmatprep.subr.mxu0 %v31120_v45  ;;  %24106 = vmatprep.subr.mxu1 %v31120_v45 }
 0x242   :  { %24096 = vmatpush3.msra.mxu0 %v27897_v35  ;;  %24107 = vmatpush3.msra.mxu1 %v27968_v44 }
 0x243   :  { %24097 = vmatprep.subr.mxu0 %v31120_v45  ;;  %24099 = vmatprep.mubr.msk.f32.mxu0 %vm27076_vm2, %v31120_v45 }
 0x244   :  { %24098 = vmatpush3.msra.mxu0 %v27915_v27  ;;  %24108 = vmatprep.subr.mxu1 %v31120_v45 }
 0x245   :  { %24113 = vmatprep.subr.mxu0 %v31120_v45  ;;  %24100 = vmatmul.mubr.f32.vlgmr.msra.gmra.mxu0 %v31120_v45 }
 0x246   :  { %24109 = vmatpush3.msra.mxu1 %v27980_v61  ;;  %24114 = vmatpush3.msra.mxu0 %v27895_v31 }
 0x247   :  { %24110 = vmatprep.mubr.msk.f32.mxu1 %vm27076_vm2, %v31120_v45  ;;  %24115 = vmatprep.subr.mxu0 %v31120_v45 }
 0x248   :  { %24124 = vmatprep.subr.mxu1 %v31120_v45  ;;  %24111 = vmatmul.mubr.f32.vlgmr.msra.gmra.mxu1 %v31120_v45 }
 0x249   :  { %24116 = vmatpush3.msra.mxu0 %v27905_v19  ;;  %24125 = vmatpush3.msra.mxu1 %v27882_v2 }
 0x24a   :  { %24117 = vmatprep.subr.mxu0 %v31120_v45  ;;  %24126 = vmatprep.subr.mxu1 %v31120_v45 }
 0x24b   :  { %24118 = vmatpush3.msra.mxu0 %v27918_v41  ;;  %24127 = vmatpush3.msra.mxu1 %v27888_v15 }
 0x24c   :  { %24119 = vmatprep.subr.mxu0 %v31120_v45  ;;  %24128 = vmatprep.subr.mxu1 %v31120_v45 }
 0x24d   :  { %24120 = vmatpush3.msra.mxu0 %v27937_v33  ;;  %24129 = vmatpush3.msra.mxu1 %v27897_v35 }
 0x24e   :  { %24121 = vmatprep.mubr.msk.f32.mxu0 %vm27076_vm2, %v31120_v45  ;;  %24130 = vmatprep.subr.mxu1 %v31120_v45 }
 0x24f   :  { %24135 = vmatprep.subr.mxu0 %v31120_v45  ;;  %24122 = vmatmul.mubr.f32.vlgmr.msra.gmra.mxu0 %v31120_v45 }
 0x250   :  { %24131 = vmatpush3.msra.mxu1 %v27915_v27  ;;  %24136 = vmatpush3.msra.mxu0 %v27913_v23 }
 0x251   :  { %24132 = vmatprep.mubr.msk.f32.mxu1 %vm27076_vm2, %v31120_v45  ;;  %24137 = vmatprep.subr.mxu0 %v31120_v45 }
 0x252   :  { %24146 = vmatprep.subr.mxu1 %v31120_v45  ;;  %24133 = vmatmul.mubr.f32.vlgmr.msra.gmra.mxu1 %v31120_v45 }
 0x253   :  { %24138 = vmatpush3.msra.mxu0 %v27925_v40  ;;  %24147 = vmatpush3.msra.mxu1 %v27882_v2 }
 0x254   :  { %24139 = vmatprep.subr.mxu0 %v31120_v45  ;;  %24148 = vmatprep.subr.mxu1 %v31120_v45 }
 0x255   :  { %24140 = vmatpush3.msra.mxu0 %v27934_v58  ;;  %24149 = vmatpush3.msra.mxu1 %v27888_v15 }
 0x256   :  { %24141 = vmatprep.subr.mxu0 %v31120_v45  ;;  %24150 = vmatprep.subr.mxu1 %v31120_v45 }
 0x257   :  { %24142 = vmatpush3.msra.mxu0 %v27955_v42  ;;  %24143 = vmatprep.mubr.msk.f32.mxu0 %vm27076_vm2, %v31120_v45 }
 0x258   :  { %24151 = vmatpush3.msra.mxu1 %v27897_v35  ;;  %24144 = vmatmul.mubr.f32.vlgmr.msra.gmra.mxu0 %v31120_v45 }
 0x259   :  { %24152 = vmatprep.subr.mxu1 %v31120_v45  ;;  %24154 = vmatprep.mubr.msk.f32.mxu1 %vm27076_vm2, %v31120_v45 }
 0x25a   :  { %24153 = vmatpush3.msra.mxu1 %v27915_v27  ;;  %24157 = vmatprep.subr.mxu0 %v31120_v45 }
 0x25b   :  { %24155 = vmatmul.mubr.f32.vlgmr.msra.gmra.mxu1 %v31120_v45  ;;  %24168 = vmatprep.subr.mxu1 %v31120_v45 }
 0x25c   :  { %24169 = vmatpush3.msra.mxu1 %v27590_v10  ;;  %24176 = vmatprep.mubr.msk.f32.mxu1 %vm27076_vm2, %v31120_v45 }
 0x25d   :  { %24170 = vmatprep.subr.mxu1 %v31120_v45  ;;  %24158 = vmatpush3.msra.mxu0 %v27553_v38 }
 0x25e   :  { %24171 = vmatpush3.msra.mxu1 %v27604_v51  ;;  %24159 = vmatprep.subr.mxu0 %v31120_v45  ;;  %v28062_v51 = vld [vmem:[#allocation7] ss:$0 sm:$0xff] }
 0x25f   :  { %24172 = vmatprep.subr.mxu1 %v31120_v45  ;;  %24160 = vmatpush3.msra.mxu0 %v27562_v47 }
 0x260   :  { %24173 = vmatpush3.msra.mxu1 %v27617_v60  ;;  %24161 = vmatprep.subr.mxu0 %v31120_v45 }
 0x261   :  { %24174 = vmatprep.subr.mxu1 %v31120_v45  ;;  %24162 = vmatpush3.msra.mxu0 %v27571_v49 }
 0x262   :  { %24175 = vmatpush3.msra.mxu1 %v27628_v32  ;;  %24163 = vmatprep.subr.mxu0 %v31120_v45 }
 0x263   :  { %24190 = vmatprep.subr.mxu1 %v31120_v45  ;;  %24164 = vmatpush3.msra.mxu0 %v27584_v55 }
 0x264   :  { %24165 = vmatprep.mubr.msk.f32.mxu0 %vm27076_vm2, %v31120_v45  ;;  %24179 = vmatprep.subr.mxu0 %v31120_v45 }
 0x278   :  { %v23827_v30 = vpop.f32.mrf.mxu1 }
 0x27a   :  { %v28058_v17 = vpop.f32.mrf.mxu1 }
 0x27c   :  { %v23830_v60 = vpop.f32.mrf.mxu1 }
 0x27e   :  { %v28060_v42 = vpop.f32.mrf.mxu1 }
 0x27f   :  { %31248 = vst [vmem:[#allocation64_spill] sm:$0xff] %v28060_v42 }
 0x280   :  { %v23813_v32 = vpop.f32.mrf.mxu0  ;;  %v23833_v58 = vpop.f32.mrf.mxu1 }
 0x281   :  { %v1185_v10 = vadd.f32 %v23813_v32, %v28062_v51 }
 0x282   :  { %v28065_v40 = vpop.f32.mrf.mxu0  ;;  %v28067_v23 = vpop.f32.mrf.mxu1 }
 0x283   :  { %31249 = vst [vmem:[#allocation65_spill] sm:$0xff] %v28067_v23  ;;  %v1327_v33 = vadd.f32 %v23827_v30, %v1185_v10 }
 0x284   :  { %v23816_v41 = vpop.f32.mrf.mxu0  ;;  %v23836_v19 = vpop.f32.mrf.mxu1 }
 0x285   :  { %v1205_v45 = vadd.f32 %v23816_v41, %v28062_v51 }
 0x286   :  { %v28070_v31 = vpop.f32.mrf.mxu0  ;;  %v28072_v27 = vpop.f32.mrf.mxu1 }
 0x287   :  { %31250 = vst [vmem:[#allocation66_spill] sm:$0xff] %v28070_v31  ;;  %31251 = vst [vmem:[#allocation67_spill] sm:$0xff] %v28072_v27  ;;  %v1339_v42 = vadd.f32 %v23830_v60, %v1205_v45 }
 0x288   :  { %v23819_v35 = vpop.f32.mrf.mxu0  ;;  %v23855_v15 = vpop.f32.mrf.mxu1 }
 0x289   :  { %v1225_v2 = vadd.f32 %v23819_v35, %v28062_v51 }
 0x28a   :  { %v28075_v61 = vpop.f32.mrf.mxu0  ;;  %v28077_v32 = vpop.f32.mrf.mxu1 }
 0x28b   :  { %31252 = vst [vmem:[#allocation68_spill] sm:$0xff] %v28075_v61  ;;  %v1351_v44 = vadd.f32 %v23833_v58, %v1225_v2 }
 0x28c   :  { %v23822_v23 = vpop.f32.mrf.mxu0  ;;  %v23858_v10 = vpop.f32.mrf.mxu1 }
 0x28d   :  { %v1245_v30 = vadd.f32 %v23822_v23, %v28062_v51 }
 0x28e   :  { %v28080_v48 = vpop.f32.mrf.mxu0  ;;  %v28082_v41 = vpop.f32.mrf.mxu1 }
 0x28f   :  { %31253 = vst [vmem:[#allocation69_spill] sm:$0xff] %v28080_v48  ;;  %31254 = vst [vmem:[#allocation70_spill] sm:$0xff] %v28082_v41  ;;  %v1363_v31 = vadd.f32 %v23836_v19, %v1245_v30 }
 0x290   :  { %v23841_v27 = vpop.f32.mrf.mxu0  ;;  %v23861_v45 = vpop.f32.mrf.mxu1 }
 0x291   :  { %v1444_v60 = vadd.f32 %v23841_v27, %v1327_v33 }
 0x292   :  { %v28084_v13 = vpop.f32.mrf.mxu0  ;;  %v28086_v35 = vpop.f32.mrf.mxu1 }
 0x293   :  { %31255 = vst [vmem:[#allocation71_spill] sm:$0xff] %v28086_v35  ;;  %v1568_v61 = vadd.f32 %v23855_v15, %v1444_v60 }
 0x294   :  { %v23844_v36 = vpop.f32.mrf.mxu0  ;;  %v23864_v39 = vpop.f32.mrf.mxu1 }
 0x295   :  { %v1458_v2 = vadd.f32 %v23844_v36, %v1339_v42 }
 0x296   :  { %v28088_v58 = vpop.f32.mrf.mxu0  ;;  %v28090_v37 = vpop.f32.mrf.mxu1 }
 0x297   :  { %31256 = vst [vmem:[#allocation72_spill] sm:$0xff] %v28088_v58  ;;  %31257 = vst [vmem:[#allocation73_spill] sm:$0xff] %v28090_v37  ;;  %v1584_v23 = vadd.f32 %v23858_v10, %v1458_v2 }
 0x298   :  { %v23847_v48 = vpop.f32.mrf.mxu0  ;;  %v23883_v28 = vpop.f32.mrf.mxu1 }
 0x299   :  { %v1472_v41 = vadd.f32 %v23847_v48, %v1351_v44 }
 0x29a   :  { %v28092_v19 = vpop.f32.mrf.mxu0  ;;  %v28094_v30 = vpop.f32.mrf.mxu1 }
 0x29b   :  { %31258 = vst [vmem:[#allocation74_spill] sm:$0xff] %v28092_v19  ;;  %v1600_v27 = vadd.f32 %v23861_v45, %v1472_v41 }
 0x29c   :  { %v23850_v33 = vpop.f32.mrf.mxu0  ;;  %v23886_v25 = vpop.f32.mrf.mxu1 }
 0x29d   :  { %v1486_v35 = vadd.f32 %v23850_v33, %v1363_v31 }
 0x29e   :  { %v28096_v15 = vpop.f32.mrf.mxu0  ;;  %v28098_v60 = vpop.f32.mrf.mxu1 }
 0x29f   :  { %31259 = vst [vmem:[#allocation75_spill] sm:$0xff] %v28096_v15  ;;  %31260 = vst [vmem:[#allocation76_spill] sm:$0xff] %v28098_v60  ;;  %v1616_v36 = vadd.f32 %v23864_v39, %v1486_v35 }
 0x2a0   :  { %v23869_v42 = vpop.f32.mrf.mxu0  ;;  %v23889_v58 = vpop.f32.mrf.mxu1 }
 0x2a1   :  { %v1696_v37 = vadd.f32 %v23869_v42, %v1568_v61 }
 0x2a2   :  { %v28100_v10 = vpop.f32.mrf.mxu0  ;;  %v28102_v2 = vpop.f32.mrf.mxu1 }
 0x2a3   :  { %31261 = vst [vmem:[#allocation77_spill] sm:$0xff] %v28102_v2  ;;  %v28104_v48 = vadd.f32 %v23883_v28, %v1696_v37 }
 0x2a4   :  { %v23872_v44 = vpop.f32.mrf.mxu0  ;;  %v23892_v41 = vpop.f32.mrf.mxu1 }
 0x2a5   :  { %31262 = vst [vmem:[#allocation78_spill] sm:$0xff] %v28104_v48  ;;  %v1708_v19 = vadd.f32 %v23872_v44, %v1584_v23 }
 0x2a6   :  { %v28106_v45 = vpop.f32.mrf.mxu0  ;;  %v28110_v15 = vpop.f32.mrf.mxu1 }
 0x2a7   :  { %31263 = vst [vmem:[#allocation79_spill] sm:$0xff] %v28106_v45  ;;  %v28108_v31 = vadd.f32 %v23886_v25, %v1708_v19  ;;  %31265 = vst [vmem:[#allocation81_spill] sm:$0xff] %v28110_v15 }
 0x2a8   :  { %v23875_v33 = vpop.f32.mrf.mxu0 }
 0x2a9   :  { %31264 = vst [vmem:[#allocation80_spill] sm:$0xff] %v28108_v31  ;;  %v1720_v39 = vadd.f32 %v23875_v33, %v1600_v27 }
 0x2aa   :  { %v28112_v35 = vpop.f32.mrf.mxu0 }
 0x2ab   :  { %31266 = vst [vmem:[#allocation82_spill] sm:$0xff] %v28112_v35  ;;  %v28114_v61 = vadd.f32 %v23889_v58, %v1720_v39  ;;  %v2034_v42 = vpop.f32.mrf.mxu1 }
 0x2ac   :  { %v23878_v60 = vpop.f32.mrf.mxu0 }
 0x2ad   :  { %31267 = vst [vmem:[#allocation83_spill] sm:$0xff] %v28114_v61  ;;  %v1732_v2 = vadd.f32 %v23878_v60, %v1616_v36  ;;  %v23914_v28 = vpop.f32.mrf.mxu1 }
 0x2ae   :  { %v28116_v37 = vpop.f32.mrf.mxu0 }
 0x2af   :  { %31268 = vst [vmem:[#allocation84_spill] sm:$0xff] %v28116_v37  ;;  %v28118_v23 = vadd.f32 %v23892_v41, %v1732_v2 }
 0x2b0   :  { %v1943_v44 = vpop.f32.mrf.mxu0 }
 0x2b1   :  { %31269 = vst [vmem:[#allocation85_spill] sm:$0xff] %v28118_v23  ;;  %v2035_v45 = vadd.f32 %v2034_v42, %v1943_v44 }
 0x2b2   :  { %v23903_v25 = vpop.f32.mrf.mxu0 }
 0x2b5   :  { %v2191_v19 = vpop.f32.mrf.mxu1 }
 0x2b7   :  { %v23936_v31 = vpop.f32.mrf.mxu1 }
 0x2b8   :  { %v2114_v48 = vpop.f32.mrf.mxu0 }
 0x2b9   :  { %v2115_v15 = vadd.f32 %v2114_v48, %v2035_v45 }
 0x2ba   :  { %v23925_v27 = vpop.f32.mrf.mxu0 }
 0x2bb   :  { %v2192_v33 = vadd.f32 %v2191_v19, %v2115_v15 }
 0x2c0   :  { %v2274_v35 = vpop.f32.mrf.mxu0 }
 0x2c1   :  { %v2275_v58 = vadd.f32 %v2274_v35, %v2192_v33  ;;  %v2349_v39 = vpop.f32.mrf.mxu1 }
 0x2c2   :  { %v23947_v61 = vpop.f32.mrf.mxu0 }
 0x2c3   :  { %v28120_v6 = vadd.f32 %v2349_v39, %v2275_v58  ;;  %v23958_v60 = vpop.f32.mrf.mxu1 }
 0x2c9   :  { %v2435_v36 = vpop.f32.mrf.mxu0 }
 0x2cb   :  { %v2526_v28 = vpop.f32.mrf.mxu1  ;;  %v23969_v2 = vpop.f32.mrf.mxu0 }
 0x2cc   :  { %v2527_v25 = vadd.f32 %v2526_v28, %v2435_v36 }
 0x2cd   :  { %v23980_v41 = vpop.f32.mrf.mxu1 }
 0x2d3   :  { %v2606_v23 = vpop.f32.mrf.mxu0 }
 0x2d4   :  { %v2607_v37 = vadd.f32 %v2606_v23, %v2527_v25 }
 0x2d5   :  { %v2683_v42 = vpop.f32.mrf.mxu1  ;;  %v23991_v44 = vpop.f32.mrf.mxu0 }
 0x2d6   :  { %v2684_v48 = vadd.f32 %v2683_v42, %v2607_v37 }
 0x2d7   :  { %v24002_v31 = vpop.f32.mrf.mxu1 }
 0x2dd   :  { %v2766_v45 = vpop.f32.mrf.mxu0 }
 0x2de   :  { %v2767_v15 = vadd.f32 %v2766_v45, %v2684_v48 }
 0x2df   :  { %v2841_v19 = vpop.f32.mrf.mxu1  ;;  %v24013_v35 = vpop.f32.mrf.mxu0 }
 0x2e0   :  { %v2842_v27 = vadd.f32 %v2841_v19, %v2767_v15 }
 0x2e1   :  { %v24024_v61 = vpop.f32.mrf.mxu1 }
 0x2e2   :  { %2846 = vrot.lane.b32.xlu1 %v2842_v27, %s27077_s26 }
 0x2e7   :  { %v2931_v33 = vpop.f32.mrf.mxu0 }
 0x2e9   :  { %v3022_v58 = vpop.f32.mrf.mxu1  ;;  %v24035_v39 = vpop.f32.mrf.mxu0 }
 0x2ea   :  { %v3023_v36 = vadd.f32 %v3022_v58, %v2931_v33 }
 0x2eb   :  { %v24046_v60 = vpop.f32.mrf.mxu1 }
 0x2f1   :  { %v3102_v2 = vpop.f32.mrf.mxu0 }
 0x2f2   :  { %v3103_v23 = vadd.f32 %v3102_v2, %v3023_v36 }
 0x2f3   :  { %v3179_v41 = vpop.f32.mrf.mxu1  ;;  %v24057_v44 = vpop.f32.mrf.mxu0 }
 0x2f4   :  { %v3180_v37 = vadd.f32 %v3179_v41, %v3103_v23 }
 0x2f5   :  { %v24068_v28 = vpop.f32.mrf.mxu1 }
 0x2fc   :  { %v3262_v42 = vpop.f32.mrf.mxu0  ;;  %v3337_v25 = vpop.f32.mrf.mxu1 }
 0x2fd   :  { %v3263_v31 = vadd.f32 %v3262_v42, %v3180_v37 }
 0x2fe   :  { %v24079_v48 = vpop.f32.mrf.mxu0  ;;  %v24090_v45 = vpop.f32.mrf.mxu1 }
 0x2ff   :  { %v3338_v15 = vadd.f32 %v3337_v25, %v3263_v31  ;;  %v1175_v31 = vadd.f32 %v28062_v51, %v28065_v40 }
 0x301   :  { %3342 = vrot.lane.b32.xlu0 %v3338_v15, %s27078_s27  ;;  %v1321_v48 = vadd.f32 %v28058_v17, %v1175_v31 }
 0x303   :  { %v1437_v45 = vadd.f32 %v28084_v13, %v1321_v48 }
 0x305   :  { %v3422_v19 = vpop.f32.mrf.mxu0  ;;  %v1560_v15 = vadd.f32 %v28077_v32, %v1437_v45 }
 0x307   :  { %v24101_v35 = vpop.f32.mrf.mxu0 }
 0x308   :  { %v3513_v27 = vpop.f32.mrf.mxu1 }
 0x309   :  { %v3514_v61 = vadd.f32 %v3513_v27, %v3422_v19  ;;  %v1690_v19 = vadd.f32 %v28100_v10, %v1560_v15 }
 0x30a   :  { %v24112_v39 = vpop.f32.mrf.mxu1 }
 0x30b   :  { %v1804_v35 = vadd.f32 %v28094_v30, %v1690_v19 }
 0x30d   :  { %v2353_v51 = vadd.f32 %v28120_v6, %v1804_v35 }
 0x30f   :  { %v3593_v60 = vpop.f32.mrf.mxu0  ;;  %v22256_v40 = vmul.f32 -1.442695, %v2353_v51 }
 0x310   :  { %v3594_v44 = vadd.f32 %v3593_v60, %v3514_v61 }
 0x311   :  { %v24123_v33 = vpop.f32.mrf.mxu0 }
 0x312   :  { %v3670_v58 = vpop.f32.mrf.mxu1 }
 0x313   :  { %v3671_v2 = vadd.f32 %v3670_v58, %v3594_v44 }
 0x314   :  { %v24134_v41 = vpop.f32.mrf.mxu1 }
 0x318   :  { %v3753_v36 = vpop.f32.mrf.mxu0 }
 0x319   :  { %v3754_v28 = vadd.f32 %v3753_v36, %v3671_v2 }
 0x31a   :  { %v24145_v23 = vpop.f32.mrf.mxu0 }
 0x31b   :  { %v3828_v37 = vpop.f32.mrf.mxu1 }
 0x31c   :  { %v3829_v42 = vadd.f32 %v3828_v37, %v3754_v28 }
 0x31d   :  { %v24156_v25 = vpop.f32.mrf.mxu1 }
 0x354   :  { %v2847_v30 = vpop.permute.xlu1 %2846 }
 0x355   :  { %v2849_v44 = vadd.f32 %v2847_v30, %v1804_v35  ;;  %v31274_v30 = vld [vmem:[#allocation43_spill] sm:$0xff] }
 0x357   :  { %v22257_v33 = vmul.f32 -1.442695, %v2849_v44  ;;  %v31275_v44 = vld [vmem:[#allocation45_spill] sm:$0xff] }
 0x373   :  { %v3343_v27 = vpop.permute.xlu0 %3342 }
 0x374   :  { %v3345_v61 = vadd.f32 %v3343_v27, %v1804_v35 }
 0x376   :  { %26628 = vtanh.f32 %v3345_v61 }
 0x377   :  { %26630 = vpow2.f32 %v22256_v40 }
 0x383   :  { %v26629_v39 = vpop.eup %26628 }
 0x384   :  { %3845 = vrot.lane.b32.xlu0 %v26629_v39, %s27078_s27  ;;  %v26631_v13 = vpop.eup %26630 }
 0x385   :  { %v2357_v17 = vadd.f32 1.0, %v26631_v13 }
 0x387   :  { %26632 = vrcp.f32 %v2357_v17 }
 0x388   :  { %3833 = vrot.lane.b32.xlu0 %v3829_v42, %s27079_s8  ;;  %26634 = vpow2.f32 %v22257_v33  ;;  %v31276_v33 = vld [vmem:[#allocation42_spill] sm:$0xff] }
 0x394   :  { %v26633_v32 = vpop.eup %26632 }
 0x395   :  { %v26635_v58 = vpop.eup %26634 }
 0x396   :  { %v2853_v2 = vadd.f32 1.0, %v26635_v58  ;;  %v31277_v58 = vld [vmem:[#allocation59_spill] sm:$0xff] }
 0x398   :  { %26636 = vrcp.f32 %v2853_v2  ;;  %v31278_v2 = vld [vmem:[#allocation44_spill] sm:$0xff] }
 0x3a5   :  { %v26637_v41 = vpop.eup %26636 }
 0x3a6   :  { %v3843_v36 = vmul.f32 0.0, %v26637_v41  ;;  %v31279_v41 = vld [vmem:[#allocation61_spill] sm:$0xff] }
 0x3f6   :  { %v3846_v10 = vpop.permute.xlu0 %3845 }
 0x3f7   :  { %v3848_v60 = vmul.f32 %v26633_v32, %v3846_v10  ;;  %v31271_v32 = vld [vmem:[#allocation41_spill] sm:$0xff]  ;;  %v31272_v10 = vld [vmem:[#allocation38_spill] sm:$0xff] }
 0x3f9   :  { %3850 = vrot.lane.b32.xlu1 %v3848_v60, %s27077_s26  ;;  %v31273_v60 = vld [vmem:[#allocation40_spill] sm:$0xff] }
 0x3fa   :  { %v3834_v37 = vpop.permute.xlu0 %3833 }
 0x3fb   :  { %v3836_v42 = vadd.f32 %v3834_v37, %v1804_v35  ;;  %v31270_v35 = vmov 0.0   ;;  %v31283_v37 = vld [vmem:[#allocation63_spill] sm:$0xff] }
 0x3fd   :  { %v22258_v25 = vmul.f32 -1.442695, %v3836_v42  ;;  %v31284_v42 = vld [vmem:[#allocation48_spill] sm:$0xff] }
 0x46b   :  { %v3851_v6 = vpop.permute.xlu1 %3850 }
 0x46c   :  { %v28135_v28 = vadd.f32 %v3851_v6, %v3843_v36  ;;  %v31280_v36 = vld [vmem:[#allocation46_spill] sm:$0xff] }
 0x46d   :  { %v31281_v6 = vld [vmem:[#allocation62_spill] sm:$0xff] }
 0x46e   :  { %26638 = vtanh.f32 %v28135_v28 }
 0x46f   :  { %26640 = vpow2.f32 %v22258_v25  ;;  %v31285_v25 = vld [vmem:[#allocation49_spill] sm:$0xff] }
 0x47b   :  { %v26639_v23 = vpop.eup %26638 }
 0x47c   :  { %3856 = vrot.lane.b32.xlu1 %v26639_v23, %s27078_s27  ;;  %v26641_v31 = vpop.eup %26640  ;;  %v31282_v23 = vld [vmem:[#allocation47_spill] sm:$0xff] }
 0x47d   :  { %v3840_v48 = vadd.f32 1.0, %v26641_v31  ;;  %v31286_v31 = vld [vmem:[#allocation51_spill] sm:$0xff] }
 0x47f   :  { %26642 = vrcp.f32 %v3840_v48  ;;  %v31287_v48 = vld [vmem:[#allocation54_spill] sm:$0xff] }
 0x48c   :  { %v26643_v45 = vpop.eup %26642 }
 0x4ee   :  { %v3857_v15 = vpop.permute.xlu1 %3856 }
 0x4ef   :  { %v3859_v19 = vmul.f32 %v26643_v45, %v3857_v15  ;;  %v31288_v45 = vld [vmem:[#allocation50_spill] sm:$0xff]  ;;  %v31289_v15 = vld [vmem:[#allocation52_spill] sm:$0xff] }
 0x4f1   :  { %3861 = vrot.lane.b32.xlu0 %v3859_v19, %s27077_s26  ;;  %v31290_v19 = vld [vmem:[#allocation55_spill] sm:$0xff] }
 0x563   :  { %v3862_v27 = vpop.permute.xlu0 %3861 }
 0x564   :  { %v3863_v61 = vsel %vm258_vm0, %v3862_v27, 0  ;;  %v31291_v27 = vld [vmem:[#allocation58_spill] sm:$0xff] }
 0x565   :  { %v28141_v39 = vand.u32 4294901760, %v3863_v61 }
 0x567   :  { %v28144_v51 = vsub.f32 %v3863_v61, %v28141_v39  ;;  %24177 = vmatmul.mubr.f32.vlgmr.msra.gmra.mxu1 %v28141_v39  ;;  %v31292_v61 = vld [vmem:[#allocation53_spill] sm:$0xff] }
 0x568   :  { %24191 = vmatpush3.msra.mxu1 %v27553_v38  ;;  %24198 = vmatprep.mubr.msk.f32.mxu1 %vm27076_vm2, %v31270_v35 }
 0x569   :  { %24192 = vmatprep.subr.mxu1 %v31270_v35  ;;  %v28152_v40 = vand.u32 4294901760, %v28144_v51 }
 0x56a   :  { %24193 = vmatpush3.msra.mxu1 %v27562_v47 }
 0x56b   :  { %24194 = vmatprep.subr.mxu1 %v31270_v35  ;;  %v3937_v13 = vsub.f32 %v28144_v51, %v28152_v40 }
 0x56c   :  { %24195 = vmatpush3.msra.mxu1 %v27571_v49 }
 0x56d   :  { %24196 = vmatprep.subr.mxu1 %v31270_v35  ;;  %v28160_v17 = vand.u32 4294901760, %v3937_v13  ;;  %v31294_v13 = vld [vmem:[#allocation33_spill] sm:$0xff] }
 0x56e   :  { %24197 = vmatpush3.msra.mxu1 %v27584_v55 }
 0x56f   :  { %24199 = vmatmul.mubr.f32.vlgmr.msra.gmra.mxu1 %v28152_v40  ;;  %24212 = vmatprep.subr.mxu1 %v31270_v35 }
 0x570   :  { %24166 = vmatmul.mubr.f32.vlgmr.msra.gmra.mxu0 %v28160_v17  ;;  %24213 = vmatpush3.msra.mxu1 %v27553_v38 }
 0x571   :  { %24180 = vmatpush3.msra.mxu0 %v27560_v46  ;;  %24214 = vmatprep.subr.mxu1 %v31270_v35 }
 0x572   :  { %24181 = vmatprep.subr.mxu0 %v31270_v35  ;;  %24215 = vmatpush3.msra.mxu1 %v27562_v47 }
 0x573   :  { %24182 = vmatpush3.msra.mxu0 %v27569_v5  ;;  %24216 = vmatprep.subr.mxu1 %v31270_v35 }
 0x574   :  { %24183 = vmatprep.subr.mxu0 %v31270_v35  ;;  %24217 = vmatpush3.msra.mxu1 %v27571_v49 }
 0x575   :  { %24184 = vmatpush3.msra.mxu0 %v27582_v54  ;;  %24218 = vmatprep.subr.mxu1 %v31270_v35 }
 0x576   :  { %24185 = vmatprep.subr.mxu0 %v31270_v35  ;;  %24187 = vmatprep.mubr.msk.f32.mxu0 %vm27076_vm2, %v31270_v35 }
 0x577   :  { %24186 = vmatpush3.msra.mxu0 %v27598_v57  ;;  %24219 = vmatpush3.msra.mxu1 %v27584_v55 }
 0x578   :  { %24220 = vmatprep.mubr.msk.f32.mxu1 %vm27076_vm2, %v31270_v35  ;;  %24188 = vmatmul.mubr.f32.vlgmr.msra.gmra.mxu0 %v28144_v51 }
 0x579   :  { %24201 = vmatprep.subr.mxu0 %v31270_v35  ;;  %24221 = vmatmul.mubr.f32.vlgmr.msra.gmra.mxu1 %v28141_v39 }
 0x57a   :  { %24234 = vmatprep.subr.mxu1 %v31270_v35  ;;  %24202 = vmatpush3.msra.mxu0 %v27566_v43 }
 0x57b   :  { %24235 = vmatpush3.msra.mxu1 %v27725_v21  ;;  %24203 = vmatprep.subr.mxu0 %v31270_v35 }
 0x57c   :  { %24236 = vmatprep.subr.mxu1 %v31270_v35  ;;  %24204 = vmatpush3.msra.mxu0 %v27579_v53 }
 0x57d   :  { %24237 = vmatpush3.msra.mxu1 %v27734_v34  ;;  %24205 = vmatprep.subr.mxu0 %v31270_v35 }
 0x57e   :  { %24238 = vmatprep.subr.mxu1 %v31270_v35  ;;  %24206 = vmatpush3.msra.mxu0 %v27595_v56 }
 0x57f   :  { %24239 = vmatpush3.msra.mxu1 %v27742_v4  ;;  %24207 = vmatprep.subr.mxu0 %v31270_v35 }
 0x580   :  { %24240 = vmatprep.subr.mxu1 %v31270_v35  ;;  %24208 = vmatpush3.msra.mxu0 %v27609_v59 }
 0x581   :  { %24209 = vmatprep.mubr.msk.f32.mxu0 %vm27076_vm2, %v31270_v35  ;;  %24241 = vmatpush3.msra.mxu1 %v27750_v16 }
 0x582   :  { %24242 = vmatprep.mubr.msk.f32.mxu1 %vm27076_vm2, %v31270_v35  ;;  %24210 = vmatmul.mubr.f32.vlgmr.msra.gmra.mxu0 %v28141_v39 }
 0x583   :  { %24223 = vmatprep.subr.mxu0 %v31270_v35  ;;  %24243 = vmatmul.mubr.f32.vlgmr.msra.gmra.mxu1 %v28141_v39 }
 0x584   :  { %24256 = vmatprep.subr.mxu1 %v31270_v35  ;;  %24224 = vmatpush3.msra.mxu0 %v27656_v52 }
 0x585   :  { %24257 = vmatpush3.msra.mxu1 %v27656_v52  ;;  %24225 = vmatprep.subr.mxu0 %v31270_v35 }
 0x586   :  { %24258 = vmatprep.subr.mxu1 %v31270_v35  ;;  %24226 = vmatpush3.msra.mxu0 %v27661_v63 }
 0x587   :  { %24259 = vmatpush3.msra.mxu1 %v27661_v63  ;;  %24227 = vmatprep.subr.mxu0 %v31270_v35 }
 0x588   :  { %24260 = vmatprep.subr.mxu1 %v31270_v35  ;;  %24228 = vmatpush3.msra.mxu0 %v27671_v1 }
 0x589   :  { %24261 = vmatpush3.msra.mxu1 %v27671_v1  ;;  %24229 = vmatprep.subr.mxu0 %v31270_v35 }
 0x58a   :  { %24262 = vmatprep.subr.mxu1 %v31270_v35  ;;  %24230 = vmatpush3.msra.mxu0 %v27682_v7 }
 0x58b   :  { %24231 = vmatprep.mubr.msk.f32.mxu0 %vm27076_vm2, %v31270_v35  ;;  %24263 = vmatpush3.msra.mxu1 %v27682_v7 }
 0x58c   :  { %24264 = vmatprep.mubr.msk.f32.mxu1 %vm27076_vm2, %v31270_v35  ;;  %24232 = vmatmul.mubr.f32.vlgmr.msra.gmra.mxu0 %v28160_v17 }
 0x58d   :  { %24245 = vmatprep.subr.mxu0 %v31270_v35  ;;  %24265 = vmatmul.mubr.f32.vlgmr.msra.gmra.mxu1 %v28152_v40 }
 0x58e   :  { %24278 = vmatprep.subr.mxu1 %v31270_v35  ;;  %24246 = vmatpush3.msra.mxu0 %v27669_v0 }
 0x58f   :  { %24279 = vmatpush3.msra.mxu1 %v27656_v52  ;;  %24247 = vmatprep.subr.mxu0 %v31270_v35 }
 0x590   :  { %24280 = vmatprep.subr.mxu1 %v31270_v35  ;;  %24248 = vmatpush3.msra.mxu0 %v27678_v3 }
 0x591   :  { %24281 = vmatpush3.msra.mxu1 %v27661_v63  ;;  %24249 = vmatprep.subr.mxu0 %v31270_v35 }
 0x592   :  { %24282 = vmatprep.subr.mxu1 %v31270_v35  ;;  %24250 = vmatpush3.msra.mxu0 %v27690_v9 }
 0x593   :  { %24283 = vmatpush3.msra.mxu1 %v27671_v1  ;;  %24251 = vmatprep.subr.mxu0 %v31270_v35 }
 0x594   :  { %24284 = vmatprep.subr.mxu1 %v31270_v35  ;;  %24252 = vmatpush3.msra.mxu0 %v27702_v12 }
 0x595   :  { %24253 = vmatprep.mubr.msk.f32.mxu0 %vm27076_vm2, %v31270_v35  ;;  %24285 = vmatpush3.msra.mxu1 %v27682_v7 }
 0x596   :  { %24286 = vmatprep.mubr.msk.f32.mxu1 %vm27076_vm2, %v31270_v35  ;;  %24254 = vmatmul.mubr.f32.vlgmr.msra.gmra.mxu0 %v28144_v51 }
 0x597   :  { %24267 = vmatprep.subr.mxu0 %v31270_v35  ;;  %24287 = vmatmul.mubr.f32.vlgmr.msra.gmra.mxu1 %v28141_v39 }
 0x598   :  { %24300 = vmatprep.subr.mxu1 %v31270_v35  ;;  %24268 = vmatpush3.msra.mxu0 %v27687_v8 }
 0x599   :  { %24301 = vmatpush3.msra.mxu1 %v27839_v50  ;;  %24269 = vmatprep.subr.mxu0 %v31270_v35 }
 0x59a   :  { %24302 = vmatprep.subr.mxu1 %v31270_v35  ;;  %24270 = vmatpush3.msra.mxu0 %v27697_v11 }
 0x59b   :  { %24303 = vmatpush3.msra.mxu1 %v27848_v29  ;;  %24271 = vmatprep.subr.mxu0 %v31270_v35 }
 0x59c   :  { %24304 = vmatprep.subr.mxu1 %v31270_v35  ;;  %24272 = vmatpush3.msra.mxu0 %v27709_v14 }
 0x59d   :  { %24305 = vmatpush3.msra.mxu1 %v27856_v62  ;;  %24273 = vmatprep.subr.mxu0 %v31270_v35 }
 0x59e   :  { %24306 = vmatprep.subr.mxu1 %v31270_v35  ;;  %24274 = vmatpush3.msra.mxu0 %v27721_v20 }
 0x59f   :  { %24275 = vmatprep.mubr.msk.f32.mxu0 %vm27076_vm2, %v31270_v35  ;;  %24307 = vmatpush3.msra.mxu1 %v27864_v18 }
 0x5a0   :  { %24308 = vmatprep.mubr.msk.f32.mxu1 %vm27076_vm2, %v31270_v35  ;;  %24276 = vmatmul.mubr.f32.vlgmr.msra.gmra.mxu0 %v28141_v39 }
 0x5a1   :  { %24289 = vmatprep.subr.mxu0 %v31270_v35  ;;  %24309 = vmatmul.mubr.f32.vlgmr.msra.gmra.mxu1 %v28141_v39 }
 0x5a2   :  { %24322 = vmatprep.subr.mxu1 %v31270_v35  ;;  %24290 = vmatpush3.msra.mxu0 %v27768_v22 }
 0x5a3   :  { %24323 = vmatpush3.msra.mxu1 %v27768_v22  ;;  %24291 = vmatprep.subr.mxu0 %v31270_v35 }
 0x5a4   :  { %24324 = vmatprep.subr.mxu1 %v31270_v35  ;;  %24292 = vmatpush3.msra.mxu0 %v27774_v24 }
 0x5a5   :  { %24325 = vmatpush3.msra.mxu1 %v27774_v24  ;;  %24293 = vmatprep.subr.mxu0 %v31270_v35 }
 0x5a6   :  { %24326 = vmatprep.subr.mxu1 %v31270_v35  ;;  %24294 = vmatpush3.msra.mxu0 %v27783_v26 }
 0x5a7   :  { %24327 = vmatpush3.msra.mxu1 %v27783_v26  ;;  %24295 = vmatprep.subr.mxu0 %v31270_v35 }
 0x5a8   :  { %24328 = vmatprep.subr.mxu1 %v31270_v35  ;;  %24296 = vmatpush3.msra.mxu0 %v31271_v32 }
 0x5a9   :  { %24297 = vmatprep.mubr.msk.f32.mxu0 %vm27076_vm2, %v31270_v35  ;;  %24329 = vmatpush3.msra.mxu1 %v31271_v32 }
 0x5aa   :  { %24330 = vmatprep.mubr.msk.f32.mxu1 %vm27076_vm2, %v31270_v35  ;;  %24298 = vmatmul.mubr.f32.vlgmr.msra.gmra.mxu0 %v28160_v17 }
 0x5ab   :  { %24311 = vmatprep.subr.mxu0 %v31270_v35  ;;  %24331 = vmatmul.mubr.f32.vlgmr.msra.gmra.mxu1 %v28152_v40 }
 0x5ac   :  { %24344 = vmatprep.subr.mxu1 %v31270_v35  ;;  %24312 = vmatpush3.msra.mxu0 %v31272_v10 }
 0x5ad   :  { %24345 = vmatpush3.msra.mxu1 %v27768_v22  ;;  %24313 = vmatprep.subr.mxu0 %v31270_v35 }
 0x5ae   :  { %24346 = vmatprep.subr.mxu1 %v31270_v35  ;;  %24314 = vmatpush3.msra.mxu0 %v31273_v60 }
 0x5af   :  { %24347 = vmatpush3.msra.mxu1 %v27774_v24  ;;  %24315 = vmatprep.subr.mxu0 %v31270_v35 }
 0x5b0   :  { %24348 = vmatprep.subr.mxu1 %v31270_v35  ;;  %24316 = vmatpush3.msra.mxu0 %v31274_v30 }
 0x5b1   :  { %24349 = vmatpush3.msra.mxu1 %v27783_v26  ;;  %24317 = vmatprep.subr.mxu0 %v31270_v35 }
 0x5b2   :  { %24350 = vmatprep.subr.mxu1 %v31270_v35  ;;  %24318 = vmatpush3.msra.mxu0 %v31275_v44 }
 0x5b3   :  { %24319 = vmatprep.mubr.msk.f32.mxu0 %vm27076_vm2, %v31270_v35  ;;  %24351 = vmatpush3.msra.mxu1 %v31271_v32 }
 0x5b4   :  { %24352 = vmatprep.mubr.msk.f32.mxu1 %vm27076_vm2, %v31270_v35  ;;  %24320 = vmatmul.mubr.f32.vlgmr.msra.gmra.mxu0 %v28144_v51 }
 0x5b5   :  { %24333 = vmatprep.subr.mxu0 %v31270_v35  ;;  %24353 = vmatmul.mubr.f32.vlgmr.msra.gmra.mxu1 %v28141_v39 }
 0x5b6   :  { %24366 = vmatprep.subr.mxu1 %v31270_v35  ;;  %24334 = vmatpush3.msra.mxu0 %v31276_v33 }
 0x5b7   :  { %24367 = vmatpush3.msra.mxu1 %v31277_v58  ;;  %24335 = vmatprep.subr.mxu0 %v31270_v35 }
 0x5b8   :  { %24368 = vmatprep.subr.mxu1 %v31270_v35  ;;  %24336 = vmatpush3.msra.mxu0 %v31278_v2 }
 0x5b9   :  { %24369 = vmatpush3.msra.mxu1 %v31279_v41  ;;  %24337 = vmatprep.subr.mxu0 %v31270_v35 }
 0x5ba   :  { %24370 = vmatprep.subr.mxu1 %v31270_v35  ;;  %24338 = vmatpush3.msra.mxu0 %v31280_v36 }
 0x5bb   :  { %24371 = vmatpush3.msra.mxu1 %v31281_v6  ;;  %24339 = vmatprep.subr.mxu0 %v31270_v35 }
 0x5bc   :  { %24372 = vmatprep.subr.mxu1 %v31270_v35  ;;  %24340 = vmatpush3.msra.mxu0 %v31282_v23 }
 0x5bd   :  { %24341 = vmatprep.mubr.msk.f32.mxu0 %vm27076_vm2, %v31270_v35  ;;  %24373 = vmatpush3.msra.mxu1 %v31283_v37 }
 0x5be   :  { %24374 = vmatprep.mubr.msk.f32.mxu1 %vm27076_vm2, %v31270_v35  ;;  %24342 = vmatmul.mubr.f32.vlgmr.msra.gmra.mxu0 %v28141_v39 }
 0x5bf   :  { %24355 = vmatprep.subr.mxu0 %v31270_v35  ;;  %24375 = vmatmul.mubr.f32.vlgmr.msra.gmra.mxu1 %v28141_v39 }
 0x5c0   :  { %24388 = vmatprep.subr.mxu1 %v31270_v35  ;;  %24356 = vmatpush3.msra.mxu0 %v31284_v42 }
 0x5c1   :  { %24389 = vmatpush3.msra.mxu1 %v31284_v42  ;;  %24357 = vmatprep.subr.mxu0 %v31270_v35 }
 0x5c2   :  { %24390 = vmatprep.subr.mxu1 %v31270_v35  ;;  %24358 = vmatpush3.msra.mxu0 %v31285_v25 }
 0x5c3   :  { %24391 = vmatpush3.msra.mxu1 %v31285_v25  ;;  %24359 = vmatprep.subr.mxu0 %v31270_v35 }
 0x5c4   :  { %24392 = vmatprep.subr.mxu1 %v31270_v35  ;;  %24360 = vmatpush3.msra.mxu0 %v31286_v31 }
 0x5c5   :  { %24393 = vmatpush3.msra.mxu1 %v31286_v31  ;;  %24361 = vmatprep.subr.mxu0 %v31270_v35 }
 0x5c6   :  { %24394 = vmatprep.subr.mxu1 %v31270_v35  ;;  %24362 = vmatpush3.msra.mxu0 %v31287_v48 }
 0x5c7   :  { %24363 = vmatprep.mubr.msk.f32.mxu0 %vm27076_vm2, %v31270_v35  ;;  %24395 = vmatpush3.msra.mxu1 %v31287_v48 }
 0x5c8   :  { %24396 = vmatprep.mubr.msk.f32.mxu1 %vm27076_vm2, %v31270_v35  ;;  %24364 = vmatmul.mubr.f32.vlgmr.msra.gmra.mxu0 %v28160_v17  ;;  %v31296_v17 = vld [vmem:[#allocation34_spill] sm:$0xff] }
 0x5c9   :  { %24377 = vmatprep.subr.mxu0 %v31270_v35  ;;  %24397 = vmatmul.mubr.f32.vlgmr.msra.gmra.mxu1 %v28152_v40  ;;  %v31293_v40 = vld [vmem:[#allocation56_spill] sm:$0xff] }
 0x5ca   :  { %24410 = vmatprep.subr.mxu1 %v31270_v35  ;;  %24378 = vmatpush3.msra.mxu0 %v31288_v45 }
 0x5cb   :  { %24411 = vmatpush3.msra.mxu1 %v31284_v42  ;;  %24379 = vmatprep.subr.mxu0 %v31270_v35 }
 0x5cc   :  { %24412 = vmatprep.subr.mxu1 %v31270_v35  ;;  %24380 = vmatpush3.msra.mxu0 %v31289_v15 }
 0x5cd   :  { %24413 = vmatpush3.msra.mxu1 %v31285_v25  ;;  %24381 = vmatprep.subr.mxu0 %v31270_v35 }
 0x5ce   :  { %24414 = vmatprep.subr.mxu1 %v31270_v35  ;;  %24382 = vmatpush3.msra.mxu0 %v31290_v19 }
 0x5cf   :  { %24415 = vmatpush3.msra.mxu1 %v31286_v31  ;;  %24383 = vmatprep.subr.mxu0 %v31270_v35 }
 0x5d0   :  { %24416 = vmatprep.subr.mxu1 %v31270_v35  ;;  %24384 = vmatpush3.msra.mxu0 %v31291_v27  ;;  %v31298_v27 = vld [vmem:[#allocation35_spill] sm:$0xff] }
 0x5d1   :  { %24385 = vmatprep.mubr.msk.f32.mxu0 %vm27076_vm2, %v31270_v35  ;;  %24417 = vmatpush3.msra.mxu1 %v31287_v48 }
 0x5d2   :  { %24418 = vmatprep.mubr.msk.f32.mxu1 %vm27076_vm2, %v31270_v35  ;;  %24386 = vmatmul.mubr.f32.vlgmr.msra.gmra.mxu0 %v28144_v51  ;;  %v31295_v51 = vld [vmem:[#allocation57_spill] sm:$0xff] }
 0x5d3   :  { %24399 = vmatprep.subr.mxu0 %v31270_v35  ;;  %24419 = vmatmul.mubr.f32.vlgmr.msra.gmra.mxu1 %v28141_v39 }
 0x5d4   :  { %24400 = vmatpush3.msra.mxu0 %v31292_v61  ;;  %24407 = vmatprep.mubr.msk.f32.mxu0 %vm27076_vm2, %v31270_v35  ;;  %v31297_v61 = vld [vmem:[#allocation60_spill] sm:$0xff] }
 0x5d5   :  { %24401 = vmatprep.subr.mxu0 %v31270_v35  ;;  %24432 = vmatprep.subr.mxu1 %v31270_v35 }
 0x5d6   :  { %24402 = vmatpush3.msra.mxu0 %v31293_v40  ;;  %24433 = vmatpush3.msra.mxu1 %v31294_v13  ;;  %v31299_v13 = vld [vmem:[#allocation36_spill] sm:$0xff] }
 0x5d7   :  { %24403 = vmatprep.subr.mxu0 %v31270_v35  ;;  %24434 = vmatprep.subr.mxu1 %v31270_v35 }
 0x5d8   :  { %24404 = vmatpush3.msra.mxu0 %v31295_v51  ;;  %24435 = vmatpush3.msra.mxu1 %v31296_v17 }
 0x5d9   :  { %24405 = vmatprep.subr.mxu0 %v31270_v35  ;;  %24436 = vmatprep.subr.mxu1 %v31270_v35 }
 0x5da   :  { %24406 = vmatpush3.msra.mxu0 %v31297_v61  ;;  %24437 = vmatpush3.msra.mxu1 %v31298_v27 }
 0x5db   :  { %24408 = vmatmul.mubr.f32.vlgmr.msra.gmra.mxu0 %v28141_v39  ;;  %24438 = vmatprep.subr.mxu1 %v31270_v35 }
 0x5dc   :  { %24439 = vmatpush3.msra.mxu1 %v31299_v13  ;;  %24421 = vmatprep.subr.mxu0 %v31270_v35 }
 0x5dd   :  { %24440 = vmatprep.mubr.msk.f32.mxu1 %vm27076_vm2, %v31270_v35  ;;  %24454 = vmatprep.subr.mxu1 %v31270_v35 }
 0x5de   :  { %24422 = vmatpush3.msra.mxu0 %v27553_v38  ;;  %24429 = vmatprep.mubr.msk.f32.mxu0 %vm27076_vm2, %v31270_v35 }
 0x5df   :  { %24423 = vmatprep.subr.mxu0 %v31270_v35 }
 0x5e0   :  { %24424 = vmatpush3.msra.mxu0 %v27562_v47 }
 0x5e1   :  { %24425 = vmatprep.subr.mxu0 %v31270_v35 }
 0x5e2   :  { %24426 = vmatpush3.msra.mxu0 %v27571_v49 }
 0x5e3   :  { %24427 = vmatprep.subr.mxu0 %v31270_v35 }
 0x5e4   :  { %24428 = vmatpush3.msra.mxu0 %v27584_v55 }
 0x5e5   :  { %24443 = vmatprep.subr.mxu0 %v31270_v35 }
 0x627   :  { %v4031_v39 = vpop.f32.mrf.mxu1 }
 0x629   :  { %v24178_v13 = vpop.f32.mrf.mxu1 }
 0x62f   :  { %v4188_v27 = vpop.f32.mrf.mxu1 }
 0x630   :  { %v3940_v61 = vpop.f32.mrf.mxu0 }
 0x631   :  { %v4032_v17 = vadd.f32 %v4031_v39, %v3940_v61  ;;  %v24200_v51 = vpop.f32.mrf.mxu1 }
 0x632   :  { %v24167_v40 = vpop.f32.mrf.mxu0 }
 0x638   :  { %v4111_v19 = vpop.f32.mrf.mxu0 }
 0x639   :  { %v4112_v15 = vadd.f32 %v4111_v19, %v4032_v17  ;;  %v4346_v45 = vpop.f32.mrf.mxu1 }
 0x63a   :  { %v24189_v48 = vpop.f32.mrf.mxu0 }
 0x63b   :  { %v24222_v31 = vpop.f32.mrf.mxu1  ;;  %v4189_v25 = vadd.f32 %v4188_v27, %v4112_v15 }
 0x642   :  { %v4271_v42 = vpop.f32.mrf.mxu0 }
 0x643   :  { %v4272_v37 = vadd.f32 %v4271_v42, %v4189_v25  ;;  %v4523_v23 = vpop.f32.mrf.mxu1 }
 0x644   :  { %v24211_v6 = vpop.f32.mrf.mxu0 }
 0x645   :  { %v4347_v36 = vadd.f32 %v4346_v45, %v4272_v37  ;;  %v24244_v41 = vpop.f32.mrf.mxu1 }
 0x64c   :  { %v4432_v2 = vpop.f32.mrf.mxu0 }
 0x64d   :  { %v4680_v58 = vpop.f32.mrf.mxu1  ;;  %v4524_v30 = vadd.f32 %v4523_v23, %v4432_v2 }
 0x64e   :  { %v24233_v13 = vpop.f32.mrf.mxu0 }
 0x64f   :  { %v24266_v33 = vpop.f32.mrf.mxu1 }
 0x656   :  { %v4603_v44 = vpop.f32.mrf.mxu0 }
 0x657   :  { %v4838_v61 = vpop.f32.mrf.mxu1  ;;  %v4604_v33 = vadd.f32 %v4603_v44, %v4524_v30 }
 0x658   :  { %v24255_v51 = vpop.f32.mrf.mxu0 }
 0x659   :  { %v24288_v40 = vpop.f32.mrf.mxu1  ;;  %v4681_v51 = vadd.f32 %v4680_v58, %v4604_v33 }
 0x660   :  { %v4763_v39 = vpop.f32.mrf.mxu0 }
 0x661   :  { %v5019_v19 = vpop.f32.mrf.mxu1 }
 0x662   :  { %v24277_v17 = vpop.f32.mrf.mxu0 }
 0x663   :  { %v24310_v48 = vpop.f32.mrf.mxu1  ;;  %v4764_v17 = vadd.f32 %v4763_v39, %v4681_v51 }
 0x66a   :  { %v4928_v31 = vpop.f32.mrf.mxu0 }
 0x66b   :  { %v5176_v15 = vpop.f32.mrf.mxu1  ;;  %v5020_v41 = vadd.f32 %v5019_v19, %v4928_v31 }
 0x66c   :  { %v24299_v27 = vpop.f32.mrf.mxu0 }
 0x66d   :  { %v24332_v42 = vpop.f32.mrf.mxu1  ;;  %v4839_v27 = vadd.f32 %v4838_v61, %v4764_v17 }
 0x674   :  { %v5099_v25 = vpop.f32.mrf.mxu0 }
 0x675   :  { %v5334_v6 = vpop.f32.mrf.mxu1  ;;  %v5100_v13 = vadd.f32 %v5099_v25, %v5020_v41 }
 0x676   :  { %v24321_v37 = vpop.f32.mrf.mxu0 }
 0x677   :  { %v24354_v45 = vpop.f32.mrf.mxu1  ;;  %v5177_v60 = vadd.f32 %v5176_v15, %v5100_v13 }
 0x67e   :  { %v5259_v10 = vpop.f32.mrf.mxu0 }
 0x67f   :  { %v5260_v40 = vadd.f32 %v5259_v10, %v5177_v60  ;;  %v5510_v32 = vpop.f32.mrf.mxu1 }
 0x680   :  { %v24343_v26 = vpop.f32.mrf.mxu0 }
 0x681   :  { %v5335_v48 = vadd.f32 %v5334_v6, %v5260_v40  ;;  %v24376_v24 = vpop.f32.mrf.mxu1  ;;  %v31300_v6 = vld [vmem:[#allocation78_spill] sm:$0xff] }
 0x682   :  { %v4350_v45 = vadd.f32 %v4347_v36, %v31300_v6 }
 0x683   :  { %5339 = vrot.lane.b32.xlu1 %v5335_v48, %s27078_s27 }
 0x687   :  { %4843 = vrot.lane.b32.xlu1 %v4839_v27, %s27077_s26 }
 0x688   :  { %v5419_v42 = vpop.f32.mrf.mxu0 }
 0x689   :  { %v5667_v19 = vpop.f32.mrf.mxu1  ;;  %v5511_v44 = vadd.f32 %v5510_v32, %v5419_v42  ;;  %v22259_v32 = vmul.f32 -1.442695, %v4350_v45 }
 0x68a   :  { %v24365_v31 = vpop.f32.mrf.mxu0 }
 0x68b   :  { %v24398_v2 = vpop.f32.mrf.mxu1 }
 0x692   :  { %v5590_v23 = vpop.f32.mrf.mxu0 }
 0x693   :  { %v5825_v30 = vpop.f32.mrf.mxu1  ;;  %v5591_v10 = vadd.f32 %v5590_v23, %v5511_v44 }
 0x694   :  { %v24387_v15 = vpop.f32.mrf.mxu0 }
 0x695   :  { %v24420_v58 = vpop.f32.mrf.mxu1  ;;  %v5668_v60 = vadd.f32 %v5667_v19, %v5591_v10 }
 0x69b   :  { %v5750_v26 = vpop.f32.mrf.mxu0 }
 0x69c   :  { %v5751_v39 = vadd.f32 %v5750_v26, %v5668_v60 }
 0x69d   :  { %v24409_v25 = vpop.f32.mrf.mxu0 }
 0x69e   :  { %v5826_v24 = vadd.f32 %v5825_v30, %v5751_v39 }
 0x6a0   :  { %5830 = vrot.lane.b32.xlu1 %v5826_v24, %s27079_s8 }
 0x6f5   :  { %v5340_v61 = vpop.permute.xlu1 %5339 }
 0x6f6   :  { %v5342_v37 = vadd.f32 %v5340_v61, %v31300_v6 }
 0x6f8   :  { %26644 = vtanh.f32 %v5342_v37 }
 0x6f9   :  { %26646 = vpow2.f32 %v22259_v32  ;;  %v4844_v48 = vpop.permute.xlu1 %4843 }
 0x6fa   :  { %v4846_v27 = vadd.f32 %v4844_v48, %v31300_v6  ;;  %v31306_v48 = vld [vmem:[#allocation43_spill] sm:$0xff] }
 0x6fc   :  { %v22260_v42 = vmul.f32 -1.442695, %v4846_v27  ;;  %v31307_v27 = vld [vmem:[#allocation45_spill] sm:$0xff] }
 0x705   :  { %v26645_v41 = vpop.eup %26644 }
 0x706   :  { %5842 = vrot.lane.b32.xlu0 %v26645_v41, %s27078_s27  ;;  %v26647_v13 = vpop.eup %26646 }
 0x707   :  { %v4354_v33 = vadd.f32 1.0, %v26647_v13  ;;  %v31301_v13 = vld [vmem:[#allocation37_spill] sm:$0xff] }
 0x709   :  { %26648 = vrcp.f32 %v4354_v33  ;;  %v31302_v33 = vld [vmem:[#allocation39_spill] sm:$0xff] }
 0x70a   :  { %26650 = vpow2.f32 %v22260_v42  ;;  %v31308_v42 = vld [vmem:[#allocation42_spill] sm:$0xff] }
 0x712   :  { %v5831_v15 = vpop.permute.xlu1 %5830 }
 0x713   :  { %v5833_v58 = vadd.f32 %v5831_v15, %v31300_v6  ;;  %v31315_v15 = vld [vmem:[#allocation63_spill] sm:$0xff] }
 0x715   :  { %v22261_v10 = vmul.f32 -1.442695, %v5833_v58  ;;  %v31316_v58 = vld [vmem:[#allocation48_spill] sm:$0xff] }
 0x716   :  { %v26649_v51 = vpop.eup %26648 }
 0x717   :  { %v26651_v19 = vpop.eup %26650 }
 0x718   :  { %v4850_v31 = vadd.f32 1.0, %v26651_v19  ;;  %v31309_v19 = vld [vmem:[#allocation59_spill] sm:$0xff] }
 0x71a   :  { %26652 = vrcp.f32 %v4850_v31  ;;  %v31310_v31 = vld [vmem:[#allocation44_spill] sm:$0xff] }
 0x727   :  { %v26653_v2 = vpop.eup %26652 }
 0x728   :  { %v5840_v36 = vmul.f32 %v26653_v2, %v28135_v28  ;;  %v31311_v2 = vld [vmem:[#allocation61_spill] sm:$0xff] }
 0x778   :  { %v5843_v40 = vpop.permute.xlu0 %5842 }
 0x779   :  { %v5845_v17 = vmul.f32 %v26649_v51, %v5843_v40  ;;  %v31303_v51 = vld [vmem:[#allocation41_spill] sm:$0xff]  ;;  %v31304_v40 = vld [vmem:[#allocation38_spill] sm:$0xff] }
 0x77b   :  { %5847 = vrot.lane.b32.xlu0 %v5845_v17, %s27077_s26  ;;  %v31305_v17 = vld [vmem:[#allocation40_spill] sm:$0xff] }
 0x7ed   :  { %v5848_v23 = vpop.permute.xlu0 %5847 }
 0x7ee   :  { %v28426_v30 = vadd.f32 %v5848_v23, %v5840_v36  ;;  %v31312_v36 = vld [vmem:[#allocation46_spill] sm:$0xff] }
 0x7ef   :  { %v31313_v23 = vld [vmem:[#allocation62_spill] sm:$0xff] }
 0x7f0   :  { %26654 = vtanh.f32 %v28426_v30 }
 0x7f1   :  { %26656 = vpow2.f32 %v22261_v10  ;;  %v31317_v10 = vld [vmem:[#allocation49_spill] sm:$0xff] }
 0x7fd   :  { %v26655_v44 = vpop.eup %26654 }
 0x7fe   :  { %5853 = vrot.lane.b32.xlu0 %v26655_v44, %s27078_s27  ;;  %v26657_v60 = vpop.eup %26656  ;;  %v31314_v44 = vld [vmem:[#allocation47_spill] sm:$0xff] }
 0x7ff   :  { %v5837_v26 = vadd.f32 1.0, %v26657_v60  ;;  %v31318_v60 = vld [vmem:[#allocation51_spill] sm:$0xff] }
 0x801   :  { %26658 = vrcp.f32 %v5837_v26  ;;  %v31319_v26 = vld [vmem:[#allocation54_spill] sm:$0xff] }
 0x80e   :  { %v26659_v39 = vpop.eup %26658 }
 0x870   :  { %v5854_v25 = vpop.permute.xlu0 %5853 }
 0x871   :  { %v5856_v24 = vmul.f32 %v26659_v39, %v5854_v25  ;;  %v31320_v39 = vld [vmem:[#allocation50_spill] sm:$0xff]  ;;  %v31321_v25 = vld [vmem:[#allocation52_spill] sm:$0xff] }
 0x873   :  { %5858 = vrot.lane.b32.xlu1 %v5856_v24, %s27077_s26  ;;  %v31322_v24 = vld [vmem:[#allocation55_spill] sm:$0xff] }
 0x8e5   :  { %v5859_v28 = vpop.permute.xlu1 %5858 }
 0x8e6   :  { %v5860_v61 = vsel %vm258_vm0, %v5859_v28, 0  ;;  %v31323_v28 = vld [vmem:[#allocation58_spill] sm:$0xff] }
 0x8e7   :  { %v28433_v37 = vand.u32 4294901760, %v5860_v61 }
 0x8e9   :  { %v28436_v41 = vsub.f32 %v5860_v61, %v28433_v37  ;;  %24441 = vmatmul.mubr.f32.vlgmr.msra.gmra.mxu1 %v28433_v37  ;;  %v31324_v61 = vld [vmem:[#allocation53_spill] sm:$0xff] }
 0x8ea   :  { %24455 = vmatpush3.msra.mxu1 %v27553_v38  ;;  %24462 = vmatprep.mubr.msk.f32.mxu1 %vm27076_vm2, %v31270_v35 }
 0x8eb   :  { %24456 = vmatprep.subr.mxu1 %v31270_v35  ;;  %v28444_v6 = vand.u32 4294901760, %v28436_v41 }
 0x8ec   :  { %24457 = vmatpush3.msra.mxu1 %v27562_v47 }
 0x8ed   :  { %24458 = vmatprep.subr.mxu1 %v31270_v35  ;;  %v5934_v45 = vsub.f32 %v28436_v41, %v28444_v6 }
 0x8ee   :  { %24459 = vmatpush3.msra.mxu1 %v27571_v49 }
 0x8ef   :  { %24460 = vmatprep.subr.mxu1 %v31270_v35  ;;  %v28452_v32 = vand.u32 4294901760, %v5934_v45  ;;  %v31326_v45 = vld [vmem:[#allocation33_spill] sm:$0xff] }
 0x8f0   :  { %24461 = vmatpush3.msra.mxu1 %v27584_v55 }
 0x8f1   :  { %24463 = vmatmul.mubr.f32.vlgmr.msra.gmra.mxu1 %v28444_v6  ;;  %24476 = vmatprep.subr.mxu1 %v31270_v35 }
 0x8f2   :  { %24430 = vmatmul.mubr.f32.vlgmr.msra.gmra.mxu0 %v28452_v32  ;;  %24477 = vmatpush3.msra.mxu1 %v27553_v38 }
 0x8f3   :  { %24444 = vmatpush3.msra.mxu0 %v27560_v46  ;;  %24478 = vmatprep.subr.mxu1 %v31270_v35 }
 0x8f4   :  { %24445 = vmatprep.subr.mxu0 %v31270_v35  ;;  %24479 = vmatpush3.msra.mxu1 %v27562_v47 }
 0x8f5   :  { %24446 = vmatpush3.msra.mxu0 %v27569_v5  ;;  %24480 = vmatprep.subr.mxu1 %v31270_v35 }
 0x8f6   :  { %24447 = vmatprep.subr.mxu0 %v31270_v35  ;;  %24481 = vmatpush3.msra.mxu1 %v27571_v49 }
 0x8f7   :  { %24448 = vmatpush3.msra.mxu0 %v27582_v54  ;;  %24482 = vmatprep.subr.mxu1 %v31270_v35 }
 0x8f8   :  { %24449 = vmatprep.subr.mxu0 %v31270_v35  ;;  %24451 = vmatprep.mubr.msk.f32.mxu0 %vm27076_vm2, %v31270_v35 }
 0x8f9   :  { %24450 = vmatpush3.msra.mxu0 %v27598_v57  ;;  %24483 = vmatpush3.msra.mxu1 %v27584_v55 }
 0x8fa   :  { %24484 = vmatprep.mubr.msk.f32.mxu1 %vm27076_vm2, %v31270_v35  ;;  %24452 = vmatmul.mubr.f32.vlgmr.msra.gmra.mxu0 %v28436_v41 }
 0x8fb   :  { %24465 = vmatprep.subr.mxu0 %v31270_v35  ;;  %24485 = vmatmul.mubr.f32.vlgmr.msra.gmra.mxu1 %v28433_v37 }
 0x8fc   :  { %24498 = vmatprep.subr.mxu1 %v31270_v35  ;;  %24466 = vmatpush3.msra.mxu0 %v27566_v43 }
 0x8fd   :  { %24499 = vmatpush3.msra.mxu1 %v27725_v21  ;;  %24467 = vmatprep.subr.mxu0 %v31270_v35 }
 0x8fe   :  { %24500 = vmatprep.subr.mxu1 %v31270_v35  ;;  %24468 = vmatpush3.msra.mxu0 %v27579_v53 }
 0x8ff   :  { %24501 = vmatpush3.msra.mxu1 %v27734_v34  ;;  %24469 = vmatprep.subr.mxu0 %v31270_v35 }
 0x900   :  { %24502 = vmatprep.subr.mxu1 %v31270_v35  ;;  %24470 = vmatpush3.msra.mxu0 %v27595_v56 }
 0x901   :  { %24503 = vmatpush3.msra.mxu1 %v27742_v4  ;;  %24471 = vmatprep.subr.mxu0 %v31270_v35 }
 0x902   :  { %24504 = vmatprep.subr.mxu1 %v31270_v35  ;;  %24472 = vmatpush3.msra.mxu0 %v27609_v59 }
 0x903   :  { %24473 = vmatprep.mubr.msk.f32.mxu0 %vm27076_vm2, %v31270_v35  ;;  %24505 = vmatpush3.msra.mxu1 %v27750_v16 }
 0x904   :  { %24506 = vmatprep.mubr.msk.f32.mxu1 %vm27076_vm2, %v31270_v35  ;;  %24474 = vmatmul.mubr.f32.vlgmr.msra.gmra.mxu0 %v28433_v37 }
 0x905   :  { %24487 = vmatprep.subr.mxu0 %v31270_v35  ;;  %24507 = vmatmul.mubr.f32.vlgmr.msra.gmra.mxu1 %v28433_v37 }
 0x906   :  { %24520 = vmatprep.subr.mxu1 %v31270_v35  ;;  %24488 = vmatpush3.msra.mxu0 %v27656_v52 }
 0x907   :  { %24521 = vmatpush3.msra.mxu1 %v27656_v52  ;;  %24489 = vmatprep.subr.mxu0 %v31270_v35 }
 0x908   :  { %24522 = vmatprep.subr.mxu1 %v31270_v35  ;;  %24490 = vmatpush3.msra.mxu0 %v27661_v63 }
 0x909   :  { %24523 = vmatpush3.msra.mxu1 %v27661_v63  ;;  %24491 = vmatprep.subr.mxu0 %v31270_v35 }
 0x90a   :  { %24524 = vmatprep.subr.mxu1 %v31270_v35  ;;  %24492 = vmatpush3.msra.mxu0 %v27671_v1 }
 0x90b   :  { %24525 = vmatpush3.msra.mxu1 %v27671_v1  ;;  %24493 = vmatprep.subr.mxu0 %v31270_v35 }
 0x90c   :  { %24526 = vmatprep.subr.mxu1 %v31270_v35  ;;  %24494 = vmatpush3.msra.mxu0 %v27682_v7 }
 0x90d   :  { %24495 = vmatprep.mubr.msk.f32.mxu0 %vm27076_vm2, %v31270_v35  ;;  %24527 = vmatpush3.msra.mxu1 %v27682_v7 }
 0x90e   :  { %24528 = vmatprep.mubr.msk.f32.mxu1 %vm27076_vm2, %v31270_v35  ;;  %24496 = vmatmul.mubr.f32.vlgmr.msra.gmra.mxu0 %v28452_v32 }
 0x90f   :  { %24509 = vmatprep.subr.mxu0 %v31270_v35  ;;  %24529 = vmatmul.mubr.f32.vlgmr.msra.gmra.mxu1 %v28444_v6 }
 0x910   :  { %24542 = vmatprep.subr.mxu1 %v31270_v35  ;;  %24510 = vmatpush3.msra.mxu0 %v27669_v0 }
 0x911   :  { %24543 = vmatpush3.msra.mxu1 %v27656_v52  ;;  %24511 = vmatprep.subr.mxu0 %v31270_v35 }
 0x912   :  { %24544 = vmatprep.subr.mxu1 %v31270_v35  ;;  %24512 = vmatpush3.msra.mxu0 %v27678_v3 }
 0x913   :  { %24545 = vmatpush3.msra.mxu1 %v27661_v63  ;;  %24513 = vmatprep.subr.mxu0 %v31270_v35 }
 0x914   :  { %24546 = vmatprep.subr.mxu1 %v31270_v35  ;;  %24514 = vmatpush3.msra.mxu0 %v27690_v9 }
 0x915   :  { %24547 = vmatpush3.msra.mxu1 %v27671_v1  ;;  %24515 = vmatprep.subr.mxu0 %v31270_v35 }
 0x916   :  { %24548 = vmatprep.subr.mxu1 %v31270_v35  ;;  %24516 = vmatpush3.msra.mxu0 %v27702_v12 }
 0x917   :  { %24517 = vmatprep.mubr.msk.f32.mxu0 %vm27076_vm2, %v31270_v35  ;;  %24549 = vmatpush3.msra.mxu1 %v27682_v7 }
 0x918   :  { %24550 = vmatprep.mubr.msk.f32.mxu1 %vm27076_vm2, %v31270_v35  ;;  %24518 = vmatmul.mubr.f32.vlgmr.msra.gmra.mxu0 %v28436_v41 }
 0x919   :  { %24531 = vmatprep.subr.mxu0 %v31270_v35  ;;  %24551 = vmatmul.mubr.f32.vlgmr.msra.gmra.mxu1 %v28433_v37 }
 0x91a   :  { %24564 = vmatprep.subr.mxu1 %v31270_v35  ;;  %24532 = vmatpush3.msra.mxu0 %v27687_v8 }
 0x91b   :  { %24565 = vmatpush3.msra.mxu1 %v27839_v50  ;;  %24533 = vmatprep.subr.mxu0 %v31270_v35 }
 0x91c   :  { %24566 = vmatprep.subr.mxu1 %v31270_v35  ;;  %24534 = vmatpush3.msra.mxu0 %v27697_v11 }
 0x91d   :  { %24567 = vmatpush3.msra.mxu1 %v27848_v29  ;;  %24535 = vmatprep.subr.mxu0 %v31270_v35 }
 0x91e   :  { %24568 = vmatprep.subr.mxu1 %v31270_v35  ;;  %24536 = vmatpush3.msra.mxu0 %v27709_v14 }
 0x91f   :  { %24569 = vmatpush3.msra.mxu1 %v27856_v62  ;;  %24537 = vmatprep.subr.mxu0 %v31270_v35 }
 0x920   :  { %24570 = vmatprep.subr.mxu1 %v31270_v35  ;;  %24538 = vmatpush3.msra.mxu0 %v27721_v20 }
 0x921   :  { %24539 = vmatprep.mubr.msk.f32.mxu0 %vm27076_vm2, %v31270_v35  ;;  %24571 = vmatpush3.msra.mxu1 %v27864_v18 }
 0x922   :  { %24572 = vmatprep.mubr.msk.f32.mxu1 %vm27076_vm2, %v31270_v35  ;;  %24540 = vmatmul.mubr.f32.vlgmr.msra.gmra.mxu0 %v28433_v37 }
 0x923   :  { %24553 = vmatprep.subr.mxu0 %v31270_v35  ;;  %24573 = vmatmul.mubr.f32.vlgmr.msra.gmra.mxu1 %v28433_v37 }
 0x924   :  { %24586 = vmatprep.subr.mxu1 %v31270_v35  ;;  %24554 = vmatpush3.msra.mxu0 %v27768_v22 }
 0x925   :  { %24587 = vmatpush3.msra.mxu1 %v27768_v22  ;;  %24555 = vmatprep.subr.mxu0 %v31270_v35 }
 0x926   :  { %24588 = vmatprep.subr.mxu1 %v31270_v35  ;;  %24556 = vmatpush3.msra.mxu0 %v31301_v13 }
 0x927   :  { %24589 = vmatpush3.msra.mxu1 %v31301_v13  ;;  %24557 = vmatprep.subr.mxu0 %v31270_v35 }
 0x928   :  { %24590 = vmatprep.subr.mxu1 %v31270_v35  ;;  %24558 = vmatpush3.msra.mxu0 %v31302_v33 }
 0x929   :  { %24591 = vmatpush3.msra.mxu1 %v31302_v33  ;;  %24559 = vmatprep.subr.mxu0 %v31270_v35 }
 0x92a   :  { %24592 = vmatprep.subr.mxu1 %v31270_v35  ;;  %24560 = vmatpush3.msra.mxu0 %v31303_v51 }
 0x92b   :  { %24561 = vmatprep.mubr.msk.f32.mxu0 %vm27076_vm2, %v31270_v35  ;;  %24593 = vmatpush3.msra.mxu1 %v31303_v51 }
 0x92c   :  { %24594 = vmatprep.mubr.msk.f32.mxu1 %vm27076_vm2, %v31270_v35  ;;  %24562 = vmatmul.mubr.f32.vlgmr.msra.gmra.mxu0 %v28452_v32 }
 0x92d   :  { %24575 = vmatprep.subr.mxu0 %v31270_v35  ;;  %24595 = vmatmul.mubr.f32.vlgmr.msra.gmra.mxu1 %v28444_v6 }
 0x92e   :  { %24608 = vmatprep.subr.mxu1 %v31270_v35  ;;  %24576 = vmatpush3.msra.mxu0 %v31304_v40 }
 0x92f   :  { %24609 = vmatpush3.msra.mxu1 %v27768_v22  ;;  %24577 = vmatprep.subr.mxu0 %v31270_v35 }
 0x930   :  { %24610 = vmatprep.subr.mxu1 %v31270_v35  ;;  %24578 = vmatpush3.msra.mxu0 %v31305_v17 }
 0x931   :  { %24611 = vmatpush3.msra.mxu1 %v31301_v13  ;;  %24579 = vmatprep.subr.mxu0 %v31270_v35 }
 0x932   :  { %24612 = vmatprep.subr.mxu1 %v31270_v35  ;;  %24580 = vmatpush3.msra.mxu0 %v31306_v48 }
 0x933   :  { %24613 = vmatpush3.msra.mxu1 %v31302_v33  ;;  %24581 = vmatprep.subr.mxu0 %v31270_v35 }
 0x934   :  { %24614 = vmatprep.subr.mxu1 %v31270_v35  ;;  %24582 = vmatpush3.msra.mxu0 %v31307_v27 }
 0x935   :  { %24583 = vmatprep.mubr.msk.f32.mxu0 %vm27076_vm2, %v31270_v35  ;;  %24615 = vmatpush3.msra.mxu1 %v31303_v51 }
 0x936   :  { %24616 = vmatprep.mubr.msk.f32.mxu1 %vm27076_vm2, %v31270_v35  ;;  %24584 = vmatmul.mubr.f32.vlgmr.msra.gmra.mxu0 %v28436_v41 }
 0x937   :  { %24597 = vmatprep.subr.mxu0 %v31270_v35  ;;  %24617 = vmatmul.mubr.f32.vlgmr.msra.gmra.mxu1 %v28433_v37 }
 0x938   :  { %24630 = vmatprep.subr.mxu1 %v31270_v35  ;;  %24598 = vmatpush3.msra.mxu0 %v31308_v42 }
 0x939   :  { %24631 = vmatpush3.msra.mxu1 %v31309_v19  ;;  %24599 = vmatprep.subr.mxu0 %v31270_v35 }
 0x93a   :  { %24632 = vmatprep.subr.mxu1 %v31270_v35  ;;  %24600 = vmatpush3.msra.mxu0 %v31310_v31 }
 0x93b   :  { %24633 = vmatpush3.msra.mxu1 %v31311_v2  ;;  %24601 = vmatprep.subr.mxu0 %v31270_v35 }
 0x93c   :  { %24634 = vmatprep.subr.mxu1 %v31270_v35  ;;  %24602 = vmatpush3.msra.mxu0 %v31312_v36 }
 0x93d   :  { %24635 = vmatpush3.msra.mxu1 %v31313_v23  ;;  %24603 = vmatprep.subr.mxu0 %v31270_v35 }
 0x93e   :  { %24636 = vmatprep.subr.mxu1 %v31270_v35  ;;  %24604 = vmatpush3.msra.mxu0 %v31314_v44 }
 0x93f   :  { %24605 = vmatprep.mubr.msk.f32.mxu0 %vm27076_vm2, %v31270_v35  ;;  %24637 = vmatpush3.msra.mxu1 %v31315_v15 }
 0x940   :  { %24638 = vmatprep.mubr.msk.f32.mxu1 %vm27076_vm2, %v31270_v35  ;;  %24606 = vmatmul.mubr.f32.vlgmr.msra.gmra.mxu0 %v28433_v37 }
 0x941   :  { %24619 = vmatprep.subr.mxu0 %v31270_v35  ;;  %24639 = vmatmul.mubr.f32.vlgmr.msra.gmra.mxu1 %v28433_v37 }
 0x942   :  { %24652 = vmatprep.subr.mxu1 %v31270_v35  ;;  %24620 = vmatpush3.msra.mxu0 %v31316_v58 }
 0x943   :  { %24653 = vmatpush3.msra.mxu1 %v31316_v58  ;;  %24621 = vmatprep.subr.mxu0 %v31270_v35 }
 0x944   :  { %24654 = vmatprep.subr.mxu1 %v31270_v35  ;;  %24622 = vmatpush3.msra.mxu0 %v31317_v10 }
 0x945   :  { %24655 = vmatpush3.msra.mxu1 %v31317_v10  ;;  %24623 = vmatprep.subr.mxu0 %v31270_v35 }
 0x946   :  { %24656 = vmatprep.subr.mxu1 %v31270_v35  ;;  %24624 = vmatpush3.msra.mxu0 %v31318_v60 }
 0x947   :  { %24657 = vmatpush3.msra.mxu1 %v31318_v60  ;;  %24625 = vmatprep.subr.mxu0 %v31270_v35 }
 0x948   :  { %24658 = vmatprep.subr.mxu1 %v31270_v35  ;;  %24626 = vmatpush3.msra.mxu0 %v31319_v26 }
 0x949   :  { %24627 = vmatprep.mubr.msk.f32.mxu0 %vm27076_vm2, %v31270_v35  ;;  %24659 = vmatpush3.msra.mxu1 %v31319_v26 }
 0x94a   :  { %24660 = vmatprep.mubr.msk.f32.mxu1 %vm27076_vm2, %v31270_v35  ;;  %24628 = vmatmul.mubr.f32.vlgmr.msra.gmra.mxu0 %v28452_v32  ;;  %v31328_v32 = vld [vmem:[#allocation34_spill] sm:$0xff] }
 0x94b   :  { %24641 = vmatprep.subr.mxu0 %v31270_v35  ;;  %24661 = vmatmul.mubr.f32.vlgmr.msra.gmra.mxu1 %v28444_v6  ;;  %v31325_v6 = vld [vmem:[#allocation56_spill] sm:$0xff] }
 0x94c   :  { %24674 = vmatprep.subr.mxu1 %v31270_v35  ;;  %24642 = vmatpush3.msra.mxu0 %v31320_v39 }
 0x94d   :  { %24675 = vmatpush3.msra.mxu1 %v31316_v58  ;;  %24643 = vmatprep.subr.mxu0 %v31270_v35 }
 0x94e   :  { %24676 = vmatprep.subr.mxu1 %v31270_v35  ;;  %24644 = vmatpush3.msra.mxu0 %v31321_v25 }
 0x94f   :  { %24677 = vmatpush3.msra.mxu1 %v31317_v10  ;;  %24645 = vmatprep.subr.mxu0 %v31270_v35 }
 0x950   :  { %24678 = vmatprep.subr.mxu1 %v31270_v35  ;;  %24646 = vmatpush3.msra.mxu0 %v31322_v24 }
 0x951   :  { %24679 = vmatpush3.msra.mxu1 %v31318_v60  ;;  %24647 = vmatprep.subr.mxu0 %v31270_v35 }
 0x952   :  { %24680 = vmatprep.subr.mxu1 %v31270_v35  ;;  %24648 = vmatpush3.msra.mxu0 %v31323_v28  ;;  %v31330_v28 = vld [vmem:[#allocation35_spill] sm:$0xff] }
 0x953   :  { %24649 = vmatprep.mubr.msk.f32.mxu0 %vm27076_vm2, %v31270_v35  ;;  %24681 = vmatpush3.msra.mxu1 %v31319_v26 }
 0x954   :  { %24682 = vmatprep.mubr.msk.f32.mxu1 %vm27076_vm2, %v31270_v35  ;;  %24650 = vmatmul.mubr.f32.vlgmr.msra.gmra.mxu0 %v28436_v41  ;;  %v31327_v41 = vld [vmem:[#allocation57_spill] sm:$0xff] }
 0x955   :  { %24663 = vmatprep.subr.mxu0 %v31270_v35  ;;  %24683 = vmatmul.mubr.f32.vlgmr.msra.gmra.mxu1 %v28433_v37 }
 0x956   :  { %24664 = vmatpush3.msra.mxu0 %v31324_v61  ;;  %24671 = vmatprep.mubr.msk.f32.mxu0 %vm27076_vm2, %v31270_v35  ;;  %v31329_v61 = vld [vmem:[#allocation60_spill] sm:$0xff] }
 0x957   :  { %24665 = vmatprep.subr.mxu0 %v31270_v35  ;;  %24696 = vmatprep.subr.mxu1 %v31270_v35 }
 0x958   :  { %24666 = vmatpush3.msra.mxu0 %v31325_v6  ;;  %24697 = vmatpush3.msra.mxu1 %v31326_v45  ;;  %v31331_v45 = vld [vmem:[#allocation36_spill] sm:$0xff] }
 0x959   :  { %24667 = vmatprep.subr.mxu0 %v31270_v35  ;;  %24698 = vmatprep.subr.mxu1 %v31270_v35 }
 0x95a   :  { %24668 = vmatpush3.msra.mxu0 %v31327_v41  ;;  %24699 = vmatpush3.msra.mxu1 %v31328_v32 }
 0x95b   :  { %24669 = vmatprep.subr.mxu0 %v31270_v35  ;;  %24700 = vmatprep.subr.mxu1 %v31270_v35 }
 0x95c   :  { %24670 = vmatpush3.msra.mxu0 %v31329_v61  ;;  %24701 = vmatpush3.msra.mxu1 %v31330_v28 }
 0x95d   :  { %24672 = vmatmul.mubr.f32.vlgmr.msra.gmra.mxu0 %v28433_v37  ;;  %24702 = vmatprep.subr.mxu1 %v31270_v35 }
 0x95e   :  { %24703 = vmatpush3.msra.mxu1 %v31331_v45  ;;  %24685 = vmatprep.subr.mxu0 %v31270_v35 }
 0x95f   :  { %24704 = vmatprep.mubr.msk.f32.mxu1 %vm27076_vm2, %v31270_v35  ;;  %24718 = vmatprep.subr.mxu1 %v31270_v35 }
 0x960   :  { %24686 = vmatpush3.msra.mxu0 %v27553_v38  ;;  %24693 = vmatprep.mubr.msk.f32.mxu0 %vm27076_vm2, %v31270_v35 }
 0x961   :  { %24687 = vmatprep.subr.mxu0 %v31270_v35 }
 0x962   :  { %24688 = vmatpush3.msra.mxu0 %v27562_v47 }
 0x963   :  { %24689 = vmatprep.subr.mxu0 %v31270_v35 }
 0x964   :  { %24690 = vmatpush3.msra.mxu0 %v27571_v49 }
 0x965   :  { %24691 = vmatprep.subr.mxu0 %v31270_v35 }
 0x966   :  { %24692 = vmatpush3.msra.mxu0 %v27584_v55 }
 0x967   :  { %24707 = vmatprep.subr.mxu0 %v31270_v35 }
 0x9a9   :  { %v6028_v37 = vpop.f32.mrf.mxu1 }
 0x9ab   :  { %v24442_v45 = vpop.f32.mrf.mxu1 }
 0x9b1   :  { %v6185_v28 = vpop.f32.mrf.mxu1 }
 0x9b2   :  { %v5937_v61 = vpop.f32.mrf.mxu0 }
 0x9b3   :  { %v6029_v32 = vadd.f32 %v6028_v37, %v5937_v61  ;;  %v24464_v41 = vpop.f32.mrf.mxu1 }
 0x9b4   :  { %v24431_v6 = vpop.f32.mrf.mxu0 }
 0x9ba   :  { %v6108_v24 = vpop.f32.mrf.mxu0 }
 0x9bb   :  { %v6109_v25 = vadd.f32 %v6108_v24, %v6029_v32  ;;  %v6343_v39 = vpop.f32.mrf.mxu1 }
 0x9bc   :  { %v24453_v26 = vpop.f32.mrf.mxu0 }
 0x9bd   :  { %v24486_v60 = vpop.f32.mrf.mxu1  ;;  %v6186_v10 = vadd.f32 %v6185_v28, %v6109_v25 }
 0x9c4   :  { %v6268_v58 = vpop.f32.mrf.mxu0 }
 0x9c5   :  { %v6269_v15 = vadd.f32 %v6268_v58, %v6186_v10  ;;  %v6520_v44 = vpop.f32.mrf.mxu1 }
 0x9c6   :  { %v24475_v23 = vpop.f32.mrf.mxu0 }
 0x9c7   :  { %v28709_v36 = vadd.f32 %v6343_v39, %v6269_v15  ;;  %v24508_v2 = vpop.f32.mrf.mxu1 }
 0x9ce   :  { %v6429_v31 = vpop.f32.mrf.mxu0 }
 0x9cf   :  { %v6677_v45 = vpop.f32.mrf.mxu1  ;;  %v6521_v48 = vadd.f32 %v6520_v44, %v6429_v31 }
 0x9d0   :  { %v24497_v19 = vpop.f32.mrf.mxu0 }
 0x9d1   :  { %v24530_v42 = vpop.f32.mrf.mxu1 }
 0x9d8   :  { %v6600_v61 = vpop.f32.mrf.mxu0 }
 0x9d9   :  { %v6835_v41 = vpop.f32.mrf.mxu1  ;;  %v6601_v42 = vadd.f32 %v6600_v61, %v6521_v48 }
 0x9da   :  { %v24519_v6 = vpop.f32.mrf.mxu0 }
 0x9db   :  { %v24552_v37 = vpop.f32.mrf.mxu1  ;;  %v6678_v6 = vadd.f32 %v6677_v45, %v6601_v42 }
 0x9e2   :  { %v6760_v24 = vpop.f32.mrf.mxu0 }
 0x9e3   :  { %v7016_v32 = vpop.f32.mrf.mxu1 }
 0x9e4   :  { %v24541_v26 = vpop.f32.mrf.mxu0 }
 0x9e5   :  { %v24574_v60 = vpop.f32.mrf.mxu1  ;;  %v6761_v26 = vadd.f32 %v6760_v24, %v6678_v6  ;;  %v31335_v6 = vld [vmem:[#allocation70_spill] sm:$0xff] }
 0x9ec   :  { %v6925_v25 = vpop.f32.mrf.mxu0 }
 0x9ed   :  { %v7173_v28 = vpop.f32.mrf.mxu1  ;;  %v7017_v2 = vadd.f32 %v7016_v32, %v6925_v25 }
 0x9ee   :  { %v24563_v58 = vpop.f32.mrf.mxu0 }
 0x9ef   :  { %v24596_v10 = vpop.f32.mrf.mxu1  ;;  %v6836_v58 = vadd.f32 %v6835_v41, %v6761_v26  ;;  %v26760_v41 = vld [vmem:[#allocation7] ss:$0 sm:$0xff] }
 0x9f6   :  { %v7096_v23 = vpop.f32.mrf.mxu0 }
 0x9f7   :  { %v7331_v15 = vpop.f32.mrf.mxu1  ;;  %v7097_v19 = vadd.f32 %v7096_v23, %v7017_v2  ;;  %v31332_v23 = vld [vmem:[#allocation66_spill] sm:$0xff] }
 0x9f8   :  { %v24585_v39 = vpop.f32.mrf.mxu0 }
 0x9f9   :  { %v24618_v27 = vpop.f32.mrf.mxu1  ;;  %v7174_v17 = vadd.f32 %v7173_v28, %v7097_v19  ;;  %v31333_v39 = vld [vmem:[#allocation64_spill] sm:$0xff] }
 0x9fa   :  { %v31334_v19 = vld [vmem:[#allocation72_spill] sm:$0xff] }
 0xa00   :  { %v7256_v40 = vpop.f32.mrf.mxu0 }
 0xa01   :  { %v7257_v37 = vadd.f32 %v7256_v40, %v7174_v17  ;;  %v7507_v51 = vpop.f32.mrf.mxu1 }
 0xa02   :  { %v24607_v33 = vpop.f32.mrf.mxu0 }
 0xa03   :  { %v7332_v60 = vadd.f32 %v7331_v15, %v7257_v37  ;;  %v24640_v13 = vpop.f32.mrf.mxu1  ;;  %v1195_v15 = vadd.f32 %v26760_v41, %v31332_v23 }
 0xa05   :  { %7336 = vrot.lane.b32.xlu0 %v7332_v60, %s27078_s27  ;;  %v1333_v2 = vadd.f32 %v31333_v39, %v1195_v15  ;;  %v31337_v60 = vld [vmem:[#allocation76_spill] sm:$0xff] }
 0xa07   :  { %v1451_v42 = vadd.f32 %v31334_v19, %v1333_v2 }
 0xa09   :  { %6840 = vrot.lane.b32.xlu0 %v6836_v58, %s27077_s26  ;;  %v1576_v37 = vadd.f32 %v31335_v6, %v1451_v42 }
 0xa0a   :  { %v7416_v10 = vpop.f32.mrf.mxu0 }
 0xa0b   :  { %v7664_v32 = vpop.f32.mrf.mxu1  ;;  %v7508_v61 = vadd.f32 %v7507_v51, %v7416_v10  ;;  %v31336_v51 = vld [vmem:[#allocation79_spill] sm:$0xff] }
 0xa0c   :  { %v24629_v27 = vpop.f32.mrf.mxu0  ;;  %v1702_v26 = vadd.f32 %v31336_v51, %v1576_v37 }
 0xa0d   :  { %v24662_v31 = vpop.f32.mrf.mxu1 }
 0xa0e   :  { %v1816_v58 = vadd.f32 %v31337_v60, %v1702_v26 }
 0xa10   :  { %v6347_v31 = vadd.f32 %v28709_v36, %v1816_v58 }
 0xa14   :  { %v7587_v44 = vpop.f32.mrf.mxu0 }
 0xa15   :  { %v7822_v48 = vpop.f32.mrf.mxu1  ;;  %v7588_v40 = vadd.f32 %v7587_v44, %v7508_v61  ;;  %v22262_v44 = vmul.f32 -1.442695, %v6347_v31 }
 0xa16   :  { %v24651_v25 = vpop.f32.mrf.mxu0 }
 0xa17   :  { %v24684_v45 = vpop.f32.mrf.mxu1  ;;  %v7665_v17 = vadd.f32 %v7664_v32, %v7588_v40 }
 0xa1d   :  { %v7747_v33 = vpop.f32.mrf.mxu0 }
 0xa1e   :  { %v7748_v24 = vadd.f32 %v7747_v33, %v7665_v17 }
 0xa1f   :  { %v24673_v28 = vpop.f32.mrf.mxu0 }
 0xa20   :  { %v7823_v13 = vadd.f32 %v7822_v48, %v7748_v24 }
 0xa22   :  { %7827 = vrot.lane.b32.xlu0 %v7823_v13, %s27079_s8 }
 0xa77   :  { %v7337_v10 = vpop.permute.xlu0 %7336 }
 0xa78   :  { %v7339_v32 = vadd.f32 %v7337_v10, %v1816_v58 }
 0xa7a   :  { %26660 = vtanh.f32 %v7339_v32 }
 0xa7b   :  { %26662 = vpow2.f32 %v22262_v44  ;;  %v6841_v17 = vpop.permute.xlu0 %6840 }
 0xa7c   :  { %v6843_v33 = vadd.f32 %v6841_v17, %v1816_v58  ;;  %v31343_v17 = vld [vmem:[#allocation43_spill] sm:$0xff] }
 0xa7e   :  { %v22263_v24 = vmul.f32 -1.442695, %v6843_v33  ;;  %v31344_v33 = vld [vmem:[#allocation45_spill] sm:$0xff] }
 0xa87   :  { %v26661_v27 = vpop.eup %26660 }
 0xa88   :  { %7839 = vrot.lane.b32.xlu1 %v26661_v27, %s27078_s27  ;;  %v26663_v48 = vpop.eup %26662 }
 0xa89   :  { %v6351_v61 = vadd.f32 1.0, %v26663_v48  ;;  %v31338_v48 = vld [vmem:[#allocation37_spill] sm:$0xff] }
 0xa8b   :  { %26664 = vrcp.f32 %v6351_v61  ;;  %v31339_v61 = vld [vmem:[#allocation39_spill] sm:$0xff] }
 0xa8c   :  { %26666 = vpow2.f32 %v22263_v24  ;;  %v31345_v24 = vld [vmem:[#allocation42_spill] sm:$0xff] }
 0xa94   :  { %v7828_v2 = vpop.permute.xlu0 %7827 }
 0xa95   :  { %v7830_v19 = vadd.f32 %v7828_v2, %v1816_v58  ;;  %v31352_v2 = vld [vmem:[#allocation63_spill] sm:$0xff] }
 0xa97   :  { %v22264_v42 = vmul.f32 -1.442695, %v7830_v19  ;;  %v31353_v19 = vld [vmem:[#allocation48_spill] sm:$0xff] }
 0xa98   :  { %v26665_v25 = vpop.eup %26664 }
 0xa99   :  { %v26667_v28 = vpop.eup %26666 }
 0xa9a   :  { %v6847_v13 = vadd.f32 1.0, %v26667_v28  ;;  %v31346_v28 = vld [vmem:[#allocation59_spill] sm:$0xff] }
 0xa9c   :  { %26668 = vrcp.f32 %v6847_v13  ;;  %v31347_v13 = vld [vmem:[#allocation44_spill] sm:$0xff] }
 0xaa9   :  { %v26669_v41 = vpop.eup %26668 }
 0xaaa   :  { %v7837_v36 = vmul.f32 %v26669_v41, %v28426_v30  ;;  %v31348_v41 = vld [vmem:[#allocation61_spill] sm:$0xff] }
 0xafa   :  { %v7840_v45 = vpop.permute.xlu1 %7839 }
 0xafb   :  { %v7842_v40 = vmul.f32 %v26665_v25, %v7840_v45  ;;  %v31340_v25 = vld [vmem:[#allocation41_spill] sm:$0xff]  ;;  %v31341_v45 = vld [vmem:[#allocation38_spill] sm:$0xff] }
 0xafd   :  { %7844 = vrot.lane.b32.xlu1 %v7842_v40, %s27077_s26  ;;  %v31342_v40 = vld [vmem:[#allocation40_spill] sm:$0xff] }
 0xb6f   :  { %v7845_v23 = vpop.permute.xlu1 %7844 }
 0xb70   :  { %v28724_v15 = vadd.f32 %v7845_v23, %v7837_v36  ;;  %v31349_v36 = vld [vmem:[#allocation46_spill] sm:$0xff] }
 0xb71   :  { %v31350_v23 = vld [vmem:[#allocation62_spill] sm:$0xff] }
 0xb72   :  { %26670 = vtanh.f32 %v28724_v15 }
 0xb73   :  { %26672 = vpow2.f32 %v22264_v42  ;;  %v31354_v42 = vld [vmem:[#allocation49_spill] sm:$0xff] }
 0xb7f   :  { %v26671_v39 = vpop.eup %26670 }
 0xb80   :  { %7850 = vrot.lane.b32.xlu1 %v26671_v39, %s27078_s27  ;;  %v26673_v6 = vpop.eup %26672  ;;  %v31351_v39 = vld [vmem:[#allocation47_spill] sm:$0xff] }
 0xb81   :  { %v7834_v37 = vadd.f32 1.0, %v26673_v6  ;;  %v31355_v6 = vld [vmem:[#allocation51_spill] sm:$0xff] }
 0xb83   :  { %26674 = vrcp.f32 %v7834_v37  ;;  %v31356_v37 = vld [vmem:[#allocation54_spill] sm:$0xff] }
 0xb90   :  { %v26675_v51 = vpop.eup %26674 }
 0xbf2   :  { %v7851_v26 = vpop.permute.xlu1 %7850 }
 0xbf3   :  { %v7853_v60 = vmul.f32 %v26675_v51, %v7851_v26  ;;  %v31357_v51 = vld [vmem:[#allocation50_spill] sm:$0xff]  ;;  %v31358_v26 = vld [vmem:[#allocation52_spill] sm:$0xff] }
 0xbf5   :  { %7855 = vrot.lane.b32.xlu0 %v7853_v60, %s27077_s26  ;;  %v31359_v60 = vld [vmem:[#allocation55_spill] sm:$0xff] }
 0xc67   :  { %v7856_v30 = vpop.permute.xlu0 %7855 }
 0xc68   :  { %v7857_v10 = vsel %vm258_vm0, %v7856_v30, 0  ;;  %v31360_v30 = vld [vmem:[#allocation58_spill] sm:$0xff] }
 0xc69   :  { %v28730_v32 = vand.u32 4294901760, %v7857_v10 }
 0xc6b   :  { %v28733_v27 = vsub.f32 %v7857_v10, %v28730_v32  ;;  %24705 = vmatmul.mubr.f32.vlgmr.msra.gmra.mxu1 %v28730_v32  ;;  %v31361_v10 = vld [vmem:[#allocation53_spill] sm:$0xff] }
 0xc6c   :  { %24719 = vmatpush3.msra.mxu1 %v27553_v38  ;;  %24726 = vmatprep.mubr.msk.f32.mxu1 %vm27076_vm2, %v31270_v35 }
 0xc6d   :  { %24720 = vmatprep.subr.mxu1 %v31270_v35  ;;  %v28741_v58 = vand.u32 4294901760, %v28733_v27 }
 0xc6e   :  { %24721 = vmatpush3.msra.mxu1 %v27562_v47 }
 0xc6f   :  { %24722 = vmatprep.subr.mxu1 %v31270_v35  ;;  %v7931_v31 = vsub.f32 %v28733_v27, %v28741_v58 }
 0xc70   :  { %24723 = vmatpush3.msra.mxu1 %v27571_v49 }
 0xc71   :  { %24724 = vmatprep.subr.mxu1 %v31270_v35  ;;  %v28749_v44 = vand.u32 4294901760, %v7931_v31  ;;  %v31363_v31 = vld [vmem:[#allocation33_spill] sm:$0xff] }
 0xc72   :  { %24725 = vmatpush3.msra.mxu1 %v27584_v55 }
 0xc73   :  { %24727 = vmatmul.mubr.f32.vlgmr.msra.gmra.mxu1 %v28741_v58  ;;  %24740 = vmatprep.subr.mxu1 %v31270_v35 }
 0xc74   :  { %24694 = vmatmul.mubr.f32.vlgmr.msra.gmra.mxu0 %v28749_v44  ;;  %24741 = vmatpush3.msra.mxu1 %v27553_v38 }
 0xc75   :  { %24708 = vmatpush3.msra.mxu0 %v27560_v46  ;;  %24742 = vmatprep.subr.mxu1 %v31270_v35 }
 0xc76   :  { %24709 = vmatprep.subr.mxu0 %v31270_v35  ;;  %24743 = vmatpush3.msra.mxu1 %v27562_v47 }
 0xc77   :  { %24710 = vmatpush3.msra.mxu0 %v27569_v5  ;;  %24744 = vmatprep.subr.mxu1 %v31270_v35 }
 0xc78   :  { %24711 = vmatprep.subr.mxu0 %v31270_v35  ;;  %24745 = vmatpush3.msra.mxu1 %v27571_v49 }
 0xc79   :  { %24712 = vmatpush3.msra.mxu0 %v27582_v54  ;;  %24746 = vmatprep.subr.mxu1 %v31270_v35 }
 0xc7a   :  { %24713 = vmatprep.subr.mxu0 %v31270_v35  ;;  %24715 = vmatprep.mubr.msk.f32.mxu0 %vm27076_vm2, %v31270_v35 }
 0xc7b   :  { %24714 = vmatpush3.msra.mxu0 %v27598_v57  ;;  %24747 = vmatpush3.msra.mxu1 %v27584_v55 }
 0xc7c   :  { %24748 = vmatprep.mubr.msk.f32.mxu1 %vm27076_vm2, %v31270_v35  ;;  %24716 = vmatmul.mubr.f32.vlgmr.msra.gmra.mxu0 %v28733_v27 }
 0xc7d   :  { %24729 = vmatprep.subr.mxu0 %v31270_v35  ;;  %24749 = vmatmul.mubr.f32.vlgmr.msra.gmra.mxu1 %v28730_v32 }
 0xc7e   :  { %24762 = vmatprep.subr.mxu1 %v31270_v35  ;;  %24730 = vmatpush3.msra.mxu0 %v27566_v43 }
 0xc7f   :  { %24763 = vmatpush3.msra.mxu1 %v27725_v21  ;;  %24731 = vmatprep.subr.mxu0 %v31270_v35 }
 0xc80   :  { %24764 = vmatprep.subr.mxu1 %v31270_v35  ;;  %24732 = vmatpush3.msra.mxu0 %v27579_v53 }
 0xc81   :  { %24765 = vmatpush3.msra.mxu1 %v27734_v34  ;;  %24733 = vmatprep.subr.mxu0 %v31270_v35 }
 0xc82   :  { %24766 = vmatprep.subr.mxu1 %v31270_v35  ;;  %24734 = vmatpush3.msra.mxu0 %v27595_v56 }
 0xc83   :  { %24767 = vmatpush3.msra.mxu1 %v27742_v4  ;;  %24735 = vmatprep.subr.mxu0 %v31270_v35 }
 0xc84   :  { %24768 = vmatprep.subr.mxu1 %v31270_v35  ;;  %24736 = vmatpush3.msra.mxu0 %v27609_v59 }
 0xc85   :  { %24737 = vmatprep.mubr.msk.f32.mxu0 %vm27076_vm2, %v31270_v35  ;;  %24769 = vmatpush3.msra.mxu1 %v27750_v16 }
 0xc86   :  { %24770 = vmatprep.mubr.msk.f32.mxu1 %vm27076_vm2, %v31270_v35  ;;  %24738 = vmatmul.mubr.f32.vlgmr.msra.gmra.mxu0 %v28730_v32 }
 0xc87   :  { %24751 = vmatprep.subr.mxu0 %v31270_v35  ;;  %24771 = vmatmul.mubr.f32.vlgmr.msra.gmra.mxu1 %v28730_v32 }
 0xc88   :  { %24784 = vmatprep.subr.mxu1 %v31270_v35  ;;  %24752 = vmatpush3.msra.mxu0 %v27656_v52 }
 0xc89   :  { %24785 = vmatpush3.msra.mxu1 %v27656_v52  ;;  %24753 = vmatprep.subr.mxu0 %v31270_v35 }
 0xc8a   :  { %24786 = vmatprep.subr.mxu1 %v31270_v35  ;;  %24754 = vmatpush3.msra.mxu0 %v27661_v63 }
 0xc8b   :  { %24787 = vmatpush3.msra.mxu1 %v27661_v63  ;;  %24755 = vmatprep.subr.mxu0 %v31270_v35 }
 0xc8c   :  { %24788 = vmatprep.subr.mxu1 %v31270_v35  ;;  %24756 = vmatpush3.msra.mxu0 %v27671_v1 }
 0xc8d   :  { %24789 = vmatpush3.msra.mxu1 %v27671_v1  ;;  %24757 = vmatprep.subr.mxu0 %v31270_v35 }
 0xc8e   :  { %24790 = vmatprep.subr.mxu1 %v31270_v35  ;;  %24758 = vmatpush3.msra.mxu0 %v27682_v7 }
 0xc8f   :  { %24759 = vmatprep.mubr.msk.f32.mxu0 %vm27076_vm2, %v31270_v35  ;;  %24791 = vmatpush3.msra.mxu1 %v27682_v7 }
 0xc90   :  { %24792 = vmatprep.mubr.msk.f32.mxu1 %vm27076_vm2, %v31270_v35  ;;  %24760 = vmatmul.mubr.f32.vlgmr.msra.gmra.mxu0 %v28749_v44 }
 0xc91   :  { %24773 = vmatprep.subr.mxu0 %v31270_v35  ;;  %24793 = vmatmul.mubr.f32.vlgmr.msra.gmra.mxu1 %v28741_v58 }
 0xc92   :  { %24806 = vmatprep.subr.mxu1 %v31270_v35  ;;  %24774 = vmatpush3.msra.mxu0 %v27669_v0 }
 0xc93   :  { %24807 = vmatpush3.msra.mxu1 %v27656_v52  ;;  %24775 = vmatprep.subr.mxu0 %v31270_v35 }
 0xc94   :  { %24808 = vmatprep.subr.mxu1 %v31270_v35  ;;  %24776 = vmatpush3.msra.mxu0 %v27678_v3 }
 0xc95   :  { %24809 = vmatpush3.msra.mxu1 %v27661_v63  ;;  %24777 = vmatprep.subr.mxu0 %v31270_v35 }
 0xc96   :  { %24810 = vmatprep.subr.mxu1 %v31270_v35  ;;  %24778 = vmatpush3.msra.mxu0 %v27690_v9 }
 0xc97   :  { %24811 = vmatpush3.msra.mxu1 %v27671_v1  ;;  %24779 = vmatprep.subr.mxu0 %v31270_v35 }
 0xc98   :  { %24812 = vmatprep.subr.mxu1 %v31270_v35  ;;  %24780 = vmatpush3.msra.mxu0 %v27702_v12 }
 0xc99   :  { %24781 = vmatprep.mubr.msk.f32.mxu0 %vm27076_vm2, %v31270_v35  ;;  %24813 = vmatpush3.msra.mxu1 %v27682_v7 }
 0xc9a   :  { %24814 = vmatprep.mubr.msk.f32.mxu1 %vm27076_vm2, %v31270_v35  ;;  %24782 = vmatmul.mubr.f32.vlgmr.msra.gmra.mxu0 %v28733_v27 }
 0xc9b   :  { %24795 = vmatprep.subr.mxu0 %v31270_v35  ;;  %24815 = vmatmul.mubr.f32.vlgmr.msra.gmra.mxu1 %v28730_v32 }
 0xc9c   :  { %24828 = vmatprep.subr.mxu1 %v31270_v35  ;;  %24796 = vmatpush3.msra.mxu0 %v27687_v8 }
 0xc9d   :  { %24829 = vmatpush3.msra.mxu1 %v27839_v50  ;;  %24797 = vmatprep.subr.mxu0 %v31270_v35 }
 0xc9e   :  { %24830 = vmatprep.subr.mxu1 %v31270_v35  ;;  %24798 = vmatpush3.msra.mxu0 %v27697_v11 }
 0xc9f   :  { %24831 = vmatpush3.msra.mxu1 %v27848_v29  ;;  %24799 = vmatprep.subr.mxu0 %v31270_v35 }
 0xca0   :  { %24832 = vmatprep.subr.mxu1 %v31270_v35  ;;  %24800 = vmatpush3.msra.mxu0 %v27709_v14 }
 0xca1   :  { %24833 = vmatpush3.msra.mxu1 %v27856_v62  ;;  %24801 = vmatprep.subr.mxu0 %v31270_v35 }
 0xca2   :  { %24834 = vmatprep.subr.mxu1 %v31270_v35  ;;  %24802 = vmatpush3.msra.mxu0 %v27721_v20 }
 0xca3   :  { %24803 = vmatprep.mubr.msk.f32.mxu0 %vm27076_vm2, %v31270_v35  ;;  %24835 = vmatpush3.msra.mxu1 %v27864_v18 }
 0xca4   :  { %24836 = vmatprep.mubr.msk.f32.mxu1 %vm27076_vm2, %v31270_v35  ;;  %24804 = vmatmul.mubr.f32.vlgmr.msra.gmra.mxu0 %v28730_v32 }
 0xca5   :  { %24817 = vmatprep.subr.mxu0 %v31270_v35  ;;  %24837 = vmatmul.mubr.f32.vlgmr.msra.gmra.mxu1 %v28730_v32 }
 0xca6   :  { %24850 = vmatprep.subr.mxu1 %v31270_v35  ;;  %24818 = vmatpush3.msra.mxu0 %v27768_v22 }
 0xca7   :  { %24851 = vmatpush3.msra.mxu1 %v27768_v22  ;;  %24819 = vmatprep.subr.mxu0 %v31270_v35 }
 0xca8   :  { %24852 = vmatprep.subr.mxu1 %v31270_v35  ;;  %24820 = vmatpush3.msra.mxu0 %v31338_v48 }
 0xca9   :  { %24853 = vmatpush3.msra.mxu1 %v31338_v48  ;;  %24821 = vmatprep.subr.mxu0 %v31270_v35 }
 0xcaa   :  { %24854 = vmatprep.subr.mxu1 %v31270_v35  ;;  %24822 = vmatpush3.msra.mxu0 %v31339_v61 }
 0xcab   :  { %24855 = vmatpush3.msra.mxu1 %v31339_v61  ;;  %24823 = vmatprep.subr.mxu0 %v31270_v35 }
 0xcac   :  { %24856 = vmatprep.subr.mxu1 %v31270_v35  ;;  %24824 = vmatpush3.msra.mxu0 %v31340_v25 }
 0xcad   :  { %24825 = vmatprep.mubr.msk.f32.mxu0 %vm27076_vm2, %v31270_v35  ;;  %24857 = vmatpush3.msra.mxu1 %v31340_v25 }
 0xcae   :  { %24858 = vmatprep.mubr.msk.f32.mxu1 %vm27076_vm2, %v31270_v35  ;;  %24826 = vmatmul.mubr.f32.vlgmr.msra.gmra.mxu0 %v28749_v44 }
 0xcaf   :  { %24839 = vmatprep.subr.mxu0 %v31270_v35  ;;  %24859 = vmatmul.mubr.f32.vlgmr.msra.gmra.mxu1 %v28741_v58 }
 0xcb0   :  { %24872 = vmatprep.subr.mxu1 %v31270_v35  ;;  %24840 = vmatpush3.msra.mxu0 %v31341_v45 }
 0xcb1   :  { %24873 = vmatpush3.msra.mxu1 %v27768_v22  ;;  %24841 = vmatprep.subr.mxu0 %v31270_v35 }
 0xcb2   :  { %24874 = vmatprep.subr.mxu1 %v31270_v35  ;;  %24842 = vmatpush3.msra.mxu0 %v31342_v40 }
 0xcb3   :  { %24875 = vmatpush3.msra.mxu1 %v31338_v48  ;;  %24843 = vmatprep.subr.mxu0 %v31270_v35 }
 0xcb4   :  { %24876 = vmatprep.subr.mxu1 %v31270_v35  ;;  %24844 = vmatpush3.msra.mxu0 %v31343_v17 }
 0xcb5   :  { %24877 = vmatpush3.msra.mxu1 %v31339_v61  ;;  %24845 = vmatprep.subr.mxu0 %v31270_v35 }
 0xcb6   :  { %24878 = vmatprep.subr.mxu1 %v31270_v35  ;;  %24846 = vmatpush3.msra.mxu0 %v31344_v33 }
 0xcb7   :  { %24847 = vmatprep.mubr.msk.f32.mxu0 %vm27076_vm2, %v31270_v35  ;;  %24879 = vmatpush3.msra.mxu1 %v31340_v25 }
 0xcb8   :  { %24880 = vmatprep.mubr.msk.f32.mxu1 %vm27076_vm2, %v31270_v35  ;;  %24848 = vmatmul.mubr.f32.vlgmr.msra.gmra.mxu0 %v28733_v27 }
 0xcb9   :  { %24861 = vmatprep.subr.mxu0 %v31270_v35  ;;  %24881 = vmatmul.mubr.f32.vlgmr.msra.gmra.mxu1 %v28730_v32 }
 0xcba   :  { %24894 = vmatprep.subr.mxu1 %v31270_v35  ;;  %24862 = vmatpush3.msra.mxu0 %v31345_v24 }
 0xcbb   :  { %24895 = vmatpush3.msra.mxu1 %v31346_v28  ;;  %24863 = vmatprep.subr.mxu0 %v31270_v35 }
 0xcbc   :  { %24896 = vmatprep.subr.mxu1 %v31270_v35  ;;  %24864 = vmatpush3.msra.mxu0 %v31347_v13 }
 0xcbd   :  { %24897 = vmatpush3.msra.mxu1 %v31348_v41  ;;  %24865 = vmatprep.subr.mxu0 %v31270_v35 }
 0xcbe   :  { %24898 = vmatprep.subr.mxu1 %v31270_v35  ;;  %24866 = vmatpush3.msra.mxu0 %v31349_v36 }
 0xcbf   :  { %24899 = vmatpush3.msra.mxu1 %v31350_v23  ;;  %24867 = vmatprep.subr.mxu0 %v31270_v35 }
 0xcc0   :  { %24900 = vmatprep.subr.mxu1 %v31270_v35  ;;  %24868 = vmatpush3.msra.mxu0 %v31351_v39 }
 0xcc1   :  { %24869 = vmatprep.mubr.msk.f32.mxu0 %vm27076_vm2, %v31270_v35  ;;  %24901 = vmatpush3.msra.mxu1 %v31352_v2 }
 0xcc2   :  { %24902 = vmatprep.mubr.msk.f32.mxu1 %vm27076_vm2, %v31270_v35  ;;  %24870 = vmatmul.mubr.f32.vlgmr.msra.gmra.mxu0 %v28730_v32 }
 0xcc3   :  { %24883 = vmatprep.subr.mxu0 %v31270_v35  ;;  %24903 = vmatmul.mubr.f32.vlgmr.msra.gmra.mxu1 %v28730_v32 }
 0xcc4   :  { %24916 = vmatprep.subr.mxu1 %v31270_v35  ;;  %24884 = vmatpush3.msra.mxu0 %v31353_v19 }
 0xcc5   :  { %24917 = vmatpush3.msra.mxu1 %v31353_v19  ;;  %24885 = vmatprep.subr.mxu0 %v31270_v35 }
 0xcc6   :  { %24918 = vmatprep.subr.mxu1 %v31270_v35  ;;  %24886 = vmatpush3.msra.mxu0 %v31354_v42 }
 0xcc7   :  { %24919 = vmatpush3.msra.mxu1 %v31354_v42  ;;  %24887 = vmatprep.subr.mxu0 %v31270_v35 }
 0xcc8   :  { %24920 = vmatprep.subr.mxu1 %v31270_v35  ;;  %24888 = vmatpush3.msra.mxu0 %v31355_v6 }
 0xcc9   :  { %24921 = vmatpush3.msra.mxu1 %v31355_v6  ;;  %24889 = vmatprep.subr.mxu0 %v31270_v35 }
 0xcca   :  { %24922 = vmatprep.subr.mxu1 %v31270_v35  ;;  %24890 = vmatpush3.msra.mxu0 %v31356_v37 }
 0xccb   :  { %24891 = vmatprep.mubr.msk.f32.mxu0 %vm27076_vm2, %v31270_v35  ;;  %24923 = vmatpush3.msra.mxu1 %v31356_v37 }
 0xccc   :  { %24924 = vmatprep.mubr.msk.f32.mxu1 %vm27076_vm2, %v31270_v35  ;;  %24892 = vmatmul.mubr.f32.vlgmr.msra.gmra.mxu0 %v28749_v44  ;;  %v31365_v44 = vld [vmem:[#allocation34_spill] sm:$0xff] }
 0xccd   :  { %24905 = vmatprep.subr.mxu0 %v31270_v35  ;;  %24925 = vmatmul.mubr.f32.vlgmr.msra.gmra.mxu1 %v28741_v58  ;;  %v31362_v58 = vld [vmem:[#allocation56_spill] sm:$0xff] }
 0xcce   :  { %24938 = vmatprep.subr.mxu1 %v31270_v35  ;;  %24906 = vmatpush3.msra.mxu0 %v31357_v51 }
 0xccf   :  { %24939 = vmatpush3.msra.mxu1 %v31353_v19  ;;  %24907 = vmatprep.subr.mxu0 %v31270_v35 }
 0xcd0   :  { %24940 = vmatprep.subr.mxu1 %v31270_v35  ;;  %24908 = vmatpush3.msra.mxu0 %v31358_v26 }
 0xcd1   :  { %24941 = vmatpush3.msra.mxu1 %v31354_v42  ;;  %24909 = vmatprep.subr.mxu0 %v31270_v35 }
 0xcd2   :  { %24942 = vmatprep.subr.mxu1 %v31270_v35  ;;  %24910 = vmatpush3.msra.mxu0 %v31359_v60 }
 0xcd3   :  { %24943 = vmatpush3.msra.mxu1 %v31355_v6  ;;  %24911 = vmatprep.subr.mxu0 %v31270_v35 }
 0xcd4   :  { %24944 = vmatprep.subr.mxu1 %v31270_v35  ;;  %24912 = vmatpush3.msra.mxu0 %v31360_v30  ;;  %v31367_v30 = vld [vmem:[#allocation35_spill] sm:$0xff] }
 0xcd5   :  { %24913 = vmatprep.mubr.msk.f32.mxu0 %vm27076_vm2, %v31270_v35  ;;  %24945 = vmatpush3.msra.mxu1 %v31356_v37 }
 0xcd6   :  { %24946 = vmatprep.mubr.msk.f32.mxu1 %vm27076_vm2, %v31270_v35  ;;  %24914 = vmatmul.mubr.f32.vlgmr.msra.gmra.mxu0 %v28733_v27  ;;  %v31364_v27 = vld [vmem:[#allocation57_spill] sm:$0xff] }
 0xcd7   :  { %24927 = vmatprep.subr.mxu0 %v31270_v35  ;;  %24947 = vmatmul.mubr.f32.vlgmr.msra.gmra.mxu1 %v28730_v32 }
 0xcd8   :  { %24928 = vmatpush3.msra.mxu0 %v31361_v10  ;;  %24935 = vmatprep.mubr.msk.f32.mxu0 %vm27076_vm2, %v31270_v35  ;;  %v31366_v10 = vld [vmem:[#allocation60_spill] sm:$0xff] }
 0xcd9   :  { %24929 = vmatprep.subr.mxu0 %v31270_v35  ;;  %24960 = vmatprep.subr.mxu1 %v31270_v35 }
 0xcda   :  { %24930 = vmatpush3.msra.mxu0 %v31362_v58  ;;  %24961 = vmatpush3.msra.mxu1 %v31363_v31  ;;  %v31368_v31 = vld [vmem:[#allocation36_spill] sm:$0xff] }
 0xcdb   :  { %24931 = vmatprep.subr.mxu0 %v31270_v35  ;;  %24962 = vmatprep.subr.mxu1 %v31270_v35 }
 0xcdc   :  { %24932 = vmatpush3.msra.mxu0 %v31364_v27  ;;  %24963 = vmatpush3.msra.mxu1 %v31365_v44 }
 0xcdd   :  { %24933 = vmatprep.subr.mxu0 %v31270_v35  ;;  %24964 = vmatprep.subr.mxu1 %v31270_v35 }
 0xcde   :  { %24934 = vmatpush3.msra.mxu0 %v31366_v10  ;;  %24965 = vmatpush3.msra.mxu1 %v31367_v30 }
 0xcdf   :  { %24936 = vmatmul.mubr.f32.vlgmr.msra.gmra.mxu0 %v28730_v32  ;;  %24966 = vmatprep.subr.mxu1 %v31270_v35 }
 0xce0   :  { %24967 = vmatpush3.msra.mxu1 %v31368_v31  ;;  %24949 = vmatprep.subr.mxu0 %v31270_v35 }
 0xce1   :  { %24968 = vmatprep.mubr.msk.f32.mxu1 %vm27076_vm2, %v31270_v35  ;;  %24982 = vmatprep.subr.mxu1 %v31270_v35 }
 0xce2   :  { %24950 = vmatpush3.msra.mxu0 %v27553_v38  ;;  %24957 = vmatprep.mubr.msk.f32.mxu0 %vm27076_vm2, %v31270_v35 }
 0xce3   :  { %24951 = vmatprep.subr.mxu0 %v31270_v35 }
 0xce4   :  { %24952 = vmatpush3.msra.mxu0 %v27562_v47 }
 0xce5   :  { %24953 = vmatprep.subr.mxu0 %v31270_v35 }
 0xce6   :  { %24954 = vmatpush3.msra.mxu0 %v27571_v49 }
 0xce7   :  { %24955 = vmatprep.subr.mxu0 %v31270_v35 }
 0xce8   :  { %24956 = vmatpush3.msra.mxu0 %v27584_v55 }
 0xce9   :  { %24971 = vmatprep.subr.mxu0 %v31270_v35 }
 0xd2b   :  { %v8025_v32 = vpop.f32.mrf.mxu1 }
 0xd2d   :  { %v24706_v31 = vpop.f32.mrf.mxu1 }
 0xd33   :  { %v8182_v30 = vpop.f32.mrf.mxu1 }
 0xd34   :  { %v7934_v10 = vpop.f32.mrf.mxu0 }
 0xd35   :  { %v8026_v44 = vadd.f32 %v8025_v32, %v7934_v10  ;;  %v24728_v27 = vpop.f32.mrf.mxu1 }
 0xd36   :  { %v24695_v58 = vpop.f32.mrf.mxu0 }
 0xd3c   :  { %v8105_v60 = vpop.f32.mrf.mxu0 }
 0xd3d   :  { %v8106_v26 = vadd.f32 %v8105_v60, %v8026_v44  ;;  %v8340_v51 = vpop.f32.mrf.mxu1 }
 0xd3e   :  { %v24717_v37 = vpop.f32.mrf.mxu0 }
 0xd3f   :  { %v24750_v6 = vpop.f32.mrf.mxu1  ;;  %v8183_v42 = vadd.f32 %v8182_v30, %v8106_v26 }
 0xd46   :  { %v8265_v19 = vpop.f32.mrf.mxu0 }
 0xd47   :  { %v8266_v2 = vadd.f32 %v8265_v19, %v8183_v42  ;;  %v8517_v39 = vpop.f32.mrf.mxu1 }
 0xd48   :  { %v24739_v23 = vpop.f32.mrf.mxu0 }
 0xd49   :  { %v8341_v36 = vadd.f32 %v8340_v51, %v8266_v2  ;;  %v24772_v41 = vpop.f32.mrf.mxu1 }
 0xd50   :  { %v8426_v13 = vpop.f32.mrf.mxu0 }
 0xd51   :  { %v8674_v28 = vpop.f32.mrf.mxu1  ;;  %v8518_v17 = vadd.f32 %v8517_v39, %v8426_v13 }
 0xd52   :  { %v24761_v31 = vpop.f32.mrf.mxu0 }
 0xd53   :  { %v24794_v24 = vpop.f32.mrf.mxu1 }
 0xd5a   :  { %v8597_v33 = vpop.f32.mrf.mxu0 }
 0xd5b   :  { %v8832_v10 = vpop.f32.mrf.mxu1  ;;  %v8598_v24 = vadd.f32 %v8597_v33, %v8518_v17 }
 0xd5c   :  { %v24783_v27 = vpop.f32.mrf.mxu0 }
 0xd5d   :  { %v24816_v58 = vpop.f32.mrf.mxu1  ;;  %v8675_v27 = vadd.f32 %v8674_v28, %v8598_v24 }
 0xd64   :  { %v8757_v32 = vpop.f32.mrf.mxu0 }
 0xd65   :  { %v9013_v60 = vpop.f32.mrf.mxu1 }
 0xd66   :  { %v24805_v44 = vpop.f32.mrf.mxu0 }
 0xd67   :  { %v24838_v37 = vpop.f32.mrf.mxu1  ;;  %v8758_v44 = vadd.f32 %v8757_v32, %v8675_v27 }
 0xd6e   :  { %v8922_v6 = vpop.f32.mrf.mxu0 }
 0xd6f   :  { %v9170_v26 = vpop.f32.mrf.mxu1  ;;  %v9014_v41 = vadd.f32 %v9013_v60, %v8922_v6 }
 0xd70   :  { %v24827_v30 = vpop.f32.mrf.mxu0 }
 0xd71   :  { %v24860_v19 = vpop.f32.mrf.mxu1  ;;  %v8833_v30 = vadd.f32 %v8832_v10, %v8758_v44 }
 0xd78   :  { %v9093_v42 = vpop.f32.mrf.mxu0 }
 0xd79   :  { %v9328_v23 = vpop.f32.mrf.mxu1  ;;  %v9094_v31 = vadd.f32 %v9093_v42, %v9014_v41 }
 0xd7a   :  { %v24849_v2 = vpop.f32.mrf.mxu0 }
 0xd7b   :  { %v24882_v51 = vpop.f32.mrf.mxu1  ;;  %v9171_v40 = vadd.f32 %v9170_v26, %v9094_v31 }
 0xd82   :  { %v9253_v45 = vpop.f32.mrf.mxu0 }
 0xd83   :  { %v9254_v58 = vadd.f32 %v9253_v45, %v9171_v40  ;;  %v9504_v25 = vpop.f32.mrf.mxu1 }
 0xd84   :  { %v24871_v61 = vpop.f32.mrf.mxu0 }
 0xd85   :  { %v9329_v37 = vadd.f32 %v9328_v23, %v9254_v58  ;;  %v24904_v48 = vpop.f32.mrf.mxu1  ;;  %v31369_v23 = vld [vmem:[#allocation80_spill] sm:$0xff] }
 0xd86   :  { %v8344_v51 = vadd.f32 %v8341_v36, %v31369_v23 }
 0xd87   :  { %9333 = vrot.lane.b32.xlu1 %v9329_v37, %s27078_s27 }
 0xd8b   :  { %8837 = vrot.lane.b32.xlu1 %v8833_v30, %s27077_s26 }
 0xd8c   :  { %v9413_v19 = vpop.f32.mrf.mxu0 }
 0xd8d   :  { %v9661_v60 = vpop.f32.mrf.mxu1  ;;  %v9505_v33 = vadd.f32 %v9504_v25, %v9413_v19  ;;  %v22265_v25 = vmul.f32 -1.442695, %v8344_v51 }
 0xd8e   :  { %v24893_v6 = vpop.f32.mrf.mxu0 }
 0xd8f   :  { %v24926_v13 = vpop.f32.mrf.mxu1 }
 0xd96   :  { %v9584_v39 = vpop.f32.mrf.mxu0 }
 0xd97   :  { %v9819_v17 = vpop.f32.mrf.mxu1  ;;  %v9585_v45 = vadd.f32 %v9584_v39, %v9505_v33 }
 0xd98   :  { %v24915_v26 = vpop.f32.mrf.mxu0 }
 0xd99   :  { %v24948_v28 = vpop.f32.mrf.mxu1  ;;  %v9662_v40 = vadd.f32 %v9661_v60, %v9585_v45 }
 0xd9f   :  { %v9744_v61 = vpop.f32.mrf.mxu0 }
 0xda0   :  { %v9745_v32 = vadd.f32 %v9744_v61, %v9662_v40 }
 0xda1   :  { %v24937_v42 = vpop.f32.mrf.mxu0 }
 0xda2   :  { %v9820_v48 = vadd.f32 %v9819_v17, %v9745_v32 }
 0xda4   :  { %9824 = vrot.lane.b32.xlu1 %v9820_v48, %s27079_s8 }
 0xdf9   :  { %v9334_v10 = vpop.permute.xlu1 %9333 }
 0xdfa   :  { %v9336_v2 = vadd.f32 %v9334_v10, %v31369_v23 }
 0xdfc   :  { %26676 = vtanh.f32 %v9336_v2 }
 0xdfd   :  { %26678 = vpow2.f32 %v22265_v25  ;;  %v8838_v37 = vpop.permute.xlu1 %8837 }
 0xdfe   :  { %v8840_v30 = vadd.f32 %v8838_v37, %v31369_v23  ;;  %v31379_v37 = vld [vmem:[#allocation43_spill] sm:$0xff] }
 0xe00   :  { %v22266_v19 = vmul.f32 -1.442695, %v8840_v30  ;;  %v31380_v30 = vld [vmem:[#allocation45_spill] sm:$0xff] }
 0xe09   :  { %v26677_v41 = vpop.eup %26676 }
 0xe0a   :  { %9836 = vrot.lane.b32.xlu0 %v26677_v41, %s27078_s27  ;;  %v26679_v31 = vpop.eup %26678 }
 0xe0b   :  { %v8348_v24 = vadd.f32 1.0, %v26679_v31  ;;  %v31374_v31 = vld [vmem:[#allocation37_spill] sm:$0xff] }
 0xe0d   :  { %26680 = vrcp.f32 %v8348_v24  ;;  %v31375_v24 = vld [vmem:[#allocation39_spill] sm:$0xff] }
 0xe0e   :  { %26682 = vpow2.f32 %v22266_v19  ;;  %v31381_v19 = vld [vmem:[#allocation42_spill] sm:$0xff] }
 0xe16   :  { %v9825_v26 = vpop.permute.xlu1 %9824 }
 0xe17   :  { %v9827_v28 = vadd.f32 %v9825_v26, %v31369_v23  ;;  %v31388_v26 = vld [vmem:[#allocation63_spill] sm:$0xff] }
 0xe19   :  { %v22267_v45 = vmul.f32 -1.442695, %v9827_v28  ;;  %v31389_v28 = vld [vmem:[#allocation48_spill] sm:$0xff] }
 0xe1a   :  { %v26681_v27 = vpop.eup %26680 }
 0xe1b   :  { %v26683_v60 = vpop.eup %26682 }
 0xe1c   :  { %v8844_v6 = vadd.f32 1.0, %v26683_v60  ;;  %v31382_v60 = vld [vmem:[#allocation59_spill] sm:$0xff] }
 0xe1e   :  { %26684 = vrcp.f32 %v8844_v6  ;;  %v31383_v6 = vld [vmem:[#allocation44_spill] sm:$0xff] }
 0xe2b   :  { %v26685_v13 = vpop.eup %26684 }
 0xe2c   :  { %v9834_v36 = vmul.f32 %v26685_v13, %v28724_v15  ;;  %v31384_v13 = vld [vmem:[#allocation61_spill] sm:$0xff] }
 0xe7c   :  { %v9837_v58 = vpop.permute.xlu0 %9836 }
 0xe7d   :  { %v9839_v44 = vmul.f32 %v26681_v27, %v9837_v58  ;;  %v31376_v27 = vld [vmem:[#allocation41_spill] sm:$0xff]  ;;  %v31377_v58 = vld [vmem:[#allocation38_spill] sm:$0xff] }
 0xe7f   :  { %9841 = vrot.lane.b32.xlu0 %v9839_v44, %s27077_s26  ;;  %v31378_v44 = vld [vmem:[#allocation40_spill] sm:$0xff] }
 0xef1   :  { %v9842_v39 = vpop.permute.xlu0 %9841 }
 0xef2   :  { %v29015_v17 = vadd.f32 %v9842_v39, %v9834_v36  ;;  %v31385_v36 = vld [vmem:[#allocation46_spill] sm:$0xff] }
 0xef3   :  { %v31386_v39 = vld [vmem:[#allocation62_spill] sm:$0xff] }
 0xef4   :  { %26686 = vtanh.f32 %v29015_v17 }
 0xef5   :  { %26688 = vpow2.f32 %v22267_v45  ;;  %v31390_v45 = vld [vmem:[#allocation49_spill] sm:$0xff] }
 0xf01   :  { %v26687_v33 = vpop.eup %26686 }
 0xf02   :  { %9847 = vrot.lane.b32.xlu0 %v26687_v33, %s27078_s27  ;;  %v26689_v40 = vpop.eup %26688  ;;  %v31387_v33 = vld [vmem:[#allocation47_spill] sm:$0xff] }
 0xf03   :  { %v9831_v61 = vadd.f32 1.0, %v26689_v40  ;;  %v31391_v40 = vld [vmem:[#allocation51_spill] sm:$0xff] }
 0xf05   :  { %26690 = vrcp.f32 %v9831_v61  ;;  %v31392_v61 = vld [vmem:[#allocation54_spill] sm:$0xff] }
 0xf12   :  { %v26691_v32 = vpop.eup %26690 }
 0xf74   :  { %v9848_v42 = vpop.permute.xlu0 %9847 }
 0xf75   :  { %v9850_v48 = vmul.f32 %v26691_v32, %v9848_v42  ;;  %v31393_v32 = vld [vmem:[#allocation50_spill] sm:$0xff]  ;;  %v31394_v42 = vld [vmem:[#allocation52_spill] sm:$0xff] }
 0xf77   :  { %9852 = vrot.lane.b32.xlu1 %v9850_v48, %s27077_s26  ;;  %v31395_v48 = vld [vmem:[#allocation55_spill] sm:$0xff] }
 0xfe9   :  { %v9853_v15 = vpop.permute.xlu1 %9852 }
 0xfea   :  { %v9854_v10 = vsel %vm258_vm0, %v9853_v15, 0  ;;  %v31396_v15 = vld [vmem:[#allocation58_spill] sm:$0xff] }
 0xfeb   :  { %v29022_v2 = vand.u32 4294901760, %v9854_v10 }
 0xfed   :  { %31370 = vst [vmem:[#allocation78_spill] sm:$0xff] %v29022_v2  ;;  %v29025_v41 = vsub.f32 %v9854_v10, %v29022_v2  ;;  %24969 = vmatmul.mubr.f32.vlgmr.msra.gmra.mxu1 %v29022_v2  ;;  %v31397_v10 = vld [vmem:[#allocation53_spill] sm:$0xff] }
 0xfee   :  { %24983 = vmatpush3.msra.mxu1 %v27553_v38  ;;  %24990 = vmatprep.mubr.msk.f32.mxu1 %vm27076_vm2, %v31270_v35 }
 0xfef   :  { %31371 = vst [vmem:[#allocation66_spill] sm:$0xff] %v29025_v41  ;;  %24984 = vmatprep.subr.mxu1 %v31270_v35  ;;  %v29033_v23 = vand.u32 4294901760, %v29025_v41 }
 0xff0   :  { %24985 = vmatpush3.msra.mxu1 %v27562_v47 }
 0xff1   :  { %31372 = vst [vmem:[#allocation64_spill] sm:$0xff] %v29033_v23  ;;  %24986 = vmatprep.subr.mxu1 %v31270_v35  ;;  %v9928_v51 = vsub.f32 %v29025_v41, %v29033_v23 }
 0xff2   :  { %24987 = vmatpush3.msra.mxu1 %v27571_v49 }
 0xff3   :  { %24988 = vmatprep.subr.mxu1 %v31270_v35  ;;  %v29041_v25 = vand.u32 4294901760, %v9928_v51  ;;  %v31398_v51 = vld [vmem:[#allocation56_spill] sm:$0xff] }
 0xff4   :  { %24989 = vmatpush3.msra.mxu1 %v27584_v55 }
 0xff5   :  { %31373 = vst [vmem:[#allocation72_spill] sm:$0xff] %v29041_v25  ;;  %24991 = vmatmul.mubr.f32.vlgmr.msra.gmra.mxu1 %v29033_v23  ;;  %25004 = vmatprep.subr.mxu1 %v31270_v35 }
 0xff6   :  { %24958 = vmatmul.mubr.f32.vlgmr.msra.gmra.mxu0 %v29041_v25  ;;  %25005 = vmatpush3.msra.mxu1 %v27553_v38 }
 0xff7   :  { %24972 = vmatpush3.msra.mxu0 %v27560_v46  ;;  %25006 = vmatprep.subr.mxu1 %v31270_v35 }
 0xff8   :  { %24973 = vmatprep.subr.mxu0 %v31270_v35  ;;  %25007 = vmatpush3.msra.mxu1 %v27562_v47 }
 0xff9   :  { %24974 = vmatpush3.msra.mxu0 %v27569_v5  ;;  %25008 = vmatprep.subr.mxu1 %v31270_v35 }
 0xffa   :  { %24975 = vmatprep.subr.mxu0 %v31270_v35  ;;  %25009 = vmatpush3.msra.mxu1 %v27571_v49 }
 0xffb   :  { %24976 = vmatpush3.msra.mxu0 %v27582_v54  ;;  %25010 = vmatprep.subr.mxu1 %v31270_v35 }
 0xffc   :  { %24977 = vmatprep.subr.mxu0 %v31270_v35  ;;  %24979 = vmatprep.mubr.msk.f32.mxu0 %vm27076_vm2, %v31270_v35 }
 0xffd   :  { %24978 = vmatpush3.msra.mxu0 %v27598_v57  ;;  %25011 = vmatpush3.msra.mxu1 %v27584_v55 }
 0xffe   :  { %25012 = vmatprep.mubr.msk.f32.mxu1 %vm27076_vm2, %v31270_v35  ;;  %24980 = vmatmul.mubr.f32.vlgmr.msra.gmra.mxu0 %v29025_v41 }
 0xfff   :  { %24993 = vmatprep.subr.mxu0 %v31270_v35  ;;  %25013 = vmatmul.mubr.f32.vlgmr.msra.gmra.mxu1 %v29022_v2 }
0x1000   :  { %25026 = vmatprep.subr.mxu1 %v31270_v35  ;;  %24994 = vmatpush3.msra.mxu0 %v27566_v43 }
0x1001   :  { %25027 = vmatpush3.msra.mxu1 %v27725_v21  ;;  %24995 = vmatprep.subr.mxu0 %v31270_v35 }
0x1002   :  { %25028 = vmatprep.subr.mxu1 %v31270_v35  ;;  %24996 = vmatpush3.msra.mxu0 %v27579_v53 }
0x1003   :  { %25029 = vmatpush3.msra.mxu1 %v27734_v34  ;;  %24997 = vmatprep.subr.mxu0 %v31270_v35 }
0x1004   :  { %25030 = vmatprep.subr.mxu1 %v31270_v35  ;;  %24998 = vmatpush3.msra.mxu0 %v27595_v56 }
0x1005   :  { %25031 = vmatpush3.msra.mxu1 %v27742_v4  ;;  %24999 = vmatprep.subr.mxu0 %v31270_v35 }
0x1006   :  { %25032 = vmatprep.subr.mxu1 %v31270_v35  ;;  %25000 = vmatpush3.msra.mxu0 %v27609_v59 }
0x1007   :  { %25001 = vmatprep.mubr.msk.f32.mxu0 %vm27076_vm2, %v31270_v35  ;;  %25033 = vmatpush3.msra.mxu1 %v27750_v16 }
0x1008   :  { %25034 = vmatprep.mubr.msk.f32.mxu1 %vm27076_vm2, %v31270_v35  ;;  %25002 = vmatmul.mubr.f32.vlgmr.msra.gmra.mxu0 %v29022_v2 }
0x1009   :  { %25015 = vmatprep.subr.mxu0 %v31270_v35  ;;  %25035 = vmatmul.mubr.f32.vlgmr.msra.gmra.mxu1 %v29022_v2 }
0x100a   :  { %25048 = vmatprep.subr.mxu1 %v31270_v35  ;;  %25016 = vmatpush3.msra.mxu0 %v27656_v52 }
0x100b   :  { %25049 = vmatpush3.msra.mxu1 %v27656_v52  ;;  %25017 = vmatprep.subr.mxu0 %v31270_v35 }
0x100c   :  { %25050 = vmatprep.subr.mxu1 %v31270_v35  ;;  %25018 = vmatpush3.msra.mxu0 %v27661_v63 }
0x100d   :  { %25051 = vmatpush3.msra.mxu1 %v27661_v63  ;;  %25019 = vmatprep.subr.mxu0 %v31270_v35 }
0x100e   :  { %25052 = vmatprep.subr.mxu1 %v31270_v35  ;;  %25020 = vmatpush3.msra.mxu0 %v27671_v1 }
0x100f   :  { %25053 = vmatpush3.msra.mxu1 %v27671_v1  ;;  %25021 = vmatprep.subr.mxu0 %v31270_v35 }
0x1010   :  { %25054 = vmatprep.subr.mxu1 %v31270_v35  ;;  %25022 = vmatpush3.msra.mxu0 %v27682_v7 }
0x1011   :  { %25023 = vmatprep.mubr.msk.f32.mxu0 %vm27076_vm2, %v31270_v35  ;;  %25055 = vmatpush3.msra.mxu1 %v27682_v7 }
0x1012   :  { %25056 = vmatprep.mubr.msk.f32.mxu1 %vm27076_vm2, %v31270_v35  ;;  %25024 = vmatmul.mubr.f32.vlgmr.msra.gmra.mxu0 %v29041_v25 }
0x1013   :  { %25037 = vmatprep.subr.mxu0 %v31270_v35  ;;  %25057 = vmatmul.mubr.f32.vlgmr.msra.gmra.mxu1 %v29033_v23 }
0x1014   :  { %25070 = vmatprep.subr.mxu1 %v31270_v35  ;;  %25038 = vmatpush3.msra.mxu0 %v27669_v0 }
0x1015   :  { %25071 = vmatpush3.msra.mxu1 %v27656_v52  ;;  %25039 = vmatprep.subr.mxu0 %v31270_v35 }
0x1016   :  { %25072 = vmatprep.subr.mxu1 %v31270_v35  ;;  %25040 = vmatpush3.msra.mxu0 %v27678_v3 }
0x1017   :  { %25073 = vmatpush3.msra.mxu1 %v27661_v63  ;;  %25041 = vmatprep.subr.mxu0 %v31270_v35 }
0x1018   :  { %25074 = vmatprep.subr.mxu1 %v31270_v35  ;;  %25042 = vmatpush3.msra.mxu0 %v27690_v9 }
0x1019   :  { %25075 = vmatpush3.msra.mxu1 %v27671_v1  ;;  %25043 = vmatprep.subr.mxu0 %v31270_v35 }
0x101a   :  { %25076 = vmatprep.subr.mxu1 %v31270_v35  ;;  %25044 = vmatpush3.msra.mxu0 %v27702_v12 }
0x101b   :  { %25045 = vmatprep.mubr.msk.f32.mxu0 %vm27076_vm2, %v31270_v35  ;;  %25077 = vmatpush3.msra.mxu1 %v27682_v7 }
0x101c   :  { %25078 = vmatprep.mubr.msk.f32.mxu1 %vm27076_vm2, %v31270_v35  ;;  %25046 = vmatmul.mubr.f32.vlgmr.msra.gmra.mxu0 %v29025_v41 }
0x101d   :  { %25059 = vmatprep.subr.mxu0 %v31270_v35  ;;  %25079 = vmatmul.mubr.f32.vlgmr.msra.gmra.mxu1 %v29022_v2 }
0x101e   :  { %25092 = vmatprep.subr.mxu1 %v31270_v35  ;;  %25060 = vmatpush3.msra.mxu0 %v27687_v8 }
0x101f   :  { %25093 = vmatpush3.msra.mxu1 %v27839_v50  ;;  %25061 = vmatprep.subr.mxu0 %v31270_v35 }
0x1020   :  { %25094 = vmatprep.subr.mxu1 %v31270_v35  ;;  %25062 = vmatpush3.msra.mxu0 %v27697_v11 }
0x1021   :  { %25095 = vmatpush3.msra.mxu1 %v27848_v29  ;;  %25063 = vmatprep.subr.mxu0 %v31270_v35 }
0x1022   :  { %25096 = vmatprep.subr.mxu1 %v31270_v35  ;;  %25064 = vmatpush3.msra.mxu0 %v27709_v14 }
0x1023   :  { %25097 = vmatpush3.msra.mxu1 %v27856_v62  ;;  %25065 = vmatprep.subr.mxu0 %v31270_v35 }
0x1024   :  { %25098 = vmatprep.subr.mxu1 %v31270_v35  ;;  %25066 = vmatpush3.msra.mxu0 %v27721_v20 }
0x1025   :  { %25067 = vmatprep.mubr.msk.f32.mxu0 %vm27076_vm2, %v31270_v35  ;;  %25099 = vmatpush3.msra.mxu1 %v27864_v18 }
0x1026   :  { %25100 = vmatprep.mubr.msk.f32.mxu1 %vm27076_vm2, %v31270_v35  ;;  %25068 = vmatmul.mubr.f32.vlgmr.msra.gmra.mxu0 %v29022_v2 }
0x1027   :  { %25081 = vmatprep.subr.mxu0 %v31270_v35  ;;  %25101 = vmatmul.mubr.f32.vlgmr.msra.gmra.mxu1 %v29022_v2 }
0x1028   :  { %25114 = vmatprep.subr.mxu1 %v31270_v35  ;;  %25082 = vmatpush3.msra.mxu0 %v27768_v22 }
0x1029   :  { %25115 = vmatpush3.msra.mxu1 %v27768_v22  ;;  %25083 = vmatprep.subr.mxu0 %v31270_v35 }
0x102a   :  { %25116 = vmatprep.subr.mxu1 %v31270_v35  ;;  %25084 = vmatpush3.msra.mxu0 %v31374_v31 }
0x102b   :  { %25117 = vmatpush3.msra.mxu1 %v31374_v31  ;;  %25085 = vmatprep.subr.mxu0 %v31270_v35 }
0x102c   :  { %25118 = vmatprep.subr.mxu1 %v31270_v35  ;;  %25086 = vmatpush3.msra.mxu0 %v31375_v24 }
0x102d   :  { %25119 = vmatpush3.msra.mxu1 %v31375_v24  ;;  %25087 = vmatprep.subr.mxu0 %v31270_v35 }
0x102e   :  { %25120 = vmatprep.subr.mxu1 %v31270_v35  ;;  %25088 = vmatpush3.msra.mxu0 %v31376_v27 }
0x102f   :  { %25089 = vmatprep.mubr.msk.f32.mxu0 %vm27076_vm2, %v31270_v35  ;;  %25121 = vmatpush3.msra.mxu1 %v31376_v27 }
0x1030   :  { %25122 = vmatprep.mubr.msk.f32.mxu1 %vm27076_vm2, %v31270_v35  ;;  %25090 = vmatmul.mubr.f32.vlgmr.msra.gmra.mxu0 %v29041_v25 }
0x1031   :  { %25103 = vmatprep.subr.mxu0 %v31270_v35  ;;  %25123 = vmatmul.mubr.f32.vlgmr.msra.gmra.mxu1 %v29033_v23 }
0x1032   :  { %25136 = vmatprep.subr.mxu1 %v31270_v35  ;;  %25104 = vmatpush3.msra.mxu0 %v31377_v58 }
0x1033   :  { %25137 = vmatpush3.msra.mxu1 %v27768_v22  ;;  %25105 = vmatprep.subr.mxu0 %v31270_v35 }
0x1034   :  { %25138 = vmatprep.subr.mxu1 %v31270_v35  ;;  %25106 = vmatpush3.msra.mxu0 %v31378_v44 }
0x1035   :  { %25139 = vmatpush3.msra.mxu1 %v31374_v31  ;;  %25107 = vmatprep.subr.mxu0 %v31270_v35 }
0x1036   :  { %25140 = vmatprep.subr.mxu1 %v31270_v35  ;;  %25108 = vmatpush3.msra.mxu0 %v31379_v37 }
0x1037   :  { %25141 = vmatpush3.msra.mxu1 %v31375_v24  ;;  %25109 = vmatprep.subr.mxu0 %v31270_v35 }
0x1038   :  { %25142 = vmatprep.subr.mxu1 %v31270_v35  ;;  %25110 = vmatpush3.msra.mxu0 %v31380_v30 }
0x1039   :  { %25111 = vmatprep.mubr.msk.f32.mxu0 %vm27076_vm2, %v31270_v35  ;;  %25143 = vmatpush3.msra.mxu1 %v31376_v27 }
0x103a   :  { %25144 = vmatprep.mubr.msk.f32.mxu1 %vm27076_vm2, %v31270_v35  ;;  %25112 = vmatmul.mubr.f32.vlgmr.msra.gmra.mxu0 %v29025_v41 }
0x103b   :  { %25125 = vmatprep.subr.mxu0 %v31270_v35  ;;  %25145 = vmatmul.mubr.f32.vlgmr.msra.gmra.mxu1 %v29022_v2 }
0x103c   :  { %25158 = vmatprep.subr.mxu1 %v31270_v35  ;;  %25126 = vmatpush3.msra.mxu0 %v31381_v19 }
0x103d   :  { %25159 = vmatpush3.msra.mxu1 %v31382_v60  ;;  %25127 = vmatprep.subr.mxu0 %v31270_v35 }
0x103e   :  { %25160 = vmatprep.subr.mxu1 %v31270_v35  ;;  %25128 = vmatpush3.msra.mxu0 %v31383_v6 }
0x103f   :  { %25161 = vmatpush3.msra.mxu1 %v31384_v13  ;;  %25129 = vmatprep.subr.mxu0 %v31270_v35 }
0x1040   :  { %25162 = vmatprep.subr.mxu1 %v31270_v35  ;;  %25130 = vmatpush3.msra.mxu0 %v31385_v36 }
0x1041   :  { %25163 = vmatpush3.msra.mxu1 %v31386_v39  ;;  %25131 = vmatprep.subr.mxu0 %v31270_v35 }
0x1042   :  { %25164 = vmatprep.subr.mxu1 %v31270_v35  ;;  %25132 = vmatpush3.msra.mxu0 %v31387_v33 }
0x1043   :  { %25133 = vmatprep.mubr.msk.f32.mxu0 %vm27076_vm2, %v31270_v35  ;;  %25165 = vmatpush3.msra.mxu1 %v31388_v26 }
0x1044   :  { %25166 = vmatprep.mubr.msk.f32.mxu1 %vm27076_vm2, %v31270_v35  ;;  %25134 = vmatmul.mubr.f32.vlgmr.msra.gmra.mxu0 %v29022_v2 }
0x1045   :  { %25147 = vmatprep.subr.mxu0 %v31270_v35  ;;  %25167 = vmatmul.mubr.f32.vlgmr.msra.gmra.mxu1 %v29022_v2 }
0x1046   :  { %25180 = vmatprep.subr.mxu1 %v31270_v35  ;;  %25148 = vmatpush3.msra.mxu0 %v31389_v28 }
0x1047   :  { %25181 = vmatpush3.msra.mxu1 %v31389_v28  ;;  %25149 = vmatprep.subr.mxu0 %v31270_v35 }
0x1048   :  { %25182 = vmatprep.subr.mxu1 %v31270_v35  ;;  %25150 = vmatpush3.msra.mxu0 %v31390_v45 }
0x1049   :  { %25183 = vmatpush3.msra.mxu1 %v31390_v45  ;;  %25151 = vmatprep.subr.mxu0 %v31270_v35 }
0x104a   :  { %25184 = vmatprep.subr.mxu1 %v31270_v35  ;;  %25152 = vmatpush3.msra.mxu0 %v31391_v40 }
0x104b   :  { %25185 = vmatpush3.msra.mxu1 %v31391_v40  ;;  %25153 = vmatprep.subr.mxu0 %v31270_v35 }
0x104c   :  { %25186 = vmatprep.subr.mxu1 %v31270_v35  ;;  %25154 = vmatpush3.msra.mxu0 %v31392_v61 }
0x104d   :  { %25155 = vmatprep.mubr.msk.f32.mxu0 %vm27076_vm2, %v31270_v35  ;;  %25187 = vmatpush3.msra.mxu1 %v31392_v61 }
0x104e   :  { %25188 = vmatprep.mubr.msk.f32.mxu1 %vm27076_vm2, %v31270_v35  ;;  %25156 = vmatmul.mubr.f32.vlgmr.msra.gmra.mxu0 %v29041_v25  ;;  %v31401_v25 = vld [vmem:[#allocation34_spill] sm:$0xff] }
0x104f   :  { %25169 = vmatprep.subr.mxu0 %v31270_v35  ;;  %25189 = vmatmul.mubr.f32.vlgmr.msra.gmra.mxu1 %v29033_v23  ;;  %v31399_v23 = vld [vmem:[#allocation33_spill] sm:$0xff] }
0x1050   :  { %25202 = vmatprep.subr.mxu1 %v31270_v35  ;;  %25170 = vmatpush3.msra.mxu0 %v31393_v32 }
0x1051   :  { %25203 = vmatpush3.msra.mxu1 %v31389_v28  ;;  %25171 = vmatprep.subr.mxu0 %v31270_v35 }
0x1052   :  { %25204 = vmatprep.subr.mxu1 %v31270_v35  ;;  %25172 = vmatpush3.msra.mxu0 %v31394_v42 }
0x1053   :  { %25205 = vmatpush3.msra.mxu1 %v31390_v45  ;;  %25173 = vmatprep.subr.mxu0 %v31270_v35 }
0x1054   :  { %25206 = vmatprep.subr.mxu1 %v31270_v35  ;;  %25174 = vmatpush3.msra.mxu0 %v31395_v48 }
0x1055   :  { %25207 = vmatpush3.msra.mxu1 %v31391_v40  ;;  %25175 = vmatprep.subr.mxu0 %v31270_v35 }
0x1056   :  { %25208 = vmatprep.subr.mxu1 %v31270_v35  ;;  %25176 = vmatpush3.msra.mxu0 %v31396_v15  ;;  %v31403_v15 = vld [vmem:[#allocation35_spill] sm:$0xff] }
0x1057   :  { %25177 = vmatprep.mubr.msk.f32.mxu0 %vm27076_vm2, %v31270_v35  ;;  %25209 = vmatpush3.msra.mxu1 %v31392_v61 }
0x1058   :  { %25210 = vmatprep.mubr.msk.f32.mxu1 %vm27076_vm2, %v31270_v35  ;;  %25178 = vmatmul.mubr.f32.vlgmr.msra.gmra.mxu0 %v29025_v41  ;;  %v31400_v41 = vld [vmem:[#allocation57_spill] sm:$0xff] }
0x1059   :  { %25191 = vmatprep.subr.mxu0 %v31270_v35  ;;  %25211 = vmatmul.mubr.f32.vlgmr.msra.gmra.mxu1 %v29022_v2 }
0x105a   :  { %25192 = vmatpush3.msra.mxu0 %v31397_v10  ;;  %25199 = vmatprep.mubr.msk.f32.mxu0 %vm27076_vm2, %v31270_v35  ;;  %v31402_v10 = vld [vmem:[#allocation60_spill] sm:$0xff] }
0x105b   :  { %25193 = vmatprep.subr.mxu0 %v31270_v35  ;;  %25224 = vmatprep.subr.mxu1 %v31270_v35 }
0x105c   :  { %25194 = vmatpush3.msra.mxu0 %v31398_v51  ;;  %25225 = vmatpush3.msra.mxu1 %v31399_v23  ;;  %v31404_v23 = vld [vmem:[#allocation36_spill] sm:$0xff] }
0x105d   :  { %25195 = vmatprep.subr.mxu0 %v31270_v35  ;;  %25226 = vmatprep.subr.mxu1 %v31270_v35 }
0x105e   :  { %25196 = vmatpush3.msra.mxu0 %v31400_v41  ;;  %25227 = vmatpush3.msra.mxu1 %v31401_v25 }
0x105f   :  { %25197 = vmatprep.subr.mxu0 %v31270_v35  ;;  %25228 = vmatprep.subr.mxu1 %v31270_v35 }
0x1060   :  { %25198 = vmatpush3.msra.mxu0 %v31402_v10  ;;  %25229 = vmatpush3.msra.mxu1 %v31403_v15 }
0x1061   :  { %25200 = vmatmul.mubr.f32.vlgmr.msra.gmra.mxu0 %v29022_v2  ;;  %25230 = vmatprep.subr.mxu1 %v31270_v35 }
0x1062   :  { %25231 = vmatpush3.msra.mxu1 %v31404_v23  ;;  %25213 = vmatprep.subr.mxu0 %v31270_v35 }
0x1063   :  { %25232 = vmatprep.mubr.msk.f32.mxu1 %vm27076_vm2, %v31270_v35  ;;  %25246 = vmatprep.subr.mxu1 %v31270_v35 }
0x1064   :  { %25214 = vmatpush3.msra.mxu0 %v27553_v38  ;;  %25221 = vmatprep.mubr.msk.f32.mxu0 %vm27076_vm2, %v31270_v35 }
0x1065   :  { %25215 = vmatprep.subr.mxu0 %v31270_v35 }
0x1066   :  { %25216 = vmatpush3.msra.mxu0 %v27562_v47 }
0x1067   :  { %25217 = vmatprep.subr.mxu0 %v31270_v35 }
0x1068   :  { %25218 = vmatpush3.msra.mxu0 %v27571_v49 }
0x1069   :  { %25219 = vmatprep.subr.mxu0 %v31270_v35 }
0x106a   :  { %25220 = vmatpush3.msra.mxu0 %v27584_v55 }
0x106b   :  { %25235 = vmatprep.subr.mxu0 %v31270_v35 }
0x10ad   :  { %v10022_v2 = vpop.f32.mrf.mxu1 }
0x10af   :  { %v24970_v23 = vpop.f32.mrf.mxu1 }
0x10b5   :  { %v10179_v15 = vpop.f32.mrf.mxu1 }
0x10b6   :  { %v9931_v10 = vpop.f32.mrf.mxu0 }
0x10b7   :  { %v10023_v25 = vadd.f32 %v10022_v2, %v9931_v10  ;;  %v24992_v41 = vpop.f32.mrf.mxu1 }
0x10b8   :  { %v24959_v51 = vpop.f32.mrf.mxu0 }
0x10be   :  { %v10102_v48 = vpop.f32.mrf.mxu0 }
0x10bf   :  { %v10103_v42 = vadd.f32 %v10102_v48, %v10023_v25  ;;  %v10337_v32 = vpop.f32.mrf.mxu1 }
0x10c0   :  { %v24981_v61 = vpop.f32.mrf.mxu0 }
0x10c1   :  { %v25014_v40 = vpop.f32.mrf.mxu1  ;;  %v10180_v45 = vadd.f32 %v10179_v15, %v10103_v42 }
0x10c8   :  { %v10262_v28 = vpop.f32.mrf.mxu0 }
0x10c9   :  { %v10263_v26 = vadd.f32 %v10262_v28, %v10180_v45  ;;  %v10514_v33 = vpop.f32.mrf.mxu1 }
0x10ca   :  { %v25003_v39 = vpop.f32.mrf.mxu0 }
0x10cb   :  { %v29298_v36 = vadd.f32 %v10337_v32, %v10263_v26  ;;  %v25036_v13 = vpop.f32.mrf.mxu1 }
0x10d2   :  { %v10423_v6 = vpop.f32.mrf.mxu0 }
0x10d3   :  { %v10671_v23 = vpop.f32.mrf.mxu1  ;;  %v10515_v37 = vadd.f32 %v10514_v33, %v10423_v6 }
0x10d4   :  { %v25025_v60 = vpop.f32.mrf.mxu0 }
0x10d5   :  { %v25058_v19 = vpop.f32.mrf.mxu1 }
0x10dc   :  { %v10594_v2 = vpop.f32.mrf.mxu0 }
0x10dd   :  { %v10829_v41 = vpop.f32.mrf.mxu1  ;;  %v10595_v19 = vadd.f32 %v10594_v2, %v10515_v37 }
0x10de   :  { %v25047_v10 = vpop.f32.mrf.mxu0 }
0x10df   :  { %v25080_v51 = vpop.f32.mrf.mxu1  ;;  %v10672_v10 = vadd.f32 %v10671_v23, %v10595_v19 }
0x10e6   :  { %v10754_v25 = vpop.f32.mrf.mxu0 }
0x10e7   :  { %v11010_v48 = vpop.f32.mrf.mxu1 }
0x10e8   :  { %v25069_v61 = vpop.f32.mrf.mxu0 }
0x10e9   :  { %v25102_v40 = vpop.f32.mrf.mxu1  ;;  %v10755_v61 = vadd.f32 %v10754_v25, %v10672_v10  ;;  %v31408_v10 = vld [vmem:[#allocation71_spill] sm:$0xff] }
0x10f0   :  { %v10919_v42 = vpop.f32.mrf.mxu0 }
0x10f1   :  { %v11167_v15 = vpop.f32.mrf.mxu1  ;;  %v11011_v13 = vadd.f32 %v11010_v48, %v10919_v42 }
0x10f2   :  { %v25091_v28 = vpop.f32.mrf.mxu0 }
0x10f3   :  { %v25124_v45 = vpop.f32.mrf.mxu1  ;;  %v10830_v28 = vadd.f32 %v10829_v41, %v10755_v61  ;;  %v26761_v41 = vld [vmem:[#allocation7] ss:$0 sm:$0xff] }
0x10fa   :  { %v11090_v39 = vpop.f32.mrf.mxu0 }
0x10fb   :  { %v11325_v26 = vpop.f32.mrf.mxu1  ;;  %v11091_v60 = vadd.f32 %v11090_v39, %v11011_v13  ;;  %v31405_v39 = vld [vmem:[#allocation68_spill] sm:$0xff] }
0x10fc   :  { %v25113_v32 = vpop.f32.mrf.mxu0 }
0x10fd   :  { %v25146_v30 = vpop.f32.mrf.mxu1  ;;  %v11168_v44 = vadd.f32 %v11167_v15, %v11091_v60  ;;  %v31406_v32 = vld [vmem:[#allocation65_spill] sm:$0xff]  ;;  %v31407_v60 = vld [vmem:[#allocation74_spill] sm:$0xff] }
0x1104   :  { %v11250_v58 = vpop.f32.mrf.mxu0 }
0x1105   :  { %v11251_v51 = vadd.f32 %v11250_v58, %v11168_v44  ;;  %v11501_v27 = vpop.f32.mrf.mxu1 }
0x1106   :  { %v25135_v24 = vpop.f32.mrf.mxu0 }
0x1107   :  { %v11326_v40 = vadd.f32 %v11325_v26, %v11251_v51  ;;  %v25168_v31 = vpop.f32.mrf.mxu1  ;;  %v1215_v26 = vadd.f32 %v26761_v41, %v31405_v39 }
0x1109   :  { %11330 = vrot.lane.b32.xlu0 %v11326_v40, %s27078_s27  ;;  %v1345_v13 = vadd.f32 %v31406_v32, %v1215_v26  ;;  %v31410_v40 = vld [vmem:[#allocation77_spill] sm:$0xff] }
0x110b   :  { %v1465_v19 = vadd.f32 %v31407_v60, %v1345_v13 }
0x110d   :  { %10834 = vrot.lane.b32.xlu0 %v10830_v28, %s27077_s26  ;;  %v1592_v51 = vadd.f32 %v31408_v10, %v1465_v19 }
0x110e   :  { %v11410_v45 = vpop.f32.mrf.mxu0 }
0x110f   :  { %v11658_v48 = vpop.f32.mrf.mxu1  ;;  %v11502_v2 = vadd.f32 %v11501_v27, %v11410_v45  ;;  %v31409_v27 = vld [vmem:[#allocation82_spill] sm:$0xff] }
0x1110   :  { %v25157_v30 = vpop.f32.mrf.mxu0  ;;  %v1714_v61 = vadd.f32 %v31409_v27, %v1592_v51 }
0x1111   :  { %v25190_v6 = vpop.f32.mrf.mxu1 }
0x1112   :  { %v1828_v28 = vadd.f32 %v31410_v40, %v1714_v61 }
0x1114   :  { %v10341_v6 = vadd.f32 %v29298_v36, %v1828_v28 }
0x1118   :  { %v11581_v33 = vpop.f32.mrf.mxu0 }
0x1119   :  { %v11816_v37 = vpop.f32.mrf.mxu1  ;;  %v11582_v58 = vadd.f32 %v11581_v33, %v11502_v2  ;;  %v22268_v33 = vmul.f32 -1.442695, %v10341_v6 }
0x111a   :  { %v25179_v42 = vpop.f32.mrf.mxu0 }
0x111b   :  { %v25212_v23 = vpop.f32.mrf.mxu1  ;;  %v11659_v44 = vadd.f32 %v11658_v48, %v11582_v58 }
0x1121   :  { %v11741_v24 = vpop.f32.mrf.mxu0 }
0x1122   :  { %v11742_v25 = vadd.f32 %v11741_v24, %v11659_v44 }
0x1123   :  { %v25201_v15 = vpop.f32.mrf.mxu0 }
0x1124   :  { %v11817_v31 = vadd.f32 %v11816_v37, %v11742_v25 }
0x1126   :  { %11821 = vrot.lane.b32.xlu0 %v11817_v31, %s27079_s8 }
0x117b   :  { %v11331_v45 = vpop.permute.xlu0 %11330 }
0x117c   :  { %v11333_v48 = vadd.f32 %v11331_v45, %v1828_v28 }
0x117e   :  { %26692 = vtanh.f32 %v11333_v48 }
0x117f   :  { %26694 = vpow2.f32 %v22268_v33  ;;  %v10835_v44 = vpop.permute.xlu0 %10834 }
0x1180   :  { %v10837_v24 = vadd.f32 %v10835_v44, %v1828_v28  ;;  %v31416_v44 = vld [vmem:[#allocation43_spill] sm:$0xff] }
0x1182   :  { %v22269_v25 = vmul.f32 -1.442695, %v10837_v24  ;;  %v31417_v24 = vld [vmem:[#allocation45_spill] sm:$0xff] }
0x118b   :  { %v26693_v30 = vpop.eup %26692 }
0x118c   :  { %11833 = vrot.lane.b32.xlu1 %v26693_v30, %s27078_s27  ;;  %v26695_v37 = vpop.eup %26694 }
0x118d   :  { %v10345_v2 = vadd.f32 1.0, %v26695_v37  ;;  %v31411_v37 = vld [vmem:[#allocation37_spill] sm:$0xff] }
0x118f   :  { %26696 = vrcp.f32 %v10345_v2  ;;  %v31412_v2 = vld [vmem:[#allocation39_spill] sm:$0xff] }
0x1190   :  { %26698 = vpow2.f32 %v22269_v25  ;;  %v31418_v25 = vld [vmem:[#allocation42_spill] sm:$0xff] }
0x1198   :  { %v11822_v13 = vpop.permute.xlu0 %11821 }
0x1199   :  { %v11824_v60 = vadd.f32 %v11822_v13, %v1828_v28  ;;  %v31425_v13 = vld [vmem:[#allocation63_spill] sm:$0xff] }
0x119b   :  { %v22270_v19 = vmul.f32 -1.442695, %v11824_v60  ;;  %v31426_v60 = vld [vmem:[#allocation48_spill] sm:$0xff] }
0x119c   :  { %v26697_v42 = vpop.eup %26696 }
0x119d   :  { %v26699_v15 = vpop.eup %26698 }
0x119e   :  { %v10841_v31 = vadd.f32 1.0, %v26699_v15  ;;  %v31419_v15 = vld [vmem:[#allocation59_spill] sm:$0xff] }
0x11a0   :  { %26700 = vrcp.f32 %v10841_v31  ;;  %v31420_v31 = vld [vmem:[#allocation44_spill] sm:$0xff] }
0x11ad   :  { %v26701_v41 = vpop.eup %26700 }
0x11ae   :  { %v11831_v36 = vmul.f32 %v26701_v41, %v29015_v17  ;;  %v31421_v41 = vld [vmem:[#allocation61_spill] sm:$0xff] }
0x11fe   :  { %v11834_v23 = vpop.permute.xlu1 %11833 }
0x11ff   :  { %v11836_v58 = vmul.f32 %v26697_v42, %v11834_v23  ;;  %v31413_v42 = vld [vmem:[#allocation41_spill] sm:$0xff]  ;;  %v31414_v23 = vld [vmem:[#allocation38_spill] sm:$0xff] }
0x1201   :  { %11838 = vrot.lane.b32.xlu1 %v11836_v58, %s27077_s26  ;;  %v31415_v58 = vld [vmem:[#allocation40_spill] sm:$0xff] }
0x1273   :  { %v11839_v39 = vpop.permute.xlu1 %11838 }
0x1274   :  { %v29313_v26 = vadd.f32 %v11839_v39, %v11831_v36  ;;  %v31422_v36 = vld [vmem:[#allocation46_spill] sm:$0xff] }
0x1275   :  { %v31423_v39 = vld [vmem:[#allocation62_spill] sm:$0xff] }
0x1276   :  { %26702 = vtanh.f32 %v29313_v26 }
0x1277   :  { %26704 = vpow2.f32 %v22270_v19  ;;  %v31427_v19 = vld [vmem:[#allocation49_spill] sm:$0xff] }
0x1283   :  { %v26703_v32 = vpop.eup %26702 }
0x1284   :  { %11844 = vrot.lane.b32.xlu1 %v26703_v32, %s27078_s27  ;;  %v26705_v10 = vpop.eup %26704  ;;  %v31424_v32 = vld [vmem:[#allocation47_spill] sm:$0xff] }
0x1285   :  { %v11828_v51 = vadd.f32 1.0, %v26705_v10  ;;  %v31428_v10 = vld [vmem:[#allocation51_spill] sm:$0xff] }
0x1287   :  { %26706 = vrcp.f32 %v11828_v51  ;;  %v31429_v51 = vld [vmem:[#allocation54_spill] sm:$0xff] }
0x1294   :  { %v26707_v27 = vpop.eup %26706 }
0x12f6   :  { %v11845_v61 = vpop.permute.xlu1 %11844 }
0x12f7   :  { %v11847_v40 = vmul.f32 %v26707_v27, %v11845_v61  ;;  %v31430_v27 = vld [vmem:[#allocation50_spill] sm:$0xff]  ;;  %v31431_v61 = vld [vmem:[#allocation52_spill] sm:$0xff] }
0x12f9   :  { %11849 = vrot.lane.b32.xlu0 %v11847_v40, %s27077_s26  ;;  %v31432_v40 = vld [vmem:[#allocation55_spill] sm:$0xff] }
0x136b   :  { %v11850_v17 = vpop.permute.xlu0 %11849 }
0x136c   :  { %v11851_v45 = vsel %vm258_vm0, %v11850_v17, 0  ;;  %v31433_v17 = vld [vmem:[#allocation58_spill] sm:$0xff] }
0x136d   :  { %v29319_v48 = vand.u32 4294901760, %v11851_v45 }
0x136f   :  { %v29322_v30 = vsub.f32 %v11851_v45, %v29319_v48  ;;  %25233 = vmatmul.mubr.f32.vlgmr.msra.gmra.mxu1 %v29319_v48  ;;  %v31434_v45 = vld [vmem:[#allocation53_spill] sm:$0xff] }
0x1370   :  { %25247 = vmatpush3.msra.mxu1 %v27553_v38  ;;  %25254 = vmatprep.mubr.msk.f32.mxu1 %vm27076_vm2, %v31270_v35 }
0x1371   :  { %25248 = vmatprep.subr.mxu1 %v31270_v35  ;;  %v29330_v28 = vand.u32 4294901760, %v29322_v30 }
0x1372   :  { %25249 = vmatpush3.msra.mxu1 %v27562_v47 }
0x1373   :  { %25250 = vmatprep.subr.mxu1 %v31270_v35  ;;  %v11925_v6 = vsub.f32 %v29322_v30, %v29330_v28 }
0x1374   :  { %25251 = vmatpush3.msra.mxu1 %v27571_v49 }
0x1375   :  { %25252 = vmatprep.subr.mxu1 %v31270_v35  ;;  %v29338_v33 = vand.u32 4294901760, %v11925_v6  ;;  %v31436_v6 = vld [vmem:[#allocation33_spill] sm:$0xff] }
0x1376   :  { %25253 = vmatpush3.msra.mxu1 %v27584_v55 }
0x1377   :  { %25255 = vmatmul.mubr.f32.vlgmr.msra.gmra.mxu1 %v29330_v28  ;;  %25268 = vmatprep.subr.mxu1 %v31270_v35 }
0x1378   :  { %25222 = vmatmul.mubr.f32.vlgmr.msra.gmra.mxu0 %v29338_v33  ;;  %25269 = vmatpush3.msra.mxu1 %v27553_v38 }
0x1379   :  { %25236 = vmatpush3.msra.mxu0 %v27560_v46  ;;  %25270 = vmatprep.subr.mxu1 %v31270_v35 }
0x137a   :  { %25237 = vmatprep.subr.mxu0 %v31270_v35  ;;  %25271 = vmatpush3.msra.mxu1 %v27562_v47 }
0x137b   :  { %25238 = vmatpush3.msra.mxu0 %v27569_v5  ;;  %25272 = vmatprep.subr.mxu1 %v31270_v35 }
0x137c   :  { %25239 = vmatprep.subr.mxu0 %v31270_v35  ;;  %25273 = vmatpush3.msra.mxu1 %v27571_v49 }
0x137d   :  { %25240 = vmatpush3.msra.mxu0 %v27582_v54  ;;  %25274 = vmatprep.subr.mxu1 %v31270_v35 }
0x137e   :  { %25241 = vmatprep.subr.mxu0 %v31270_v35  ;;  %25243 = vmatprep.mubr.msk.f32.mxu0 %vm27076_vm2, %v31270_v35 }
0x137f   :  { %25242 = vmatpush3.msra.mxu0 %v27598_v57  ;;  %25275 = vmatpush3.msra.mxu1 %v27584_v55 }
0x1380   :  { %25276 = vmatprep.mubr.msk.f32.mxu1 %vm27076_vm2, %v31270_v35  ;;  %25244 = vmatmul.mubr.f32.vlgmr.msra.gmra.mxu0 %v29322_v30 }
0x1381   :  { %25257 = vmatprep.subr.mxu0 %v31270_v35  ;;  %25277 = vmatmul.mubr.f32.vlgmr.msra.gmra.mxu1 %v29319_v48 }
0x1382   :  { %25290 = vmatprep.subr.mxu1 %v31270_v35  ;;  %25258 = vmatpush3.msra.mxu0 %v27566_v43 }
0x1383   :  { %25291 = vmatpush3.msra.mxu1 %v27725_v21  ;;  %25259 = vmatprep.subr.mxu0 %v31270_v35 }
0x1384   :  { %25292 = vmatprep.subr.mxu1 %v31270_v35  ;;  %25260 = vmatpush3.msra.mxu0 %v27579_v53 }
0x1385   :  { %25293 = vmatpush3.msra.mxu1 %v27734_v34  ;;  %25261 = vmatprep.subr.mxu0 %v31270_v35 }
0x1386   :  { %25294 = vmatprep.subr.mxu1 %v31270_v35  ;;  %25262 = vmatpush3.msra.mxu0 %v27595_v56 }
0x1387   :  { %25295 = vmatpush3.msra.mxu1 %v27742_v4  ;;  %25263 = vmatprep.subr.mxu0 %v31270_v35 }
0x1388   :  { %25296 = vmatprep.subr.mxu1 %v31270_v35  ;;  %25264 = vmatpush3.msra.mxu0 %v27609_v59 }
0x1389   :  { %25265 = vmatprep.mubr.msk.f32.mxu0 %vm27076_vm2, %v31270_v35  ;;  %25297 = vmatpush3.msra.mxu1 %v27750_v16 }
0x138a   :  { %25298 = vmatprep.mubr.msk.f32.mxu1 %vm27076_vm2, %v31270_v35  ;;  %25266 = vmatmul.mubr.f32.vlgmr.msra.gmra.mxu0 %v29319_v48 }
0x138b   :  { %25279 = vmatprep.subr.mxu0 %v31270_v35  ;;  %25299 = vmatmul.mubr.f32.vlgmr.msra.gmra.mxu1 %v29319_v48 }
0x138c   :  { %25312 = vmatprep.subr.mxu1 %v31270_v35  ;;  %25280 = vmatpush3.msra.mxu0 %v27656_v52 }
0x138d   :  { %25313 = vmatpush3.msra.mxu1 %v27656_v52  ;;  %25281 = vmatprep.subr.mxu0 %v31270_v35 }
0x138e   :  { %25314 = vmatprep.subr.mxu1 %v31270_v35  ;;  %25282 = vmatpush3.msra.mxu0 %v27661_v63 }
0x138f   :  { %25315 = vmatpush3.msra.mxu1 %v27661_v63  ;;  %25283 = vmatprep.subr.mxu0 %v31270_v35 }
0x1390   :  { %25316 = vmatprep.subr.mxu1 %v31270_v35  ;;  %25284 = vmatpush3.msra.mxu0 %v27671_v1 }
0x1391   :  { %25317 = vmatpush3.msra.mxu1 %v27671_v1  ;;  %25285 = vmatprep.subr.mxu0 %v31270_v35 }
0x1392   :  { %25318 = vmatprep.subr.mxu1 %v31270_v35  ;;  %25286 = vmatpush3.msra.mxu0 %v27682_v7 }
0x1393   :  { %25287 = vmatprep.mubr.msk.f32.mxu0 %vm27076_vm2, %v31270_v35  ;;  %25319 = vmatpush3.msra.mxu1 %v27682_v7 }
0x1394   :  { %25320 = vmatprep.mubr.msk.f32.mxu1 %vm27076_vm2, %v31270_v35  ;;  %25288 = vmatmul.mubr.f32.vlgmr.msra.gmra.mxu0 %v29338_v33 }
0x1395   :  { %25301 = vmatprep.subr.mxu0 %v31270_v35  ;;  %25321 = vmatmul.mubr.f32.vlgmr.msra.gmra.mxu1 %v29330_v28 }
0x1396   :  { %25334 = vmatprep.subr.mxu1 %v31270_v35  ;;  %25302 = vmatpush3.msra.mxu0 %v27669_v0 }
0x1397   :  { %25335 = vmatpush3.msra.mxu1 %v27656_v52  ;;  %25303 = vmatprep.subr.mxu0 %v31270_v35 }
0x1398   :  { %25336 = vmatprep.subr.mxu1 %v31270_v35  ;;  %25304 = vmatpush3.msra.mxu0 %v27678_v3 }
0x1399   :  { %25337 = vmatpush3.msra.mxu1 %v27661_v63  ;;  %25305 = vmatprep.subr.mxu0 %v31270_v35 }
0x139a   :  { %25338 = vmatprep.subr.mxu1 %v31270_v35  ;;  %25306 = vmatpush3.msra.mxu0 %v27690_v9 }
0x139b   :  { %25339 = vmatpush3.msra.mxu1 %v27671_v1  ;;  %25307 = vmatprep.subr.mxu0 %v31270_v35 }
0x139c   :  { %25340 = vmatprep.subr.mxu1 %v31270_v35  ;;  %25308 = vmatpush3.msra.mxu0 %v27702_v12 }
0x139d   :  { %25309 = vmatprep.mubr.msk.f32.mxu0 %vm27076_vm2, %v31270_v35  ;;  %25341 = vmatpush3.msra.mxu1 %v27682_v7 }
0x139e   :  { %25342 = vmatprep.mubr.msk.f32.mxu1 %vm27076_vm2, %v31270_v35  ;;  %25310 = vmatmul.mubr.f32.vlgmr.msra.gmra.mxu0 %v29322_v30 }
0x139f   :  { %25323 = vmatprep.subr.mxu0 %v31270_v35  ;;  %25343 = vmatmul.mubr.f32.vlgmr.msra.gmra.mxu1 %v29319_v48 }
0x13a0   :  { %25356 = vmatprep.subr.mxu1 %v31270_v35  ;;  %25324 = vmatpush3.msra.mxu0 %v27687_v8 }
0x13a1   :  { %25357 = vmatpush3.msra.mxu1 %v27839_v50  ;;  %25325 = vmatprep.subr.mxu0 %v31270_v35 }
0x13a2   :  { %25358 = vmatprep.subr.mxu1 %v31270_v35  ;;  %25326 = vmatpush3.msra.mxu0 %v27697_v11 }
0x13a3   :  { %25359 = vmatpush3.msra.mxu1 %v27848_v29  ;;  %25327 = vmatprep.subr.mxu0 %v31270_v35 }
0x13a4   :  { %25360 = vmatprep.subr.mxu1 %v31270_v35  ;;  %25328 = vmatpush3.msra.mxu0 %v27709_v14 }
0x13a5   :  { %25361 = vmatpush3.msra.mxu1 %v27856_v62  ;;  %25329 = vmatprep.subr.mxu0 %v31270_v35 }
0x13a6   :  { %25362 = vmatprep.subr.mxu1 %v31270_v35  ;;  %25330 = vmatpush3.msra.mxu0 %v27721_v20 }
0x13a7   :  { %25331 = vmatprep.mubr.msk.f32.mxu0 %vm27076_vm2, %v31270_v35  ;;  %25363 = vmatpush3.msra.mxu1 %v27864_v18 }
0x13a8   :  { %25364 = vmatprep.mubr.msk.f32.mxu1 %vm27076_vm2, %v31270_v35  ;;  %25332 = vmatmul.mubr.f32.vlgmr.msra.gmra.mxu0 %v29319_v48 }
0x13a9   :  { %25345 = vmatprep.subr.mxu0 %v31270_v35  ;;  %25365 = vmatmul.mubr.f32.vlgmr.msra.gmra.mxu1 %v29319_v48 }
0x13aa   :  { %25378 = vmatprep.subr.mxu1 %v31270_v35  ;;  %25346 = vmatpush3.msra.mxu0 %v27768_v22 }
0x13ab   :  { %25379 = vmatpush3.msra.mxu1 %v27768_v22  ;;  %25347 = vmatprep.subr.mxu0 %v31270_v35 }
0x13ac   :  { %25380 = vmatprep.subr.mxu1 %v31270_v35  ;;  %25348 = vmatpush3.msra.mxu0 %v31411_v37 }
0x13ad   :  { %25381 = vmatpush3.msra.mxu1 %v31411_v37  ;;  %25349 = vmatprep.subr.mxu0 %v31270_v35 }
0x13ae   :  { %25382 = vmatprep.subr.mxu1 %v31270_v35  ;;  %25350 = vmatpush3.msra.mxu0 %v31412_v2 }
0x13af   :  { %25383 = vmatpush3.msra.mxu1 %v31412_v2  ;;  %25351 = vmatprep.subr.mxu0 %v31270_v35 }
0x13b0   :  { %25384 = vmatprep.subr.mxu1 %v31270_v35  ;;  %25352 = vmatpush3.msra.mxu0 %v31413_v42 }
0x13b1   :  { %25353 = vmatprep.mubr.msk.f32.mxu0 %vm27076_vm2, %v31270_v35  ;;  %25385 = vmatpush3.msra.mxu1 %v31413_v42 }
0x13b2   :  { %25386 = vmatprep.mubr.msk.f32.mxu1 %vm27076_vm2, %v31270_v35  ;;  %25354 = vmatmul.mubr.f32.vlgmr.msra.gmra.mxu0 %v29338_v33 }
0x13b3   :  { %25367 = vmatprep.subr.mxu0 %v31270_v35  ;;  %25387 = vmatmul.mubr.f32.vlgmr.msra.gmra.mxu1 %v29330_v28 }
0x13b4   :  { %25400 = vmatprep.subr.mxu1 %v31270_v35  ;;  %25368 = vmatpush3.msra.mxu0 %v31414_v23 }
0x13b5   :  { %25401 = vmatpush3.msra.mxu1 %v27768_v22  ;;  %25369 = vmatprep.subr.mxu0 %v31270_v35 }
0x13b6   :  { %25402 = vmatprep.subr.mxu1 %v31270_v35  ;;  %25370 = vmatpush3.msra.mxu0 %v31415_v58 }
0x13b7   :  { %25403 = vmatpush3.msra.mxu1 %v31411_v37  ;;  %25371 = vmatprep.subr.mxu0 %v31270_v35 }
0x13b8   :  { %25404 = vmatprep.subr.mxu1 %v31270_v35  ;;  %25372 = vmatpush3.msra.mxu0 %v31416_v44 }
0x13b9   :  { %25405 = vmatpush3.msra.mxu1 %v31412_v2  ;;  %25373 = vmatprep.subr.mxu0 %v31270_v35 }
0x13ba   :  { %25406 = vmatprep.subr.mxu1 %v31270_v35  ;;  %25374 = vmatpush3.msra.mxu0 %v31417_v24 }
0x13bb   :  { %25375 = vmatprep.mubr.msk.f32.mxu0 %vm27076_vm2, %v31270_v35  ;;  %25407 = vmatpush3.msra.mxu1 %v31413_v42 }
0x13bc   :  { %25408 = vmatprep.mubr.msk.f32.mxu1 %vm27076_vm2, %v31270_v35  ;;  %25376 = vmatmul.mubr.f32.vlgmr.msra.gmra.mxu0 %v29322_v30 }
0x13bd   :  { %25389 = vmatprep.subr.mxu0 %v31270_v35  ;;  %25409 = vmatmul.mubr.f32.vlgmr.msra.gmra.mxu1 %v29319_v48 }
0x13be   :  { %25422 = vmatprep.subr.mxu1 %v31270_v35  ;;  %25390 = vmatpush3.msra.mxu0 %v31418_v25 }
0x13bf   :  { %25423 = vmatpush3.msra.mxu1 %v31419_v15  ;;  %25391 = vmatprep.subr.mxu0 %v31270_v35 }
0x13c0   :  { %25424 = vmatprep.subr.mxu1 %v31270_v35  ;;  %25392 = vmatpush3.msra.mxu0 %v31420_v31 }
0x13c1   :  { %25425 = vmatpush3.msra.mxu1 %v31421_v41  ;;  %25393 = vmatprep.subr.mxu0 %v31270_v35 }
0x13c2   :  { %25426 = vmatprep.subr.mxu1 %v31270_v35  ;;  %25394 = vmatpush3.msra.mxu0 %v31422_v36 }
0x13c3   :  { %25427 = vmatpush3.msra.mxu1 %v31423_v39  ;;  %25395 = vmatprep.subr.mxu0 %v31270_v35 }
0x13c4   :  { %25428 = vmatprep.subr.mxu1 %v31270_v35  ;;  %25396 = vmatpush3.msra.mxu0 %v31424_v32 }
0x13c5   :  { %25397 = vmatprep.mubr.msk.f32.mxu0 %vm27076_vm2, %v31270_v35  ;;  %25429 = vmatpush3.msra.mxu1 %v31425_v13 }
0x13c6   :  { %25430 = vmatprep.mubr.msk.f32.mxu1 %vm27076_vm2, %v31270_v35  ;;  %25398 = vmatmul.mubr.f32.vlgmr.msra.gmra.mxu0 %v29319_v48 }
0x13c7   :  { %25411 = vmatprep.subr.mxu0 %v31270_v35  ;;  %25431 = vmatmul.mubr.f32.vlgmr.msra.gmra.mxu1 %v29319_v48 }
0x13c8   :  { %25444 = vmatprep.subr.mxu1 %v31270_v35  ;;  %25412 = vmatpush3.msra.mxu0 %v31426_v60 }
0x13c9   :  { %25445 = vmatpush3.msra.mxu1 %v31426_v60  ;;  %25413 = vmatprep.subr.mxu0 %v31270_v35 }
0x13ca   :  { %25446 = vmatprep.subr.mxu1 %v31270_v35  ;;  %25414 = vmatpush3.msra.mxu0 %v31427_v19 }
0x13cb   :  { %25447 = vmatpush3.msra.mxu1 %v31427_v19  ;;  %25415 = vmatprep.subr.mxu0 %v31270_v35 }
0x13cc   :  { %25448 = vmatprep.subr.mxu1 %v31270_v35  ;;  %25416 = vmatpush3.msra.mxu0 %v31428_v10 }
0x13cd   :  { %25449 = vmatpush3.msra.mxu1 %v31428_v10  ;;  %25417 = vmatprep.subr.mxu0 %v31270_v35 }
0x13ce   :  { %25450 = vmatprep.subr.mxu1 %v31270_v35  ;;  %25418 = vmatpush3.msra.mxu0 %v31429_v51 }
0x13cf   :  { %25419 = vmatprep.mubr.msk.f32.mxu0 %vm27076_vm2, %v31270_v35  ;;  %25451 = vmatpush3.msra.mxu1 %v31429_v51 }
0x13d0   :  { %25452 = vmatprep.mubr.msk.f32.mxu1 %vm27076_vm2, %v31270_v35  ;;  %25420 = vmatmul.mubr.f32.vlgmr.msra.gmra.mxu0 %v29338_v33  ;;  %v31438_v33 = vld [vmem:[#allocation34_spill] sm:$0xff] }
0x13d1   :  { %25433 = vmatprep.subr.mxu0 %v31270_v35  ;;  %25453 = vmatmul.mubr.f32.vlgmr.msra.gmra.mxu1 %v29330_v28  ;;  %v31435_v28 = vld [vmem:[#allocation56_spill] sm:$0xff] }
0x13d2   :  { %25466 = vmatprep.subr.mxu1 %v31270_v35  ;;  %25434 = vmatpush3.msra.mxu0 %v31430_v27 }
0x13d3   :  { %25467 = vmatpush3.msra.mxu1 %v31426_v60  ;;  %25435 = vmatprep.subr.mxu0 %v31270_v35 }
0x13d4   :  { %25468 = vmatprep.subr.mxu1 %v31270_v35  ;;  %25436 = vmatpush3.msra.mxu0 %v31431_v61 }
0x13d5   :  { %25469 = vmatpush3.msra.mxu1 %v31427_v19  ;;  %25437 = vmatprep.subr.mxu0 %v31270_v35 }
0x13d6   :  { %25470 = vmatprep.subr.mxu1 %v31270_v35  ;;  %25438 = vmatpush3.msra.mxu0 %v31432_v40 }
0x13d7   :  { %25471 = vmatpush3.msra.mxu1 %v31428_v10  ;;  %25439 = vmatprep.subr.mxu0 %v31270_v35 }
0x13d8   :  { %25472 = vmatprep.subr.mxu1 %v31270_v35  ;;  %25440 = vmatpush3.msra.mxu0 %v31433_v17  ;;  %v31440_v17 = vld [vmem:[#allocation35_spill] sm:$0xff] }
0x13d9   :  { %25441 = vmatprep.mubr.msk.f32.mxu0 %vm27076_vm2, %v31270_v35  ;;  %25473 = vmatpush3.msra.mxu1 %v31429_v51 }
0x13da   :  { %25474 = vmatprep.mubr.msk.f32.mxu1 %vm27076_vm2, %v31270_v35  ;;  %25442 = vmatmul.mubr.f32.vlgmr.msra.gmra.mxu0 %v29322_v30  ;;  %v31437_v30 = vld [vmem:[#allocation57_spill] sm:$0xff] }
0x13db   :  { %25455 = vmatprep.subr.mxu0 %v31270_v35  ;;  %25475 = vmatmul.mubr.f32.vlgmr.msra.gmra.mxu1 %v29319_v48 }
0x13dc   :  { %25456 = vmatpush3.msra.mxu0 %v31434_v45  ;;  %25463 = vmatprep.mubr.msk.f32.mxu0 %vm27076_vm2, %v31270_v35  ;;  %v31439_v45 = vld [vmem:[#allocation60_spill] sm:$0xff] }
0x13dd   :  { %25457 = vmatprep.subr.mxu0 %v31270_v35  ;;  %25488 = vmatprep.subr.mxu1 %v31270_v35 }
0x13de   :  { %25458 = vmatpush3.msra.mxu0 %v31435_v28  ;;  %25489 = vmatpush3.msra.mxu1 %v31436_v6  ;;  %v31441_v6 = vld [vmem:[#allocation36_spill] sm:$0xff] }
0x13df   :  { %25459 = vmatprep.subr.mxu0 %v31270_v35  ;;  %25490 = vmatprep.subr.mxu1 %v31270_v35 }
0x13e0   :  { %25460 = vmatpush3.msra.mxu0 %v31437_v30  ;;  %25491 = vmatpush3.msra.mxu1 %v31438_v33 }
0x13e1   :  { %25461 = vmatprep.subr.mxu0 %v31270_v35  ;;  %25492 = vmatprep.subr.mxu1 %v31270_v35 }
0x13e2   :  { %25462 = vmatpush3.msra.mxu0 %v31439_v45  ;;  %25493 = vmatpush3.msra.mxu1 %v31440_v17 }
0x13e3   :  { %25464 = vmatmul.mubr.f32.vlgmr.msra.gmra.mxu0 %v29319_v48  ;;  %25494 = vmatprep.subr.mxu1 %v31270_v35 }
0x13e4   :  { %25495 = vmatpush3.msra.mxu1 %v31441_v6  ;;  %25477 = vmatprep.subr.mxu0 %v31270_v35 }
0x13e5   :  { %25496 = vmatprep.mubr.msk.f32.mxu1 %vm27076_vm2, %v31270_v35  ;;  %25510 = vmatprep.subr.mxu1 %v31270_v35 }
0x13e6   :  { %25478 = vmatpush3.msra.mxu0 %v27553_v38  ;;  %25485 = vmatprep.mubr.msk.f32.mxu0 %vm27076_vm2, %v31270_v35 }
0x13e7   :  { %25479 = vmatprep.subr.mxu0 %v31270_v35 }
0x13e8   :  { %25480 = vmatpush3.msra.mxu0 %v27562_v47 }
0x13e9   :  { %25481 = vmatprep.subr.mxu0 %v31270_v35 }
0x13ea   :  { %25482 = vmatpush3.msra.mxu0 %v27571_v49 }
0x13eb   :  { %25483 = vmatprep.subr.mxu0 %v31270_v35 }
0x13ec   :  { %25484 = vmatpush3.msra.mxu0 %v27584_v55 }
0x13ed   :  { %25499 = vmatprep.subr.mxu0 %v31270_v35 }
0x142f   :  { %v12019_v48 = vpop.f32.mrf.mxu1 }
0x1431   :  { %v25234_v6 = vpop.f32.mrf.mxu1 }
0x1437   :  { %v12176_v17 = vpop.f32.mrf.mxu1 }
0x1438   :  { %v11928_v45 = vpop.f32.mrf.mxu0 }
0x1439   :  { %v12020_v33 = vadd.f32 %v12019_v48, %v11928_v45  ;;  %v25256_v30 = vpop.f32.mrf.mxu1 }
0x143a   :  { %v25223_v28 = vpop.f32.mrf.mxu0 }
0x1440   :  { %v12099_v40 = vpop.f32.mrf.mxu0 }
0x1441   :  { %v12100_v61 = vadd.f32 %v12099_v40, %v12020_v33  ;;  %v12334_v27 = vpop.f32.mrf.mxu1 }
0x1442   :  { %v25245_v51 = vpop.f32.mrf.mxu0 }
0x1443   :  { %v25278_v10 = vpop.f32.mrf.mxu1  ;;  %v12177_v19 = vadd.f32 %v12176_v17, %v12100_v61 }
0x144a   :  { %v12259_v60 = vpop.f32.mrf.mxu0 }
0x144b   :  { %v12260_v13 = vadd.f32 %v12259_v60, %v12177_v19  ;;  %v12511_v32 = vpop.f32.mrf.mxu1 }
0x144c   :  { %v25267_v39 = vpop.f32.mrf.mxu0 }
0x144d   :  { %v12335_v36 = vadd.f32 %v12334_v27, %v12260_v13  ;;  %v25300_v41 = vpop.f32.mrf.mxu1 }
0x1454   :  { %v12420_v31 = vpop.f32.mrf.mxu0 }
0x1455   :  { %v12668_v15 = vpop.f32.mrf.mxu1  ;;  %v12512_v44 = vadd.f32 %v12511_v32, %v12420_v31 }
0x1456   :  { %v25289_v6 = vpop.f32.mrf.mxu0 }
0x1457   :  { %v25322_v25 = vpop.f32.mrf.mxu1 }
0x145e   :  { %v12591_v24 = vpop.f32.mrf.mxu0 }
0x145f   :  { %v12826_v45 = vpop.f32.mrf.mxu1  ;;  %v12592_v25 = vadd.f32 %v12591_v24, %v12512_v44 }
0x1460   :  { %v25311_v30 = vpop.f32.mrf.mxu0 }
0x1461   :  { %v25344_v28 = vpop.f32.mrf.mxu1  ;;  %v12669_v30 = vadd.f32 %v12668_v15, %v12592_v25 }
0x1468   :  { %v12751_v48 = vpop.f32.mrf.mxu0 }
0x1469   :  { %v13007_v40 = vpop.f32.mrf.mxu1 }
0x146a   :  { %v25333_v33 = vpop.f32.mrf.mxu0 }
0x146b   :  { %v25366_v51 = vpop.f32.mrf.mxu1  ;;  %v12752_v33 = vadd.f32 %v12751_v48, %v12669_v30 }
0x1472   :  { %v12916_v10 = vpop.f32.mrf.mxu0 }
0x1473   :  { %v13164_v61 = vpop.f32.mrf.mxu1  ;;  %v13008_v41 = vadd.f32 %v13007_v40, %v12916_v10 }
0x1474   :  { %v25355_v17 = vpop.f32.mrf.mxu0 }
0x1475   :  { %v25388_v60 = vpop.f32.mrf.mxu1  ;;  %v12827_v17 = vadd.f32 %v12826_v45, %v12752_v33 }
0x147c   :  { %v13087_v19 = vpop.f32.mrf.mxu0 }
0x147d   :  { %v13322_v39 = vpop.f32.mrf.mxu1  ;;  %v13088_v6 = vadd.f32 %v13087_v19, %v13008_v41 }
0x147e   :  { %v25377_v13 = vpop.f32.mrf.mxu0 }
0x147f   :  { %v25410_v27 = vpop.f32.mrf.mxu1  ;;  %v13165_v58 = vadd.f32 %v13164_v61, %v13088_v6 }
0x1486   :  { %v13247_v23 = vpop.f32.mrf.mxu0 }
0x1487   :  { %v13248_v28 = vadd.f32 %v13247_v23, %v13165_v58  ;;  %v13498_v42 = vpop.f32.mrf.mxu1 }
0x1488   :  { %v25399_v2 = vpop.f32.mrf.mxu0 }
0x1489   :  { %v13323_v51 = vadd.f32 %v13322_v39, %v13248_v28  ;;  %v25432_v37 = vpop.f32.mrf.mxu1  ;;  %v31442_v39 = vld [vmem:[#allocation83_spill] sm:$0xff] }
0x148a   :  { %v12338_v27 = vadd.f32 %v12335_v36, %v31442_v39 }
0x148b   :  { %13327 = vrot.lane.b32.xlu1 %v13323_v51, %s27078_s27 }
0x148f   :  { %12831 = vrot.lane.b32.xlu1 %v12827_v17, %s27077_s26 }
0x1490   :  { %v13407_v60 = vpop.f32.mrf.mxu0 }
0x1491   :  { %v13655_v40 = vpop.f32.mrf.mxu1  ;;  %v13499_v24 = vadd.f32 %v13498_v42, %v13407_v60  ;;  %v22271_v42 = vmul.f32 -1.442695, %v12338_v27 }
0x1492   :  { %v25421_v10 = vpop.f32.mrf.mxu0 }
0x1493   :  { %v25454_v31 = vpop.f32.mrf.mxu1 }
0x149a   :  { %v13578_v32 = vpop.f32.mrf.mxu0 }
0x149b   :  { %v13813_v44 = vpop.f32.mrf.mxu1  ;;  %v13579_v23 = vadd.f32 %v13578_v32, %v13499_v24 }
0x149c   :  { %v25443_v61 = vpop.f32.mrf.mxu0 }
0x149d   :  { %v25476_v15 = vpop.f32.mrf.mxu1  ;;  %v13656_v58 = vadd.f32 %v13655_v40, %v13579_v23 }
0x14a3   :  { %v13738_v2 = vpop.f32.mrf.mxu0 }
0x14a4   :  { %v13739_v48 = vadd.f32 %v13738_v2, %v13656_v58 }
0x14a5   :  { %v25465_v19 = vpop.f32.mrf.mxu0 }
0x14a6   :  { %v13814_v37 = vadd.f32 %v13813_v44, %v13739_v48 }
0x14a8   :  { %13818 = vrot.lane.b32.xlu1 %v13814_v37, %s27079_s8 }
0x14fd   :  { %v13328_v45 = vpop.permute.xlu1 %13327 }
0x14fe   :  { %v13330_v13 = vadd.f32 %v13328_v45, %v31442_v39 }
0x1500   :  { %26708 = vtanh.f32 %v13330_v13 }
0x1501   :  { %26710 = vpow2.f32 %v22271_v42  ;;  %v12832_v51 = vpop.permute.xlu1 %12831 }
0x1502   :  { %v12834_v17 = vadd.f32 %v12832_v51, %v31442_v39  ;;  %v31448_v51 = vld [vmem:[#allocation43_spill] sm:$0xff] }
0x1504   :  { %v22272_v60 = vmul.f32 -1.442695, %v12834_v17  ;;  %v31449_v17 = vld [vmem:[#allocation45_spill] sm:$0xff] }
0x150d   :  { %v26709_v41 = vpop.eup %26708 }
0x150e   :  { %13830 = vrot.lane.b32.xlu0 %v26709_v41, %s27078_s27  ;;  %v26711_v6 = vpop.eup %26710 }
0x150f   :  { %v12342_v25 = vadd.f32 1.0, %v26711_v6  ;;  %v31443_v6 = vld [vmem:[#allocation37_spill] sm:$0xff] }
0x1511   :  { %26712 = vrcp.f32 %v12342_v25  ;;  %v31444_v25 = vld [vmem:[#allocation39_spill] sm:$0xff] }
0x1512   :  { %26714 = vpow2.f32 %v22272_v60  ;;  %v31450_v60 = vld [vmem:[#allocation42_spill] sm:$0xff] }
0x151a   :  { %v13819_v61 = vpop.permute.xlu1 %13818 }
0x151b   :  { %v13821_v15 = vadd.f32 %v13819_v61, %v31442_v39  ;;  %v31457_v61 = vld [vmem:[#allocation63_spill] sm:$0xff] }
0x151d   :  { %v22273_v23 = vmul.f32 -1.442695, %v13821_v15  ;;  %v31458_v15 = vld [vmem:[#allocation48_spill] sm:$0xff] }
0x151e   :  { %v26713_v30 = vpop.eup %26712 }
0x151f   :  { %v26715_v40 = vpop.eup %26714 }
0x1520   :  { %v12838_v10 = vadd.f32 1.0, %v26715_v40  ;;  %v31451_v40 = vld [vmem:[#allocation59_spill] sm:$0xff] }
0x1522   :  { %26716 = vrcp.f32 %v12838_v10  ;;  %v31452_v10 = vld [vmem:[#allocation44_spill] sm:$0xff] }
0x152f   :  { %v26717_v31 = vpop.eup %26716 }
0x1530   :  { %v13828_v36 = vmul.f32 %v26717_v31, %v29313_v26  ;;  %v31453_v31 = vld [vmem:[#allocation61_spill] sm:$0xff] }
0x1580   :  { %v13831_v28 = vpop.permute.xlu0 %13830 }
0x1581   :  { %v13833_v33 = vmul.f32 %v26713_v30, %v13831_v28  ;;  %v31445_v30 = vld [vmem:[#allocation41_spill] sm:$0xff]  ;;  %v31446_v28 = vld [vmem:[#allocation38_spill] sm:$0xff] }
0x1583   :  { %13835 = vrot.lane.b32.xlu0 %v13833_v33, %s27077_s26  ;;  %v31447_v33 = vld [vmem:[#allocation40_spill] sm:$0xff] }
0x15f5   :  { %v13836_v32 = vpop.permute.xlu0 %13835 }
0x15f6   :  { %v29604_v44 = vadd.f32 %v13836_v32, %v13828_v36  ;;  %v31454_v36 = vld [vmem:[#allocation46_spill] sm:$0xff] }
0x15f7   :  { %v31455_v32 = vld [vmem:[#allocation62_spill] sm:$0xff] }
0x15f8   :  { %26718 = vtanh.f32 %v29604_v44 }
0x15f9   :  { %26720 = vpow2.f32 %v22273_v23  ;;  %v31459_v23 = vld [vmem:[#allocation49_spill] sm:$0xff] }
0x1605   :  { %v26719_v24 = vpop.eup %26718 }
0x1606   :  { %13841 = vrot.lane.b32.xlu0 %v26719_v24, %s27078_s27  ;;  %v26721_v58 = vpop.eup %26720  ;;  %v31456_v24 = vld [vmem:[#allocation47_spill] sm:$0xff] }
0x1607   :  { %v13825_v2 = vadd.f32 1.0, %v26721_v58  ;;  %v31460_v58 = vld [vmem:[#allocation51_spill] sm:$0xff] }
0x1609   :  { %26722 = vrcp.f32 %v13825_v2  ;;  %v31461_v2 = vld [vmem:[#allocation54_spill] sm:$0xff] }
0x1616   :  { %v26723_v48 = vpop.eup %26722 }
0x1678   :  { %v13842_v19 = vpop.permute.xlu0 %13841 }
0x1679   :  { %v13844_v37 = vmul.f32 %v26723_v48, %v13842_v19  ;;  %v31462_v48 = vld [vmem:[#allocation50_spill] sm:$0xff]  ;;  %v31463_v19 = vld [vmem:[#allocation52_spill] sm:$0xff] }
0x167b   :  { %13846 = vrot.lane.b32.xlu1 %v13844_v37, %s27077_s26  ;;  %v31464_v37 = vld [vmem:[#allocation55_spill] sm:$0xff] }
0x16ed   :  { %v13847_v26 = vpop.permute.xlu1 %13846 }
0x16ee   :  { %v13848_v45 = vsel %vm258_vm0, %v13847_v26, 0  ;;  %v31465_v26 = vld [vmem:[#allocation58_spill] sm:$0xff] }
0x16ef   :  { %v29611_v13 = vand.u32 4294901760, %v13848_v45 }
0x16f1   :  { %v29614_v41 = vsub.f32 %v13848_v45, %v29611_v13  ;;  %25497 = vmatmul.mubr.f32.vlgmr.msra.gmra.mxu1 %v29611_v13  ;;  %v31466_v45 = vld [vmem:[#allocation53_spill] sm:$0xff] }
0x16f2   :  { %25511 = vmatpush3.msra.mxu1 %v27553_v38  ;;  %25518 = vmatprep.mubr.msk.f32.mxu1 %vm27076_vm2, %v31270_v35 }
0x16f3   :  { %25512 = vmatprep.subr.mxu1 %v31270_v35  ;;  %v29622_v39 = vand.u32 4294901760, %v29614_v41 }
0x16f4   :  { %25513 = vmatpush3.msra.mxu1 %v27562_v47 }
0x16f5   :  { %25514 = vmatprep.subr.mxu1 %v31270_v35  ;;  %v13922_v27 = vsub.f32 %v29614_v41, %v29622_v39 }
0x16f6   :  { %25515 = vmatpush3.msra.mxu1 %v27571_v49 }
0x16f7   :  { %25516 = vmatprep.subr.mxu1 %v31270_v35  ;;  %v29630_v42 = vand.u32 4294901760, %v13922_v27  ;;  %v31468_v27 = vld [vmem:[#allocation33_spill] sm:$0xff] }
0x16f8   :  { %25517 = vmatpush3.msra.mxu1 %v27584_v55 }
0x16f9   :  { %25519 = vmatmul.mubr.f32.vlgmr.msra.gmra.mxu1 %v29622_v39  ;;  %25532 = vmatprep.subr.mxu1 %v31270_v35 }
0x16fa   :  { %25486 = vmatmul.mubr.f32.vlgmr.msra.gmra.mxu0 %v29630_v42  ;;  %25533 = vmatpush3.msra.mxu1 %v27553_v38 }
0x16fb   :  { %25500 = vmatpush3.msra.mxu0 %v27560_v46  ;;  %25534 = vmatprep.subr.mxu1 %v31270_v35 }
0x16fc   :  { %25501 = vmatprep.subr.mxu0 %v31270_v35  ;;  %25535 = vmatpush3.msra.mxu1 %v27562_v47 }
0x16fd   :  { %25502 = vmatpush3.msra.mxu0 %v27569_v5  ;;  %25536 = vmatprep.subr.mxu1 %v31270_v35 }
0x16fe   :  { %25503 = vmatprep.subr.mxu0 %v31270_v35  ;;  %25537 = vmatpush3.msra.mxu1 %v27571_v49 }
0x16ff   :  { %25504 = vmatpush3.msra.mxu0 %v27582_v54  ;;  %25538 = vmatprep.subr.mxu1 %v31270_v35 }
0x1700   :  { %25505 = vmatprep.subr.mxu0 %v31270_v35  ;;  %25507 = vmatprep.mubr.msk.f32.mxu0 %vm27076_vm2, %v31270_v35 }
0x1701   :  { %25506 = vmatpush3.msra.mxu0 %v27598_v57  ;;  %25539 = vmatpush3.msra.mxu1 %v27584_v55 }
0x1702   :  { %25540 = vmatprep.mubr.msk.f32.mxu1 %vm27076_vm2, %v31270_v35  ;;  %25508 = vmatmul.mubr.f32.vlgmr.msra.gmra.mxu0 %v29614_v41 }
0x1703   :  { %25521 = vmatprep.subr.mxu0 %v31270_v35  ;;  %25541 = vmatmul.mubr.f32.vlgmr.msra.gmra.mxu1 %v29611_v13 }
0x1704   :  { %25554 = vmatprep.subr.mxu1 %v31270_v35  ;;  %25522 = vmatpush3.msra.mxu0 %v27566_v43 }
0x1705   :  { %25555 = vmatpush3.msra.mxu1 %v27725_v21  ;;  %25523 = vmatprep.subr.mxu0 %v31270_v35 }
0x1706   :  { %25556 = vmatprep.subr.mxu1 %v31270_v35  ;;  %25524 = vmatpush3.msra.mxu0 %v27579_v53 }
0x1707   :  { %25557 = vmatpush3.msra.mxu1 %v27734_v34  ;;  %25525 = vmatprep.subr.mxu0 %v31270_v35 }
0x1708   :  { %25558 = vmatprep.subr.mxu1 %v31270_v35  ;;  %25526 = vmatpush3.msra.mxu0 %v27595_v56 }
0x1709   :  { %25559 = vmatpush3.msra.mxu1 %v27742_v4  ;;  %25527 = vmatprep.subr.mxu0 %v31270_v35 }
0x170a   :  { %25560 = vmatprep.subr.mxu1 %v31270_v35  ;;  %25528 = vmatpush3.msra.mxu0 %v27609_v59 }
0x170b   :  { %25529 = vmatprep.mubr.msk.f32.mxu0 %vm27076_vm2, %v31270_v35  ;;  %25561 = vmatpush3.msra.mxu1 %v27750_v16 }
0x170c   :  { %25562 = vmatprep.mubr.msk.f32.mxu1 %vm27076_vm2, %v31270_v35  ;;  %25530 = vmatmul.mubr.f32.vlgmr.msra.gmra.mxu0 %v29611_v13 }
0x170d   :  { %25543 = vmatprep.subr.mxu0 %v31270_v35  ;;  %25563 = vmatmul.mubr.f32.vlgmr.msra.gmra.mxu1 %v29611_v13 }
0x170e   :  { %25576 = vmatprep.subr.mxu1 %v31270_v35  ;;  %25544 = vmatpush3.msra.mxu0 %v27656_v52 }
0x170f   :  { %25577 = vmatpush3.msra.mxu1 %v27656_v52  ;;  %25545 = vmatprep.subr.mxu0 %v31270_v35 }
0x1710   :  { %25578 = vmatprep.subr.mxu1 %v31270_v35  ;;  %25546 = vmatpush3.msra.mxu0 %v27661_v63 }
0x1711   :  { %25579 = vmatpush3.msra.mxu1 %v27661_v63  ;;  %25547 = vmatprep.subr.mxu0 %v31270_v35 }
0x1712   :  { %25580 = vmatprep.subr.mxu1 %v31270_v35  ;;  %25548 = vmatpush3.msra.mxu0 %v27671_v1 }
0x1713   :  { %25581 = vmatpush3.msra.mxu1 %v27671_v1  ;;  %25549 = vmatprep.subr.mxu0 %v31270_v35 }
0x1714   :  { %25582 = vmatprep.subr.mxu1 %v31270_v35  ;;  %25550 = vmatpush3.msra.mxu0 %v27682_v7 }
0x1715   :  { %25551 = vmatprep.mubr.msk.f32.mxu0 %vm27076_vm2, %v31270_v35  ;;  %25583 = vmatpush3.msra.mxu1 %v27682_v7 }
0x1716   :  { %25584 = vmatprep.mubr.msk.f32.mxu1 %vm27076_vm2, %v31270_v35  ;;  %25552 = vmatmul.mubr.f32.vlgmr.msra.gmra.mxu0 %v29630_v42 }
0x1717   :  { %25565 = vmatprep.subr.mxu0 %v31270_v35  ;;  %25585 = vmatmul.mubr.f32.vlgmr.msra.gmra.mxu1 %v29622_v39 }
0x1718   :  { %25598 = vmatprep.subr.mxu1 %v31270_v35  ;;  %25566 = vmatpush3.msra.mxu0 %v27669_v0 }
0x1719   :  { %25599 = vmatpush3.msra.mxu1 %v27656_v52  ;;  %25567 = vmatprep.subr.mxu0 %v31270_v35 }
0x171a   :  { %25600 = vmatprep.subr.mxu1 %v31270_v35  ;;  %25568 = vmatpush3.msra.mxu0 %v27678_v3 }
0x171b   :  { %25601 = vmatpush3.msra.mxu1 %v27661_v63  ;;  %25569 = vmatprep.subr.mxu0 %v31270_v35 }
0x171c   :  { %25602 = vmatprep.subr.mxu1 %v31270_v35  ;;  %25570 = vmatpush3.msra.mxu0 %v27690_v9 }
0x171d   :  { %25603 = vmatpush3.msra.mxu1 %v27671_v1  ;;  %25571 = vmatprep.subr.mxu0 %v31270_v35 }
0x171e   :  { %25604 = vmatprep.subr.mxu1 %v31270_v35  ;;  %25572 = vmatpush3.msra.mxu0 %v27702_v12 }
0x171f   :  { %25573 = vmatprep.mubr.msk.f32.mxu0 %vm27076_vm2, %v31270_v35  ;;  %25605 = vmatpush3.msra.mxu1 %v27682_v7 }
0x1720   :  { %25606 = vmatprep.mubr.msk.f32.mxu1 %vm27076_vm2, %v31270_v35  ;;  %25574 = vmatmul.mubr.f32.vlgmr.msra.gmra.mxu0 %v29614_v41 }
0x1721   :  { %25587 = vmatprep.subr.mxu0 %v31270_v35  ;;  %25607 = vmatmul.mubr.f32.vlgmr.msra.gmra.mxu1 %v29611_v13 }
0x1722   :  { %25620 = vmatprep.subr.mxu1 %v31270_v35  ;;  %25588 = vmatpush3.msra.mxu0 %v27687_v8 }
0x1723   :  { %25621 = vmatpush3.msra.mxu1 %v27839_v50  ;;  %25589 = vmatprep.subr.mxu0 %v31270_v35 }
0x1724   :  { %25622 = vmatprep.subr.mxu1 %v31270_v35  ;;  %25590 = vmatpush3.msra.mxu0 %v27697_v11 }
0x1725   :  { %25623 = vmatpush3.msra.mxu1 %v27848_v29  ;;  %25591 = vmatprep.subr.mxu0 %v31270_v35 }
0x1726   :  { %25624 = vmatprep.subr.mxu1 %v31270_v35  ;;  %25592 = vmatpush3.msra.mxu0 %v27709_v14 }
0x1727   :  { %25625 = vmatpush3.msra.mxu1 %v27856_v62  ;;  %25593 = vmatprep.subr.mxu0 %v31270_v35 }
0x1728   :  { %25626 = vmatprep.subr.mxu1 %v31270_v35  ;;  %25594 = vmatpush3.msra.mxu0 %v27721_v20 }
0x1729   :  { %25595 = vmatprep.mubr.msk.f32.mxu0 %vm27076_vm2, %v31270_v35  ;;  %25627 = vmatpush3.msra.mxu1 %v27864_v18 }
0x172a   :  { %25628 = vmatprep.mubr.msk.f32.mxu1 %vm27076_vm2, %v31270_v35  ;;  %25596 = vmatmul.mubr.f32.vlgmr.msra.gmra.mxu0 %v29611_v13 }
0x172b   :  { %25609 = vmatprep.subr.mxu0 %v31270_v35  ;;  %25629 = vmatmul.mubr.f32.vlgmr.msra.gmra.mxu1 %v29611_v13 }
0x172c   :  { %25642 = vmatprep.subr.mxu1 %v31270_v35  ;;  %25610 = vmatpush3.msra.mxu0 %v27768_v22 }
0x172d   :  { %25643 = vmatpush3.msra.mxu1 %v27768_v22  ;;  %25611 = vmatprep.subr.mxu0 %v31270_v35 }
0x172e   :  { %25644 = vmatprep.subr.mxu1 %v31270_v35  ;;  %25612 = vmatpush3.msra.mxu0 %v31443_v6 }
0x172f   :  { %25645 = vmatpush3.msra.mxu1 %v31443_v6  ;;  %25613 = vmatprep.subr.mxu0 %v31270_v35 }
0x1730   :  { %25646 = vmatprep.subr.mxu1 %v31270_v35  ;;  %25614 = vmatpush3.msra.mxu0 %v31444_v25 }
0x1731   :  { %25647 = vmatpush3.msra.mxu1 %v31444_v25  ;;  %25615 = vmatprep.subr.mxu0 %v31270_v35 }
0x1732   :  { %25648 = vmatprep.subr.mxu1 %v31270_v35  ;;  %25616 = vmatpush3.msra.mxu0 %v31445_v30 }
0x1733   :  { %25617 = vmatprep.mubr.msk.f32.mxu0 %vm27076_vm2, %v31270_v35  ;;  %25649 = vmatpush3.msra.mxu1 %v31445_v30 }
0x1734   :  { %25650 = vmatprep.mubr.msk.f32.mxu1 %vm27076_vm2, %v31270_v35  ;;  %25618 = vmatmul.mubr.f32.vlgmr.msra.gmra.mxu0 %v29630_v42 }
0x1735   :  { %25631 = vmatprep.subr.mxu0 %v31270_v35  ;;  %25651 = vmatmul.mubr.f32.vlgmr.msra.gmra.mxu1 %v29622_v39 }
0x1736   :  { %25664 = vmatprep.subr.mxu1 %v31270_v35  ;;  %25632 = vmatpush3.msra.mxu0 %v31446_v28 }
0x1737   :  { %25665 = vmatpush3.msra.mxu1 %v27768_v22  ;;  %25633 = vmatprep.subr.mxu0 %v31270_v35 }
0x1738   :  { %25666 = vmatprep.subr.mxu1 %v31270_v35  ;;  %25634 = vmatpush3.msra.mxu0 %v31447_v33 }
0x1739   :  { %25667 = vmatpush3.msra.mxu1 %v31443_v6  ;;  %25635 = vmatprep.subr.mxu0 %v31270_v35 }
0x173a   :  { %25668 = vmatprep.subr.mxu1 %v31270_v35  ;;  %25636 = vmatpush3.msra.mxu0 %v31448_v51 }
0x173b   :  { %25669 = vmatpush3.msra.mxu1 %v31444_v25  ;;  %25637 = vmatprep.subr.mxu0 %v31270_v35 }
0x173c   :  { %25670 = vmatprep.subr.mxu1 %v31270_v35  ;;  %25638 = vmatpush3.msra.mxu0 %v31449_v17 }
0x173d   :  { %25639 = vmatprep.mubr.msk.f32.mxu0 %vm27076_vm2, %v31270_v35  ;;  %25671 = vmatpush3.msra.mxu1 %v31445_v30 }
0x173e   :  { %25672 = vmatprep.mubr.msk.f32.mxu1 %vm27076_vm2, %v31270_v35  ;;  %25640 = vmatmul.mubr.f32.vlgmr.msra.gmra.mxu0 %v29614_v41 }
0x173f   :  { %25653 = vmatprep.subr.mxu0 %v31270_v35  ;;  %25673 = vmatmul.mubr.f32.vlgmr.msra.gmra.mxu1 %v29611_v13 }
0x1740   :  { %25686 = vmatprep.subr.mxu1 %v31270_v35  ;;  %25654 = vmatpush3.msra.mxu0 %v31450_v60 }
0x1741   :  { %25687 = vmatpush3.msra.mxu1 %v31451_v40  ;;  %25655 = vmatprep.subr.mxu0 %v31270_v35 }
0x1742   :  { %25688 = vmatprep.subr.mxu1 %v31270_v35  ;;  %25656 = vmatpush3.msra.mxu0 %v31452_v10 }
0x1743   :  { %25689 = vmatpush3.msra.mxu1 %v31453_v31  ;;  %25657 = vmatprep.subr.mxu0 %v31270_v35 }
0x1744   :  { %25690 = vmatprep.subr.mxu1 %v31270_v35  ;;  %25658 = vmatpush3.msra.mxu0 %v31454_v36 }
0x1745   :  { %25691 = vmatpush3.msra.mxu1 %v31455_v32  ;;  %25659 = vmatprep.subr.mxu0 %v31270_v35 }
0x1746   :  { %25692 = vmatprep.subr.mxu1 %v31270_v35  ;;  %25660 = vmatpush3.msra.mxu0 %v31456_v24 }
0x1747   :  { %25661 = vmatprep.mubr.msk.f32.mxu0 %vm27076_vm2, %v31270_v35  ;;  %25693 = vmatpush3.msra.mxu1 %v31457_v61 }
0x1748   :  { %25694 = vmatprep.mubr.msk.f32.mxu1 %vm27076_vm2, %v31270_v35  ;;  %25662 = vmatmul.mubr.f32.vlgmr.msra.gmra.mxu0 %v29611_v13 }
0x1749   :  { %25675 = vmatprep.subr.mxu0 %v31270_v35  ;;  %25695 = vmatmul.mubr.f32.vlgmr.msra.gmra.mxu1 %v29611_v13 }
0x174a   :  { %25708 = vmatprep.subr.mxu1 %v31270_v35  ;;  %25676 = vmatpush3.msra.mxu0 %v31458_v15 }
0x174b   :  { %25709 = vmatpush3.msra.mxu1 %v31458_v15  ;;  %25677 = vmatprep.subr.mxu0 %v31270_v35 }
0x174c   :  { %25710 = vmatprep.subr.mxu1 %v31270_v35  ;;  %25678 = vmatpush3.msra.mxu0 %v31459_v23 }
0x174d   :  { %25711 = vmatpush3.msra.mxu1 %v31459_v23  ;;  %25679 = vmatprep.subr.mxu0 %v31270_v35 }
0x174e   :  { %25712 = vmatprep.subr.mxu1 %v31270_v35  ;;  %25680 = vmatpush3.msra.mxu0 %v31460_v58 }
0x174f   :  { %25713 = vmatpush3.msra.mxu1 %v31460_v58  ;;  %25681 = vmatprep.subr.mxu0 %v31270_v35 }
0x1750   :  { %25714 = vmatprep.subr.mxu1 %v31270_v35  ;;  %25682 = vmatpush3.msra.mxu0 %v31461_v2 }
0x1751   :  { %25683 = vmatprep.mubr.msk.f32.mxu0 %vm27076_vm2, %v31270_v35  ;;  %25715 = vmatpush3.msra.mxu1 %v31461_v2 }
0x1752   :  { %25716 = vmatprep.mubr.msk.f32.mxu1 %vm27076_vm2, %v31270_v35  ;;  %25684 = vmatmul.mubr.f32.vlgmr.msra.gmra.mxu0 %v29630_v42  ;;  %v31470_v42 = vld [vmem:[#allocation34_spill] sm:$0xff] }
0x1753   :  { %25697 = vmatprep.subr.mxu0 %v31270_v35  ;;  %25717 = vmatmul.mubr.f32.vlgmr.msra.gmra.mxu1 %v29622_v39  ;;  %v31467_v39 = vld [vmem:[#allocation56_spill] sm:$0xff] }
0x1754   :  { %25730 = vmatprep.subr.mxu1 %v31270_v35  ;;  %25698 = vmatpush3.msra.mxu0 %v31462_v48 }
0x1755   :  { %25731 = vmatpush3.msra.mxu1 %v31458_v15  ;;  %25699 = vmatprep.subr.mxu0 %v31270_v35 }
0x1756   :  { %25732 = vmatprep.subr.mxu1 %v31270_v35  ;;  %25700 = vmatpush3.msra.mxu0 %v31463_v19 }
0x1757   :  { %25733 = vmatpush3.msra.mxu1 %v31459_v23  ;;  %25701 = vmatprep.subr.mxu0 %v31270_v35 }
0x1758   :  { %25734 = vmatprep.subr.mxu1 %v31270_v35  ;;  %25702 = vmatpush3.msra.mxu0 %v31464_v37 }
0x1759   :  { %25735 = vmatpush3.msra.mxu1 %v31460_v58  ;;  %25703 = vmatprep.subr.mxu0 %v31270_v35 }
0x175a   :  { %25736 = vmatprep.subr.mxu1 %v31270_v35  ;;  %25704 = vmatpush3.msra.mxu0 %v31465_v26  ;;  %v31472_v26 = vld [vmem:[#allocation35_spill] sm:$0xff] }
0x175b   :  { %25705 = vmatprep.mubr.msk.f32.mxu0 %vm27076_vm2, %v31270_v35  ;;  %25737 = vmatpush3.msra.mxu1 %v31461_v2 }
0x175c   :  { %25738 = vmatprep.mubr.msk.f32.mxu1 %vm27076_vm2, %v31270_v35  ;;  %25706 = vmatmul.mubr.f32.vlgmr.msra.gmra.mxu0 %v29614_v41  ;;  %v31469_v41 = vld [vmem:[#allocation57_spill] sm:$0xff] }
0x175d   :  { %25719 = vmatprep.subr.mxu0 %v31270_v35  ;;  %25739 = vmatmul.mubr.f32.vlgmr.msra.gmra.mxu1 %v29611_v13 }
0x175e   :  { %25720 = vmatpush3.msra.mxu0 %v31466_v45  ;;  %25727 = vmatprep.mubr.msk.f32.mxu0 %vm27076_vm2, %v31270_v35  ;;  %v31471_v45 = vld [vmem:[#allocation60_spill] sm:$0xff] }
0x175f   :  { %25721 = vmatprep.subr.mxu0 %v31270_v35  ;;  %25752 = vmatprep.subr.mxu1 %v31270_v35 }
0x1760   :  { %25722 = vmatpush3.msra.mxu0 %v31467_v39  ;;  %25753 = vmatpush3.msra.mxu1 %v31468_v27  ;;  %v31473_v27 = vld [vmem:[#allocation36_spill] sm:$0xff] }
0x1761   :  { %25723 = vmatprep.subr.mxu0 %v31270_v35  ;;  %25754 = vmatprep.subr.mxu1 %v31270_v35 }
0x1762   :  { %25724 = vmatpush3.msra.mxu0 %v31469_v41  ;;  %25755 = vmatpush3.msra.mxu1 %v31470_v42 }
0x1763   :  { %25725 = vmatprep.subr.mxu0 %v31270_v35  ;;  %25756 = vmatprep.subr.mxu1 %v31270_v35 }
0x1764   :  { %25726 = vmatpush3.msra.mxu0 %v31471_v45  ;;  %25757 = vmatpush3.msra.mxu1 %v31472_v26 }
0x1765   :  { %25728 = vmatmul.mubr.f32.vlgmr.msra.gmra.mxu0 %v29611_v13  ;;  %25758 = vmatprep.subr.mxu1 %v31270_v35 }
0x1766   :  { %25759 = vmatpush3.msra.mxu1 %v31473_v27  ;;  %25741 = vmatprep.subr.mxu0 %v31270_v35 }
0x1767   :  { %25760 = vmatprep.mubr.msk.f32.mxu1 %vm27076_vm2, %v31270_v35  ;;  %25774 = vmatprep.subr.mxu1 %v31270_v35 }
0x1768   :  { %25742 = vmatpush3.msra.mxu0 %v27553_v38  ;;  %25749 = vmatprep.mubr.msk.f32.mxu0 %vm27076_vm2, %v31270_v35 }
0x1769   :  { %25743 = vmatprep.subr.mxu0 %v31270_v35 }
0x176a   :  { %25744 = vmatpush3.msra.mxu0 %v27562_v47 }
0x176b   :  { %25745 = vmatprep.subr.mxu0 %v31270_v35 }
0x176c   :  { %25746 = vmatpush3.msra.mxu0 %v27571_v49 }
0x176d   :  { %25747 = vmatprep.subr.mxu0 %v31270_v35 }
0x176e   :  { %25748 = vmatpush3.msra.mxu0 %v27584_v55 }
0x176f   :  { %25763 = vmatprep.subr.mxu0 %v31270_v35 }
0x17b1   :  { %v14016_v13 = vpop.f32.mrf.mxu1 }
0x17b3   :  { %v25498_v26 = vpop.f32.mrf.mxu1 }
0x17b9   :  { %v14173_v42 = vpop.f32.mrf.mxu1 }
0x17ba   :  { %v13925_v27 = vpop.f32.mrf.mxu0 }
0x17bb   :  { %v14017_v45 = vadd.f32 %v14016_v13, %v13925_v27  ;;  %v25520_v41 = vpop.f32.mrf.mxu1 }
0x17bc   :  { %v25487_v39 = vpop.f32.mrf.mxu0 }
0x17c2   :  { %v14096_v37 = vpop.f32.mrf.mxu0 }
0x17c3   :  { %v14097_v19 = vadd.f32 %v14096_v37, %v14017_v45  ;;  %v14331_v48 = vpop.f32.mrf.mxu1 }
0x17c4   :  { %v25509_v2 = vpop.f32.mrf.mxu0 }
0x17c5   :  { %v25542_v58 = vpop.f32.mrf.mxu1  ;;  %v14174_v23 = vadd.f32 %v14173_v42, %v14097_v19 }
0x17cc   :  { %v14256_v15 = vpop.f32.mrf.mxu0 }
0x17cd   :  { %v14257_v61 = vadd.f32 %v14256_v15, %v14174_v23  ;;  %v14508_v24 = vpop.f32.mrf.mxu1 }
0x17ce   :  { %v25531_v32 = vpop.f32.mrf.mxu0 }
0x17cf   :  { %v29887_v36 = vadd.f32 %v14331_v48, %v14257_v61  ;;  %v25564_v31 = vpop.f32.mrf.mxu1 }
0x17d6   :  { %v14417_v10 = vpop.f32.mrf.mxu0 }
0x17d7   :  { %v14665_v26 = vpop.f32.mrf.mxu1  ;;  %v14509_v51 = vadd.f32 %v14508_v24, %v14417_v10 }
0x17d8   :  { %v25553_v40 = vpop.f32.mrf.mxu0 }
0x17d9   :  { %v25586_v60 = vpop.f32.mrf.mxu1 }
0x17e0   :  { %v14588_v13 = vpop.f32.mrf.mxu0 }
0x17e1   :  { %v14823_v41 = vpop.f32.mrf.mxu1  ;;  %v14589_v60 = vadd.f32 %v14588_v13, %v14509_v51 }
0x17e2   :  { %v25575_v39 = vpop.f32.mrf.mxu0 }
0x17e3   :  { %v25608_v27 = vpop.f32.mrf.mxu1  ;;  %v14666_v39 = vadd.f32 %v14665_v26, %v14589_v60 }
0x17ea   :  { %v14748_v37 = vpop.f32.mrf.mxu0 }
0x17eb   :  { %v15004_v45 = vpop.f32.mrf.mxu1 }
0x17ec   :  { %v25597_v2 = vpop.f32.mrf.mxu0 }
0x17ed   :  { %v25630_v58 = vpop.f32.mrf.mxu1  ;;  %v14749_v2 = vadd.f32 %v14748_v37, %v14666_v39  ;;  %v31477_v39 = vld [vmem:[#allocation73_spill] sm:$0xff] }
0x17f4   :  { %v14913_v19 = vpop.f32.mrf.mxu0 }
0x17f5   :  { %v15161_v42 = vpop.f32.mrf.mxu1  ;;  %v15005_v31 = vadd.f32 %v15004_v45, %v14913_v19 }
0x17f6   :  { %v25619_v15 = vpop.f32.mrf.mxu0 }
0x17f7   :  { %v25652_v23 = vpop.f32.mrf.mxu1  ;;  %v14824_v15 = vadd.f32 %v14823_v41, %v14749_v2  ;;  %v26762_v41 = vld [vmem:[#allocation7] ss:$0 sm:$0xff] }
0x17fe   :  { %v15084_v32 = vpop.f32.mrf.mxu0 }
0x17ff   :  { %v15319_v61 = vpop.f32.mrf.mxu1  ;;  %v15085_v40 = vadd.f32 %v15084_v32, %v15005_v31  ;;  %v31474_v32 = vld [vmem:[#allocation69_spill] sm:$0xff] }
0x1800   :  { %v25641_v48 = vpop.f32.mrf.mxu0 }
0x1801   :  { %v25674_v17 = vpop.f32.mrf.mxu1  ;;  %v15162_v33 = vadd.f32 %v15161_v42, %v15085_v40  ;;  %v31475_v48 = vld [vmem:[#allocation67_spill] sm:$0xff] }
0x1802   :  { %v31476_v40 = vld [vmem:[#allocation75_spill] sm:$0xff] }
0x1808   :  { %v15244_v28 = vpop.f32.mrf.mxu0 }
0x1809   :  { %v15245_v27 = vadd.f32 %v15244_v28, %v15162_v33  ;;  %v15495_v30 = vpop.f32.mrf.mxu1 }
0x180a   :  { %v25663_v25 = vpop.f32.mrf.mxu0 }
0x180b   :  { %v15320_v58 = vadd.f32 %v15319_v61, %v15245_v27  ;;  %v25696_v6 = vpop.f32.mrf.mxu1  ;;  %v1235_v61 = vadd.f32 %v26762_v41, %v31474_v32 }
0x180d   :  { %15324 = vrot.lane.b32.xlu0 %v15320_v58, %s27078_s27  ;;  %v1357_v31 = vadd.f32 %v31475_v48, %v1235_v61  ;;  %v31479_v58 = vld [vmem:[#allocation81_spill] sm:$0xff] }
0x180f   :  { %v1479_v60 = vadd.f32 %v31476_v40, %v1357_v31 }
0x1811   :  { %14828 = vrot.lane.b32.xlu0 %v14824_v15, %s27077_s26  ;;  %v1608_v27 = vadd.f32 %v31477_v39, %v1479_v60 }
0x1812   :  { %v15404_v23 = vpop.f32.mrf.mxu0 }
0x1813   :  { %v15652_v45 = vpop.f32.mrf.mxu1  ;;  %v15496_v13 = vadd.f32 %v15495_v30, %v15404_v23  ;;  %v31478_v30 = vld [vmem:[#allocation84_spill] sm:$0xff] }
0x1814   :  { %v25685_v17 = vpop.f32.mrf.mxu0  ;;  %v1726_v2 = vadd.f32 %v31478_v30, %v1608_v27 }
0x1815   :  { %v25718_v10 = vpop.f32.mrf.mxu1 }
0x1816   :  { %v1840_v15 = vadd.f32 %v31479_v58, %v1726_v2 }
0x1818   :  { %v14335_v10 = vadd.f32 %v29887_v36, %v1840_v15 }
0x181c   :  { %v15575_v24 = vpop.f32.mrf.mxu0 }
0x181d   :  { %v15810_v51 = vpop.f32.mrf.mxu1  ;;  %v15576_v28 = vadd.f32 %v15575_v24, %v15496_v13  ;;  %v22274_v24 = vmul.f32 -1.442695, %v14335_v10 }
0x181e   :  { %v25707_v19 = vpop.f32.mrf.mxu0 }
0x181f   :  { %v25740_v26 = vpop.f32.mrf.mxu1  ;;  %v15653_v33 = vadd.f32 %v15652_v45, %v15576_v28 }
0x1825   :  { %v15735_v25 = vpop.f32.mrf.mxu0 }
0x1826   :  { %v15736_v37 = vadd.f32 %v15735_v25, %v15653_v33 }
0x1827   :  { %v25729_v42 = vpop.f32.mrf.mxu0 }
0x1828   :  { %v15811_v6 = vadd.f32 %v15810_v51, %v15736_v37 }
0x182a   :  { %15815 = vrot.lane.b32.xlu0 %v15811_v6, %s27079_s8 }
0x187f   :  { %v15325_v23 = vpop.permute.xlu0 %15324 }
0x1880   :  { %v15327_v45 = vadd.f32 %v15325_v23, %v1840_v15 }
0x1882   :  { %26724 = vtanh.f32 %v15327_v45 }
0x1883   :  { %26726 = vpow2.f32 %v22274_v24  ;;  %v14829_v33 = vpop.permute.xlu0 %14828 }
0x1884   :  { %v14831_v25 = vadd.f32 %v14829_v33, %v1840_v15 }
0x1886   :  { %v22275_v37 = vmul.f32 -1.442695, %v14831_v25 }
0x188f   :  { %v26725_v17 = vpop.eup %26724 }
0x1890   :  { %15827 = vrot.lane.b32.xlu1 %v26725_v17, %s27078_s27  ;;  %v26727_v51 = vpop.eup %26726 }
0x1891   :  { %v14339_v13 = vadd.f32 1.0, %v26727_v51 }
0x1893   :  { %26728 = vrcp.f32 %v14339_v13 }
0x1894   :  { %26730 = vpow2.f32 %v22275_v37 }
0x189c   :  { %v15816_v31 = vpop.permute.xlu0 %15815 }
0x189d   :  { %v15818_v40 = vadd.f32 %v15816_v31, %v1840_v15 }
0x189f   :  { %v22276_v60 = vmul.f32 -1.442695, %v15818_v40 }
0x18a0   :  { %v26729_v19 = vpop.eup %26728 }
0x18a1   :  { %v26731_v42 = vpop.eup %26730 }
0x18a2   :  { %v14835_v6 = vadd.f32 1.0, %v26731_v42 }
0x18a4   :  { %26732 = vrcp.f32 %v14835_v6 }
0x18b1   :  { %v26733_v41 = vpop.eup %26732 }
0x18b2   :  { %v15825_v36 = vmul.f32 %v26733_v41, %v29604_v44 }
0x1902   :  { %v15828_v26 = vpop.permute.xlu1 %15827 }
0x1903   :  { %v15830_v28 = vmul.f32 %v26729_v19, %v15828_v26 }
0x1905   :  { %15832 = vrot.lane.b32.xlu1 %v15830_v28, %s27077_s26 }
0x1977   :  { %v15833_v32 = vpop.permute.xlu1 %15832 }
0x1978   :  { %v29902_v61 = vadd.f32 %v15833_v32, %v15825_v36 }
0x197a   :  { %26734 = vtanh.f32 %v29902_v61 }
0x197b   :  { %26736 = vpow2.f32 %v22276_v60 }
0x1987   :  { %v26735_v48 = vpop.eup %26734 }
0x1988   :  { %15838 = vrot.lane.b32.xlu1 %v26735_v48, %s27078_s27  ;;  %v26737_v39 = vpop.eup %26736 }
0x1989   :  { %v15822_v27 = vadd.f32 1.0, %v26737_v39 }
0x198b   :  { %26738 = vrcp.f32 %v15822_v27 }
0x1998   :  { %v26739_v30 = vpop.eup %26738 }
0x19fa   :  { %v15839_v2 = vpop.permute.xlu1 %15838 }
0x19fb   :  { %v15841_v58 = vmul.f32 %v26739_v30, %v15839_v2 }
0x19fd   :  { %15843 = vrot.lane.b32.xlu0 %v15841_v58, %s27077_s26 }
0x1a6f   :  { %v15844_v44 = vpop.permute.xlu0 %15843 }
0x1a70   :  { %v15845_v23 = vsel %vm258_vm0, %v15844_v44, 0 }
0x1a71   :  { %v29908_v45 = vand.u32 4294901760, %v15845_v23 }
0x1a73   :  { %v29911_v17 = vsub.f32 %v15845_v23, %v29908_v45  ;;  %25761 = vmatmul.mubr.f32.vlgmr.msra.gmra.mxu1 %v29908_v45 }
0x1a74   :  { %25775 = vmatpush3.msra.mxu1 %v27553_v38  ;;  %25782 = vmatprep.mubr.msk.f32.mxu1 %vm27076_vm2, %v31270_v35 }
0x1a75   :  { %25776 = vmatprep.subr.mxu1 %v31270_v35  ;;  %v29919_v15 = vand.u32 4294901760, %v29911_v17 }
0x1a76   :  { %25777 = vmatpush3.msra.mxu1 %v27562_v47 }
0x1a77   :  { %25778 = vmatprep.subr.mxu1 %v31270_v35  ;;  %v15919_v10 = vsub.f32 %v29911_v17, %v29919_v15 }
0x1a78   :  { %25779 = vmatpush3.msra.mxu1 %v27571_v49 }
0x1a79   :  { %25780 = vmatprep.subr.mxu1 %v31270_v35  ;;  %v29927_v24 = vand.u32 4294901760, %v15919_v10 }
0x1a7a   :  { %25781 = vmatpush3.msra.mxu1 %v27584_v55 }
0x1a7b   :  { %25783 = vmatmul.mubr.f32.vlgmr.msra.gmra.mxu1 %v29919_v15  ;;  %25796 = vmatprep.subr.mxu1 %v31270_v35 }
0x1a7c   :  { %25750 = vmatmul.mubr.f32.vlgmr.msra.gmra.mxu0 %v29927_v24  ;;  %25797 = vmatpush3.msra.mxu1 %v27553_v38  ;;  %v31480_v38 = vld [vmem:[#allocation37_spill] sm:$0xff] }
0x1a7d   :  { %25764 = vmatpush3.msra.mxu0 %v27560_v46  ;;  %25798 = vmatprep.subr.mxu1 %v31270_v35  ;;  %v31481_v46 = vld [vmem:[#allocation39_spill] sm:$0xff] }
0x1a7e   :  { %25765 = vmatprep.subr.mxu0 %v31270_v35  ;;  %25799 = vmatpush3.msra.mxu1 %v27562_v47  ;;  %v31482_v47 = vld [vmem:[#allocation41_spill] sm:$0xff] }
0x1a7f   :  { %25766 = vmatpush3.msra.mxu0 %v27569_v5  ;;  %25800 = vmatprep.subr.mxu1 %v31270_v35  ;;  %v31484_v5 = vld [vmem:[#allocation40_spill] sm:$0xff] }
0x1a80   :  { %25767 = vmatprep.subr.mxu0 %v31270_v35  ;;  %25801 = vmatpush3.msra.mxu1 %v27571_v49  ;;  %v31485_v49 = vld [vmem:[#allocation43_spill] sm:$0xff] }
0x1a81   :  { %25768 = vmatpush3.msra.mxu0 %v27582_v54  ;;  %25802 = vmatprep.subr.mxu1 %v31270_v35  ;;  %v31487_v54 = vld [vmem:[#allocation42_spill] sm:$0xff] }
0x1a82   :  { %25769 = vmatprep.subr.mxu0 %v31270_v35  ;;  %25771 = vmatprep.mubr.msk.f32.mxu0 %vm27076_vm2, %v31270_v35 }
0x1a83   :  { %25770 = vmatpush3.msra.mxu0 %v27598_v57  ;;  %25803 = vmatpush3.msra.mxu1 %v27584_v55  ;;  %v31488_v55 = vld [vmem:[#allocation59_spill] sm:$0xff]  ;;  %v31490_v57 = vld [vmem:[#allocation61_spill] sm:$0xff] }
0x1a84   :  { %25804 = vmatprep.mubr.msk.f32.mxu1 %vm27076_vm2, %v31270_v35  ;;  %25772 = vmatmul.mubr.f32.vlgmr.msra.gmra.mxu0 %v29911_v17 }
0x1a85   :  { %25785 = vmatprep.subr.mxu0 %v31270_v35  ;;  %25805 = vmatmul.mubr.f32.vlgmr.msra.gmra.mxu1 %v29908_v45 }
0x1a86   :  { %25818 = vmatprep.subr.mxu1 %v31270_v35  ;;  %25786 = vmatpush3.msra.mxu0 %v27566_v43  ;;  %v31483_v43 = vld [vmem:[#allocation38_spill] sm:$0xff] }
0x1a87   :  { %25819 = vmatpush3.msra.mxu1 %v27725_v21  ;;  %25787 = vmatprep.subr.mxu0 %v31270_v35  ;;  %v31504_v21 = vld [vmem:[#allocation78_spill] sm:$0xff] }
0x1a88   :  { %25820 = vmatprep.subr.mxu1 %v31270_v35  ;;  %25788 = vmatpush3.msra.mxu0 %v27579_v53  ;;  %v31486_v53 = vld [vmem:[#allocation45_spill] sm:$0xff] }
0x1a89   :  { %25821 = vmatpush3.msra.mxu1 %v27734_v34  ;;  %25789 = vmatprep.subr.mxu0 %v31270_v35  ;;  %v31505_v34 = vld [vmem:[#allocation56_spill] sm:$0xff] }
0x1a8a   :  { %25822 = vmatprep.subr.mxu1 %v31270_v35  ;;  %25790 = vmatpush3.msra.mxu0 %v27595_v56  ;;  %v31489_v56 = vld [vmem:[#allocation44_spill] sm:$0xff] }
0x1a8b   :  { %25823 = vmatpush3.msra.mxu1 %v27742_v4  ;;  %25791 = vmatprep.subr.mxu0 %v31270_v35  ;;  %v31506_v4 = vld [vmem:[#allocation57_spill] sm:$0xff] }
0x1a8c   :  { %25824 = vmatprep.subr.mxu1 %v31270_v35  ;;  %25792 = vmatpush3.msra.mxu0 %v27609_v59  ;;  %v31491_v59 = vld [vmem:[#allocation46_spill] sm:$0xff] }
0x1a8d   :  { %25793 = vmatprep.mubr.msk.f32.mxu0 %vm27076_vm2, %v31270_v35  ;;  %25825 = vmatpush3.msra.mxu1 %v27750_v16  ;;  %v31507_v16 = vld [vmem:[#allocation60_spill] sm:$0xff] }
0x1a8e   :  { %25826 = vmatprep.mubr.msk.f32.mxu1 %vm27076_vm2, %v31270_v35  ;;  %25794 = vmatmul.mubr.f32.vlgmr.msra.gmra.mxu0 %v29908_v45 }
0x1a8f   :  { %25807 = vmatprep.subr.mxu0 %v31270_v35  ;;  %25827 = vmatmul.mubr.f32.vlgmr.msra.gmra.mxu1 %v29908_v45 }
0x1a90   :  { %25840 = vmatprep.subr.mxu1 %v31270_v35  ;;  %25808 = vmatpush3.msra.mxu0 %v27656_v52 }
0x1a91   :  { %25841 = vmatpush3.msra.mxu1 %v27656_v52  ;;  %25809 = vmatprep.subr.mxu0 %v31270_v35 }
0x1a92   :  { %25842 = vmatprep.subr.mxu1 %v31270_v35  ;;  %25810 = vmatpush3.msra.mxu0 %v27661_v63 }
0x1a93   :  { %25843 = vmatpush3.msra.mxu1 %v27661_v63  ;;  %25811 = vmatprep.subr.mxu0 %v31270_v35 }
0x1a94   :  { %25844 = vmatprep.subr.mxu1 %v31270_v35  ;;  %25812 = vmatpush3.msra.mxu0 %v27671_v1 }
0x1a95   :  { %25845 = vmatpush3.msra.mxu1 %v27671_v1  ;;  %25813 = vmatprep.subr.mxu0 %v31270_v35 }
0x1a96   :  { %25846 = vmatprep.subr.mxu1 %v31270_v35  ;;  %25814 = vmatpush3.msra.mxu0 %v27682_v7 }
0x1a97   :  { %25815 = vmatprep.mubr.msk.f32.mxu0 %vm27076_vm2, %v31270_v35  ;;  %25847 = vmatpush3.msra.mxu1 %v27682_v7 }
0x1a98   :  { %25848 = vmatprep.mubr.msk.f32.mxu1 %vm27076_vm2, %v31270_v35  ;;  %25816 = vmatmul.mubr.f32.vlgmr.msra.gmra.mxu0 %v29927_v24 }
0x1a99   :  { %25829 = vmatprep.subr.mxu0 %v31270_v35  ;;  %25849 = vmatmul.mubr.f32.vlgmr.msra.gmra.mxu1 %v29919_v15 }
0x1a9a   :  { %25862 = vmatprep.subr.mxu1 %v31270_v35  ;;  %25830 = vmatpush3.msra.mxu0 %v27669_v0  ;;  %v31494_v0 = vld [vmem:[#allocation63_spill] sm:$0xff] }
0x1a9b   :  { %25863 = vmatpush3.msra.mxu1 %v27656_v52  ;;  %25831 = vmatprep.subr.mxu0 %v31270_v35  ;;  %v31492_v52 = vld [vmem:[#allocation62_spill] sm:$0xff] }
0x1a9c   :  { %25864 = vmatprep.subr.mxu1 %v31270_v35  ;;  %25832 = vmatpush3.msra.mxu0 %v27678_v3  ;;  %v31496_v3 = vld [vmem:[#allocation49_spill] sm:$0xff] }
0x1a9d   :  { %25865 = vmatpush3.msra.mxu1 %v27661_v63  ;;  %25833 = vmatprep.subr.mxu0 %v31270_v35  ;;  %v31493_v63 = vld [vmem:[#allocation47_spill] sm:$0xff] }
0x1a9e   :  { %25866 = vmatprep.subr.mxu1 %v31270_v35  ;;  %25834 = vmatpush3.msra.mxu0 %v27690_v9  ;;  %v31499_v9 = vld [vmem:[#allocation50_spill] sm:$0xff] }
0x1a9f   :  { %25867 = vmatpush3.msra.mxu1 %v27671_v1  ;;  %25835 = vmatprep.subr.mxu0 %v31270_v35  ;;  %v31495_v1 = vld [vmem:[#allocation48_spill] sm:$0xff] }
0x1aa0   :  { %25868 = vmatprep.subr.mxu1 %v31270_v35  ;;  %25836 = vmatpush3.msra.mxu0 %v27702_v12  ;;  %v31501_v12 = vld [vmem:[#allocation55_spill] sm:$0xff] }
0x1aa1   :  { %25837 = vmatprep.mubr.msk.f32.mxu0 %vm27076_vm2, %v31270_v35  ;;  %25869 = vmatpush3.msra.mxu1 %v27682_v7  ;;  %v31497_v7 = vld [vmem:[#allocation51_spill] sm:$0xff] }
0x1aa2   :  { %25870 = vmatprep.mubr.msk.f32.mxu1 %vm27076_vm2, %v31270_v35  ;;  %25838 = vmatmul.mubr.f32.vlgmr.msra.gmra.mxu0 %v29911_v17 }
0x1aa3   :  { %25851 = vmatprep.subr.mxu0 %v31270_v35  ;;  %25871 = vmatmul.mubr.f32.vlgmr.msra.gmra.mxu1 %v29908_v45 }
0x1aa4   :  { %25884 = vmatprep.subr.mxu1 %v31270_v35  ;;  %25852 = vmatpush3.msra.mxu0 %v27687_v8  ;;  %v31498_v8 = vld [vmem:[#allocation54_spill] sm:$0xff] }
0x1aa5   :  { %25885 = vmatpush3.msra.mxu1 %v27839_v50  ;;  %25853 = vmatprep.subr.mxu0 %v31270_v35 }
0x1aa6   :  { %25886 = vmatprep.subr.mxu1 %v31270_v35  ;;  %25854 = vmatpush3.msra.mxu0 %v27697_v11  ;;  %v31500_v11 = vld [vmem:[#allocation52_spill] sm:$0xff] }
0x1aa7   :  { %25887 = vmatpush3.msra.mxu1 %v27848_v29  ;;  %25855 = vmatprep.subr.mxu0 %v31270_v35 }
0x1aa8   :  { %25888 = vmatprep.subr.mxu1 %v31270_v35  ;;  %25856 = vmatpush3.msra.mxu0 %v27709_v14  ;;  %v31502_v14 = vld [vmem:[#allocation58_spill] sm:$0xff] }
0x1aa9   :  { %25889 = vmatpush3.msra.mxu1 %v27856_v62  ;;  %25857 = vmatprep.subr.mxu0 %v31270_v35 }
0x1aaa   :  { %25890 = vmatprep.subr.mxu1 %v31270_v35  ;;  %25858 = vmatpush3.msra.mxu0 %v27721_v20  ;;  %v31503_v20 = vld [vmem:[#allocation53_spill] sm:$0xff] }
0x1aab   :  { %25859 = vmatprep.mubr.msk.f32.mxu0 %vm27076_vm2, %v31270_v35  ;;  %25891 = vmatpush3.msra.mxu1 %v27864_v18 }
0x1aac   :  { %25892 = vmatprep.mubr.msk.f32.mxu1 %vm27076_vm2, %v31270_v35  ;;  %25860 = vmatmul.mubr.f32.vlgmr.msra.gmra.mxu0 %v29908_v45 }
0x1aad   :  { %25873 = vmatprep.subr.mxu0 %v31270_v35  ;;  %25893 = vmatmul.mubr.f32.vlgmr.msra.gmra.mxu1 %v29908_v45 }
0x1aae   :  { %25906 = vmatprep.subr.mxu1 %v31270_v35  ;;  %25874 = vmatpush3.msra.mxu0 %v27768_v22 }
0x1aaf   :  { %25907 = vmatpush3.msra.mxu1 %v27768_v22  ;;  %25875 = vmatprep.subr.mxu0 %v31270_v35 }
0x1ab0   :  { %25908 = vmatprep.subr.mxu1 %v31270_v35  ;;  %25876 = vmatpush3.msra.mxu0 %v31480_v38 }
0x1ab1   :  { %25909 = vmatpush3.msra.mxu1 %v31480_v38  ;;  %25877 = vmatprep.subr.mxu0 %v31270_v35 }
0x1ab2   :  { %25910 = vmatprep.subr.mxu1 %v31270_v35  ;;  %25878 = vmatpush3.msra.mxu0 %v31481_v46 }
0x1ab3   :  { %25911 = vmatpush3.msra.mxu1 %v31481_v46  ;;  %25879 = vmatprep.subr.mxu0 %v31270_v35 }
0x1ab4   :  { %25912 = vmatprep.subr.mxu1 %v31270_v35  ;;  %25880 = vmatpush3.msra.mxu0 %v31482_v47 }
0x1ab5   :  { %25881 = vmatprep.mubr.msk.f32.mxu0 %vm27076_vm2, %v31270_v35  ;;  %25913 = vmatpush3.msra.mxu1 %v31482_v47 }
0x1ab6   :  { %25914 = vmatprep.mubr.msk.f32.mxu1 %vm27076_vm2, %v31270_v35  ;;  %25882 = vmatmul.mubr.f32.vlgmr.msra.gmra.mxu0 %v29927_v24 }
0x1ab7   :  { %25895 = vmatprep.subr.mxu0 %v31270_v35  ;;  %25915 = vmatmul.mubr.f32.vlgmr.msra.gmra.mxu1 %v29919_v15 }
0x1ab8   :  { %25928 = vmatprep.subr.mxu1 %v31270_v35  ;;  %25896 = vmatpush3.msra.mxu0 %v31483_v43 }
0x1ab9   :  { %25929 = vmatpush3.msra.mxu1 %v27768_v22  ;;  %25897 = vmatprep.subr.mxu0 %v31270_v35  ;;  %v31508_v22 = vld [vmem:[#allocation72_spill] sm:$0xff] }
0x1aba   :  { %25930 = vmatprep.subr.mxu1 %v31270_v35  ;;  %25898 = vmatpush3.msra.mxu0 %v31484_v5 }
0x1abb   :  { %25931 = vmatpush3.msra.mxu1 %v31480_v38  ;;  %25899 = vmatprep.subr.mxu0 %v31270_v35 }
0x1abc   :  { %25932 = vmatprep.subr.mxu1 %v31270_v35  ;;  %25900 = vmatpush3.msra.mxu0 %v31485_v49 }
0x1abd   :  { %25933 = vmatpush3.msra.mxu1 %v31481_v46  ;;  %25901 = vmatprep.subr.mxu0 %v31270_v35 }
0x1abe   :  { %25934 = vmatprep.subr.mxu1 %v31270_v35  ;;  %25902 = vmatpush3.msra.mxu0 %v31486_v53 }
0x1abf   :  { %25903 = vmatprep.mubr.msk.f32.mxu0 %vm27076_vm2, %v31270_v35  ;;  %25935 = vmatpush3.msra.mxu1 %v31482_v47 }
0x1ac0   :  { %25936 = vmatprep.mubr.msk.f32.mxu1 %vm27076_vm2, %v31270_v35  ;;  %25904 = vmatmul.mubr.f32.vlgmr.msra.gmra.mxu0 %v29911_v17 }
0x1ac1   :  { %25917 = vmatprep.subr.mxu0 %v31270_v35  ;;  %25937 = vmatmul.mubr.f32.vlgmr.msra.gmra.mxu1 %v29908_v45 }
0x1ac2   :  { %25950 = vmatprep.subr.mxu1 %v31270_v35  ;;  %25918 = vmatpush3.msra.mxu0 %v31487_v54 }
0x1ac3   :  { %25951 = vmatpush3.msra.mxu1 %v31488_v55  ;;  %25919 = vmatprep.subr.mxu0 %v31270_v35 }
0x1ac4   :  { %25952 = vmatprep.subr.mxu1 %v31270_v35  ;;  %25920 = vmatpush3.msra.mxu0 %v31489_v56 }
0x1ac5   :  { %25953 = vmatpush3.msra.mxu1 %v31490_v57  ;;  %25921 = vmatprep.subr.mxu0 %v31270_v35 }
0x1ac6   :  { %25954 = vmatprep.subr.mxu1 %v31270_v35  ;;  %25922 = vmatpush3.msra.mxu0 %v31491_v59 }
0x1ac7   :  { %25955 = vmatpush3.msra.mxu1 %v31492_v52  ;;  %25923 = vmatprep.subr.mxu0 %v31270_v35 }
0x1ac8   :  { %25956 = vmatprep.subr.mxu1 %v31270_v35  ;;  %25924 = vmatpush3.msra.mxu0 %v31493_v63 }
0x1ac9   :  { %25925 = vmatprep.mubr.msk.f32.mxu0 %vm27076_vm2, %v31270_v35  ;;  %25957 = vmatpush3.msra.mxu1 %v31494_v0 }
0x1aca   :  { %25958 = vmatprep.mubr.msk.f32.mxu1 %vm27076_vm2, %v31270_v35  ;;  %25926 = vmatmul.mubr.f32.vlgmr.msra.gmra.mxu0 %v29908_v45 }
0x1acb   :  { %25939 = vmatprep.subr.mxu0 %v31270_v35  ;;  %25959 = vmatmul.mubr.f32.vlgmr.msra.gmra.mxu1 %v29908_v45 }
0x1acc   :  { %25972 = vmatprep.subr.mxu1 %v31270_v35  ;;  %25940 = vmatpush3.msra.mxu0 %v31495_v1 }
0x1acd   :  { %25973 = vmatpush3.msra.mxu1 %v31495_v1  ;;  %25941 = vmatprep.subr.mxu0 %v31270_v35 }
0x1ace   :  { %25974 = vmatprep.subr.mxu1 %v31270_v35  ;;  %25942 = vmatpush3.msra.mxu0 %v31496_v3 }
0x1acf   :  { %25975 = vmatpush3.msra.mxu1 %v31496_v3  ;;  %25943 = vmatprep.subr.mxu0 %v31270_v35 }
0x1ad0   :  { %25976 = vmatprep.subr.mxu1 %v31270_v35  ;;  %25944 = vmatpush3.msra.mxu0 %v31497_v7 }
0x1ad1   :  { %25977 = vmatpush3.msra.mxu1 %v31497_v7  ;;  %25945 = vmatprep.subr.mxu0 %v31270_v35 }
0x1ad2   :  { %25978 = vmatprep.subr.mxu1 %v31270_v35  ;;  %25946 = vmatpush3.msra.mxu0 %v31498_v8 }
0x1ad3   :  { %25947 = vmatprep.mubr.msk.f32.mxu0 %vm27076_vm2, %v31270_v35  ;;  %25979 = vmatpush3.msra.mxu1 %v31498_v8 }
0x1ad4   :  { %25980 = vmatprep.mubr.msk.f32.mxu1 %vm27076_vm2, %v31270_v35  ;;  %25948 = vmatmul.mubr.f32.vlgmr.msra.gmra.mxu0 %v29927_v24 }
0x1ad5   :  { %25961 = vmatprep.subr.mxu0 %v31270_v35  ;;  %25981 = vmatmul.mubr.f32.vlgmr.msra.gmra.mxu1 %v29919_v15 }
0x1ad6   :  { %25994 = vmatprep.subr.mxu1 %v31270_v35  ;;  %25962 = vmatpush3.msra.mxu0 %v31499_v9 }
0x1ad7   :  { %25995 = vmatpush3.msra.mxu1 %v31495_v1  ;;  %25963 = vmatprep.subr.mxu0 %v31270_v35 }
0x1ad8   :  { %25996 = vmatprep.subr.mxu1 %v31270_v35  ;;  %25964 = vmatpush3.msra.mxu0 %v31500_v11 }
0x1ad9   :  { %25997 = vmatpush3.msra.mxu1 %v31496_v3  ;;  %25965 = vmatprep.subr.mxu0 %v31270_v35 }
0x1ada   :  { %25998 = vmatprep.subr.mxu1 %v31270_v35  ;;  %25966 = vmatpush3.msra.mxu0 %v31501_v12 }
0x1adb   :  { %25999 = vmatpush3.msra.mxu1 %v31497_v7  ;;  %25967 = vmatprep.subr.mxu0 %v31270_v35 }
0x1adc   :  { %26000 = vmatprep.subr.mxu1 %v31270_v35  ;;  %25968 = vmatpush3.msra.mxu0 %v31502_v14 }
0x1add   :  { %25969 = vmatprep.mubr.msk.f32.mxu0 %vm27076_vm2, %v31270_v35  ;;  %26001 = vmatpush3.msra.mxu1 %v31498_v8 }
0x1ade   :  { %26002 = vmatprep.mubr.msk.f32.mxu1 %vm27076_vm2, %v31270_v35  ;;  %25970 = vmatmul.mubr.f32.vlgmr.msra.gmra.mxu0 %v29911_v17 }
0x1adf   :  { %25983 = vmatprep.subr.mxu0 %v31270_v35  ;;  %26003 = vmatmul.mubr.f32.vlgmr.msra.gmra.mxu1 %v29908_v45 }
0x1ae0   :  { %25984 = vmatpush3.msra.mxu0 %v31503_v20  ;;  %26024 = vmatprep.mubr.f32.mxu1 %v31504_v21 }
0x1ae1   :  { %25985 = vmatprep.subr.mxu0 %v31270_v35  ;;  %25991 = vmatprep.mubr.msk.f32.mxu0 %vm27076_vm2, %v31270_v35 }
0x1ae2   :  { %25986 = vmatpush3.msra.mxu0 %v31505_v34 }
0x1ae3   :  { %25987 = vmatprep.subr.mxu0 %v31270_v35 }
0x1ae4   :  { %25988 = vmatpush3.msra.mxu0 %v31506_v4 }
0x1ae5   :  { %25989 = vmatprep.subr.mxu0 %v31270_v35 }
0x1ae6   :  { %25990 = vmatpush3.msra.mxu0 %v31507_v16 }
0x1ae7   :  { %25992 = vmatmul.mubr.f32.vlgmr.msra.gmra.mxu0 %v29908_v45 }
0x1ae8   :  { %26013 = vmatprep.mubr.f32.mxu0 %v31508_v22 }
0x1b33   :  { %v16013_v50 = vpop.f32.mrf.mxu1 }
0x1b35   :  { %v25762_v29 = vpop.f32.mrf.mxu1 }
0x1b3b   :  { %v16170_v62 = vpop.f32.mrf.mxu1 }
0x1b3c   :  { %v15922_v18 = vpop.f32.mrf.mxu0 }
0x1b3d   :  { %v16014_v51 = vadd.f32 %v16013_v50, %v15922_v18  ;;  %v25784_v13 = vpop.f32.mrf.mxu1 }
0x1b3e   :  { %v25751_v19 = vpop.f32.mrf.mxu0 }
0x1b44   :  { %v16093_v26 = vpop.f32.mrf.mxu0 }
0x1b45   :  { %v16094_v28 = vadd.f32 %v16093_v26, %v16014_v51  ;;  %v16328_v33 = vpop.f32.mrf.mxu1 }
0x1b46   :  { %v25773_v25 = vpop.f32.mrf.mxu0 }
0x1b47   :  { %v25806_v37 = vpop.f32.mrf.mxu1  ;;  %v16171_v42 = vadd.f32 %v16170_v62, %v16094_v28  ;;  %v31509_v28 = vld [vmem:[#allocation85_spill] sm:$0xff] }
0x1b4e   :  { %v16253_v6 = vpop.f32.mrf.mxu0 }
0x1b4f   :  { %v16254_v41 = vadd.f32 %v16253_v6, %v16171_v42  ;;  %v16505_v36 = vpop.f32.mrf.mxu1 }
0x1b50   :  { %v25795_v32 = vpop.f32.mrf.mxu0 }
0x1b51   :  { %v16329_v48 = vadd.f32 %v16328_v33, %v16254_v41  ;;  %v25828_v31 = vpop.f32.mrf.mxu1 }
0x1b53   :  { %v16332_v37 = vadd.f32 %v16329_v48, %v31509_v28 }
0x1b55   :  { %v22277_v42 = vmul.f32 -1.442695, %v16332_v37 }
0x1b58   :  { %v16414_v40 = vpop.f32.mrf.mxu0 }
0x1b59   :  { %v16662_v60 = vpop.f32.mrf.mxu1  ;;  %v16506_v54 = vadd.f32 %v16505_v36, %v16414_v40 }
0x1b5a   :  { %v25817_v39 = vpop.f32.mrf.mxu0 }
0x1b5b   :  { %v25850_v27 = vpop.f32.mrf.mxu1 }
0x1b62   :  { %v16585_v30 = vpop.f32.mrf.mxu0 }
0x1b63   :  { %v16820_v2 = vpop.f32.mrf.mxu1  ;;  %v16586_v56 = vadd.f32 %v16585_v30, %v16506_v54 }
0x1b64   :  { %v25839_v58 = vpop.f32.mrf.mxu0 }
0x1b65   :  { %v25872_v44 = vpop.f32.mrf.mxu1  ;;  %v16663_v52 = vadd.f32 %v16662_v60, %v16586_v56 }
0x1b6c   :  { %v16745_v23 = vpop.f32.mrf.mxu0 }
0x1b6d   :  { %v17001_v45 = vpop.f32.mrf.mxu1  ;;  %v16746_v3 = vadd.f32 %v16745_v23, %v16663_v52  ;;  %v17842_v23 = vld [vmem:[#allocation14 + $0x18] sm:$0xff] }
0x1b6e   :  { %v25861_v17 = vpop.f32.mrf.mxu0 }
0x1b6f   :  { %v25894_v15 = vpop.f32.mrf.mxu1  ;;  %v16821_v9 = vadd.f32 %v16820_v2, %v16746_v3  ;;  %v17840_v17 = vld [vmem:[#allocation14 + $0x8] sm:$0xff] }
0x1b70   :  { %v30173_v15 = vand.u32 4294901760, %v17842_v23 }
0x1b72   :  { %26005 = vmatprep.subr.mxu0 %v30173_v15 }
0x1b73   :  { %26006 = vmatpush3.msra.mxu0 %v30173_v15 }
0x1b76   :  { %v16910_v10 = vpop.f32.mrf.mxu0 }
0x1b77   :  { %v17158_v24 = vpop.f32.mrf.mxu1  ;;  %v17002_v49 = vadd.f32 %v17001_v45, %v16910_v10  ;;  %v17841_v45 = vld [vmem:[#allocation14 + $0x10] sm:$0xff] }
0x1b78   :  { %v25883_v38 = vpop.f32.mrf.mxu0  ;;  %v30175_v10 = vand.u32 4294901760, %v17841_v45 }
0x1b79   :  { %v25916_v46 = vpop.f32.mrf.mxu1  ;;  %v30180_v38 = vsub.f32 %v17842_v23, %v30173_v15 }
0x1b7a   :  { %v30183_v46 = vsub.f32 %v17841_v45, %v30175_v10  ;;  %26007 = vmatprep.subr.mxu0 %v30175_v10 }
0x1b7b   :  { %26008 = vmatpush3.msra.mxu0 %v30175_v10 }
0x1b80   :  { %v17081_v47 = vpop.f32.mrf.mxu0 }
0x1b81   :  { %v17316_v43 = vpop.f32.mrf.mxu1  ;;  %v17082_v55 = vadd.f32 %v17081_v47, %v17002_v49  ;;  %v30191_v47 = vand.u32 4294901760, %v30180_v38 }
0x1b82   :  { %v25905_v5 = vpop.f32.mrf.mxu0 }
0x1b83   :  { %v25938_v53 = vpop.f32.mrf.mxu1  ;;  %v17159_v57 = vadd.f32 %v17158_v24, %v17082_v55  ;;  %v30177_v24 = vand.u32 4294901760, %v17840_v17  ;;  %v17972_v49 = vsub.f32 %v30180_v38, %v30191_v47 }
0x1b85   :  { %26009 = vmatprep.subr.mxu0 %v30177_v24  ;;  %v17973_v55 = vand.u32 4294901760, %v17972_v49  ;;  %v18896_v49 = vld [vmem:[#allocation17] sm:$0xff] }
0x1b86   :  { %26010 = vmatpush3.msra.mxu0 %v30177_v24 }
0x1b87   :  { %26016 = vmatprep.subr.mxu1 %v17973_v55 }
0x1b88   :  { %26017 = vmatpush3.msra.mxu1 %v17973_v55 }
0x1b8a   :  { %v17241_v59 = vpop.f32.mrf.mxu0 }
0x1b8b   :  { %v17242_v63 = vadd.f32 %v17241_v59, %v17159_v57  ;;  %v17492_v0 = vpop.f32.mrf.mxu1 }
0x1b8c   :  { %v25927_v1 = vpop.f32.mrf.mxu0 }
0x1b8d   :  { %v17317_v7 = vadd.f32 %v17316_v43, %v17242_v63  ;;  %v25960_v8 = vpop.f32.mrf.mxu1  ;;  %v30194_v43 = vand.u32 4294901760, %v30183_v46 }
0x1b8f   :  { %17321 = vrot.lane.b32.xlu1 %v17317_v7, %s27078_s27  ;;  %v17979_v53 = vsub.f32 %v30183_v46, %v30194_v43  ;;  %v17839_v7 = vld [vmem:[#allocation14] sm:$0xff] }
0x1b90   :  { %v17889_v8 = vand.u32 4294901760, %v17839_v7 }
0x1b91   :  { %v17980_v56 = vand.u32 4294901760, %v17979_v53 }
0x1b92   :  { %26011 = vmatprep.subr.mxu0 %v17889_v8 }
0x1b93   :  { %16825 = vrot.lane.b32.xlu1 %v16821_v9, %s27077_s26  ;;  %26018 = vmatprep.subr.mxu1 %v17980_v56  ;;  %v17991_v9 = vsub.f32 %v17839_v7, %v17889_v8 }
0x1b94   :  { %v17401_v11 = vpop.f32.mrf.mxu0  ;;  %26019 = vmatpush3.msra.mxu1 %v17980_v56  ;;  %26012 = vmatpush3.msra.mxu0 %v17889_v8  ;;  %v18897_v56 = vld [vmem:[#allocation17 + $0x8] sm:$0xf] }
0x1b95   :  { %v17649_v12 = vpop.f32.mrf.mxu1  ;;  %v17493_v16 = vadd.f32 %v17492_v0, %v17401_v11  ;;  %v17992_v11 = vand.u32 4294901760, %v17991_v9  ;;  %26027 = vmatprep.subr.mxu0 %v30180_v38 }
0x1b96   :  { %v25949_v14 = vpop.f32.mrf.mxu0 }
0x1b97   :  { %v25982_v20 = vpop.f32.mrf.mxu1 }
0x1b9e   :  { %v17572_v34 = vpop.f32.mrf.mxu0 }
0x1b9f   :  { %v17807_v4 = vpop.f32.mrf.mxu1  ;;  %v17573_v29 = vadd.f32 %v17572_v34, %v17493_v16 }
0x1ba0   :  { %v25971_v22 = vpop.f32.mrf.mxu0 }
0x1ba1   :  { %v26004_v50 = vpop.f32.mrf.mxu1  ;;  %v17650_v62 = vadd.f32 %v17649_v12, %v17573_v29  ;;  %v17993_v12 = vsub.f32 %v17991_v9, %v17992_v11 }
0x1ba3   :  { %v17994_v14 = vand.u32 4294901760, %v17993_v12 }
0x1ba7   :  { %v17732_v18 = vpop.f32.mrf.mxu0 }
0x1ba8   :  { %v17733_v51 = vadd.f32 %v17732_v18, %v17650_v62  ;;  %v31510_v62 = vld [vmem:[#allocation64_spill] sm:$0xff] }
0x1ba9   :  { %v25993_v13 = vpop.f32.mrf.mxu0 }
0x1baa   :  { %v17808_v19 = vadd.f32 %v17807_v4, %v17733_v51 }
0x1bac   :  { %17812 = vrot.lane.b32.xlu1 %v17808_v19, %s27079_s8  ;;  %v31511_v19 = vld [vmem:[#allocation66_spill] sm:$0xff] }
0x1c01   :  { %v17322_v26 = vpop.permute.xlu1 %17321 }
0x1c02   :  { %v17324_v33 = vadd.f32 %v17322_v26, %v31509_v28  ;;  %v18385_v26 = vld [vmem:[%s31079_s10] sm:$0xff] }
0x1c04   :  { %26740 = vtanh.f32 %v17324_v33 }
0x1c05   :  { %26742 = vpow2.f32 %v22277_v42  ;;  %v16826_v40 = vpop.permute.xlu1 %16825 }
0x1c06   :  { %v16828_v60 = vadd.f32 %v16826_v40, %v31509_v28 }
0x1c08   :  { %v22278_v39 = vmul.f32 -1.442695, %v16828_v60 }
0x1c11   :  { %v26741_v25 = vpop.eup %26740 }
0x1c12   :  { %17824 = vrot.lane.b32.xlu0 %v26741_v25, %s27078_s27  ;;  %v26743_v6 = vpop.eup %26742 }
0x1c13   :  { %v16336_v41 = vadd.f32 1.0, %v26743_v6 }
0x1c15   :  { %26744 = vrcp.f32 %v16336_v41  ;;  %v22280_v41 = vld [vmem:[#allocation16] ss:$0 sm:$0xff] }
0x1c16   :  { %26746 = vpow2.f32 %v22278_v39 }
0x1c1e   :  { %v17813_v52 = vpop.permute.xlu1 %17812 }
0x1c1f   :  { %v17815_v63 = vadd.f32 %v17813_v52, %v31509_v28  ;;  %v18389_v28 = vsel %vm18387_vm3, %v18385_v26, 0 }
0x1c20   :  { %v30245_v33 = vand.u32 4294901760, %v18389_v28 }
0x1c21   :  { %v22279_v0 = vmul.f32 -1.442695, %v17815_v63  ;;  %v18899_v63 = vsel %vm18387_vm3, %v18896_v49, 0 }
0x1c22   :  { %v26745_v36 = vpop.eup %26744  ;;  %v30272_v7 = vand.u32 4294901760, %v18899_v63 }
0x1c23   :  { %v26747_v27 = vpop.eup %26746 }
0x1c24   :  { %v16832_v30 = vadd.f32 1.0, %v26747_v27 }
0x1c26   :  { %26748 = vrcp.f32 %v16832_v30 }
0x1c33   :  { %v26749_v2 = vpop.eup %26748 }
0x1c34   :  { %v17822_v48 = vmul.f32 %v26749_v2, %v29902_v61  ;;  %v30186_v61 = vsub.f32 %v17840_v17, %v30177_v24 }
0x1c36   :  { %v30197_v5 = vand.u32 4294901760, %v30186_v61 }
0x1c38   :  { %v17986_v54 = vsub.f32 %v30186_v61, %v30197_v5 }
0x1c3a   :  { %v17987_v59 = vand.u32 4294901760, %v17986_v54 }
0x1c3c   :  { %26020 = vmatprep.subr.mxu1 %v17987_v59 }
0x1c3d   :  { %26021 = vmatpush3.msra.mxu1 %v17987_v59 }
0x1c3e   :  { %26022 = vmatprep.subr.mxu1 %v17994_v14 }
0x1c3f   :  { %26023 = vmatpush3.msra.mxu1 %v17994_v14 }
0x1c40   :  { %26038 = vmatprep.subr.mxu1 %v30173_v15 }
0x1c84   :  { %v17825_v32 = vpop.permute.xlu0 %17824 }
0x1c85   :  { %v17827_v31 = vmul.f32 %v26745_v36, %v17825_v32  ;;  %v18386_v36 = vld [vmem:[%s31079_s10 + $0x8] sm:$0xf] }
0x1c86   :  { %v18392_v60 = vsel %vm18387_vm3, %v18386_v36, 0 }
0x1c87   :  { %17829 = vrot.lane.b32.xlu0 %v17827_v31, %s27077_s26 }
0x1cf9   :  { %v17830_v58 = vpop.permute.xlu0 %17829 }
0x1cfa   :  { %v17832_v44 = vadd.f32 %v17830_v58, %v17822_v48  ;;  %v30259_v48 = vand.u32 4294901760, %v18392_v60 }
0x1cfc   :  { %26750 = vtanh.f32 %v17832_v44 }
0x1cfd   :  { %26752 = vpow2.f32 %v22279_v0 }
0x1d09   :  { %v26751_v57 = vpop.eup %26750 }
0x1d0a   :  { %17835 = vrot.lane.b32.xlu0 %v26751_v57, %s27078_s27  ;;  %v26753_v1 = vpop.eup %26752 }
0x1d0b   :  { %v17819_v3 = vadd.f32 1.0, %v26753_v1 }
0x1d0d   :  { %26754 = vrcp.f32 %v17819_v3  ;;  %v18902_v3 = vsel %vm18387_vm3, %v18897_v56, 0 }
0x1d0e   :  { %v30279_v12 = vand.u32 4294901760, %v18902_v3 }
0x1d1a   :  { %v26755_v20 = vpop.eup %26754 }
0x1d7c   :  { %v17836_v34 = vpop.permute.xlu0 %17835 }
0x1d7d   :  { %v17838_v4 = vmul.f32 %v26755_v20, %v17836_v34  ;;  %v30285_v34 = vsub.f32 %v18899_v63, %v30272_v7 }
0x1d7f   :  { %17851 = vrot.lane.b32.xlu1 %v17838_v4, %s27077_s26 }
0x1df1   :  { %v17852_v16 = vpop.permute.xlu1 %17851 }
0x1df2   :  { %v17853_v22 = vsel %vm258_vm0, %v17852_v16, 0 }
0x1df3   :  { %v17934_v50 = vand.u32 4294901760, %v17853_v22 }
0x1df5   :  { %v17935_v29 = vsub.f32 %v17853_v22, %v17934_v50  ;;  %26025 = vmatmul.mubr.f32.vlgmr.msra.gmra.mxu1 %v17934_v50  ;;  %v30289_v22 = vsub.f32 %v18902_v3, %v30279_v12 }
0x1df6   :  { %26039 = vmatpush3.msra.mxu1 %v30173_v15  ;;  %26046 = vmatprep.mubr.f32.mxu1 %v31510_v62  ;;  %v18973_v62 = vand.u32 4294901760, %v30285_v34 }
0x1df7   :  { %v17936_v18 = vand.u32 4294901760, %v17935_v29  ;;  %26040 = vmatprep.subr.mxu1 %v30175_v10 }
0x1df8   :  { %26041 = vmatpush3.msra.mxu1 %v30175_v10 }
0x1df9   :  { %v17937_v51 = vsub.f32 %v17935_v29, %v17936_v18  ;;  %26042 = vmatprep.subr.mxu1 %v30177_v24 }
0x1dfa   :  { %26043 = vmatpush3.msra.mxu1 %v30177_v24 }
0x1dfb   :  { %v17938_v13 = vand.u32 4294901760, %v17937_v51  ;;  %26044 = vmatprep.subr.mxu1 %v17889_v8  ;;  %v18983_v51 = vand.u32 4294901760, %v30289_v22 }
0x1dfc   :  { %26045 = vmatpush3.msra.mxu1 %v17889_v8 }
0x1dfd   :  { %26047 = vmatmul.mubr.f32.vlgmr.msra.gmra.mxu1 %v17936_v18  ;;  %26060 = vmatprep.subr.mxu1 %v30173_v15 }
0x1dfe   :  { %26014 = vmatmul.mubr.f32.vlgmr.msra.gmra.mxu0 %v17938_v13  ;;  %26061 = vmatpush3.msra.mxu1 %v30173_v15  ;;  %v30262_v15 = vsub.f32 %v18392_v60, %v30259_v48  ;;  %v18974_v13 = vsub.f32 %v30285_v34, %v18973_v62 }
0x1dff   :  { %26028 = vmatpush3.msra.mxu0 %v30180_v38  ;;  %26068 = vmatprep.mubr.f32.mxu1 %v31504_v21 }
0x1e00   :  { %26029 = vmatprep.subr.mxu0 %v30183_v46  ;;  %26035 = vmatprep.mubr.f32.mxu0 %v31511_v19  ;;  %v18984_v19 = vsub.f32 %v30289_v22, %v18983_v51  ;;  %v18975_v26 = vand.u32 4294901760, %v18974_v13 }
0x1e01   :  { %26062 = vmatprep.subr.mxu1 %v30175_v10  ;;  %26030 = vmatpush3.msra.mxu0 %v30183_v46 }
0x1e02   :  { %26063 = vmatpush3.msra.mxu1 %v30175_v10  ;;  %26031 = vmatprep.subr.mxu0 %v30186_v61 }
0x1e03   :  { %26064 = vmatprep.subr.mxu1 %v30177_v24  ;;  %26032 = vmatpush3.msra.mxu0 %v30186_v61 }
0x1e04   :  { %26065 = vmatpush3.msra.mxu1 %v30177_v24  ;;  %26033 = vmatprep.subr.mxu0 %v17991_v9 }
0x1e05   :  { %26066 = vmatprep.subr.mxu1 %v17889_v8  ;;  %26034 = vmatpush3.msra.mxu0 %v17991_v9 }
0x1e06   :  { %26067 = vmatpush3.msra.mxu1 %v17889_v8  ;;  %26036 = vmatmul.mubr.f32.vlgmr.msra.gmra.mxu0 %v17935_v29 }
0x1e07   :  { %26049 = vmatprep.subr.mxu0 %v30191_v47  ;;  %26069 = vmatmul.mubr.f32.vlgmr.msra.gmra.mxu1 %v17934_v50 }
0x1e08   :  { %26050 = vmatpush3.msra.mxu0 %v30191_v47  ;;  %26057 = vmatprep.mubr.f32.mxu0 %v31504_v21  ;;  %v30248_v21 = vsub.f32 %v18389_v28, %v30245_v33  ;;  %v18985_v28 = vand.u32 4294901760, %v18984_v19 }
0x1e09   :  { %26051 = vmatprep.subr.mxu0 %v30194_v43  ;;  %26082 = vmatprep.mubr.f32.mxu1 %v30245_v33 }
0x1e0a   :  { %26052 = vmatpush3.msra.mxu0 %v30194_v43  ;;  %v18463_v25 = vand.u32 4294901760, %v30248_v21  ;;  %v18473_v43 = vand.u32 4294901760, %v30262_v15 }
0x1e0b   :  { %26053 = vmatprep.subr.mxu0 %v30197_v5 }
0x1e0c   :  { %26054 = vmatpush3.msra.mxu0 %v30197_v5  ;;  %v18464_v37 = vsub.f32 %v30248_v21, %v18463_v25  ;;  %v18474_v52 = vsub.f32 %v30262_v15, %v18473_v43 }
0x1e0d   :  { %26055 = vmatprep.subr.mxu0 %v17992_v11 }
0x1e0e   :  { %26056 = vmatpush3.msra.mxu0 %v17992_v11  ;;  %v18465_v42 = vand.u32 4294901760, %v18464_v37  ;;  %v18475_v11 = vand.u32 4294901760, %v18474_v52 }
0x1e0f   :  { %26058 = vmatmul.mubr.f32.vlgmr.msra.gmra.mxu0 %v17934_v50 }
0x1e10   :  { %26075 = vmatprep.mubr.f32.mxu0 %v18465_v42 }
0x1eb5   :  { %v26026_v32 = vpop.f32.mrf.mxu1 }
0x1eb7   :  { %v18031_v30 = vpop.f32.mrf.mxu1 }
0x1ebd   :  { %v26048_v58 = vpop.f32.mrf.mxu1 }
0x1ebe   :  { %v26015_v6 = vpop.f32.mrf.mxu0 }
0x1ebf   :  { %v17941_v40 = vadd.f32 %v26015_v6, %v22280_v41  ;;  %v18201_v10 = vpop.f32.mrf.mxu1  ;;  %v19419_v6 = vld [vmem:[%s31082_s13 + $0x28] sm:$0xff] }
0x1ec0   :  { %v17930_v31 = vpop.f32.mrf.mxu0 }
0x1ec1   :  { %v17931_v39 = vadd.f32 %v22280_v41, %v17930_v31  ;;  %v18038_v2 = vadd.f32 %v26026_v32, %v17941_v40  ;;  %v30357_v32 = vand.u32 4294901760, %v19419_v6  ;;  %v19418_v31 = vld [vmem:[%s31082_s13 + $0x20] sm:$0xff] }
0x1ec3   :  { %v18032_v45 = vadd.f32 %v18031_v30, %v17931_v39  ;;  %v30370_v39 = vsub.f32 %v19419_v6, %v30357_v32  ;;  %v19417_v30 = vld [vmem:[%s31082_s13 + $0x18] sm:$0xff] }
0x1ec6   :  { %v26037_v27 = vpop.f32.mrf.mxu0 }
0x1ec7   :  { %v18125_v23 = vadd.f32 %v26037_v27, %v18038_v2  ;;  %v26070_v38 = vpop.f32.mrf.mxu1  ;;  %v30372_v27 = vand.u32 4294901760, %v19418_v31 }
0x1ec8   :  { %v18117_v44 = vpop.f32.mrf.mxu0 }
0x1ec9   :  { %v18118_v17 = vadd.f32 %v18117_v44, %v18032_v45  ;;  %v18210_v24 = vadd.f32 %v26048_v58, %v18125_v23  ;;  %v18373_v55 = vpop.f32.mrf.mxu1  ;;  %v30382_v58 = vand.u32 4294901760, %v30370_v39  ;;  %v30385_v44 = vsub.f32 %v19418_v31, %v30372_v27  ;;  %v19416_v45 = vld [vmem:[%s31082_s13 + $0x10] sm:$0xff] }
0x1eca   :  { %v30388_v23 = vand.u32 4294901760, %v19417_v30 }
0x1ecb   :  { %v18202_v47 = vadd.f32 %v18201_v10, %v18118_v17  ;;  %v30397_v10 = vand.u32 4294901760, %v30385_v44 }
0x1ecf   :  { %v26059_v46 = vpop.f32.mrf.mxu0 }
0x1ed0   :  { %v18299_v61 = vadd.f32 %v26059_v46, %v18210_v24  ;;  %v30399_v24 = vand.u32 4294901760, %v19416_v45  ;;  %v19415_v46 = vld [vmem:[%s31082_s13 + $0x8] sm:$0xff] }
0x1ed1   :  { %v18292_v5 = vpop.f32.mrf.mxu0 }
0x1ed2   :  { %v18380_v53 = vadd.f32 %v26070_v38, %v18299_v61  ;;  %v18293_v54 = vadd.f32 %v18292_v5, %v18202_v47  ;;  %v30402_v38 = vsub.f32 %v19417_v30, %v30388_v23  ;;  %v19563_v47 = vsub.f32 %v30385_v44, %v30397_v10 }
0x1ed3   :  { %v30413_v5 = vand.u32 4294901760, %v19415_v46 }
0x1ed4   :  { %v18384_v57 = vmax.f32 %v18380_v53, 0.0  ;;  %v18374_v59 = vadd.f32 %v18373_v55, %v18293_v54  ;;  %v30417_v49 = vand.u32 4294901760, %v30402_v38  ;;  %v19414_v53 = vld [vmem:[%s31082_s13] sm:$0xff]  ;;  %v19564_v54 = vand.u32 4294901760, %v19563_v47 }
0x1ed5   :  { %v30427_v56 = vsub.f32 %v19415_v46, %v30413_v5 }
0x1ed6   :  { %v30269_v0 = vand.u32 4294901760, %v18384_v57  ;;  %v18383_v1 = vmax.f32 %v18374_v59, 0.0  ;;  %v19570_v59 = vsub.f32 %v30402_v38, %v30417_v49 }
0x1ed7   :  { %v30438_v63 = vand.u32 4294901760, %v30427_v56 }
0x1ed8   :  { %v18511_v8 = vsub.f32 %v18384_v57, %v30269_v0  ;;  %v30275_v9 = vand.u32 4294901760, %v18383_v1  ;;  %26071 = vmatprep.subr.mxu0 %v30269_v0  ;;  %v30429_v57 = vand.u32 4294901760, %v19414_v53 }
0x1ed9   :  { %26072 = vmatpush3.msra.mxu0 %v30269_v0 }
0x1eda   :  { %v18518_v14 = vsub.f32 %v18383_v1, %v30275_v9  ;;  %26073 = vmatprep.subr.mxu0 %v30275_v9  ;;  %v18512_v20 = vand.u32 4294901760, %v18511_v8  ;;  %v19571_v1 = vand.u32 4294901760, %v19570_v59 }
0x1edb   :  { %26074 = vmatpush3.msra.mxu0 %v30275_v9 }
0x1edc   :  { %26085 = vmatprep.subr.mxu0 %v18511_v8  ;;  %26076 = vmatmul.mubr.f32.vlgmr.msra.gmra.mxu0 %v18475_v11  ;;  %v18513_v4 = vsub.f32 %v18511_v8, %v18512_v20  ;;  %v18519_v16 = vand.u32 4294901760, %v18518_v14 }
0x1edd   :  { %26086 = vmatpush3.msra.mxu0 %v18511_v8  ;;  %26089 = vmatprep.mubr.f32.mxu0 %v30248_v21 }
0x1ede   :  { %26087 = vmatprep.subr.mxu0 %v18518_v14  ;;  %v18514_v50 = vand.u32 4294901760, %v18513_v4  ;;  %v18520_v29 = vsub.f32 %v18518_v14, %v18519_v16 }
0x1edf   :  { %26088 = vmatpush3.msra.mxu0 %v18518_v14 }
0x1ee0   :  { %26078 = vmatprep.subr.mxu1 %v18514_v50  ;;  %26099 = vmatprep.subr.mxu0 %v18512_v20  ;;  %v18521_v18 = vand.u32 4294901760, %v18520_v29 }
0x1ee1   :  { %26079 = vmatpush3.msra.mxu1 %v18514_v50  ;;  %26090 = vmatmul.mubr.f32.vlgmr.msra.gmra.mxu0 %v30262_v15  ;;  %v19556_v15 = vsub.f32 %v30370_v39, %v30382_v58 }
0x1ee2   :  { %26100 = vmatpush3.msra.mxu0 %v18512_v20  ;;  %26080 = vmatprep.subr.mxu1 %v18521_v18 }
0x1ee3   :  { %26101 = vmatprep.subr.mxu0 %v18519_v16  ;;  %26081 = vmatpush3.msra.mxu1 %v18521_v18  ;;  %v19557_v61 = vand.u32 4294901760, %v19556_v15 }
0x1ee4   :  { %26102 = vmatpush3.msra.mxu0 %v18519_v16  ;;  %26083 = vmatmul.mubr.f32.vlgmr.msra.gmra.mxu1 %v30259_v48 }
0x1ee5   :  { %26092 = vmatprep.subr.mxu1 %v30269_v0  ;;  %26103 = vmatprep.mubr.f32.mxu0 %v30245_v33 }
0x1ee6   :  { %26113 = vmatprep.subr.mxu0 %v30269_v0  ;;  %26093 = vmatpush3.msra.mxu1 %v30269_v0 }
0x1ee7   :  { %26104 = vmatmul.mubr.f32.vlgmr.msra.gmra.mxu0 %v30259_v48  ;;  %26094 = vmatprep.subr.mxu1 %v30275_v9 }
0x1ee8   :  { %26114 = vmatpush3.msra.mxu0 %v30269_v0  ;;  %26095 = vmatpush3.msra.mxu1 %v30275_v9 }
0x1ee9   :  { %26115 = vmatprep.subr.mxu0 %v30275_v9  ;;  %26096 = vmatprep.mubr.f32.mxu1 %v18463_v25  ;;  %v19420_v25 = vld [vmem:[%s31082_s13 + $0x30] sm:$0xff] }
0x1eea   :  { %26116 = vmatpush3.msra.mxu0 %v30275_v9  ;;  %26097 = vmatmul.mubr.f32.vlgmr.msra.gmra.mxu1 %v18473_v43  ;;  %v30344_v42 = vand.u32 4294901760, %v19420_v25  ;;  %v30411_v43 = vsub.f32 %v19416_v45, %v30399_v24 }
0x1eeb   :  { %26106 = vmatprep.subr.mxu1 %v30269_v0  ;;  %26117 = vmatprep.mubr.f32.mxu0 %v18975_v26 }
0x1eec   :  { %26127 = vmatprep.subr.mxu0 %v18511_v8  ;;  %26107 = vmatpush3.msra.mxu1 %v30269_v0  ;;  %v30355_v36 = vsub.f32 %v19420_v25, %v30344_v42  ;;  %v30424_v55 = vand.u32 4294901760, %v30411_v43 }
0x1eed   :  { %26118 = vmatmul.mubr.f32.vlgmr.msra.gmra.mxu0 %v18985_v28  ;;  %26108 = vmatprep.subr.mxu1 %v30275_v9 }
0x1eee   :  { %26128 = vmatpush3.msra.mxu0 %v18511_v8  ;;  %26109 = vmatpush3.msra.mxu1 %v30275_v9  ;;  %v30367_v60 = vand.u32 4294901760, %v30355_v36  ;;  %v19577_v52 = vsub.f32 %v30411_v43, %v30424_v55 }
0x1eef   :  { %26129 = vmatprep.subr.mxu0 %v18518_v14  ;;  %26110 = vmatprep.mubr.f32.mxu1 %v30245_v33  ;;  %v19421_v33 = vld [vmem:[%s31082_s13 + $0x38] sm:$0xff] }
0x1ef0   :  { %26130 = vmatpush3.msra.mxu0 %v18518_v14  ;;  %26111 = vmatmul.mubr.f32.vlgmr.msra.gmra.mxu1 %v30259_v48  ;;  %v30336_v21 = vand.u32 4294901760, %v19421_v33  ;;  %v19549_v48 = vsub.f32 %v30355_v36, %v30367_v60  ;;  %v19578_v3 = vand.u32 4294901760, %v19577_v52 }
0x1ef1   :  { %26120 = vmatprep.subr.mxu1 %v18514_v50  ;;  %26131 = vmatprep.mubr.f32.mxu0 %v30285_v34 }
0x1ef2   :  { %26141 = vmatprep.subr.mxu0 %v18512_v20  ;;  %26121 = vmatpush3.msra.mxu1 %v18514_v50  ;;  %v30342_v37 = vsub.f32 %v19421_v33, %v30336_v21  ;;  %v19550_v17 = vand.u32 4294901760, %v19549_v48 }
0x1ef3   :  { %26132 = vmatmul.mubr.f32.vlgmr.msra.gmra.mxu0 %v30289_v22  ;;  %26122 = vmatprep.subr.mxu1 %v18521_v18 }
0x1ef4   :  { %26142 = vmatpush3.msra.mxu0 %v18512_v20  ;;  %26123 = vmatpush3.msra.mxu1 %v18521_v18  ;;  %v30352_v41 = vand.u32 4294901760, %v30342_v37 }
0x1ef5   :  { %26143 = vmatprep.subr.mxu0 %v18519_v16  ;;  %26124 = vmatprep.mubr.f32.mxu1 %v30272_v7 }
0x1ef6   :  { %26144 = vmatpush3.msra.mxu0 %v18519_v16  ;;  %26125 = vmatmul.mubr.f32.vlgmr.msra.gmra.mxu1 %v30279_v12  ;;  %v19542_v40 = vsub.f32 %v30342_v37, %v30352_v41 }
0x1ef7   :  { %26134 = vmatprep.subr.mxu1 %v30269_v0  ;;  %26138 = vmatprep.mubr.f32.mxu1 %v18973_v62 }
0x1ef8   :  { %26135 = vmatpush3.msra.mxu1 %v30269_v0  ;;  %26145 = vmatprep.mubr.f32.mxu0 %v30272_v7  ;;  %v19543_v2 = vand.u32 4294901760, %v19542_v40 }
0x1ef9   :  { %26136 = vmatprep.subr.mxu1 %v30275_v9  ;;  %26146 = vmatmul.mubr.f32.vlgmr.msra.gmra.mxu0 %v30279_v12 }
0x1efa   :  { %26137 = vmatpush3.msra.mxu1 %v30275_v9  ;;  %26155 = vmatprep.subr.mxu0 %v30336_v21 }
0x1efb   :  { %26139 = vmatmul.mubr.f32.vlgmr.msra.gmra.mxu1 %v18983_v51  ;;  %26148 = vmatprep.subr.mxu1 %v30269_v0 }
0x1efc   :  { %26149 = vmatpush3.msra.mxu1 %v30269_v0  ;;  %26152 = vmatprep.mubr.f32.mxu1 %v30272_v7  ;;  %v30441_v0 = vsub.f32 %v19414_v53, %v30429_v57  ;;  %v19584_v7 = vsub.f32 %v30427_v56, %v30438_v63 }
0x1efd   :  { %26150 = vmatprep.subr.mxu1 %v30275_v9  ;;  %26156 = vmatpush3.msra.mxu0 %v30336_v21 }
0x1efe   :  { %26151 = vmatpush3.msra.mxu1 %v30275_v9  ;;  %26157 = vmatprep.subr.mxu0 %v30344_v42  ;;  %v30448_v8 = vand.u32 4294901760, %v30441_v0  ;;  %v19585_v9 = vand.u32 4294901760, %v19584_v7 }
0x1eff   :  { %26153 = vmatmul.mubr.f32.vlgmr.msra.gmra.mxu1 %v30279_v12  ;;  %26158 = vmatpush3.msra.mxu0 %v30344_v42 }
0x1f00   :  { %26159 = vmatprep.subr.mxu0 %v30357_v32  ;;  %26174 = vmatprep.subr.mxu1 %v19543_v2  ;;  %v19591_v11 = vsub.f32 %v30441_v0, %v30448_v8 }
0x1f01   :  { %26160 = vmatpush3.msra.mxu0 %v30357_v32  ;;  %26175 = vmatpush3.msra.mxu1 %v19543_v2 }
0x1f02   :  { %26161 = vmatprep.subr.mxu0 %v30372_v27  ;;  %26176 = vmatprep.subr.mxu1 %v19550_v17  ;;  %v19592_v12 = vand.u32 4294901760, %v19591_v11 }
0x1f03   :  { %26162 = vmatpush3.msra.mxu0 %v30372_v27  ;;  %26177 = vmatpush3.msra.mxu1 %v19550_v17 }
0x1f04   :  { %26163 = vmatprep.subr.mxu0 %v30388_v23  ;;  %26178 = vmatprep.subr.mxu1 %v19557_v61 }
0x1f05   :  { %26164 = vmatpush3.msra.mxu0 %v30388_v23  ;;  %26179 = vmatpush3.msra.mxu1 %v19557_v61 }
0x1f06   :  { %26165 = vmatprep.subr.mxu0 %v30399_v24  ;;  %26180 = vmatprep.subr.mxu1 %v19564_v54 }
0x1f07   :  { %26166 = vmatpush3.msra.mxu0 %v30399_v24  ;;  %26181 = vmatpush3.msra.mxu1 %v19564_v54 }
0x1f08   :  { %26167 = vmatprep.subr.mxu0 %v30413_v5  ;;  %26182 = vmatprep.subr.mxu1 %v19571_v1 }
0x1f09   :  { %26168 = vmatpush3.msra.mxu0 %v30413_v5  ;;  %26183 = vmatpush3.msra.mxu1 %v19571_v1 }
0x1f0a   :  { %26169 = vmatprep.subr.mxu0 %v30429_v57  ;;  %26184 = vmatprep.subr.mxu1 %v19578_v3 }
0x1f0b   :  { %26170 = vmatpush3.msra.mxu0 %v30429_v57  ;;  %26185 = vmatpush3.msra.mxu1 %v19578_v3 }
0x1f0c   :  { %26193 = vmatprep.subr.mxu0 %v30342_v37  ;;  %26186 = vmatprep.subr.mxu1 %v19585_v9 }
0x1f0d   :  { %26187 = vmatpush3.msra.mxu1 %v19585_v9 }
0x1f0e   :  { %26188 = vmatprep.subr.mxu1 %v19592_v12 }
0x1f0f   :  { %26189 = vmatpush3.msra.mxu1 %v19592_v12 }
0x1f10   :  { %26212 = vmatprep.subr.mxu1 %v30336_v21 }
0x1f9c   :  { %v26077_v14 = vpop.f32.mrf.mxu0 }
0x1f9e   :  { %v18467_v20 = vpop.f32.mrf.mxu0 }
0x1fa1   :  { %v26091_v34 = vpop.f32.mrf.mxu0 }
0x1fa3   :  { %v18640_v4 = vpop.f32.mrf.mxu0 }
0x1fa4   :  { %v26084_v16 = vpop.f32.mrf.mxu1 }
0x1fa5   :  { %v18565_v22 = vadd.f32 %v26084_v16, %v26077_v14 }
0x1fa6   :  { %v18558_v50 = vpop.f32.mrf.mxu1 }
0x1fa7   :  { %v18648_v29 = vadd.f32 %v26091_v34, %v18565_v22  ;;  %v26105_v62 = vpop.f32.mrf.mxu0 }
0x1fa9   :  { %v30455_v18 = vpop.f32.mrf.mxu0 }
0x1faa   :  { %v26098_v51 = vpop.f32.mrf.mxu1 }
0x1fab   :  { %v18731_v13 = vadd.f32 %v26098_v51, %v18648_v29 }
0x1fac   :  { %v18722_v19 = vpop.f32.mrf.mxu1 }
0x1fad   :  { %v18814_v26 = vadd.f32 %v26105_v62, %v18731_v13  ;;  %v26119_v28 = vpop.f32.mrf.mxu0 }
0x1faf   :  { %v18977_v33 = vpop.f32.mrf.mxu0 }
0x1fb0   :  { %v26112_v25 = vpop.f32.mrf.mxu1 }
0x1fb1   :  { %v30457_v6 = vadd.f32 %v26112_v25, %v18814_v26 }
0x1fb2   :  { %v30459_v31 = vpop.f32.mrf.mxu1 }
0x1fb3   :  { %v26133_v40 = vpop.f32.mrf.mxu0 }
0x1fb5   :  { %v19150_v48 = vpop.f32.mrf.mxu0 }
0x1fb6   :  { %v26126_v30 = vpop.f32.mrf.mxu1 }
0x1fb7   :  { %v19075_v2 = vadd.f32 %v26126_v30, %v26119_v28 }
0x1fb8   :  { %v19068_v45 = vpop.f32.mrf.mxu1 }
0x1fb9   :  { %v19158_v17 = vadd.f32 %v26133_v40, %v19075_v2  ;;  %v19069_v15 = vadd.f32 %v19068_v45, %v18977_v33  ;;  %v26147_v47 = vpop.f32.mrf.mxu0  ;;  %v18559_v33 = vadd.f32 %v18558_v50, %v18467_v20 }
0x1fbb   :  { %v19151_v46 = vadd.f32 %v19150_v48, %v19069_v15  ;;  %v26140_v61 = vpop.f32.mrf.mxu1  ;;  %v19317_v1 = vpop.f32.mrf.mxu0  ;;  %v18641_v30 = vadd.f32 %v18640_v4, %v18559_v33  ;;  %v19413_v4 = vld [vmem:[%s31081_s12 + $0x38] sm:$0xff]  ;;  %v19407_v15 = vld [vmem:[%s31081_s12 + $0x8] sm:$0xff] }
0x1fbc   :  { %v19241_v53 = vadd.f32 %v26140_v61, %v19158_v17 }
0x1fbd   :  { %v19232_v54 = vpop.f32.mrf.mxu1  ;;  %v18723_v20 = vadd.f32 %v18722_v19, %v18641_v30  ;;  %v19410_v19 = vld [vmem:[%s31081_s12 + $0x20] sm:$0xff] }
0x1fbe   :  { %v19324_v59 = vadd.f32 %v26147_v47, %v19241_v53  ;;  %v19233_v52 = vadd.f32 %v19232_v54, %v19151_v46  ;;  %v30538_v48 = vand.u32 4294901760, %v19410_v19  ;;  %v30590_v54 = vand.u32 4294901760, %v19407_v15 }
0x1fbf   :  { %v26154_v3 = vpop.f32.mrf.mxu1  ;;  %v18808_v50 = vadd.f32 %v30455_v18, %v18723_v20  ;;  %v20613_v20 = vld [vmem:[%s31084_s15 + $0x38] sm:$0xff] }
0x1fc0   :  { %v19318_v7 = vadd.f32 %v19317_v1, %v19233_v52  ;;  %v19403_v9 = vadd.f32 %v26154_v3, %v19324_v59 }
0x1fc1   :  { %v19396_v11 = vpop.f32.mrf.mxu1  ;;  %v18887_v2 = vadd.f32 %v30459_v31, %v18808_v50 }
0x1fc2   :  { %v19427_v12 = vsel %vm19422_vm4, %v19403_v9, 0  ;;  %v19397_v14 = vadd.f32 %v19396_v11, %v19318_v7 }
0x1fc3   :  { %v30462_v34 = vand.u32 4294901760, %v19427_v12 }
0x1fc4   :  { %v19424_v16 = vsel %vm19422_vm4, %v19397_v14, 0 }
0x1fc5   :  { %v30466_v22 = vsub.f32 %v19427_v12, %v30462_v34  ;;  %v30468_v29 = vand.u32 4294901760, %v19424_v16 }
0x1fc7   :  { %v19514_v62 = vand.u32 4294901760, %v30466_v22  ;;  %v19503_v51 = vsub.f32 %v19424_v16, %v30468_v29  ;;  %26190 = vmatprep.mubr.f32.mxu1 %v30468_v29 }
0x1fc8   :  { %26191 = vmatmul.mubr.f32.vlgmr.msra.gmra.mxu1 %v30462_v34 }
0x1fc9   :  { %26213 = vmatpush3.msra.mxu1 %v30336_v21  ;;  %v19504_v13 = vand.u32 4294901760, %v19503_v51  ;;  %v19515_v26 = vsub.f32 %v30466_v22, %v19514_v62 }
0x1fca   :  { %26214 = vmatprep.subr.mxu1 %v30344_v42 }
0x1fcb   :  { %26215 = vmatpush3.msra.mxu1 %v30344_v42  ;;  %26228 = vmatprep.mubr.f32.mxu1 %v19504_v13  ;;  %v19505_v28 = vsub.f32 %v19503_v51, %v19504_v13  ;;  %v19516_v40 = vand.u32 4294901760, %v19515_v26 }
0x1fcc   :  { %26216 = vmatprep.subr.mxu1 %v30357_v32 }
0x1fcd   :  { %26217 = vmatpush3.msra.mxu1 %v30357_v32  ;;  %v19506_v25 = vand.u32 4294901760, %v19505_v28 }
0x1fce   :  { %26218 = vmatprep.subr.mxu1 %v30372_v27 }
0x1fcf   :  { %26219 = vmatpush3.msra.mxu1 %v30372_v27  ;;  %26171 = vmatprep.mubr.f32.mxu0 %v19506_v25 }
0x1fd0   :  { %26220 = vmatprep.subr.mxu1 %v30388_v23  ;;  %26172 = vmatmul.mubr.f32.vlgmr.msra.gmra.mxu0 %v19516_v40 }
0x1fd1   :  { %26194 = vmatpush3.msra.mxu0 %v30342_v37  ;;  %26221 = vmatpush3.msra.mxu1 %v30388_v23  ;;  %v30499_v37 = vand.u32 4294901760, %v19413_v4 }
0x1fd2   :  { %26195 = vmatprep.subr.mxu0 %v30355_v36  ;;  %26209 = vmatprep.mubr.f32.mxu0 %v19503_v51  ;;  %v20013_v51 = vsel %vm19422_vm4, %v30457_v6, 0 }
0x1fd3   :  { %26222 = vmatprep.subr.mxu1 %v30399_v24  ;;  %26196 = vmatpush3.msra.mxu0 %v30355_v36  ;;  %v19412_v36 = vld [vmem:[%s31081_s12 + $0x30] sm:$0xff]  ;;  %v30518_v18 = vsub.f32 %v19413_v4, %v30499_v37  ;;  %v30656_v26 = vand.u32 4294901760, %v20013_v51  ;;  %v30756_v4 = vand.u32 4294901760, %v20613_v20 }
0x1fd4   :  { %26223 = vmatpush3.msra.mxu1 %v30399_v24  ;;  %26197 = vmatprep.subr.mxu0 %v30370_v39 }
0x1fd5   :  { %26224 = vmatprep.subr.mxu1 %v30413_v5  ;;  %26198 = vmatpush3.msra.mxu0 %v30370_v39  ;;  %v19411_v39 = vld [vmem:[%s31081_s12 + $0x28] sm:$0xff] }
0x1fd6   :  { %26225 = vmatpush3.msra.mxu1 %v30413_v5  ;;  %26199 = vmatprep.subr.mxu0 %v30385_v44 }
0x1fd7   :  { %26226 = vmatprep.subr.mxu1 %v30429_v57  ;;  %26200 = vmatpush3.msra.mxu0 %v30385_v44  ;;  %v30513_v44 = vand.u32 4294901760, %v19412_v36 }
0x1fd8   :  { %26227 = vmatpush3.msra.mxu1 %v30429_v57  ;;  %26201 = vmatprep.subr.mxu0 %v30402_v38 }
0x1fd9   :  { %26229 = vmatmul.mubr.f32.vlgmr.msra.gmra.mxu1 %v19514_v62  ;;  %26250 = vmatprep.subr.mxu1 %v30336_v21  ;;  %v30536_v31 = vsub.f32 %v19412_v36, %v30513_v44  ;;  %v30762_v36 = vsub.f32 %v20613_v20, %v30756_v4 }
0x1fda   :  { %26202 = vmatpush3.msra.mxu0 %v30402_v38  ;;  %26251 = vmatpush3.msra.mxu1 %v30336_v21  ;;  %v30526_v21 = vand.u32 4294901760, %v19411_v39  ;;  %v19409_v38 = vld [vmem:[%s31081_s12 + $0x18] sm:$0xff] }
0x1fdb   :  { %26266 = vmatprep.mubr.f32.mxu1 %v30468_v29  ;;  %26203 = vmatprep.subr.mxu0 %v30411_v43  ;;  %v30551_v45 = vand.u32 4294901760, %v19409_v38  ;;  %v30561_v17 = vand.u32 4294901760, %v30536_v31 }
0x1fdc   :  { %26252 = vmatprep.subr.mxu1 %v30344_v42  ;;  %26204 = vmatpush3.msra.mxu0 %v30411_v43  ;;  %v20010_v43 = vsel %vm19422_vm4, %v18887_v2, 0  ;;  %v20610_v2 = vld [vmem:[%s31084_s15 + $0x20] sm:$0xff] }
0x1fdd   :  { %26253 = vmatpush3.msra.mxu1 %v30344_v42  ;;  %26205 = vmatprep.subr.mxu0 %v30427_v56  ;;  %v30543_v42 = vand.u32 4294901760, %v30518_v18  ;;  %v30569_v46 = vand.u32 4294901760, %v20010_v43  ;;  %v30583_v53 = vsub.f32 %v19409_v38, %v30551_v45 }
0x1fde   :  { %26254 = vmatprep.subr.mxu1 %v30357_v32  ;;  %26206 = vmatpush3.msra.mxu0 %v30427_v56  ;;  %v30549_v56 = vsub.f32 %v19411_v39, %v30526_v21  ;;  %v20611_v39 = vld [vmem:[%s31084_s15 + $0x28] sm:$0xff] }
0x1fdf   :  { %26255 = vmatpush3.msra.mxu1 %v30357_v32  ;;  %26207 = vmatprep.subr.mxu0 %v30441_v0  ;;  %v19408_v32 = vld [vmem:[%s31081_s12 + $0x10] sm:$0xff]  ;;  %v30600_v52 = vsub.f32 %v20010_v43, %v30569_v46  ;;  %v30614_v7 = vand.u32 4294901760, %v30583_v53 }
0x1fe0   :  { %26256 = vmatprep.subr.mxu1 %v30372_v27  ;;  %26208 = vmatpush3.msra.mxu0 %v30441_v0  ;;  %v30564_v0 = vsub.f32 %v19410_v19, %v30538_v48  ;;  %v30575_v61 = vand.u32 4294901760, %v19408_v32  ;;  %v30580_v47 = vand.u32 4294901760, %v30549_v56  ;;  %v30777_v19 = vand.u32 4294901760, %v20611_v39 }
0x1fe1   :  { %26257 = vmatpush3.msra.mxu1 %v30372_v27  ;;  %26210 = vmatmul.mubr.f32.vlgmr.msra.gmra.mxu0 %v30466_v22  ;;  %v20128_v27 = vsub.f32 %v30518_v18, %v30543_v42  ;;  %v20090_v11 = vand.u32 4294901760, %v30600_v52  ;;  %v20156_v14 = vsub.f32 %v30583_v53, %v30614_v7 }
0x1fe2   :  { %26231 = vmatprep.subr.mxu0 %v30352_v41  ;;  %26258 = vmatprep.subr.mxu1 %v30388_v23  ;;  %v30597_v59 = vand.u32 4294901760, %v30564_v0  ;;  %v30605_v1 = vsub.f32 %v19408_v32, %v30575_v61  ;;  %v20142_v3 = vsub.f32 %v30549_v56, %v30580_v47 }
0x1fe3   :  { %26232 = vmatpush3.msra.mxu0 %v30352_v41  ;;  %26247 = vmatprep.mubr.f32.mxu0 %v30468_v29  ;;  %v19406_v41 = vld [vmem:[%s31081_s12] sm:$0xff]  ;;  %v20157_v13 = vand.u32 4294901760, %v20156_v14 }
0x1fe4   :  { %26259 = vmatpush3.msra.mxu1 %v30388_v23  ;;  %26233 = vmatprep.subr.mxu0 %v30367_v60  ;;  %v20135_v23 = vsub.f32 %v30536_v31, %v30561_v17  ;;  %v20149_v9 = vsub.f32 %v30564_v0, %v30597_v59  ;;  %v30628_v12 = vand.u32 4294901760, %v30605_v1 }
0x1fe5   :  { %26260 = vmatprep.subr.mxu1 %v30399_v24  ;;  %26234 = vmatpush3.msra.mxu0 %v30367_v60  ;;  %v20129_v60 = vand.u32 4294901760, %v20128_v27 }
0x1fe6   :  { %26261 = vmatpush3.msra.mxu1 %v30399_v24  ;;  %26235 = vmatprep.subr.mxu0 %v30382_v58  ;;  %v30607_v24 = vand.u32 4294901760, %v19406_v41  ;;  %v20150_v22 = vand.u32 4294901760, %v20149_v9  ;;  %v20163_v29 = vsub.f32 %v30605_v1, %v30628_v12 }
0x1fe7   :  { %26262 = vmatprep.subr.mxu1 %v30413_v5  ;;  %26236 = vmatpush3.msra.mxu0 %v30382_v58  ;;  %v30619_v58 = vsub.f32 %v19407_v15, %v30590_v54 }
0x1fe8   :  { %26263 = vmatpush3.msra.mxu1 %v30413_v5  ;;  %26237 = vmatprep.subr.mxu0 %v30397_v10  ;;  %v20136_v5 = vand.u32 4294901760, %v20135_v23  ;;  %v20164_v6 = vand.u32 4294901760, %v20163_v29 }
0x1fe9   :  { %26264 = vmatprep.subr.mxu1 %v30429_v57  ;;  %26238 = vmatpush3.msra.mxu0 %v30397_v10  ;;  %v30631_v10 = vsub.f32 %v19406_v41, %v30607_v24  ;;  %v30639_v16 = vand.u32 4294901760, %v30619_v58 }
0x1fea   :  { %26265 = vmatpush3.msra.mxu1 %v30429_v57  ;;  %26239 = vmatprep.subr.mxu0 %v30417_v49  ;;  %v20143_v57 = vand.u32 4294901760, %v20142_v3 }
0x1feb   :  { %26267 = vmatmul.mubr.f32.vlgmr.msra.gmra.mxu1 %v30462_v34  ;;  %26288 = vmatprep.subr.mxu1 %v20129_v60  ;;  %v30647_v62 = vand.u32 4294901760, %v30631_v10 }
0x1fec   :  { %26240 = vmatpush3.msra.mxu0 %v30417_v49  ;;  %26289 = vmatpush3.msra.mxu1 %v20129_v60  ;;  %v20091_v49 = vsub.f32 %v30600_v52, %v20090_v11  ;;  %v20606_v60 = vld [vmem:[%s31084_s15] sm:$0xff] }
0x1fed   :  { %26304 = vmatprep.mubr.f32.mxu1 %v30569_v46  ;;  %26241 = vmatprep.subr.mxu0 %v30424_v55 }
0x1fee   :  { %26290 = vmatprep.subr.mxu1 %v20136_v5  ;;  %26242 = vmatpush3.msra.mxu0 %v30424_v55  ;;  %v20170_v55 = vsub.f32 %v30619_v58, %v30639_v16  ;;  %v20092_v28 = vand.u32 4294901760, %v20091_v49 }
0x1fef   :  { %26291 = vmatpush3.msra.mxu1 %v20136_v5  ;;  %26243 = vmatprep.subr.mxu0 %v30438_v63 }
0x1ff0   :  { %26292 = vmatprep.subr.mxu1 %v20143_v57  ;;  %26244 = vmatpush3.msra.mxu0 %v30438_v63  ;;  %v20177_v63 = vsub.f32 %v30631_v10, %v30647_v62  ;;  %v20171_v33 = vand.u32 4294901760, %v20170_v55 }
0x1ff1   :  { %26293 = vmatpush3.msra.mxu1 %v20143_v57  ;;  %26245 = vmatprep.subr.mxu0 %v30448_v8 }
0x1ff2   :  { %26294 = vmatprep.subr.mxu1 %v20150_v22  ;;  %26246 = vmatpush3.msra.mxu0 %v30448_v8  ;;  %v30665_v8 = vsub.f32 %v20013_v51, %v30656_v26 }
0x1ff3   :  { %26295 = vmatpush3.msra.mxu1 %v20150_v22  ;;  %26248 = vmatmul.mubr.f32.vlgmr.msra.gmra.mxu0 %v30462_v34  ;;  %v20178_v34 = vand.u32 4294901760, %v20177_v63 }
0x1ff4   :  { %26269 = vmatprep.subr.mxu0 %v30499_v37  ;;  %26296 = vmatprep.subr.mxu1 %v20157_v13  ;;  %v20100_v25 = vand.u32 4294901760, %v30665_v8 }
0x1ff5   :  { %26270 = vmatpush3.msra.mxu0 %v30499_v37  ;;  %26285 = vmatprep.mubr.f32.mxu0 %v20092_v28 }
0x1ff6   :  { %26297 = vmatpush3.msra.mxu1 %v20157_v13  ;;  %26271 = vmatprep.subr.mxu0 %v30513_v44  ;;  %v20101_v40 = vsub.f32 %v30665_v8, %v20100_v25 }
0x1ff7   :  { %26298 = vmatprep.subr.mxu1 %v20164_v6  ;;  %26272 = vmatpush3.msra.mxu0 %v30513_v44 }
0x1ff8   :  { %26299 = vmatpush3.msra.mxu1 %v20164_v6  ;;  %26273 = vmatprep.subr.mxu0 %v30526_v21  ;;  %v20102_v30 = vand.u32 4294901760, %v20101_v40 }
0x1ff9   :  { %26300 = vmatprep.subr.mxu1 %v20171_v33  ;;  %26274 = vmatpush3.msra.mxu0 %v30526_v21 }
0x1ffa   :  { %26301 = vmatpush3.msra.mxu1 %v20171_v33  ;;  %26275 = vmatprep.subr.mxu0 %v30538_v48 }
0x1ffb   :  { %26302 = vmatprep.subr.mxu1 %v20178_v34  ;;  %26276 = vmatpush3.msra.mxu0 %v30538_v48 }
0x1ffc   :  { %26303 = vmatpush3.msra.mxu1 %v20178_v34  ;;  %26277 = vmatprep.subr.mxu0 %v30551_v45 }
0x1ffd   :  { %26305 = vmatmul.mubr.f32.vlgmr.msra.gmra.mxu1 %v30656_v26  ;;  %26326 = vmatprep.subr.mxu1 %v30499_v37 }
0x1ffe   :  { %26278 = vmatpush3.msra.mxu0 %v30551_v45  ;;  %26327 = vmatpush3.msra.mxu1 %v30499_v37 }
0x1fff   :  { %26342 = vmatprep.mubr.f32.mxu1 %v20090_v11  ;;  %26279 = vmatprep.subr.mxu0 %v30575_v61 }
0x2000   :  { %26328 = vmatprep.subr.mxu1 %v30513_v44  ;;  %26280 = vmatpush3.msra.mxu0 %v30575_v61 }
0x2001   :  { %26329 = vmatpush3.msra.mxu1 %v30513_v44  ;;  %26281 = vmatprep.subr.mxu0 %v30590_v54 }
0x2002   :  { %26330 = vmatprep.subr.mxu1 %v30526_v21  ;;  %26282 = vmatpush3.msra.mxu0 %v30590_v54 }
0x2003   :  { %26331 = vmatpush3.msra.mxu1 %v30526_v21  ;;  %26283 = vmatprep.subr.mxu0 %v30607_v24 }
0x2004   :  { %26332 = vmatprep.subr.mxu1 %v30538_v48  ;;  %26284 = vmatpush3.msra.mxu0 %v30607_v24 }
0x2005   :  { %26333 = vmatpush3.msra.mxu1 %v30538_v48  ;;  %26286 = vmatmul.mubr.f32.vlgmr.msra.gmra.mxu0 %v20102_v30 }
0x2006   :  { %26307 = vmatprep.subr.mxu0 %v30518_v18  ;;  %26334 = vmatprep.subr.mxu1 %v30551_v45 }
0x2007   :  { %26308 = vmatpush3.msra.mxu0 %v30518_v18  ;;  %26323 = vmatprep.mubr.f32.mxu0 %v30600_v52 }
0x2008   :  { %26335 = vmatpush3.msra.mxu1 %v30551_v45  ;;  %26309 = vmatprep.subr.mxu0 %v30536_v31 }
0x2009   :  { %26336 = vmatprep.subr.mxu1 %v30575_v61  ;;  %26310 = vmatpush3.msra.mxu0 %v30536_v31  ;;  %v30790_v31 = vsub.f32 %v20611_v39, %v30777_v19 }
0x200a   :  { %26337 = vmatpush3.msra.mxu1 %v30575_v61  ;;  %26311 = vmatprep.subr.mxu0 %v30549_v56 }
0x200b   :  { %26338 = vmatprep.subr.mxu1 %v30590_v54  ;;  %26312 = vmatpush3.msra.mxu0 %v30549_v56 }
0x200c   :  { %26339 = vmatpush3.msra.mxu1 %v30590_v54  ;;  %26313 = vmatprep.subr.mxu0 %v30564_v0 }
0x200d   :  { %26340 = vmatprep.subr.mxu1 %v30607_v24  ;;  %26314 = vmatpush3.msra.mxu0 %v30564_v0  ;;  %v20608_v0 = vld [vmem:[%s31084_s15 + $0x10] sm:$0xff] }
0x200e   :  { %26341 = vmatpush3.msra.mxu1 %v30607_v24  ;;  %26315 = vmatprep.subr.mxu0 %v30583_v53 }
0x200f   :  { %26343 = vmatmul.mubr.f32.vlgmr.msra.gmra.mxu1 %v20100_v25  ;;  %26364 = vmatprep.subr.mxu1 %v30499_v37 }
0x2010   :  { %26316 = vmatpush3.msra.mxu0 %v30583_v53  ;;  %26365 = vmatpush3.msra.mxu1 %v30499_v37  ;;  %v20612_v37 = vld [vmem:[%s31084_s15 + $0x30] sm:$0xff]  ;;  %v20607_v53 = vld [vmem:[%s31084_s15 + $0x8] sm:$0xff] }
0x2011   :  { %26380 = vmatprep.mubr.f32.mxu1 %v30569_v46  ;;  %26317 = vmatprep.subr.mxu0 %v30605_v1  ;;  %v30764_v50 = vand.u32 4294901760, %v20612_v37 }
0x2012   :  { %26366 = vmatprep.subr.mxu1 %v30513_v44  ;;  %26318 = vmatpush3.msra.mxu0 %v30605_v1 }
0x2013   :  { %26367 = vmatpush3.msra.mxu1 %v30513_v44  ;;  %26319 = vmatprep.subr.mxu0 %v30619_v58  ;;  %v30772_v44 = vand.u32 4294901760, %v30762_v36  ;;  %v30775_v18 = vsub.f32 %v20612_v37, %v30764_v50 }
0x2014   :  { %26368 = vmatprep.subr.mxu1 %v30526_v21  ;;  %26320 = vmatpush3.msra.mxu0 %v30619_v58 }
0x2015   :  { %26369 = vmatpush3.msra.mxu1 %v30526_v21  ;;  %26321 = vmatprep.subr.mxu0 %v30631_v10  ;;  %v20740_v21 = vsub.f32 %v30762_v36, %v30772_v44  ;;  %v30787_v38 = vand.u32 4294901760, %v30775_v18 }
0x2016   :  { %26370 = vmatprep.subr.mxu1 %v30538_v48  ;;  %26322 = vmatpush3.msra.mxu0 %v30631_v10 }
0x2017   :  { %26371 = vmatpush3.msra.mxu1 %v30538_v48  ;;  %26324 = vmatmul.mubr.f32.vlgmr.msra.gmra.mxu0 %v30665_v8  ;;  %v30792_v48 = vand.u32 4294901760, %v20610_v2  ;;  %v20741_v43 = vand.u32 4294901760, %v20740_v21  ;;  %v20747_v56 = vsub.f32 %v30775_v18, %v30787_v38 }
0x2018   :  { %26345 = vmatprep.subr.mxu0 %v30543_v42  ;;  %26372 = vmatprep.subr.mxu1 %v30551_v45 }
0x2019   :  { %26346 = vmatpush3.msra.mxu0 %v30543_v42  ;;  %26361 = vmatprep.mubr.f32.mxu0 %v30569_v46  ;;  %v20609_v42 = vld [vmem:[%s31084_s15 + $0x18] sm:$0xff]  ;;  %v30805_v32 = vsub.f32 %v20610_v2, %v30792_v48  ;;  %v20748_v15 = vand.u32 4294901760, %v20747_v56 }
0x201a   :  { %26373 = vmatpush3.msra.mxu1 %v30551_v45  ;;  %26347 = vmatprep.subr.mxu0 %v30561_v17  ;;  %v30802_v45 = vand.u32 4294901760, %v30790_v31 }
0x201b   :  { %26374 = vmatprep.subr.mxu1 %v30575_v61  ;;  %26348 = vmatpush3.msra.mxu0 %v30561_v17  ;;  %v30808_v17 = vand.u32 4294901760, %v20609_v42  ;;  %v30817_v27 = vand.u32 4294901760, %v30805_v32 }
0x201c   :  { %26375 = vmatpush3.msra.mxu1 %v30575_v61  ;;  %26349 = vmatprep.subr.mxu0 %v30580_v47  ;;  %v20754_v46 = vsub.f32 %v30790_v31, %v30802_v45  ;;  %v30819_v61 = vand.u32 4294901760, %v20608_v0 }
0x201d   :  { %26376 = vmatprep.subr.mxu1 %v30590_v54  ;;  %26350 = vmatpush3.msra.mxu0 %v30580_v47  ;;  %v30822_v47 = vsub.f32 %v20609_v42, %v30808_v17 }
0x201e   :  { %26377 = vmatpush3.msra.mxu1 %v30590_v54  ;;  %26351 = vmatprep.subr.mxu0 %v30597_v59  ;;  %v20755_v41 = vand.u32 4294901760, %v20754_v46  ;;  %v20761_v54 = vsub.f32 %v30805_v32, %v30817_v27  ;;  %v30831_v23 = vsub.f32 %v20608_v0, %v30819_v61 }
0x201f   :  { %26378 = vmatprep.subr.mxu1 %v30607_v24  ;;  %26352 = vmatpush3.msra.mxu0 %v30597_v59  ;;  %v30833_v59 = vand.u32 4294901760, %v20607_v53  ;;  %v30837_v52 = vand.u32 4294901760, %v30822_v47 }
0x2020   :  { %26379 = vmatpush3.msra.mxu1 %v30607_v24  ;;  %26353 = vmatprep.subr.mxu0 %v30614_v7  ;;  %v20762_v1 = vand.u32 4294901760, %v20761_v54  ;;  %v30844_v24 = vand.u32 4294901760, %v30831_v23 }
0x2021   :  { %26381 = vmatmul.mubr.f32.vlgmr.msra.gmra.mxu1 %v30656_v26  ;;  %26354 = vmatpush3.msra.mxu0 %v30614_v7  ;;  %v30847_v3 = vsub.f32 %v20607_v53, %v30833_v59  ;;  %v30849_v7 = vand.u32 4294901760, %v20606_v60  ;;  %v20768_v58 = vsub.f32 %v30822_v47, %v30837_v52 }
0x2022   :  { %26355 = vmatprep.subr.mxu0 %v30628_v12  ;;  %26402 = vmatprep.subr.mxu1 %v20741_v43  ;;  %v20775_v5 = vsub.f32 %v30831_v23, %v30844_v24 }
0x2023   :  { %26356 = vmatpush3.msra.mxu0 %v30628_v12  ;;  %26403 = vmatpush3.msra.mxu1 %v20741_v43  ;;  %v30858_v9 = vand.u32 4294901760, %v30847_v3  ;;  %v30861_v11 = vsub.f32 %v20606_v60, %v30849_v7  ;;  %v20769_v12 = vand.u32 4294901760, %v20768_v58 }
0x2024   :  { %26357 = vmatprep.subr.mxu0 %v30639_v16  ;;  %26404 = vmatprep.subr.mxu1 %v20748_v15  ;;  %v20776_v10 = vand.u32 4294901760, %v20775_v5 }
0x2025   :  { %26358 = vmatpush3.msra.mxu0 %v30639_v16  ;;  %26405 = vmatpush3.msra.mxu1 %v20748_v15  ;;  %v20782_v57 = vsub.f32 %v30847_v3, %v30858_v9  ;;  %v30868_v14 = vand.u32 4294901760, %v30861_v11 }
0x2026   :  { %26359 = vmatprep.subr.mxu0 %v30647_v62  ;;  %26406 = vmatprep.subr.mxu1 %v20755_v41 }
0x2027   :  { %26360 = vmatpush3.msra.mxu0 %v30647_v62  ;;  %26407 = vmatpush3.msra.mxu1 %v20755_v41  ;;  %v20783_v16 = vand.u32 4294901760, %v20782_v57  ;;  %v20789_v22 = vsub.f32 %v30861_v11, %v30868_v14 }
0x2028   :  { %26362 = vmatmul.mubr.f32.vlgmr.msra.gmra.mxu0 %v30656_v26  ;;  %26383 = vmatprep.subr.mxu0 %v30756_v4 }
0x2029   :  { %26384 = vmatpush3.msra.mxu0 %v30756_v4  ;;  %26408 = vmatprep.subr.mxu1 %v20762_v1  ;;  %v20790_v49 = vand.u32 4294901760, %v20789_v22 }
0x202a   :  { %26385 = vmatprep.subr.mxu0 %v30764_v50  ;;  %26409 = vmatpush3.msra.mxu1 %v20762_v1 }
0x202b   :  { %26386 = vmatpush3.msra.mxu0 %v30764_v50  ;;  %26410 = vmatprep.subr.mxu1 %v20769_v12 }
0x202c   :  { %26387 = vmatprep.subr.mxu0 %v30777_v19  ;;  %26411 = vmatpush3.msra.mxu1 %v20769_v12 }
0x202d   :  { %26388 = vmatpush3.msra.mxu0 %v30777_v19  ;;  %26412 = vmatprep.subr.mxu1 %v20776_v10 }
0x202e   :  { %26389 = vmatprep.subr.mxu0 %v30792_v48  ;;  %26413 = vmatpush3.msra.mxu1 %v20776_v10 }
0x202f   :  { %26390 = vmatpush3.msra.mxu0 %v30792_v48  ;;  %26414 = vmatprep.subr.mxu1 %v20783_v16 }
0x2030   :  { %26391 = vmatprep.subr.mxu0 %v30808_v17  ;;  %26415 = vmatpush3.msra.mxu1 %v20783_v16 }
0x2031   :  { %26392 = vmatpush3.msra.mxu0 %v30808_v17  ;;  %26416 = vmatprep.subr.mxu1 %v20790_v49 }
0x2032   :  { %26393 = vmatprep.subr.mxu0 %v30819_v61  ;;  %26417 = vmatpush3.msra.mxu1 %v20790_v49 }
0x2033   :  { %26394 = vmatpush3.msra.mxu0 %v30819_v61  ;;  %26440 = vmatprep.subr.mxu1 %v30756_v4 }
0x2034   :  { %26395 = vmatprep.subr.mxu0 %v30833_v59 }
0x2035   :  { %26396 = vmatpush3.msra.mxu0 %v30833_v59 }
0x2036   :  { %26397 = vmatprep.subr.mxu0 %v30849_v7 }
0x2037   :  { %26398 = vmatpush3.msra.mxu0 %v30849_v7 }
0x2038   :  { %26421 = vmatprep.subr.mxu0 %v30762_v36 }
0x2088   :  { %v26192_v62 = vpop.f32.mrf.mxu1 }
0x208a   :  { %v19629_v55 = vpop.f32.mrf.mxu1 }
0x2090   :  { %v26173_v29 = vpop.f32.mrf.mxu0 }
0x2091   :  { %v19636_v26 = vadd.f32 %v26192_v62, %v26173_v29 }
0x2092   :  { %v19508_v51 = vpop.f32.mrf.mxu0 }
0x2093   :  { %v19630_v63 = vadd.f32 %v19629_v55, %v19508_v51  ;;  %v22281_v51 = vld [vmem:[#allocation19] ss:$0 sm:$0xff] }
0x2099   :  { %v26230_v28 = vpop.f32.mrf.mxu1 }
0x209b   :  { %v19811_v25 = vpop.f32.mrf.mxu1 }
0x20a1   :  { %v26211_v13 = vpop.f32.mrf.mxu0 }
0x20a2   :  { %v19731_v33 = vadd.f32 %v26211_v13, %v19636_v26 }
0x20a3   :  { %v19723_v6 = vpop.f32.mrf.mxu0 }
0x20a4   :  { %v19724_v34 = vadd.f32 %v19723_v6, %v19630_v63  ;;  %v19820_v40 = vadd.f32 %v26230_v28, %v19731_v33 }
0x20a6   :  { %v19812_v39 = vadd.f32 %v19811_v25, %v19724_v34 }
0x20ab   :  { %v26268_v30 = vpop.f32.mrf.mxu1 }
0x20ad   :  { %v19999_v42 = vpop.f32.mrf.mxu1 }
0x20b3   :  { %v26249_v8 = vpop.f32.mrf.mxu0 }
0x20b4   :  { %v19921_v37 = vadd.f32 %v26249_v8, %v19820_v40 }
0x20b5   :  { %v19914_v20 = vpop.f32.mrf.mxu0 }
0x20b6   :  { %v19915_v21 = vadd.f32 %v19914_v20, %v19812_v39  ;;  %v20006_v43 = vadd.f32 %v26268_v30, %v19921_v37 }
0x20b8   :  { %v20000_v46 = vadd.f32 %v19999_v42, %v19915_v21 }
0x20bd   :  { %v26306_v56 = vpop.f32.mrf.mxu1 }
0x20bf   :  { %v20215_v54 = vpop.f32.mrf.mxu1 }
0x20c5   :  { %v26287_v2 = vpop.f32.mrf.mxu0 }
0x20c6   :  { %v20105_v15 = vadd.f32 %v26287_v2, %v20006_v43 }
0x20c7   :  { %v20094_v0 = vpop.f32.mrf.mxu0 }
0x20c8   :  { %v20095_v41 = vadd.f32 %v20094_v0, %v20000_v46  ;;  %v20222_v60 = vadd.f32 %v26306_v56, %v20105_v15  ;;  %v22282_v46 = vld [vmem:[#allocation20] ss:$0 sm:$0xff] }
0x20ca   :  { %v20216_v12 = vadd.f32 %v20215_v54, %v20095_v41 }
0x20cf   :  { %v26344_v1 = vpop.f32.mrf.mxu1 }
0x20d1   :  { %v20397_v57 = vpop.f32.mrf.mxu1 }
0x20d7   :  { %v26325_v53 = vpop.f32.mrf.mxu0 }
0x20d8   :  { %v20317_v5 = vadd.f32 %v26325_v53, %v20222_v60 }
0x20d9   :  { %v20309_v58 = vpop.f32.mrf.mxu0 }
0x20da   :  { %v20310_v10 = vadd.f32 %v20309_v58, %v20216_v12  ;;  %v20406_v16 = vadd.f32 %v26344_v1, %v20317_v5 }
0x20dc   :  { %v20398_v62 = vadd.f32 %v20397_v57, %v20310_v10 }
0x20e1   :  { %v26382_v22 = vpop.f32.mrf.mxu1 }
0x20e3   :  { %v20585_v28 = vpop.f32.mrf.mxu1 }
0x20e8   :  { %v26363_v49 = vpop.f32.mrf.mxu0 }
0x20e9   :  { %v20507_v29 = vadd.f32 %v26363_v49, %v20406_v16 }
0x20ea   :  { %v20500_v13 = vpop.f32.mrf.mxu0 }
0x20eb   :  { %v20592_v55 = vadd.f32 %v26382_v22, %v20507_v29  ;;  %v20501_v26 = vadd.f32 %v20500_v13, %v20398_v62 }
0x20ed   :  { %v20603_v6 = vadd.f32 %v22281_v51, %v20592_v55  ;;  %v20586_v63 = vadd.f32 %v20585_v28, %v20501_v26 }
0x20ef   :  { %v20605_v33 = vmax.f32 %v20603_v6, 0.0  ;;  %v20602_v8 = vadd.f32 %v22281_v51, %v20586_v63 }
0x20f1   :  { %v20625_v34 = vsel %vm19422_vm4, %v20605_v33, 0  ;;  %v20604_v25 = vmax.f32 %v20602_v8, 0.0 }
0x20f2   :  { %v30876_v40 = vand.u32 4294901760, %v20625_v34 }
0x20f3   :  { %v20622_v30 = vsel %vm19422_vm4, %v20604_v25, 0 }
0x20f4   :  { %v20711_v20 = vsub.f32 %v20625_v34, %v30876_v40  ;;  %v20700_v37 = vand.u32 4294901760, %v20622_v30 }
0x20f6   :  { %v20712_v39 = vand.u32 4294901760, %v20711_v20  ;;  %26418 = vmatprep.mubr.f32.mxu1 %v20700_v37  ;;  %v20701_v2 = vsub.f32 %v20622_v30, %v20700_v37 }
0x20f7   :  { %26419 = vmatmul.mubr.f32.vlgmr.msra.gmra.mxu1 %v30876_v40 }
0x20f8   :  { %26441 = vmatpush3.msra.mxu1 %v30756_v4  ;;  %v20702_v21 = vand.u32 4294901760, %v20701_v2  ;;  %v20713_v42 = vsub.f32 %v20711_v20, %v20712_v39 }
0x20f9   :  { %26442 = vmatprep.subr.mxu1 %v30764_v50 }
0x20fa   :  { %26443 = vmatpush3.msra.mxu1 %v30764_v50  ;;  %26456 = vmatprep.mubr.f32.mxu1 %v20702_v21  ;;  %v20703_v43 = vsub.f32 %v20701_v2, %v20702_v21  ;;  %v20714_v0 = vand.u32 4294901760, %v20713_v42 }
0x20fb   :  { %26444 = vmatprep.subr.mxu1 %v30777_v19 }
0x20fc   :  { %26445 = vmatpush3.msra.mxu1 %v30777_v19  ;;  %v20704_v56 = vand.u32 4294901760, %v20703_v43 }
0x20fd   :  { %26446 = vmatprep.subr.mxu1 %v30792_v48 }
0x20fe   :  { %26447 = vmatpush3.msra.mxu1 %v30792_v48  ;;  %26399 = vmatprep.mubr.f32.mxu0 %v20704_v56 }
0x20ff   :  { %26448 = vmatprep.subr.mxu1 %v30808_v17  ;;  %26400 = vmatmul.mubr.f32.vlgmr.msra.gmra.mxu0 %v20714_v0 }
0x2100   :  { %26422 = vmatpush3.msra.mxu0 %v30762_v36  ;;  %26449 = vmatpush3.msra.mxu1 %v30808_v17 }
0x2101   :  { %26423 = vmatprep.subr.mxu0 %v30775_v18  ;;  %26437 = vmatprep.mubr.f32.mxu0 %v20701_v2 }
0x2102   :  { %26450 = vmatprep.subr.mxu1 %v30819_v61  ;;  %26424 = vmatpush3.msra.mxu0 %v30775_v18 }
0x2103   :  { %26451 = vmatpush3.msra.mxu1 %v30819_v61  ;;  %26425 = vmatprep.subr.mxu0 %v30790_v31 }
0x2104   :  { %26452 = vmatprep.subr.mxu1 %v30833_v59  ;;  %26426 = vmatpush3.msra.mxu0 %v30790_v31 }
0x2105   :  { %26453 = vmatpush3.msra.mxu1 %v30833_v59  ;;  %26427 = vmatprep.subr.mxu0 %v30805_v32 }
0x2106   :  { %26454 = vmatprep.subr.mxu1 %v30849_v7  ;;  %26428 = vmatpush3.msra.mxu0 %v30805_v32 }
0x2107   :  { %26455 = vmatpush3.msra.mxu1 %v30849_v7  ;;  %26429 = vmatprep.subr.mxu0 %v30822_v47 }
0x2108   :  { %26457 = vmatmul.mubr.f32.vlgmr.msra.gmra.mxu1 %v20712_v39  ;;  %26478 = vmatprep.subr.mxu1 %v30756_v4 }
0x2109   :  { %26430 = vmatpush3.msra.mxu0 %v30822_v47  ;;  %26479 = vmatpush3.msra.mxu1 %v30756_v4  ;;  %v21212_v4 = vld [vmem:[%s31086_s17 + $0x18] sm:$0xff] }
0x210a   :  { %26494 = vmatprep.mubr.f32.mxu1 %v20700_v37  ;;  %26431 = vmatprep.subr.mxu0 %v30831_v23  ;;  %v30948_v36 = vand.u32 4294901760, %v21212_v4 }
0x210b   :  { %26480 = vmatprep.subr.mxu1 %v30764_v50  ;;  %26432 = vmatpush3.msra.mxu0 %v30831_v23 }
0x210c   :  { %26481 = vmatpush3.msra.mxu1 %v30764_v50  ;;  %26433 = vmatprep.subr.mxu0 %v30847_v3  ;;  %v21211_v50 = vld [vmem:[%s31086_s17 + $0x10] sm:$0xff] }
0x210d   :  { %26482 = vmatprep.subr.mxu1 %v30777_v19  ;;  %26434 = vmatpush3.msra.mxu0 %v30847_v3  ;;  %v30956_v18 = vand.u32 4294901760, %v21211_v50 }
0x210e   :  { %26483 = vmatpush3.msra.mxu1 %v30777_v19  ;;  %26435 = vmatprep.subr.mxu0 %v30861_v11  ;;  %v21210_v19 = vld [vmem:[%s31086_s17 + $0x8] sm:$0xff] }
0x210f   :  { %26484 = vmatprep.subr.mxu1 %v30792_v48  ;;  %26436 = vmatpush3.msra.mxu0 %v30861_v11  ;;  %v30967_v31 = vsub.f32 %v21211_v50, %v30956_v18 }
0x2110   :  { %26485 = vmatpush3.msra.mxu1 %v30792_v48  ;;  %26438 = vmatmul.mubr.f32.vlgmr.msra.gmra.mxu0 %v20711_v20  ;;  %v30969_v48 = vand.u32 4294901760, %v21210_v19 }
0x2111   :  { %26459 = vmatprep.subr.mxu0 %v30772_v44  ;;  %26486 = vmatprep.subr.mxu1 %v30808_v17 }
0x2112   :  { %26460 = vmatpush3.msra.mxu0 %v30772_v44  ;;  %26475 = vmatprep.mubr.f32.mxu0 %v20700_v37  ;;  %v30954_v44 = vsub.f32 %v21212_v4, %v30948_v36  ;;  %v21757_v4 = vld [vmem:[#allocation2] sm:$0x1] }
0x2113   :  { %26487 = vmatpush3.msra.mxu1 %v30808_v17  ;;  %26461 = vmatprep.subr.mxu0 %v30787_v38  ;;  %v30979_v17 = vand.u32 4294901760, %v30967_v31 }
0x2114   :  { %26488 = vmatprep.subr.mxu1 %v30819_v61  ;;  %26462 = vmatpush3.msra.mxu0 %v30787_v38  ;;  %v30964_v38 = vand.u32 4294901760, %v30954_v44 }
0x2115   :  { %26489 = vmatpush3.msra.mxu1 %v30819_v61  ;;  %26463 = vmatprep.subr.mxu0 %v30802_v45  ;;  %v21350_v23 = vsub.f32 %v30967_v31, %v30979_v17 }
0x2116   :  { %26490 = vmatprep.subr.mxu1 %v30833_v59  ;;  %26464 = vmatpush3.msra.mxu0 %v30802_v45  ;;  %v21209_v45 = vld [vmem:[%s31086_s17] sm:$0xff]  ;;  %v21343_v32 = vsub.f32 %v30954_v44, %v30964_v38 }
0x2117   :  { %26491 = vmatpush3.msra.mxu1 %v30833_v59  ;;  %26465 = vmatprep.subr.mxu0 %v30817_v27  ;;  %v30984_v61 = vand.u32 4294901760, %v21209_v45 }
0x2118   :  { %26492 = vmatprep.subr.mxu1 %v30849_v7  ;;  %26466 = vmatpush3.msra.mxu0 %v30817_v27  ;;  %v30982_v27 = vsub.f32 %v21210_v19, %v30969_v48  ;;  %v21344_v47 = vand.u32 4294901760, %v21343_v32 }
0x2119   :  { %26493 = vmatpush3.msra.mxu1 %v30849_v7  ;;  %26467 = vmatprep.subr.mxu0 %v30837_v52 }
0x211a   :  { %26495 = vmatmul.mubr.f32.vlgmr.msra.gmra.mxu1 %v30876_v40  ;;  %26468 = vmatpush3.msra.mxu0 %v30837_v52  ;;  %v30991_v59 = vand.u32 4294901760, %v30982_v27  ;;  %v30994_v52 = vsub.f32 %v21209_v45, %v30984_v61  ;;  %v21756_v45 = vld [vmem:[#allocation23] sm:$0x1] }
0x211b   :  { %26469 = vmatprep.subr.mxu0 %v30844_v24  ;;  %26508 = vmatprep.subr.mxu1 %v21344_v47 }
0x211c   :  { %26470 = vmatpush3.msra.mxu0 %v30844_v24  ;;  %v21351_v24 = vand.u32 4294901760, %v21350_v23  ;;  %v21357_v3 = vsub.f32 %v30982_v27, %v30991_v59  ;;  %v31001_v7 = vand.u32 4294901760, %v30994_v52  ;;  %26509 = vmatpush3.msra.mxu1 %v21344_v47  ;;  %v21768_v47 = vsel %vm1077_vm1, %v21756_v45, 0 }
0x211d   :  { %26471 = vmatprep.subr.mxu0 %v30858_v9 }
0x211e   :  { %26472 = vmatpush3.msra.mxu0 %v30858_v9  ;;  %26510 = vmatprep.subr.mxu1 %v21351_v24  ;;  %v21358_v9 = vand.u32 4294901760, %v21357_v3  ;;  %v21364_v11 = vsub.f32 %v30994_v52, %v31001_v7 }
0x211f   :  { %26473 = vmatprep.subr.mxu0 %v30868_v14  ;;  %26511 = vmatpush3.msra.mxu1 %v21351_v24  ;;  %v21843_v24 = vand.u32 4294901760, %v21768_v47 }
0x2120   :  { %26474 = vmatpush3.msra.mxu0 %v30868_v14  ;;  %26512 = vmatprep.subr.mxu1 %v21358_v9  ;;  %v21365_v14 = vand.u32 4294901760, %v21364_v11 }
0x2121   :  { %26476 = vmatmul.mubr.f32.vlgmr.msra.gmra.mxu0 %v30876_v40  ;;  %26497 = vmatprep.subr.mxu0 %v30948_v36 }
0x2122   :  { %26498 = vmatpush3.msra.mxu0 %v30948_v36  ;;  %26513 = vmatpush3.msra.mxu1 %v21358_v9 }
0x2123   :  { %26499 = vmatprep.subr.mxu0 %v30956_v18  ;;  %26514 = vmatprep.subr.mxu1 %v21365_v14 }
0x2124   :  { %26500 = vmatpush3.msra.mxu0 %v30956_v18  ;;  %26515 = vmatpush3.msra.mxu1 %v21365_v14 }
0x2125   :  { %26501 = vmatprep.subr.mxu0 %v30969_v48  ;;  %26530 = vmatprep.subr.mxu1 %v30948_v36 }
0x2126   :  { %26502 = vmatpush3.msra.mxu0 %v30969_v48 }
0x2127   :  { %26503 = vmatprep.subr.mxu0 %v30984_v61 }
0x2128   :  { %26504 = vmatpush3.msra.mxu0 %v30984_v61 }
0x2129   :  { %26519 = vmatprep.subr.mxu0 %v30954_v44 }
0x21b7   :  { %v26420_v53 = vpop.f32.mrf.mxu1 }
0x21b9   :  { %v20827_v58 = vpop.f32.mrf.mxu1 }
0x21bf   :  { %v26401_v15 = vpop.f32.mrf.mxu0 }
0x21c0   :  { %v20717_v54 = vadd.f32 %v26401_v15, %v22282_v46 }
0x21c1   :  { %v20706_v41 = vpop.f32.mrf.mxu0 }
0x21c2   :  { %v20707_v1 = vadd.f32 %v22282_v46, %v20706_v41  ;;  %v20834_v5 = vadd.f32 %v26420_v53, %v20717_v54  ;;  %v21844_v46 = vsub.f32 %v21768_v47, %v21843_v24 }
0x21c4   :  { %v20828_v16 = vadd.f32 %v20827_v58, %v20707_v1 }
0x21c8   :  { %v26458_v12 = vpop.f32.mrf.mxu1 }
0x21ca   :  { %v21009_v49 = vpop.f32.mrf.mxu1 }
0x21d0   :  { %v26439_v60 = vpop.f32.mrf.mxu0 }
0x21d1   :  { %v20929_v57 = vadd.f32 %v26439_v60, %v20834_v5  ;;  %v21845_v5 = vand.u32 4294901760, %v21844_v46 }
0x21d2   :  { %v20921_v10 = vpop.f32.mrf.mxu0 }
0x21d3   :  { %v20922_v22 = vadd.f32 %v20921_v10, %v20828_v16  ;;  %v21018_v29 = vadd.f32 %v26458_v12, %v20929_v57 }
0x21d5   :  { %v21010_v55 = vadd.f32 %v21009_v49, %v20922_v22  ;;  %v21846_v22 = vsub.f32 %v21844_v46, %v21845_v5 }
0x21da   :  { %v26496_v62 = vpop.f32.mrf.mxu1 }
0x21dc   :  { %v21197_v63 = vpop.f32.mrf.mxu1 }
0x21e1   :  { %v26477_v51 = vpop.f32.mrf.mxu0 }
0x21e2   :  { %v21119_v13 = vadd.f32 %v26477_v51, %v21018_v29 }
0x21e3   :  { %v21112_v26 = vpop.f32.mrf.mxu0 }
0x21e4   :  { %v21204_v28 = vadd.f32 %v26496_v62, %v21119_v13  ;;  %v21113_v6 = vadd.f32 %v21112_v26, %v21010_v55  ;;  %v21847_v13 = vand.u32 4294901760, %v21846_v22 }
0x21e6   :  { %v21208_v33 = vmax.f32 %v21204_v28, 0.0  ;;  %v21198_v8 = vadd.f32 %v21197_v63, %v21113_v6 }
0x21e8   :  { %v21224_v34 = vsel %vm258_vm0, %v21208_v33, 0  ;;  %v21207_v25 = vmax.f32 %v21198_v8, 0.0  ;;  %v21763_v33 = vlaneseq }
0x21e9   :  { %v21305_v40 = vand.u32 4294901760, %v21224_v34 }
0x21ea   :  { %v21221_v30 = vsel %vm258_vm0, %v21207_v25, 0  ;;  %v21764_v8 = vshrl.u32 %v21763_v33, 7 }
0x21eb   :  { %v21306_v20 = vsub.f32 %v21224_v34, %v21305_v40  ;;  %v21295_v37 = vand.u32 4294901760, %v21221_v30 }
0x21ec   :  { %v21765_v25 = vsub.s32 0, %v21764_v8 }
0x21ed   :  { %v21307_v39 = vand.u32 4294901760, %v21306_v20  ;;  %v21296_v2 = vsub.f32 %v21221_v30, %v21295_v37  ;;  %26516 = vmatprep.mubr.f32.mxu1 %v21295_v37 }
0x21ee   :  { %26517 = vmatmul.mubr.f32.vlgmr.msra.gmra.mxu1 %v21305_v40 }
0x21ef   :  { %26531 = vmatpush3.msra.mxu1 %v30948_v36  ;;  %v21297_v21 = vand.u32 4294901760, %v21296_v2  ;;  %v21308_v42 = vsub.f32 %v21306_v20, %v21307_v39 }
0x21f0   :  { %26532 = vmatprep.subr.mxu1 %v30956_v18 }
0x21f1   :  { %26533 = vmatpush3.msra.mxu1 %v30956_v18  ;;  %26538 = vmatprep.mubr.f32.mxu1 %v21297_v21  ;;  %v21298_v43 = vsub.f32 %v21296_v2, %v21297_v21  ;;  %v21309_v0 = vand.u32 4294901760, %v21308_v42 }
0x21f2   :  { %26534 = vmatprep.subr.mxu1 %v30969_v48 }
0x21f3   :  { %26535 = vmatpush3.msra.mxu1 %v30969_v48  ;;  %v21299_v56 = vand.u32 4294901760, %v21298_v43 }
0x21f4   :  { %26536 = vmatprep.subr.mxu1 %v30984_v61 }
0x21f5   :  { %26537 = vmatpush3.msra.mxu1 %v30984_v61  ;;  %26505 = vmatprep.mubr.f32.mxu0 %v21299_v56 }
0x21f6   :  { %26539 = vmatmul.mubr.f32.vlgmr.msra.gmra.mxu1 %v21307_v39  ;;  %26552 = vmatprep.subr.mxu1 %v30948_v36 }
0x21f7   :  { %26506 = vmatmul.mubr.f32.vlgmr.msra.gmra.mxu0 %v21309_v0  ;;  %26553 = vmatpush3.msra.mxu1 %v30948_v36  ;;  %v27080_v36 = vmov 0  }
0x21f8   :  { %26520 = vmatpush3.msra.mxu0 %v30954_v44  ;;  %26560 = vmatprep.mubr.f32.mxu1 %v21295_v37  ;;  %v22283_v44 = vld [vmem:[#allocation22] ss:$0 sm:$0xff] }
0x21f9   :  { %26521 = vmatprep.subr.mxu0 %v30967_v31  ;;  %26527 = vmatprep.mubr.f32.mxu0 %v21296_v2 }
0x21fa   :  { %26554 = vmatprep.subr.mxu1 %v30956_v18  ;;  %26522 = vmatpush3.msra.mxu0 %v30967_v31 }
0x21fb   :  { %26555 = vmatpush3.msra.mxu1 %v30956_v18  ;;  %26523 = vmatprep.subr.mxu0 %v30982_v27 }
0x21fc   :  { %26556 = vmatprep.subr.mxu1 %v30969_v48  ;;  %26524 = vmatpush3.msra.mxu0 %v30982_v27 }
0x21fd   :  { %26557 = vmatpush3.msra.mxu1 %v30969_v48  ;;  %26525 = vmatprep.subr.mxu0 %v30994_v52 }
0x21fe   :  { %26558 = vmatprep.subr.mxu1 %v30984_v61  ;;  %26526 = vmatpush3.msra.mxu0 %v30994_v52 }
0x21ff   :  { %26559 = vmatpush3.msra.mxu1 %v30984_v61  ;;  %26528 = vmatmul.mubr.f32.vlgmr.msra.gmra.mxu0 %v21306_v20 }
0x2200   :  { %26541 = vmatprep.subr.mxu0 %v30964_v38  ;;  %26561 = vmatmul.mubr.f32.vlgmr.msra.gmra.mxu1 %v21305_v40 }
0x2201   :  { %26542 = vmatpush3.msra.mxu0 %v30964_v38  ;;  %26549 = vmatprep.mubr.f32.mxu0 %v21295_v37 }
0x2202   :  { %26543 = vmatprep.subr.mxu0 %v30979_v17  ;;  %26570 = vmatprep.subr.mxu1 %v31270_v35 }
0x2203   :  { %26544 = vmatpush3.msra.mxu0 %v30979_v17  ;;  %26574 = vmatprep.mubr.msk.f32.mxu1 %vm27076_vm2, %v31270_v35 }
0x2204   :  { %26545 = vmatprep.subr.mxu0 %v30991_v59  ;;  %26627 = vset.pattern.permute.xlu0 %v27080_v36 }
0x2205   :  { %26546 = vmatpush3.msra.mxu0 %v30991_v59  ;;  %21760 = vperm.xlu0 %26627, %v21757_v4  }
0x2206   :  { %26547 = vmatprep.subr.mxu0 %v31001_v7 }
0x2207   :  { %26548 = vmatpush3.msra.mxu0 %v31001_v7 }
0x2208   :  { %26550 = vmatmul.mubr.f32.vlgmr.msra.gmra.mxu0 %v21305_v40  ;;  %26563 = vmatprep.subr.mxu0 %v31270_v35 }
0x2209   :  { %26567 = vmatprep.mubr.msk.f32.mxu0 %vm27076_vm2, %v31270_v35 }
0x2280   :  { %v21761_v40 = vpop.permute.xlu0 %21760 }
0x2281   :  { %v21766_v20 = vrot.slane %v21761_v40, %v21765_v25 }
0x22ae   :  { %v26518_v18 = vpop.f32.mrf.mxu1 }
0x22b0   :  { %v21402_v32 = vpop.f32.mrf.mxu1 }
0x22b6   :  { %v26540_v27 = vpop.f32.mrf.mxu1 }
0x22b7   :  { %v26507_v50 = vpop.f32.mrf.mxu0 }
0x22b8   :  { %v21312_v38 = vadd.f32 %v26507_v50, %v22283_v44  ;;  %v21572_v3 = vpop.f32.mrf.mxu1 }
0x22b9   :  { %v21301_v19 = vpop.f32.mrf.mxu0 }
0x22ba   :  { %v21302_v31 = vadd.f32 %v22283_v44, %v21301_v19  ;;  %v21409_v17 = vadd.f32 %v26518_v18, %v21312_v38 }
0x22bc   :  { %v21403_v59 = vadd.f32 %v21402_v32, %v21302_v31 }
0x22bf   :  { %v26529_v48 = vpop.f32.mrf.mxu0 }
0x22c0   :  { %v21496_v23 = vadd.f32 %v26529_v48, %v21409_v17  ;;  %v26562_v9 = vpop.f32.mrf.mxu1 }
0x22c1   :  { %v21488_v61 = vpop.f32.mrf.mxu0 }
0x22c2   :  { %v21489_v52 = vadd.f32 %v21488_v61, %v21403_v59  ;;  %v21581_v7 = vadd.f32 %v26540_v27, %v21496_v23  ;;  %v21744_v60 = vpop.f32.mrf.mxu1 }
0x22c4   :  { %v21573_v15 = vadd.f32 %v21572_v3, %v21489_v52 }
0x22c8   :  { %v26551_v11 = vpop.f32.mrf.mxu0 }
0x22c9   :  { %v21670_v14 = vadd.f32 %v26551_v11, %v21581_v7 }
0x22ca   :  { %v21663_v53 = vpop.f32.mrf.mxu0 }
0x22cb   :  { %v21751_v41 = vadd.f32 %v26562_v9, %v21670_v14  ;;  %v21664_v54 = vadd.f32 %v21663_v53, %v21573_v15 }
0x22cd   :  { %v21755_v1 = vmax.f32 %v21751_v41, 0.0  ;;  %v21745_v58 = vadd.f32 %v21744_v60, %v21664_v54 }
0x22cf   :  { %v21774_v12 = vsel %vm1077_vm1, %v21755_v1, 0  ;;  %v21754_v10 = vmax.f32 %v21745_v58, 0.0 }
0x22d0   :  { %v21805_v57 = vand.u32 4294901760, %v21774_v12 }
0x22d1   :  { %v21771_v16 = vsel %vm1077_vm1, %v21754_v10, 0 }
0x22d2   :  { %v21883_v49 = vsub.f32 %v21774_v12, %v21805_v57  ;;  %v21808_v29 = vand.u32 4294901760, %v21771_v16  ;;  %26564 = vmatpush3.xpose.msra.mxu0 %v21805_v57 }
0x22d3   :  { %26565 = vmatprep.subr.mxu0 %v31270_v35 }
0x22d4   :  { %v21890_v62 = vsub.f32 %v21771_v16, %v21808_v29  ;;  %v21884_v51 = vand.u32 4294901760, %v21883_v49 }
0x22d6   :  { %26566 = vmatpush3.xpose.msra.mxu0 %v21808_v29  ;;  %v21885_v55 = vsub.f32 %v21883_v49, %v21884_v51  ;;  %v21891_v26 = vand.u32 4294901760, %v21890_v62 }
0x22d7   :  { %26577 = vmatprep.subr.mxu0 %v31270_v35 }
0x22d8   :  { %v21886_v28 = vand.u32 4294901760, %v21885_v55  ;;  %v21892_v6 = vsub.f32 %v21890_v62, %v21891_v26 }
0x22d9   :  { %26568 = vmatmul.mubr.f32.vlgmr.msra.gmra.mxu0 %v21847_v13 }
0x22da   :  { %26571 = vmatpush3.xpose.msra.mxu1 %v21886_v28  ;;  %26578 = vmatpush3.xpose.msra.mxu0 %v21883_v49  ;;  %v21893_v63 = vand.u32 4294901760, %v21892_v6 }
0x22db   :  { %26572 = vmatprep.subr.mxu1 %v31270_v35  ;;  %26579 = vmatprep.subr.mxu0 %v31270_v35 }
0x22dc   :  { %26581 = vmatprep.mubr.msk.f32.mxu0 %vm27076_vm2, %v31270_v35 }
0x22de   :  { %26573 = vmatpush3.xpose.msra.mxu1 %v21893_v63  ;;  %26580 = vmatpush3.xpose.msra.mxu0 %v21890_v62 }
0x22df   :  { %26584 = vmatprep.subr.mxu1 %v31270_v35  ;;  %26591 = vmatprep.subr.mxu0 %v31270_v35 }
0x22e1   :  { %26575 = vmatmul.mubr.f32.vlgmr.msra.gmra.mxu1 %v21843_v24  ;;  %26582 = vmatmul.mubr.f32.vlgmr.msra.gmra.mxu0 %v21844_v46 }
0x22e2   :  { %26585 = vmatpush3.xpose.msra.mxu1 %v21805_v57  ;;  %26592 = vmatpush3.xpose.msra.mxu0 %v21884_v51 }
0x22e3   :  { %26586 = vmatprep.subr.mxu1 %v31270_v35  ;;  %26593 = vmatprep.subr.mxu0 %v31270_v35 }
0x22e4   :  { %26588 = vmatprep.mubr.msk.f32.mxu1 %vm27076_vm2, %v31270_v35  ;;  %26595 = vmatprep.mubr.msk.f32.mxu0 %vm27076_vm2, %v31270_v35 }
0x22e6   :  { %26587 = vmatpush3.xpose.msra.mxu1 %v21808_v29  ;;  %26594 = vmatpush3.xpose.msra.mxu0 %v21891_v26 }
0x22e7   :  { %26598 = vmatprep.subr.mxu1 %v31270_v35 }
0x22e9   :  { %26589 = vmatmul.mubr.f32.vlgmr.msra.gmra.mxu1 %v21845_v5  ;;  %26596 = vmatmul.mubr.f32.vlgmr.msra.gmra.mxu0 %v21843_v24 }
0x22ea   :  { %26599 = vmatpush3.xpose.msra.mxu1 %v21805_v57  ;;  %26602 = vmatprep.mubr.msk.f32.mxu1 %vm27076_vm2, %v31270_v35 }
0x22eb   :  { %26600 = vmatprep.subr.mxu1 %v31270_v35 }
0x22ee   :  { %26601 = vmatpush3.xpose.msra.mxu1 %v21808_v29 }
0x22f1   :  { %26603 = vmatmul.mubr.f32.vlgmr.msra.gmra.mxu1 %v21843_v24 }
0x2399   :  { %v21849_v34 = vpop.f32.mrf.mxu0 }
0x239a   :  { %v21850_v2 = vadd.f32 %v21849_v34, %v21766_v20 }
0x239b   :  { %v26569_v30 = vpop.f32.mrf.mxu0 }
0x23a1   :  { %v21930_v37 = vpop.f32.mrf.mxu1  ;;  %v22006_v39 = vpop.f32.mrf.mxu0 }
0x23a2   :  { %v21931_v43 = vadd.f32 %v21930_v37, %v21850_v2 }
0x23a3   :  { %v26576_v21 = vpop.f32.mrf.mxu1  ;;  %v26583_v42 = vpop.f32.mrf.mxu0 }
0x23a4   :  { %v22007_v4 = vadd.f32 %v22006_v39, %v21931_v43 }
0x23a9   :  { %v22081_v56 = vpop.f32.mrf.mxu1  ;;  %v22158_v0 = vpop.f32.mrf.mxu0 }
0x23aa   :  { %v22082_v50 = vadd.f32 %v22081_v56, %v22007_v4 }
0x23ab   :  { %v26590_v36 = vpop.f32.mrf.mxu1  ;;  %v26597_v35 = vpop.f32.mrf.mxu0 }
0x23ac   :  { %v22159_v44 = vadd.f32 %v22158_v0, %v22082_v50 }
0x23b1   :  { %v22231_v18 = vpop.f32.mrf.mxu1 }
0x23b2   :  { %v22232_v19 = vadd.f32 %v22231_v18, %v22159_v44 }
0x23b3   :  { %v26604_v38 = vpop.f32.mrf.mxu1 }
0x23b4   :  { %v22284_v31 = vmul.f32 -1.442695, %v22232_v19 }
0x23b6   :  { %26756 = vpow2.f32 %v22284_v31 }
0x23c3   :  { %v26757_v48 = vpop.eup %26756 }
0x23c4   :  { %v22238_v45 = vadd.f32 1.0, %v26757_v48 }
0x23c6   :  { %26758 = vrcp.f32 %v22238_v45 }
0x23d3   :  { %v26759_v32 = vpop.eup %26758 }
0x23d4   :  { %22242 = vst.msk [vmem:[%s31090_s21] sm:$0x1] %vm22241_vm5, %v26759_v32 }
0x23d5   :  { %22247 = vsyncpa [#allocation4], 1 }
0x23d6   :  { %22248 = vsyncpa [#allocation6], 1 }
0x23d7   :  { %22249 = vsyncpa [#allocation9], 1 }
0x23d8   :  { %22250 = vsyncpa [#allocation12], 1 }
0x23d9   :  { %22251 = vsyncpa [#allocation15], 1 }
0x23da   :  { %22252 = vsyncpa [#allocation18], 1 }
0x23db   :  { %22253 = vsyncpa [#allocation21], 1 }
0x23dc   :  { %22254 = vsyncpa [#allocation24], 1 }

</bundles_post_ra>
